<compile_context>
chip_gen: v5e
topology: v5e:2x2
jax: 0.10.0
libtpu: 0.0.40
codegen_flags: <defaults>
</compile_context>

<pallas_src>
import functools

import jax
import jax.numpy as jnp
from jax.experimental import pallas as pl
from jax.experimental.pallas import tpu as pltpu

_VMEM_LIMIT = 32 * 1024 * 1024  # explicit scoped-VMEM budget (safe on v5e/v6e/v7x)


# ----------------------------------------------------------------------------
# Kernel 1: fused 3x3 SAME conv (im2col-free) + bias + activation.
#   Grid iterates over images; each step DMAs one halo-padded image tile and
#   accumulates 9 shifted bf16 matmuls into an f32 accumulator.
#   out_mode="nc": store (H*W, Cout)             (encoder, feeds attention)
#   out_mode="cn": store lane-dense (Cout, H*W)  (decoder, NCHW fused in-kernel)
# ----------------------------------------------------------------------------
def _conv3x3_kernel(xp_ref, w_ref, b_ref, o_ref, *, H, W, act, out_mode,
                    cout_real):
    xp = xp_ref[0]                                    # (H+2, W+2, Cin) bf16
    cin = xp.shape[-1]
    cout = w_ref.shape[-1]
    acc = jnp.zeros((H * W, cout), jnp.float32)
    tap = 0
    for dh in range(3):
        for dw in range(3):
            patch = xp[dh:dh + H, dw:dw + W, :].reshape(H * W, cin)
            acc = acc + jnp.dot(patch, w_ref[tap],
                                preferred_element_type=jnp.float32)
            tap += 1
    acc = acc + b_ref[...]                            # (1, Cout) broadcast, f32
    if act == "leaky_relu":
        acc = jnp.where(acc >= 0.0, acc, 0.2 * acc)
    elif act == "tanh":
        acc = jnp.tanh(acc)

    if out_mode == "nc":
        o_ref[0] = acc.astype(o_ref.dtype)            # (H*W, Cout)
    else:  # "cn": fused NHWC->NCHW, lane-dense store over H*W lanes
        acc_t = jnp.transpose(acc)                    # (Cout_pad, H*W)
        o_ref[0] = acc_t[:cout_real, :].astype(o_ref.dtype)


def conv3x3(x, w_taps, b, act, *, out_mode="nc", cout_real=None,
            out_dtype=jnp.bfloat16):
    """x: (Bc, H, W, Cin) bf16.  w_taps: (9, Cin, Cout).  b: (Cout,) f32."""
    Bc, H, W, Cin = x.shape
    _, Cin_w, Cout = w_taps.shape
    assert Cin == Cin_w
    xp = jnp.pad(x, ((0, 0), (1, 1), (1, 1), (0, 0)))  # halo pad only (no 9x im2col)

    if out_mode == "nc":
        out_shape = jax.ShapeDtypeStruct((Bc, H * W, Cout), out_dtype)
        out_spec = pl.BlockSpec((1, H * W, Cout), lambda i: (i, 0, 0))
    else:
        out_shape = jax.ShapeDtypeStruct((Bc, cout_real, H * W), out_dtype)
        out_spec = pl.BlockSpec((1, cout_real, H * W), lambda i: (i, 0, 0))

    kernel = functools.partial(_conv3x3_kernel, H=H, W=W, act=act,
                               out_mode=out_mode, cout_real=cout_real)
    return pl.pallas_call(
        kernel,
        out_shape=out_shape,
        grid_spec=pltpu.PrefetchScalarGridSpec(
            num_scalar_prefetch=0,
            grid=(Bc,),
            in_specs=[
                pl.BlockSpec((1, H + 2, W + 2, Cin), lambda i: (i, 0, 0, 0)),
                pl.BlockSpec((9, Cin, Cout), lambda i: (0, 0, 0)),
                pl.BlockSpec((1, Cout), lambda i: (0, 0)),
            ],
            out_specs=out_spec,
        ),
        compiler_params=pltpu.CompilerParams(
            dimension_semantics=("parallel",),
            vmem_limit_bytes=_VMEM_LIMIT),
    )(xp, w_taps, b.reshape(1, Cout))


# ----------------------------------------------------------------------------
# Kernel 2: cross-branch pose attention, KV-tiled with online softmax.
#   Q from the target branch, K/V from the source branch, residual add.
#   1/sqrt(C) is folded into Wq; [Wk|Wv] is one (C, 2C) weight.
# ----------------------------------------------------------------------------
def _pose_attn_kernel(ft_ref, fs_ref, wq_ref, wkv_ref, o_ref,
                      q_scr, m_scr, l_scr, acc_scr):
    kv = pl.program_id(1)
    C = wq_ref.shape[1]

    @pl.when(kv == 0)
    def _():
        q = jnp.dot(ft_ref[0], wq_ref[...], preferred_element_type=jnp.float32)
        q_scr[...] = q.astype(q_scr.dtype)
        m_scr[...] = jnp.full_like(m_scr, -jnp.inf)
        l_scr[...] = jnp.zeros_like(l_scr)
        acc_scr[...] = jnp.zeros_like(acc_scr)

    kvp = jnp.dot(fs_ref[0], wkv_ref[...],
                  preferred_element_type=jnp.float32)          # (tk, 2C)
    k = kvp[:, :C].astype(jnp.bfloat16)
    v = kvp[:, C:].astype(jnp.bfloat16)

    s = jnp.dot(q_scr[...], k.T, preferred_element_type=jnp.float32)  # (N, tk)
    m_prev = m_scr[...]
    m_new = jnp.maximum(m_prev, jnp.max(s, axis=-1, keepdims=True))
    alpha = jnp.exp(m_prev - m_new)
    p = jnp.exp(s - m_new)
    l_scr[...] = alpha * l_scr[...] + jnp.sum(p, axis=-1, keepdims=True)
    acc_scr[...] = alpha * acc_scr[...] + jnp.dot(
        p.astype(jnp.bfloat16), v, preferred_element_type=jnp.float32)
    m_scr[...] = m_new

    @pl.when(kv == pl.num_programs(1) - 1)
    def _():
        inv = pl.reciprocal(l_scr[...], approx=True)
        out = ft_ref[0].astype(jnp.float32) + acc_scr[...] * inv
        o_ref[0] = out.astype(o_ref.dtype)


def pose_attention(ft, fs, wq, wkv, *, tk=128):
    """ft, fs: (B, N, C) bf16.  wq: (C, C) (scale folded).  wkv: (C, 2C)."""
    B, N, C = ft.shape
    if N % tk != 0:
        tk = N
    nk = N // tk
    return pl.pallas_call(
        _pose_attn_kernel,
        out_shape=jax.ShapeDtypeStruct((B, N, C), jnp.bfloat16),
        grid_spec=pltpu.PrefetchScalarGridSpec(
            num_scalar_prefetch=0,
            grid=(B, nk),
            in_specs=[
                pl.BlockSpec((1, N, C), lambda b, k: (b, 0, 0)),
                pl.BlockSpec((1, tk, C), lambda b, k: (b, k, 0)),
                pl.BlockSpec((C, C), lambda b, k: (0, 0)),
                pl.BlockSpec((C, 2 * C), lambda b, k: (0, 0)),
            ],
            out_specs=pl.BlockSpec((1, N, C), lambda b, k: (b, 0, 0)),
            scratch_shapes=[
                pltpu.VMEM((N, C), jnp.bfloat16),   # q
                pltpu.VMEM((N, 1), jnp.float32),    # running max
                pltpu.VMEM((N, 1), jnp.float32),    # running denom
                pltpu.VMEM((N, C), jnp.float32),    # output accumulator
            ],
        ),
        compiler_params=pltpu.CompilerParams(
            dimension_semantics=("parallel", "arbitrary"),
            vmem_limit_bytes=_VMEM_LIMIT),
    )(ft, fs, wq, wkv)


# ----------------------------------------------------------------------------
# DPTN-style generator + model wrapper
# ----------------------------------------------------------------------------
_COUT_PAD = 128  # pad decoder output channels so the MXU/store path is full-width


def init_generator_params(key, img_ch=3, map_ch=4, hidden=32):
    cin = img_ch + 3 * map_ch + img_ch  # src_img + src_map + pose_map + can_img + can_map
    ks = jax.random.split(key, 4)
    s = 0.05
    enc_w = s * jax.random.normal(ks[0], (9, cin, hidden), jnp.float32)
    # fold 1/sqrt(C) attention scale into Wq
    wq = (s / (hidden ** 0.5)) * jax.random.normal(ks[1], (hidden, hidden), jnp.float32)
    wkv = s * jax.random.normal(ks[2], (hidden, 2 * hidden), jnp.float32)
    dec_core = s * jax.random.normal(ks[3], (9, hidden, img_ch), jnp.float32)
    dec_w = jnp.zeros((9, hidden, _COUT_PAD), jnp.float32).at[:, :, :img_ch].set(dec_core)
    return {
        "enc_w": enc_w.astype(jnp.bfloat16),
        "enc_b": jnp.zeros((hidden,), jnp.float32),
        "wq": wq.astype(jnp.bfloat16),
        "wkv": wkv.astype(jnp.bfloat16),
        "dec_w": dec_w.astype(jnp.bfloat16),
        "dec_b": jnp.zeros((_COUT_PAD,), jnp.float32),
        "img_ch": img_ch,
    }


def dptn_generator(params, src_image, src_map, tgt_map, can_image, can_map):
    """Inputs NHWC f32.  Returns (fake_image_t, fake_image_s) in NCHW."""
    B, H, W, _ = src_image.shape
    img_ch = params["img_ch"]

    # Target branch conditions on the target pose, source branch on its own
    # pose (self-reconstruction) — DPTN dual-task design.  Fuse both branches
    # along batch so encoder/decoder run as single pallas_calls.
    x_t = jnp.concatenate([src_image, src_map, tgt_map, can_image, can_map], -1)
    x_s = jnp.concatenate([src_image, src_map, src_map, can_image, can_map], -1)
    x = jnp.concatenate([x_t, x_s], 0).astype(jnp.bfloat16)        # (2B, H, W, Cin)

    f = conv3x3(x, params["enc_w"], params["enc_b"], "leaky_relu",
                out_mode="nc", out_dtype=jnp.bfloat16)             # (2B, H*W, hid)
    f_t, f_s = f[:B], f[B:]

    f_t2 = pose_attention(f_t, f_s, params["wq"], params["wkv"])   # (B, H*W, hid)

    hid = f.shape[-1]
    dec_in = jnp.concatenate([f_t2, f_s], 0).reshape(2 * B, H, W, hid)
    out = conv3x3(dec_in, params["dec_w"], params["dec_b"], "tanh",
                  out_mode="cn", cout_real=img_ch,
                  out_dtype=jnp.float32)                           # (2B, 3, H*W)
    out = out.reshape(2 * B, img_ch, H, W)                         # free reshape
    return out[:B], out[B:]


class DPTNModelPallas:
    """Mirrors DPTNModel.forward(data, mode='inference')."""

    def __init__(self, params):
        self.params = params
        self._gen = jax.jit(functools.partial(dptn_generator, params))

    @staticmethod
    def _nchw_to_nhwc(x):
        return jnp.transpose(x, (0, 2, 3, 1)).astype(jnp.float32)

    def preprocess_input(self, data):
        return (data["src_image"], data["src_map"], data["tgt_image"],
                data["tgt_map"], data["canonical_image"], data["canonical_map"])

    def forward(self, data, mode):
        src_image, src_map, _tgt_image, tgt_map, can_image, can_map = \
            self.preprocess_input(data)
        if mode == "inference":
            # outputs are already NCHW (transpose fused into the decoder kernel)
            return self._gen(
                self._nchw_to_nhwc(src_image),
                self._nchw_to_nhwc(src_map),
                self._nchw_to_nhwc(tgt_map),
                self._nchw_to_nhwc(can_image),
                self._nchw_to_nhwc(can_map),
            )
        raise NotImplementedError(
            "only 'inference' mode is implemented (netD / losses not given)")


# ----------------------------------------------------------------------------
if __name__ == "__main__":
    B, IMG_CH, MAP_CH, H, W = 2, 3, 4, 16, 16
    key = jax.random.PRNGKey(0)
    k_params, *k_data = jax.random.split(key, 7)

    data = {
        "src_image":       jax.random.normal(k_data[0], (B, IMG_CH, H, W), jnp.float32),
        "src_map":         jax.random.normal(k_data[1], (B, MAP_CH, H, W), jnp.float32),
        "tgt_image":       jax.random.normal(k_data[2], (B, IMG_CH, H, W), jnp.float32),
        "tgt_map":         jax.random.normal(k_data[3], (B, MAP_CH, H, W), jnp.float32),
        "canonical_image": jax.random.normal(k_data[4], (B, IMG_CH, H, W), jnp.float32),
        "canonical_map":   jax.random.normal(k_data[5], (B, MAP_CH, H, W), jnp.float32),
    }

    params = init_generator_params(k_params, img_ch=IMG_CH, map_ch=MAP_CH, hidden=32)
    model = DPTNModelPallas(params)

    fake_image_t, fake_image_s = model.forward(data, mode="inference")
    jax.block_until_ready((fake_image_t, fake_image_s))

    assert fake_image_t.shape == (B, IMG_CH, H, W)
    assert fake_image_s.shape == (B, IMG_CH, H, W)
    assert bool(jnp.all(jnp.isfinite(fake_image_t)))
    assert bool(jnp.all(jnp.isfinite(fake_image_s)))
    print("KERNEL_OK")
</pallas_src>

<mosaic_0001>
module attributes {stable_mosaic.version = 11 : i64} {
  func.func @_conv3x3_kernel(%arg0: i32, %arg1: memref<1x18x18x18xbf16, #tpu.memory_space<vmem>>, %arg2: memref<9x18x32xbf16, #tpu.memory_space<vmem>>, %arg3: memref<1x32xf32, #tpu.memory_space<vmem>>, %arg4: memref<1x256x32xbf16, #tpu.memory_space<vmem>>) attributes {dimension_semantics = [#tpu.dimension_semantics<parallel>], iteration_bounds = array<i64: 4>, scalar_prefetch = 0 : i64, scratch_operands = 0 : i64, tpu.core_type = #tpu.core_type<tc>, window_params = [{transform_indices = @transform_0, window_bounds = array<i64: 1, 18, 18, 18>}, {pipeline_mode = #tpu.pipeline_mode<synchronous>, transform_indices = @transform_1, window_bounds = array<i64: 9, 18, 32>}, {pipeline_mode = #tpu.pipeline_mode<synchronous>, transform_indices = @transform_2, window_bounds = array<i64: 1, 32>}, {transform_indices = @transform_3, window_bounds = array<i64: 1, 256, 32>}]} {
    %c0 = arith.constant 0 : index
    %c0_0 = arith.constant 0 : index
    %c0_1 = arith.constant 0 : index
    %c0_2 = arith.constant 0 : index
    %0 = vector.load %arg1[%c0, %c0_0, %c0_1, %c0_2] : memref<1x18x18x18xbf16, #tpu.memory_space<vmem>>, vector<1x18x18x18xbf16>
    %1 = vector.shape_cast %0 : vector<1x18x18x18xbf16> to vector<18x18x18xbf16>
    %cst = arith.constant 0.000000e+00 : f32
    %2 = vector.broadcast %cst : f32 to vector<256x32xf32>
    %3 = vector.extract_strided_slice %1 {offsets = [0, 0, 0], sizes = [16, 16, 18], strides = [1, 1, 1]} : vector<18x18x18xbf16> to vector<16x16x18xbf16>
    %4 = vector.shape_cast %3 : vector<16x16x18xbf16> to vector<256x18xbf16>
    %c0_3 = arith.constant 0 : index
    %c0_4 = arith.constant 0 : index
    %c0_5 = arith.constant 0 : index
    %5 = vector.load %arg2[%c0_3, %c0_4, %c0_5] : memref<9x18x32xbf16, #tpu.memory_space<vmem>>, vector<1x18x32xbf16>
    %6 = vector.shape_cast %5 : vector<1x18x32xbf16> to vector<18x32xbf16>
    %cst_6 = arith.constant dense<0.000000e+00> : vector<256x32xf32>
    %7 = tpu.matmul %4, %6, %cst_6 {dimension_numbers = #tpu.dot_dimension_numbers<[1], [0], [0], [1], [0, 0, 1, 1], [], []>} : vector<256x18xbf16>, vector<18x32xbf16>, vector<256x32xf32> -> vector<256x32xf32>
    %8 = arith.addf %2, %7 : vector<256x32xf32>
    %9 = vector.extract_strided_slice %1 {offsets = [0, 1, 0], sizes = [16, 16, 18], strides = [1, 1, 1]} : vector<18x18x18xbf16> to vector<16x16x18xbf16>
    %10 = vector.shape_cast %9 : vector<16x16x18xbf16> to vector<256x18xbf16>
    %c1 = arith.constant 1 : index
    %c0_7 = arith.constant 0 : index
    %c0_8 = arith.constant 0 : index
    %11 = vector.load %arg2[%c1, %c0_7, %c0_8] : memref<9x18x32xbf16, #tpu.memory_space<vmem>>, vector<1x18x32xbf16>
    %12 = vector.shape_cast %11 : vector<1x18x32xbf16> to vector<18x32xbf16>
    %cst_9 = arith.constant dense<0.000000e+00> : vector<256x32xf32>
    %13 = tpu.matmul %10, %12, %cst_9 {dimension_numbers = #tpu.dot_dimension_numbers<[1], [0], [0], [1], [0, 0, 1, 1], [], []>} : vector<256x18xbf16>, vector<18x32xbf16>, vector<256x32xf32> -> vector<256x32xf32>
    %14 = arith.addf %8, %13 : vector<256x32xf32>
    %15 = vector.extract_strided_slice %1 {offsets = [0, 2, 0], sizes = [16, 16, 18], strides = [1, 1, 1]} : vector<18x18x18xbf16> to vector<16x16x18xbf16>
    %16 = vector.shape_cast %15 : vector<16x16x18xbf16> to vector<256x18xbf16>
    %c2 = arith.constant 2 : index
    %c0_10 = arith.constant 0 : index
    %c0_11 = arith.constant 0 : index
    %17 = vector.load %arg2[%c2, %c0_10, %c0_11] : memref<9x18x32xbf16, #tpu.memory_space<vmem>>, vector<1x18x32xbf16>
    %18 = vector.shape_cast %17 : vector<1x18x32xbf16> to vector<18x32xbf16>
    %cst_12 = arith.constant dense<0.000000e+00> : vector<256x32xf32>
    %19 = tpu.matmul %16, %18, %cst_12 {dimension_numbers = #tpu.dot_dimension_numbers<[1], [0], [0], [1], [0, 0, 1, 1], [], []>} : vector<256x18xbf16>, vector<18x32xbf16>, vector<256x32xf32> -> vector<256x32xf32>
    %20 = arith.addf %14, %19 : vector<256x32xf32>
    %21 = vector.extract_strided_slice %1 {offsets = [1, 0, 0], sizes = [16, 16, 18], strides = [1, 1, 1]} : vector<18x18x18xbf16> to vector<16x16x18xbf16>
    %22 = vector.shape_cast %21 : vector<16x16x18xbf16> to vector<256x18xbf16>
    %c3 = arith.constant 3 : index
    %c0_13 = arith.constant 0 : index
    %c0_14 = arith.constant 0 : index
    %23 = vector.load %arg2[%c3, %c0_13, %c0_14] : memref<9x18x32xbf16, #tpu.memory_space<vmem>>, vector<1x18x32xbf16>
    %24 = vector.shape_cast %23 : vector<1x18x32xbf16> to vector<18x32xbf16>
    %cst_15 = arith.constant dense<0.000000e+00> : vector<256x32xf32>
    %25 = tpu.matmul %22, %24, %cst_15 {dimension_numbers = #tpu.dot_dimension_numbers<[1], [0], [0], [1], [0, 0, 1, 1], [], []>} : vector<256x18xbf16>, vector<18x32xbf16>, vector<256x32xf32> -> vector<256x32xf32>
    %26 = arith.addf %20, %25 : vector<256x32xf32>
    %27 = vector.extract_strided_slice %1 {offsets = [1, 1, 0], sizes = [16, 16, 18], strides = [1, 1, 1]} : vector<18x18x18xbf16> to vector<16x16x18xbf16>
    %28 = vector.shape_cast %27 : vector<16x16x18xbf16> to vector<256x18xbf16>
    %c4 = arith.constant 4 : index
    %c0_16 = arith.constant 0 : index
    %c0_17 = arith.constant 0 : index
    %29 = vector.load %arg2[%c4, %c0_16, %c0_17] : memref<9x18x32xbf16, #tpu.memory_space<vmem>>, vector<1x18x32xbf16>
    %30 = vector.shape_cast %29 : vector<1x18x32xbf16> to vector<18x32xbf16>
    %cst_18 = arith.constant dense<0.000000e+00> : vector<256x32xf32>
    %31 = tpu.matmul %28, %30, %cst_18 {dimension_numbers = #tpu.dot_dimension_numbers<[1], [0], [0], [1], [0, 0, 1, 1], [], []>} : vector<256x18xbf16>, vector<18x32xbf16>, vector<256x32xf32> -> vector<256x32xf32>
    %32 = arith.addf %26, %31 : vector<256x32xf32>
    %33 = vector.extract_strided_slice %1 {offsets = [1, 2, 0], sizes = [16, 16, 18], strides = [1, 1, 1]} : vector<18x18x18xbf16> to vector<16x16x18xbf16>
    %34 = vector.shape_cast %33 : vector<16x16x18xbf16> to vector<256x18xbf16>
    %c5 = arith.constant 5 : index
    %c0_19 = arith.constant 0 : index
    %c0_20 = arith.constant 0 : index
    %35 = vector.load %arg2[%c5, %c0_19, %c0_20] : memref<9x18x32xbf16, #tpu.memory_space<vmem>>, vector<1x18x32xbf16>
    %36 = vector.shape_cast %35 : vector<1x18x32xbf16> to vector<18x32xbf16>
    %cst_21 = arith.constant dense<0.000000e+00> : vector<256x32xf32>
    %37 = tpu.matmul %34, %36, %cst_21 {dimension_numbers = #tpu.dot_dimension_numbers<[1], [0], [0], [1], [0, 0, 1, 1], [], []>} : vector<256x18xbf16>, vector<18x32xbf16>, vector<256x32xf32> -> vector<256x32xf32>
    %38 = arith.addf %32, %37 : vector<256x32xf32>
    %39 = vector.extract_strided_slice %1 {offsets = [2, 0, 0], sizes = [16, 16, 18], strides = [1, 1, 1]} : vector<18x18x18xbf16> to vector<16x16x18xbf16>
    %40 = vector.shape_cast %39 : vector<16x16x18xbf16> to vector<256x18xbf16>
    %c6 = arith.constant 6 : index
    %c0_22 = arith.constant 0 : index
    %c0_23 = arith.constant 0 : index
    %41 = vector.load %arg2[%c6, %c0_22, %c0_23] : memref<9x18x32xbf16, #tpu.memory_space<vmem>>, vector<1x18x32xbf16>
    %42 = vector.shape_cast %41 : vector<1x18x32xbf16> to vector<18x32xbf16>
    %cst_24 = arith.constant dense<0.000000e+00> : vector<256x32xf32>
    %43 = tpu.matmul %40, %42, %cst_24 {dimension_numbers = #tpu.dot_dimension_numbers<[1], [0], [0], [1], [0, 0, 1, 1], [], []>} : vector<256x18xbf16>, vector<18x32xbf16>, vector<256x32xf32> -> vector<256x32xf32>
    %44 = arith.addf %38, %43 : vector<256x32xf32>
    %45 = vector.extract_strided_slice %1 {offsets = [2, 1, 0], sizes = [16, 16, 18], strides = [1, 1, 1]} : vector<18x18x18xbf16> to vector<16x16x18xbf16>
    %46 = vector.shape_cast %45 : vector<16x16x18xbf16> to vector<256x18xbf16>
    %c7 = arith.constant 7 : index
    %c0_25 = arith.constant 0 : index
    %c0_26 = arith.constant 0 : index
    %47 = vector.load %arg2[%c7, %c0_25, %c0_26] : memref<9x18x32xbf16, #tpu.memory_space<vmem>>, vector<1x18x32xbf16>
    %48 = vector.shape_cast %47 : vector<1x18x32xbf16> to vector<18x32xbf16>
    %cst_27 = arith.constant dense<0.000000e+00> : vector<256x32xf32>
    %49 = tpu.matmul %46, %48, %cst_27 {dimension_numbers = #tpu.dot_dimension_numbers<[1], [0], [0], [1], [0, 0, 1, 1], [], []>} : vector<256x18xbf16>, vector<18x32xbf16>, vector<256x32xf32> -> vector<256x32xf32>
    %50 = arith.addf %44, %49 : vector<256x32xf32>
    %51 = vector.extract_strided_slice %1 {offsets = [2, 2, 0], sizes = [16, 16, 18], strides = [1, 1, 1]} : vector<18x18x18xbf16> to vector<16x16x18xbf16>
    %52 = vector.shape_cast %51 : vector<16x16x18xbf16> to vector<256x18xbf16>
    %c8 = arith.constant 8 : index
    %c0_28 = arith.constant 0 : index
    %c0_29 = arith.constant 0 : index
    %53 = vector.load %arg2[%c8, %c0_28, %c0_29] : memref<9x18x32xbf16, #tpu.memory_space<vmem>>, vector<1x18x32xbf16>
    %54 = vector.shape_cast %53 : vector<1x18x32xbf16> to vector<18x32xbf16>
    %cst_30 = arith.constant dense<0.000000e+00> : vector<256x32xf32>
    %55 = tpu.matmul %52, %54, %cst_30 {dimension_numbers = #tpu.dot_dimension_numbers<[1], [0], [0], [1], [0, 0, 1, 1], [], []>} : vector<256x18xbf16>, vector<18x32xbf16>, vector<256x32xf32> -> vector<256x32xf32>
    %56 = arith.addf %50, %55 : vector<256x32xf32>
    %c0_31 = arith.constant 0 : index
    %c0_32 = arith.constant 0 : index
    %57 = vector.load %arg3[%c0_31, %c0_32] : memref<1x32xf32, #tpu.memory_space<vmem>>, vector<1x32xf32>
    %58 = vector.broadcast %57 : vector<1x32xf32> to vector<256x32xf32>
    %59 = arith.addf %56, %58 : vector<256x32xf32>
    %cst_33 = arith.constant 0.000000e+00 : f32
    %60 = vector.broadcast %cst_33 : f32 to vector<256x32xf32>
    %61 = arith.cmpf oge, %59, %60 : vector<256x32xf32>
    %cst_34 = arith.constant 2.000000e-01 : f32
    %62 = vector.broadcast %cst_34 : f32 to vector<256x32xf32>
    %63 = arith.mulf %62, %59 : vector<256x32xf32>
    %64 = arith.select %61, %59, %63 : vector<256x32xi1>, vector<256x32xf32>
    %65 = arith.truncf %64 : vector<256x32xf32> to vector<256x32xbf16>
    %c0_35 = arith.constant 0 : index
    %c0_36 = arith.constant 0 : index
    %c0_37 = arith.constant 0 : index
    %66 = vector.load %arg4[%c0_35, %c0_36, %c0_37] : memref<1x256x32xbf16, #tpu.memory_space<vmem>>, vector<1x256x32xbf16>
    %67 = vector.shape_cast %66 : vector<1x256x32xbf16> to vector<256x32xbf16>
    %68 = vector.shape_cast %65 : vector<256x32xbf16> to vector<1x256x32xbf16>
    tpu.vector_store %arg4[%c0_35, %c0_36, %c0_37], %68 {strides = array<i32>} : memref<1x256x32xbf16, #tpu.memory_space<vmem>>, vector<1x256x32xbf16>,
    return
  }
  func.func @transform_0(%arg0: i32) -> (i32, i32, i32, i32) {
    %c0_i32 = arith.constant 0 : i32
    %c0_i32_0 = arith.constant 0 : i32
    %c0_i32_1 = arith.constant 0 : i32
    %c0_i32_2 = arith.constant 0 : i32
    return %arg0, %c0_i32, %c0_i32_0, %c0_i32_1 : i32, i32, i32, i32
  }
  func.func @transform_1(%arg0: i32) -> (i32, i32, i32) {
    %c0_i32 = arith.constant 0 : i32
    %c0_i32_0 = arith.constant 0 : i32
    %c0_i32_1 = arith.constant 0 : i32
    %c0_i32_2 = arith.constant 0 : i32
    return %c0_i32, %c0_i32_0, %c0_i32_1 : i32, i32, i32
  }
  func.func @transform_2(%arg0: i32) -> (i32, i32) {
    %c0_i32 = arith.constant 0 : i32
    %c0_i32_0 = arith.constant 0 : i32
    %c0_i32_1 = arith.constant 0 : i32
    return %c0_i32, %c0_i32_0 : i32, i32
  }
  func.func @transform_3(%arg0: i32) -> (i32, i32, i32) {
    %c0_i32 = arith.constant 0 : i32
    %c0_i32_0 = arith.constant 0 : i32
    %c0_i32_1 = arith.constant 0 : i32
    return %arg0, %c0_i32, %c0_i32_0 : i32, i32, i32
  }
}

module attributes {stable_mosaic.version = 11 : i64} {
  func.func @_pose_attn_kernel(%arg0: i32, %arg1: i32, %arg2: memref<1x256x32xbf16, #tpu.memory_space<vmem>>, %arg3: memref<1x128x32xbf16, #tpu.memory_space<vmem>>, %arg4: memref<32x32xbf16, #tpu.memory_space<vmem>>, %arg5: memref<32x64xbf16, #tpu.memory_space<vmem>>, %arg6: memref<1x256x32xbf16, #tpu.memory_space<vmem>>, %arg7: memref<256x32xbf16, #tpu.memory_space<vmem>>, %arg8: memref<256x1xf32, #tpu.memory_space<vmem>>, %arg9: memref<256x1xf32, #tpu.memory_space<vmem>>, %arg10: memref<256x32xf32, #tpu.memory_space<vmem>>) attributes {dimension_semantics = [#tpu.dimension_semantics<parallel>, #tpu.dimension_semantics<arbitrary>], iteration_bounds = array<i64: 2, 2>, scalar_prefetch = 0 : i64, scratch_operands = 4 : i64, tpu.core_type = #tpu.core_type<tc>, window_params = [{transform_indices = @transform_0, window_bounds = array<i64: 1, 256, 32>}, {transform_indices = @transform_1, window_bounds = array<i64: 1, 128, 32>}, {pipeline_mode = #tpu.pipeline_mode<synchronous>, transform_indices = @transform_2, window_bounds = array<i64: 32, 32>}, {pipeline_mode = #tpu.pipeline_mode<synchronous>, transform_indices = @transform_3, window_bounds = array<i64: 32, 64>}, {transform_indices = @transform_4, window_bounds = array<i64: 1, 256, 32>}]} {
    %c0_i32 = arith.constant 0 : i32
    %0 = arith.cmpi eq, %arg1, %c0_i32 : i32
    %1 = arith.extui %0 : i1 to i32
    %c0_i32_0 = arith.constant 0 : i32
    %2 = arith.cmpi ne, %1, %c0_i32_0 : i32
    scf.if %2 {
      %c0_24 = arith.constant 0 : index
      %c0_25 = arith.constant 0 : index
      %c0_26 = arith.constant 0 : index
      %40 = vector.load %arg2[%c0_24, %c0_25, %c0_26] : memref<1x256x32xbf16, #tpu.memory_space<vmem>>, vector<1x256x32xbf16>
      %41 = vector.shape_cast %40 : vector<1x256x32xbf16> to vector<256x32xbf16>
      %c0_27 = arith.constant 0 : index
      %c0_28 = arith.constant 0 : index
      %42 = vector.load %arg4[%c0_27, %c0_28] : memref<32x32xbf16, #tpu.memory_space<vmem>>, vector<32x32xbf16>
      %cst_29 = arith.constant dense<0.000000e+00> : vector<256x32xf32>
      %43 = tpu.matmul %41, %42, %cst_29 {dimension_numbers = #tpu.dot_dimension_numbers<[1], [0], [0], [1], [0, 0, 1, 1], [], []>} : vector<256x32xbf16>, vector<32x32xbf16>, vector<256x32xf32> -> vector<256x32xf32>
      %44 = arith.truncf %43 : vector<256x32xf32> to vector<256x32xbf16>
      %c0_30 = arith.constant 0 : index
      %c0_31 = arith.constant 0 : index
      %45 = vector.load %arg7[%c0_30, %c0_31] : memref<256x32xbf16, #tpu.memory_space<vmem>>, vector<256x32xbf16>
      tpu.vector_store %arg7[%c0_30, %c0_31], %44 {strides = array<i32>} : memref<256x32xbf16, #tpu.memory_space<vmem>>, vector<256x32xbf16>,
      %cst_32 = arith.constant 0xFF800000 : f32
      %46 = vector.broadcast %cst_32 : f32 to vector<256x1xf32>
      %c0_33 = arith.constant 0 : index
      %c0_34 = arith.constant 0 : index
      %47 = vector.load %arg8[%c0_33, %c0_34] : memref<256x1xf32, #tpu.memory_space<vmem>>, vector<256x1xf32>
      tpu.vector_store %arg8[%c0_33, %c0_34], %46 {strides = array<i32>} : memref<256x1xf32, #tpu.memory_space<vmem>>, vector<256x1xf32>,
      %cst_35 = arith.constant 0.000000e+00 : f32
      %48 = vector.broadcast %cst_35 : f32 to vector<256x1xf32>
      %c0_36 = arith.constant 0 : index
      %c0_37 = arith.constant 0 : index
      %49 = vector.load %arg9[%c0_36, %c0_37] : memref<256x1xf32, #tpu.memory_space<vmem>>, vector<256x1xf32>
      tpu.vector_store %arg9[%c0_36, %c0_37], %48 {strides = array<i32>} : memref<256x1xf32, #tpu.memory_space<vmem>>, vector<256x1xf32>,
      %cst_38 = arith.constant 0.000000e+00 : f32
      %50 = vector.broadcast %cst_38 : f32 to vector<256x32xf32>
      %c0_39 = arith.constant 0 : index
      %c0_40 = arith.constant 0 : index
      %51 = vector.load %arg10[%c0_39, %c0_40] : memref<256x32xf32, #tpu.memory_space<vmem>>, vector<256x32xf32>
      tpu.vector_store %arg10[%c0_39, %c0_40], %50 {strides = array<i32>} : memref<256x32xf32, #tpu.memory_space<vmem>>, vector<256x32xf32>,
    } else {
    }
    %c0 = arith.constant 0 : index
    %c0_1 = arith.constant 0 : index
    %c0_2 = arith.constant 0 : index
    %3 = vector.load %arg3[%c0, %c0_1, %c0_2] : memref<1x128x32xbf16, #tpu.memory_space<vmem>>, vector<1x128x32xbf16>
    %4 = vector.shape_cast %3 : vector<1x128x32xbf16> to vector<128x32xbf16>
    %c0_3 = arith.constant 0 : index
    %c0_4 = arith.constant 0 : index
    %5 = vector.load %arg5[%c0_3, %c0_4] : memref<32x64xbf16, #tpu.memory_space<vmem>>, vector<32x64xbf16>
    %cst = arith.constant dense<0.000000e+00> : vector<128x64xf32>
    %6 = tpu.matmul %4, %5, %cst {dimension_numbers = #tpu.dot_dimension_numbers<[1], [0], [0], [1], [0, 0, 1, 1], [], []>} : vector<128x32xbf16>, vector<32x64xbf16>, vector<128x64xf32> -> vector<128x64xf32>
    %7 = vector.extract_strided_slice %6 {offsets = [0, 0], sizes = [128, 32], strides = [1, 1]} : vector<128x64xf32> to vector<128x32xf32>
    %8 = arith.truncf %7 : vector<128x32xf32> to vector<128x32xbf16>
    %9 = vector.extract_strided_slice %6 {offsets = [0, 32], sizes = [128, 32], strides = [1, 1]} : vector<128x64xf32> to vector<128x32xf32>
    %10 = arith.truncf %9 : vector<128x32xf32> to vector<128x32xbf16>
    %c0_5 = arith.constant 0 : index
    %c0_6 = arith.constant 0 : index
    %11 = vector.load %arg7[%c0_5, %c0_6] : memref<256x32xbf16, #tpu.memory_space<vmem>>, vector<256x32xbf16>
    %12 = tpu.transpose %8, [1, 0] : vector<128x32xbf16> -> vector<32x128xbf16>
    %cst_7 = arith.constant dense<0.000000e+00> : vector<256x128xf32>
    %13 = tpu.matmul %11, %12, %cst_7 {dimension_numbers = #tpu.dot_dimension_numbers<[1], [0], [0], [1], [0, 0, 1, 1], [], []>} : vector<256x32xbf16>, vector<32x128xbf16>, vector<256x128xf32> -> vector<256x128xf32>
    %c0_8 = arith.constant 0 : index
    %c0_9 = arith.constant 0 : index
    %14 = vector.load %arg8[%c0_8, %c0_9] : memref<256x1xf32, #tpu.memory_space<vmem>>, vector<256x1xf32>
    %cst_10 = arith.constant dense<0xFF800000> : vector<256xf32>
    %15 = vector.multi_reduction <maximumf>, %13, %cst_10 [1] : vector<256x128xf32> to vector<256xf32>
    %16 = vector.shape_cast %15 : vector<256xf32> to vector<256x1xf32>
    %17 = arith.maximumf %14, %16 : vector<256x1xf32>
    %18 = arith.subf %14, %17 : vector<256x1xf32>
    %19 = math.exp %18 : vector<256x1xf32>
    %20 = vector.broadcast %17 : vector<256x1xf32> to vector<256x128xf32>
    %21 = arith.subf %13, %20 : vector<256x128xf32>
    %22 = math.exp %21 : vector<256x128xf32>
    %c0_11 = arith.constant 0 : index
    %c0_12 = arith.constant 0 : index
    %23 = vector.load %arg9[%c0_11, %c0_12] : memref<256x1xf32, #tpu.memory_space<vmem>>, vector<256x1xf32>
    %24 = arith.mulf %19, %23 : vector<256x1xf32>
    %cst_13 = arith.constant dense<0.000000e+00> : vector<256xf32>
    %25 = vector.multi_reduction <add>, %22, %cst_13 [1] : vector<256x128xf32> to vector<256xf32>
    %26 = vector.shape_cast %25 : vector<256xf32> to vector<256x1xf32>
    %27 = arith.addf %24, %26 : vector<256x1xf32>
    %c0_14 = arith.constant 0 : index
    %c0_15 = arith.constant 0 : index
    %28 = vector.load %arg9[%c0_14, %c0_15] : memref<256x1xf32, #tpu.memory_space<vmem>>, vector<256x1xf32>
    tpu.vector_store %arg9[%c0_14, %c0_15], %27 {strides = array<i32>} : memref<256x1xf32, #tpu.memory_space<vmem>>, vector<256x1xf32>,
    %c0_16 = arith.constant 0 : index
    %c0_17 = arith.constant 0 : index
    %29 = vector.load %arg10[%c0_16, %c0_17] : memref<256x32xf32, #tpu.memory_space<vmem>>, vector<256x32xf32>
    %30 = vector.broadcast %19 : vector<256x1xf32> to vector<256x32xf32>
    %31 = arith.mulf %30, %29 : vector<256x32xf32>
    %32 = arith.truncf %22 : vector<256x128xf32> to vector<256x128xbf16>
    %cst_18 = arith.constant dense<0.000000e+00> : vector<256x32xf32>
    %33 = tpu.matmul %32, %10, %cst_18 {dimension_numbers = #tpu.dot_dimension_numbers<[1], [0], [0], [1], [0, 0, 1, 1], [], []>} : vector<256x128xbf16>, vector<128x32xbf16>, vector<256x32xf32> -> vector<256x32xf32>
    %34 = arith.addf %31, %33 : vector<256x32xf32>
    %c0_19 = arith.constant 0 : index
    %c0_20 = arith.constant 0 : index
    %35 = vector.load %arg10[%c0_19, %c0_20] : memref<256x32xf32, #tpu.memory_space<vmem>>, vector<256x32xf32>
    tpu.vector_store %arg10[%c0_19, %c0_20], %34 {strides = array<i32>} : memref<256x32xf32, #tpu.memory_space<vmem>>, vector<256x32xf32>,
    %c0_21 = arith.constant 0 : index
    %c0_22 = arith.constant 0 : index
    %36 = vector.load %arg8[%c0_21, %c0_22] : memref<256x1xf32, #tpu.memory_space<vmem>>, vector<256x1xf32>
    tpu.vector_store %arg8[%c0_21, %c0_22], %17 {strides = array<i32>} : memref<256x1xf32, #tpu.memory_space<vmem>>, vector<256x1xf32>,
    %c1_i32 = arith.constant 1 : i32
    %37 = arith.cmpi eq, %arg1, %c1_i32 : i32
    %38 = arith.extui %37 : i1 to i32
    %c0_i32_23 = arith.constant 0 : i32
    %39 = arith.cmpi ne, %38, %c0_i32_23 : i32
    scf.if %39 {
      %c0_24 = arith.constant 0 : index
      %c0_25 = arith.constant 0 : index
      %40 = vector.load %arg9[%c0_24, %c0_25] : memref<256x1xf32, #tpu.memory_space<vmem>>, vector<256x1xf32>
      %41 = tpu.reciprocal %40 {approx = true} : vector<256x1xf32> -> vector<256x1xf32>
      %c0_26 = arith.constant 0 : index
      %c0_27 = arith.constant 0 : index
      %c0_28 = arith.constant 0 : index
      %42 = vector.load %arg2[%c0_26, %c0_27, %c0_28] : memref<1x256x32xbf16, #tpu.memory_space<vmem>>, vector<1x256x32xbf16>
      %43 = vector.shape_cast %42 : vector<1x256x32xbf16> to vector<256x32xbf16>
      %44 = arith.extf %43 : vector<256x32xbf16> to vector<256x32xf32>
      %c0_29 = arith.constant 0 : index
      %c0_30 = arith.constant 0 : index
      %45 = vector.load %arg10[%c0_29, %c0_30] : memref<256x32xf32, #tpu.memory_space<vmem>>, vector<256x32xf32>
      %46 = vector.broadcast %41 : vector<256x1xf32> to vector<256x32xf32>
      %47 = arith.mulf %45, %46 : vector<256x32xf32>
      %48 = arith.addf %44, %47 : vector<256x32xf32>
      %49 = arith.truncf %48 : vector<256x32xf32> to vector<256x32xbf16>
      %c0_31 = arith.constant 0 : index
      %c0_32 = arith.constant 0 : index
      %c0_33 = arith.constant 0 : index
      %50 = vector.load %arg6[%c0_31, %c0_32, %c0_33] : memref<1x256x32xbf16, #tpu.memory_space<vmem>>, vector<1x256x32xbf16>
      %51 = vector.shape_cast %50 : vector<1x256x32xbf16> to vector<256x32xbf16>
      %52 = vector.shape_cast %49 : vector<256x32xbf16> to vector<1x256x32xbf16>
      tpu.vector_store %arg6[%c0_31, %c0_32, %c0_33], %52 {strides = array<i32>} : memref<1x256x32xbf16, #tpu.memory_space<vmem>>, vector<1x256x32xbf16>,
    } else {
    }
    return
  }
  func.func @transform_0(%arg0: i32, %arg1: i32) -> (i32, i32, i32) {
    %c0_i32 = arith.constant 0 : i32
    %c0_i32_0 = arith.constant 0 : i32
    %c0_i32_1 = arith.constant 0 : i32
    return %arg0, %c0_i32, %c0_i32_0 : i32, i32, i32
  }
  func.func @transform_1(%arg0: i32, %arg1: i32) -> (i32, i32, i32) {
    %c0_i32 = arith.constant 0 : i32
    %c0_i32_0 = arith.constant 0 : i32
    return %arg0, %arg1, %c0_i32 : i32, i32, i32
  }
  func.func @transform_2(%arg0: i32, %arg1: i32) -> (i32, i32) {
    %c0_i32 = arith.constant 0 : i32
    %c0_i32_0 = arith.constant 0 : i32
    %c0_i32_1 = arith.constant 0 : i32
    return %c0_i32, %c0_i32_0 : i32, i32
  }
  func.func @transform_3(%arg0: i32, %arg1: i32) -> (i32, i32) {
    %c0_i32 = arith.constant 0 : i32
    %c0_i32_0 = arith.constant 0 : i32
    %c0_i32_1 = arith.constant 0 : i32
    return %c0_i32, %c0_i32_0 : i32, i32
  }
  func.func @transform_4(%arg0: i32, %arg1: i32) -> (i32, i32, i32) {
    %c0_i32 = arith.constant 0 : i32
    %c0_i32_0 = arith.constant 0 : i32
    %c0_i32_1 = arith.constant 0 : i32
    return %arg0, %c0_i32, %c0_i32_0 : i32, i32, i32
  }
}

module attributes {stable_mosaic.version = 11 : i64} {
  func.func @_conv3x3_kernel(%arg0: i32, %arg1: memref<1x18x18x32xbf16, #tpu.memory_space<vmem>>, %arg2: memref<9x32x128xbf16, #tpu.memory_space<vmem>>, %arg3: memref<1x128xf32, #tpu.memory_space<vmem>>, %arg4: memref<1x3x256xf32, #tpu.memory_space<vmem>>) attributes {dimension_semantics = [#tpu.dimension_semantics<parallel>], iteration_bounds = array<i64: 4>, scalar_prefetch = 0 : i64, scratch_operands = 0 : i64, tpu.core_type = #tpu.core_type<tc>, window_params = [{transform_indices = @transform_0, window_bounds = array<i64: 1, 18, 18, 32>}, {pipeline_mode = #tpu.pipeline_mode<synchronous>, transform_indices = @transform_1, window_bounds = array<i64: 9, 32, 128>}, {pipeline_mode = #tpu.pipeline_mode<synchronous>, transform_indices = @transform_2, window_bounds = array<i64: 1, 128>}, {transform_indices = @transform_3, window_bounds = array<i64: 1, 3, 256>}]} {
    %c0 = arith.constant 0 : index
    %c0_0 = arith.constant 0 : index
    %c0_1 = arith.constant 0 : index
    %c0_2 = arith.constant 0 : index
    %0 = vector.load %arg1[%c0, %c0_0, %c0_1, %c0_2] : memref<1x18x18x32xbf16, #tpu.memory_space<vmem>>, vector<1x18x18x32xbf16>
    %1 = vector.shape_cast %0 : vector<1x18x18x32xbf16> to vector<18x18x32xbf16>
    %cst = arith.constant 0.000000e+00 : f32
    %2 = vector.broadcast %cst : f32 to vector<256x128xf32>
    %3 = vector.extract_strided_slice %1 {offsets = [0, 0, 0], sizes = [16, 16, 32], strides = [1, 1, 1]} : vector<18x18x32xbf16> to vector<16x16x32xbf16>
    %4 = vector.shape_cast %3 : vector<16x16x32xbf16> to vector<256x32xbf16>
    %c0_3 = arith.constant 0 : index
    %c0_4 = arith.constant 0 : index
    %c0_5 = arith.constant 0 : index
    %5 = vector.load %arg2[%c0_3, %c0_4, %c0_5] : memref<9x32x128xbf16, #tpu.memory_space<vmem>>, vector<1x32x128xbf16>
    %6 = vector.shape_cast %5 : vector<1x32x128xbf16> to vector<32x128xbf16>
    %cst_6 = arith.constant dense<0.000000e+00> : vector<256x128xf32>
    %7 = tpu.matmul %4, %6, %cst_6 {dimension_numbers = #tpu.dot_dimension_numbers<[1], [0], [0], [1], [0, 0, 1, 1], [], []>} : vector<256x32xbf16>, vector<32x128xbf16>, vector<256x128xf32> -> vector<256x128xf32>
    %8 = arith.addf %2, %7 : vector<256x128xf32>
    %9 = vector.extract_strided_slice %1 {offsets = [0, 1, 0], sizes = [16, 16, 32], strides = [1, 1, 1]} : vector<18x18x32xbf16> to vector<16x16x32xbf16>
    %10 = vector.shape_cast %9 : vector<16x16x32xbf16> to vector<256x32xbf16>
    %c1 = arith.constant 1 : index
    %c0_7 = arith.constant 0 : index
    %c0_8 = arith.constant 0 : index
    %11 = vector.load %arg2[%c1, %c0_7, %c0_8] : memref<9x32x128xbf16, #tpu.memory_space<vmem>>, vector<1x32x128xbf16>
    %12 = vector.shape_cast %11 : vector<1x32x128xbf16> to vector<32x128xbf16>
    %cst_9 = arith.constant dense<0.000000e+00> : vector<256x128xf32>
    %13 = tpu.matmul %10, %12, %cst_9 {dimension_numbers = #tpu.dot_dimension_numbers<[1], [0], [0], [1], [0, 0, 1, 1], [], []>} : vector<256x32xbf16>, vector<32x128xbf16>, vector<256x128xf32> -> vector<256x128xf32>
    %14 = arith.addf %8, %13 : vector<256x128xf32>
    %15 = vector.extract_strided_slice %1 {offsets = [0, 2, 0], sizes = [16, 16, 32], strides = [1, 1, 1]} : vector<18x18x32xbf16> to vector<16x16x32xbf16>
    %16 = vector.shape_cast %15 : vector<16x16x32xbf16> to vector<256x32xbf16>
    %c2 = arith.constant 2 : index
    %c0_10 = arith.constant 0 : index
    %c0_11 = arith.constant 0 : index
    %17 = vector.load %arg2[%c2, %c0_10, %c0_11] : memref<9x32x128xbf16, #tpu.memory_space<vmem>>, vector<1x32x128xbf16>
    %18 = vector.shape_cast %17 : vector<1x32x128xbf16> to vector<32x128xbf16>
    %cst_12 = arith.constant dense<0.000000e+00> : vector<256x128xf32>
    %19 = tpu.matmul %16, %18, %cst_12 {dimension_numbers = #tpu.dot_dimension_numbers<[1], [0], [0], [1], [0, 0, 1, 1], [], []>} : vector<256x32xbf16>, vector<32x128xbf16>, vector<256x128xf32> -> vector<256x128xf32>
    %20 = arith.addf %14, %19 : vector<256x128xf32>
    %21 = vector.extract_strided_slice %1 {offsets = [1, 0, 0], sizes = [16, 16, 32], strides = [1, 1, 1]} : vector<18x18x32xbf16> to vector<16x16x32xbf16>
    %22 = vector.shape_cast %21 : vector<16x16x32xbf16> to vector<256x32xbf16>
    %c3 = arith.constant 3 : index
    %c0_13 = arith.constant 0 : index
    %c0_14 = arith.constant 0 : index
    %23 = vector.load %arg2[%c3, %c0_13, %c0_14] : memref<9x32x128xbf16, #tpu.memory_space<vmem>>, vector<1x32x128xbf16>
    %24 = vector.shape_cast %23 : vector<1x32x128xbf16> to vector<32x128xbf16>
    %cst_15 = arith.constant dense<0.000000e+00> : vector<256x128xf32>
    %25 = tpu.matmul %22, %24, %cst_15 {dimension_numbers = #tpu.dot_dimension_numbers<[1], [0], [0], [1], [0, 0, 1, 1], [], []>} : vector<256x32xbf16>, vector<32x128xbf16>, vector<256x128xf32> -> vector<256x128xf32>
    %26 = arith.addf %20, %25 : vector<256x128xf32>
    %27 = vector.extract_strided_slice %1 {offsets = [1, 1, 0], sizes = [16, 16, 32], strides = [1, 1, 1]} : vector<18x18x32xbf16> to vector<16x16x32xbf16>
    %28 = vector.shape_cast %27 : vector<16x16x32xbf16> to vector<256x32xbf16>
    %c4 = arith.constant 4 : index
    %c0_16 = arith.constant 0 : index
    %c0_17 = arith.constant 0 : index
    %29 = vector.load %arg2[%c4, %c0_16, %c0_17] : memref<9x32x128xbf16, #tpu.memory_space<vmem>>, vector<1x32x128xbf16>
    %30 = vector.shape_cast %29 : vector<1x32x128xbf16> to vector<32x128xbf16>
    %cst_18 = arith.constant dense<0.000000e+00> : vector<256x128xf32>
    %31 = tpu.matmul %28, %30, %cst_18 {dimension_numbers = #tpu.dot_dimension_numbers<[1], [0], [0], [1], [0, 0, 1, 1], [], []>} : vector<256x32xbf16>, vector<32x128xbf16>, vector<256x128xf32> -> vector<256x128xf32>
    %32 = arith.addf %26, %31 : vector<256x128xf32>
    %33 = vector.extract_strided_slice %1 {offsets = [1, 2, 0], sizes = [16, 16, 32], strides = [1, 1, 1]} : vector<18x18x32xbf16> to vector<16x16x32xbf16>
    %34 = vector.shape_cast %33 : vector<16x16x32xbf16> to vector<256x32xbf16>
    %c5 = arith.constant 5 : index
    %c0_19 = arith.constant 0 : index
    %c0_20 = arith.constant 0 : index
    %35 = vector.load %arg2[%c5, %c0_19, %c0_20] : memref<9x32x128xbf16, #tpu.memory_space<vmem>>, vector<1x32x128xbf16>
    %36 = vector.shape_cast %35 : vector<1x32x128xbf16> to vector<32x128xbf16>
    %cst_21 = arith.constant dense<0.000000e+00> : vector<256x128xf32>
    %37 = tpu.matmul %34, %36, %cst_21 {dimension_numbers = #tpu.dot_dimension_numbers<[1], [0], [0], [1], [0, 0, 1, 1], [], []>} : vector<256x32xbf16>, vector<32x128xbf16>, vector<256x128xf32> -> vector<256x128xf32>
    %38 = arith.addf %32, %37 : vector<256x128xf32>
    %39 = vector.extract_strided_slice %1 {offsets = [2, 0, 0], sizes = [16, 16, 32], strides = [1, 1, 1]} : vector<18x18x32xbf16> to vector<16x16x32xbf16>
    %40 = vector.shape_cast %39 : vector<16x16x32xbf16> to vector<256x32xbf16>
    %c6 = arith.constant 6 : index
    %c0_22 = arith.constant 0 : index
    %c0_23 = arith.constant 0 : index
    %41 = vector.load %arg2[%c6, %c0_22, %c0_23] : memref<9x32x128xbf16, #tpu.memory_space<vmem>>, vector<1x32x128xbf16>
    %42 = vector.shape_cast %41 : vector<1x32x128xbf16> to vector<32x128xbf16>
    %cst_24 = arith.constant dense<0.000000e+00> : vector<256x128xf32>
    %43 = tpu.matmul %40, %42, %cst_24 {dimension_numbers = #tpu.dot_dimension_numbers<[1], [0], [0], [1], [0, 0, 1, 1], [], []>} : vector<256x32xbf16>, vector<32x128xbf16>, vector<256x128xf32> -> vector<256x128xf32>
    %44 = arith.addf %38, %43 : vector<256x128xf32>
    %45 = vector.extract_strided_slice %1 {offsets = [2, 1, 0], sizes = [16, 16, 32], strides = [1, 1, 1]} : vector<18x18x32xbf16> to vector<16x16x32xbf16>
    %46 = vector.shape_cast %45 : vector<16x16x32xbf16> to vector<256x32xbf16>
    %c7 = arith.constant 7 : index
    %c0_25 = arith.constant 0 : index
    %c0_26 = arith.constant 0 : index
    %47 = vector.load %arg2[%c7, %c0_25, %c0_26] : memref<9x32x128xbf16, #tpu.memory_space<vmem>>, vector<1x32x128xbf16>
    %48 = vector.shape_cast %47 : vector<1x32x128xbf16> to vector<32x128xbf16>
    %cst_27 = arith.constant dense<0.000000e+00> : vector<256x128xf32>
    %49 = tpu.matmul %46, %48, %cst_27 {dimension_numbers = #tpu.dot_dimension_numbers<[1], [0], [0], [1], [0, 0, 1, 1], [], []>} : vector<256x32xbf16>, vector<32x128xbf16>, vector<256x128xf32> -> vector<256x128xf32>
    %50 = arith.addf %44, %49 : vector<256x128xf32>
    %51 = vector.extract_strided_slice %1 {offsets = [2, 2, 0], sizes = [16, 16, 32], strides = [1, 1, 1]} : vector<18x18x32xbf16> to vector<16x16x32xbf16>
    %52 = vector.shape_cast %51 : vector<16x16x32xbf16> to vector<256x32xbf16>
    %c8 = arith.constant 8 : index
    %c0_28 = arith.constant 0 : index
    %c0_29 = arith.constant 0 : index
    %53 = vector.load %arg2[%c8, %c0_28, %c0_29] : memref<9x32x128xbf16, #tpu.memory_space<vmem>>, vector<1x32x128xbf16>
    %54 = vector.shape_cast %53 : vector<1x32x128xbf16> to vector<32x128xbf16>
    %cst_30 = arith.constant dense<0.000000e+00> : vector<256x128xf32>
    %55 = tpu.matmul %52, %54, %cst_30 {dimension_numbers = #tpu.dot_dimension_numbers<[1], [0], [0], [1], [0, 0, 1, 1], [], []>} : vector<256x32xbf16>, vector<32x128xbf16>, vector<256x128xf32> -> vector<256x128xf32>
    %56 = arith.addf %50, %55 : vector<256x128xf32>
    %c0_31 = arith.constant 0 : index
    %c0_32 = arith.constant 0 : index
    %57 = vector.load %arg3[%c0_31, %c0_32] : memref<1x128xf32, #tpu.memory_space<vmem>>, vector<1x128xf32>
    %58 = vector.broadcast %57 : vector<1x128xf32> to vector<256x128xf32>
    %59 = arith.addf %56, %58 : vector<256x128xf32>
    %60 = math.tanh %59 : vector<256x128xf32>
    %61 = tpu.transpose %60, [1, 0] : vector<256x128xf32> -> vector<128x256xf32>
    %62 = vector.extract_strided_slice %61 {offsets = [0, 0], sizes = [3, 256], strides = [1, 1]} : vector<128x256xf32> to vector<3x256xf32>
    %c0_33 = arith.constant 0 : index
    %c0_34 = arith.constant 0 : index
    %c0_35 = arith.constant 0 : index
    %63 = vector.load %arg4[%c0_33, %c0_34, %c0_35] : memref<1x3x256xf32, #tpu.memory_space<vmem>>, vector<1x3x256xf32>
    %64 = vector.shape_cast %63 : vector<1x3x256xf32> to vector<3x256xf32>
    %65 = vector.shape_cast %62 : vector<3x256xf32> to vector<1x3x256xf32>
    tpu.vector_store %arg4[%c0_33, %c0_34, %c0_35], %65 {strides = array<i32>} : memref<1x3x256xf32, #tpu.memory_space<vmem>>, vector<1x3x256xf32>,
    return
  }
  func.func @transform_0(%arg0: i32) -> (i32, i32, i32, i32) {
    %c0_i32 = arith.constant 0 : i32
    %c0_i32_0 = arith.constant 0 : i32
    %c0_i32_1 = arith.constant 0 : i32
    %c0_i32_2 = arith.constant 0 : i32
    return %arg0, %c0_i32, %c0_i32_0, %c0_i32_1 : i32, i32, i32, i32
  }
  func.func @transform_1(%arg0: i32) -> (i32, i32, i32) {
    %c0_i32 = arith.constant 0 : i32
    %c0_i32_0 = arith.constant 0 : i32
    %c0_i32_1 = arith.constant 0 : i32
    %c0_i32_2 = arith.constant 0 : i32
    return %c0_i32, %c0_i32_0, %c0_i32_1 : i32, i32, i32
  }
  func.func @transform_2(%arg0: i32) -> (i32, i32) {
    %c0_i32 = arith.constant 0 : i32
    %c0_i32_0 = arith.constant 0 : i32
    %c0_i32_1 = arith.constant 0 : i32
    return %c0_i32, %c0_i32_0 : i32, i32
  }
  func.func @transform_3(%arg0: i32) -> (i32, i32, i32) {
    %c0_i32 = arith.constant 0 : i32
    %c0_i32_0 = arith.constant 0 : i32
    %c0_i32_1 = arith.constant 0 : i32
    return %arg0, %c0_i32, %c0_i32_0 : i32, i32, i32
  }
}

</mosaic_0001>

<bundles_post_ra>
// kernel: dptn_generator.3
= control target key start
LH: loop header
LB: loop body
LE: loop exit
PB: predicated region body
PF: predicated region fallthrough
CT: control target
= control target key end

     0   :  { %s2975_s12 = smov 0   ;;  %s4173_s0 = inlined_call_operand.vmem [shape: bf16[4,18,18,18], index: 0, kind: input, shape index: {}]   ;;  %s4174_s1 = inlined_call_operand.vmem [shape: bf16[9,18,32], index: 1, kind: input, shape index: {}]   ;;  %s4175_s2 = inlined_call_operand.vmem [shape: f32[1,32], index: 2, kind: input, shape index: {}]   ;;  %s4176_s3 = inlined_call_operand.vmem [shape: bf16[4,256,32], index: 3, kind: output, shape index: {}]  }
   0x1 LB: > { %s2590_s13 = sadd.s32 4294967295, %s2953_s12   ;;  %p2594_p0 = scmp.ge.s32.totalorder %s2953_s12, 1  ;;  %s2953_s12 = sphi %s2975_s12, %s13_s12  }
   0x2   : > { %p137_p1 = scmp.lt.s32.totalorder %s2953_s12, 5 }
   0x4   : > { %p138_p2 = pnand %p2594_p0, %p137_p1 }
   0x6   : > { %141 = sbr.rel (%p138_p2) target bundleno = 762 (0x2fa), region = 32 }
   0xb   : > { %v2600_v0 = vld [vmem:[%s4174_s1 + $0x14] sm:$0x1]  ;;  %p161_p3 = scmp.lt.s32.totalorder %s2590_s13, 3  ;;  %v2723_v2 = vld [vmem:[%s4174_s1 + $0x20] sm:$0x1]  ;;  %vm726_vm0 = vcmask 1040384  }
   0xc   : > { %v673_v1 = vunpack.c.l.b16 %v2600_v0  ;;  %v1236_v3 = vunpack.c.l.b16 %v2723_v2  ;;  %v2746_v5 = vld [vmem:[%s4174_s1 + $0x2c] sm:$0x1]  ;;  %v228_v7 = vld [vmem:[%s4174_s1 + $0x8] sm:$0x1]  ;;  %vm229_vm1 = vsmask.f32 3328 }
   0xd   : > { %s4321_s13 = smov (!%p161_p3, %s2590_s13), 3  ;;  %v1426_v9 = vunpack.c.l.b16 %v2746_v5  ;;  %v2914_v10 = vld [vmem:[%s4174_s1 + $0xc] sm:$0xff]  ;;  %vm230_vm2 = vsmask.f32 7440  ;;  %v3011_v12 = vld [vmem:[%s4174_s1 + $0x38] sm:$0x1]  ;;  %v904_v16 = vunpack.c.l.b16 %v228_v7 }
   0xe   : > { %v675_v4 = vpack.c.b16 %v673_v1, %v673_v1  ;;  %s2928_s20 = smul.u32 216, %s4321_s13  ;;  %v1238_v6 = vpack.c.b16 %v1236_v3, %v1236_v3  ;;  %v1593_v27 = vunpack.c.l.b16 %v3011_v12  ;;  %vm677_vm3 = vcmask 146432   ;;  %vm3037_vm4 = vmor %vm229_vm1, %vm230_vm2  ;;  %s2894_s5 = sshll.u32 %s4321_s13, 7 }
   0xf   : > { %v3030_v26 = vpack.c.b16 %v1426_v9, %v1426_v9  ;;  %v906_v46 = vpack.c.b16 %v904_v16, %v904_v16  ;;  %vm1064_vm5 = vcmask 1042432   ;;  %vm1065_vm6 = vcmask 1046532   ;;  %s3967_s8 = scalar_lea.vmem %s4176_s3, %s2894_s5 }
  0x10   : > { %v728_v8 = vsel %vm726_vm0, %v675_v4, 0  ;;  %s3005_s27 = scalar_lea.vmem %s4173_s0, %s2928_s20  ;;  %v1289_v11 = vsel %vm726_vm0, %v1238_v6, 0  ;;  %vm3352_vm7 = vmor %vm1064_vm5, %vm1065_vm6  ;;  %vm2502_vm9 = vcmask 257024  }
  0x11   : > { %2922 = vmatpush.bf16.msra.mxu1 %v728_v8  ;;  %2923 = vmatpush.bf16.msra.mxu2 %v728_v8  ;;  %v3014_v13 = vld [vmem:[%s3005_s27 + $0x30] sm:$0xf]  ;;  %v3017_v14 = vld [vmem:[%s3005_s27 + $0x34] sm:$0xf]  ;;  %v3020_v15 = vld [vmem:[%s3005_s27 + $0x38] sm:$0x1] }
  0x12   : > { %2924 = vmatpush.bf16.msra.mxu3 %v728_v8  ;;  %736 = vmatpush.bf16.msra.mxu0 %v728_v8  ;;  %v329_v17 = vshrl.u32 %v3014_v13, 16  ;;  %v332_v18 = vshll.u32 %v3014_v13, 16  ;;  %v338_v19 = vshll.u32 %v3017_v14, 16  ;;  %v342_v20 = vshrl.u32 %v3017_v14, 16  ;;  %v196_v21 = vld [vmem:[%s3005_s27 + $0x60] sm:$0xf] }
  0x13   : > { %v348_v22 = vshll.u32 %v3020_v15, 16  ;;  %v197_v23 = vld [vmem:[%s3005_s27 + $0x64] sm:$0xf]  ;;  %v198_v24 = vld [vmem:[%s3005_s27 + $0x68] sm:$0x1]  ;;  %v425_v25 = vshrl.u32 %v196_v21, 16 }
  0x14   : > { %v331_v28 = vrot.slane %v329_v17, 4  ;;  %v334_v29 = vrot.slane %v332_v18, 5  ;;  %v340_v30 = vrot.slane %v338_v19, 5  ;;  %v344_v31 = vrot.slane %v342_v20, 4  ;;  %v208_v32 = vld [vmem:[%s3005_s27 + $0x90] sm:$0xf] }
  0x15   : > { %2925 = vmatpush.bf16.msra.mxu1 %v2914_v10  ;;  %2926 = vmatpush.bf16.msra.mxu2 %v2914_v10  ;;  %v350_v33 = vrot.slane %v348_v22, 5  ;;  %v427_v34 = vrot.slane %v425_v25, 4  ;;  %v428_v35 = vshll.u32 %v196_v21, 16  ;;  %v434_v36 = vshll.u32 %v197_v23, 16  ;;  %v209_v41 = vld [vmem:[%s3005_s27 + $0x94] sm:$0xf] }
  0x16   : > { %2927 = vmatpush.bf16.msra.mxu3 %v2914_v10  ;;  %737 = vmatpush.bf16.msra.mxu0 %v2914_v10  ;;  %v335_v37 = vor.u32 %v334_v29, %v331_v28  ;;  %v345_v38 = vor.u32 %v344_v31, %v340_v30  ;;  %v438_v39 = vshrl.u32 %v197_v23, 16  ;;  %v444_v40 = vshll.u32 %v198_v24, 16  ;;  %v210_v52 = vld [vmem:[%s3005_s27 + $0x98] sm:$0x1]  ;;  %v3047_v4 = vld [vmem:[%s3005_s27] sm:$0xf] }
  0x17   : > { %v430_v43 = vrot.slane %v428_v35, 5  ;;  %v436_v44 = vrot.slane %v434_v36, 5  ;;  %v521_v45 = vshrl.u32 %v208_v32, 16  ;;  %v524_v54 = vshll.u32 %v208_v32, 16  ;;  %v3054_v8 = vld [vmem:[%s3005_s27 + $0x4] sm:$0xf] }
  0x18   : > { %v336_v47 = vrot.slane %v335_v37, 4  ;;  %v346_v48 = vrot.slane %v345_v38, 4  ;;  %v440_v49 = vrot.slane %v438_v39, 4  ;;  %v446_v50 = vrot.slane %v444_v40, 5  ;;  %v3057_v9 = vld [vmem:[%s3005_s27 + $0x8] sm:$0x1] }
  0x19   : > { %1297 = vmatpush.bf16.msrb.mxu2 %v1289_v11  ;;  %v431_v51 = vor.u32 %v430_v43, %v427_v34  ;;  %v523_v53 = vrot.slane %v521_v45, 4  ;;  %v530_v55 = vshll.u32 %v209_v41, 16  ;;  %v534_v59 = vshrl.u32 %v209_v41, 16  ;;  %v3075_v35 = vld [vmem:[%s3005_s27 + $0x3c] sm:$0xf] }
  0x1a   : > { %v341_v56 = vsel %vm3037_vm4, %v336_v47, %v340_v30  ;;  %v351_v57 = vsel %vm3037_vm4, %v346_v48, %v350_v33  ;;  %v441_v58 = vor.u32 %v440_v49, %v436_v44  ;;  %v526_v63 = vrot.slane %v524_v54, 5  ;;  %v3080_v39 = vld [vmem:[%s3005_s27 + $0x40] sm:$0xf]  ;;  %v3083_v40 = vld [vmem:[%s3005_s27 + $0x44] sm:$0x1] }
  0x1b   : > { %v628_v60 = vunpack.c.l.b16 %v341_v56  ;;  %v629_v61 = vunpack.c.l.b16 %v351_v57  ;;  %v432_v62 = vrot.slane %v431_v51, 4  ;;  %v532_v1 = vrot.slane %v530_v55, 5  ;;  %v3090_v47 = vld [vmem:[%s3005_s27 + $0x6c] sm:$0xf]  ;;  %v3104_v57 = vld [vmem:[%s3005_s27 + $0x70] sm:$0xf] }
  0x1c   : > { %v442_v0 = vrot.slane %v441_v58, 4  ;;  %v536_v2 = vrot.slane %v534_v59, 4  ;;  %v540_v3 = vshll.u32 %v210_v52, 16  ;;  %v527_v7 = vor.u32 %v526_v63, %v523_v53  ;;  %v3110_v63 = vld [vmem:[%s3005_s27 + $0x74] sm:$0x1] }
  0x1d   : > { %v3049_v5 = vpack.c.b16 %v629_v61, %v628_v60  ;;  %v437_v6 = vsel %vm3037_vm4, %v432_v62, %v436_v44  ;;  %v1595_v10 = vpack.c.b16 %v1593_v27, %v1593_v27  ;;  %v233_v20 = vshrl.u32 %v3047_v4, 16 }
  0x1e   : > { %v447_v11 = vsel %vm3037_vm4, %v442_v0, %v446_v50  ;;  %v636_v12 = vunpack.c.l.b16 %v437_v6  ;;  %v537_v16 = vor.u32 %v536_v2, %v532_v1  ;;  %v542_v17 = vrot.slane %v540_v3, 5 }
  0x1f   : > { %2609 = vmatmul.msk.bf16.vlgmr.msra.gmra.mxu1 %vm677_vm3, %v3049_v5  ;;  %v637_v18 = vunpack.c.l.b16 %v447_v11  ;;  %v528_v19 = vrot.slane %v527_v7, 4  ;;  %v236_v21 = vshll.u32 %v3047_v4, 16  ;;  %v242_v23 = vshll.u32 %v3054_v8, 16 }
  0x20   : > { %v538_v22 = vrot.slane %v537_v16, 4  ;;  %v246_v24 = vshrl.u32 %v3054_v8, 16  ;;  %v252_v25 = vshll.u32 %v3057_v9, 16  ;;  %v235_v29 = vrot.slane %v233_v20, 4 }
  0x21   : > { %v3068_v27 = vpack.c.b16 %v637_v18, %v636_v12  ;;  %v533_v28 = vsel %vm3037_vm4, %v528_v19, %v532_v1  ;;  %v238_v30 = vrot.slane %v236_v21, 5  ;;  %v244_v33 = vrot.slane %v242_v23, 5  ;;  %v211_v12 = vld [vmem:[%s3005_s27 + $0x9c] sm:$0xf]  ;;  %v212_v23 = vld [vmem:[%s3005_s27 + $0xa0] sm:$0xf] }
  0x22   : > { %v543_v31 = vsel %vm3037_vm4, %v538_v22, %v542_v17  ;;  %v644_v32 = vunpack.c.l.b16 %v533_v28  ;;  %v248_v34 = vrot.slane %v246_v24, 4  ;;  %v254_v38 = vrot.slane %v252_v25, 5  ;;  %v213_v28 = vld [vmem:[%s3005_s27 + $0xa4] sm:$0x1] }
  0x23   : > { %4220 = vst [vmem:[#allocation2_spill] sm:$0xff] %v3068_v27  ;;  %2613 = vmatmul.msk.bf16.vlgmr.msra.gmra.mxu2 %vm677_vm3, %v3068_v27  ;;  %v645_v36 = vunpack.c.l.b16 %v543_v31  ;;  %v239_v37 = vor.u32 %v238_v30, %v235_v29  ;;  %v1434_v43 = vsel %vm726_vm0, %v3030_v26, 0  ;;  %v957_v44 = vsel %vm726_vm0, %v906_v46, 0 }
  0x24   : > { %v249_v41 = vor.u32 %v248_v34, %v244_v33  ;;  %v1601_v45 = vsel %vm726_vm0, %v1595_v10, 0  ;;  %1442 = vmatpush.bf16.msrb.mxu3 %v1434_v43  ;;  %965 = vmatpush.bf16.msrb.mxu1 %v957_v44  ;;  %v353_v50 = vshrl.u32 %v3075_v35, 16  ;;  %v356_v51 = vshll.u32 %v3075_v35, 16  ;;  %v3125_v43 = vld [vmem:[%s3005_s27 + $0xc] sm:$0xf] }
  0x25   : > { %v3092_v48 = vpack.c.b16 %v645_v36, %v644_v32  ;;  %v240_v49 = vrot.slane %v239_v37, 4  ;;  %1609 = vmatpush.bf16.msrb.mxu0 %v1601_v45  ;;  %v362_v26 = vshll.u32 %v3080_v39, 16  ;;  %v366_v46 = vshrl.u32 %v3080_v39, 16 }
  0x26   : > { %v250_v52 = vrot.slane %v249_v41, 4  ;;  %v372_v53 = vshll.u32 %v3083_v40, 16  ;;  %v355_v55 = vrot.slane %v353_v50, 4  ;;  %v358_v56 = vrot.slane %v356_v51, 5  ;;  %v2915_v51 = vld [vmem:[%s4174_s1 + $0x18] sm:$0xff] }
  0x27   : > { %4221 = vst [vmem:[#allocation3_spill] sm:$0xff] %v3092_v48  ;;  %2617 = vmatmul.msk.bf16.vlgmr.msra.gmra.mxu3 %vm677_vm3, %v3092_v48  ;;  %v245_v54 = vsel %vm3037_vm4, %v240_v49, %v244_v33  ;;  %v449_v58 = vshrl.u32 %v3090_v47, 16  ;;  %v364_v61 = vrot.slane %v362_v26, 5  ;;  %v368_v62 = vrot.slane %v366_v46, 4  ;;  %1298 = vmatpush.bf16.msrb.mxu2 %v2915_v51 }
  0x28   : > { %v255_v59 = vsel %vm3037_vm4, %v250_v52, %v254_v38  ;;  %v620_v60 = vunpack.c.l.b16 %v245_v54  ;;  %v359_v1 = vor.u32 %v358_v56, %v355_v55  ;;  %v374_v2 = vrot.slane %v372_v53, 5  ;;  %v3133_v53 = vld [vmem:[%s3005_s27 + $0x10] sm:$0xf] }
  0x29   : > { %v621_v0 = vunpack.c.l.b16 %v255_v59  ;;  %v451_v3 = vrot.slane %v449_v58, 4  ;;  %v369_v6 = vor.u32 %v368_v62, %v364_v61  ;;  %v452_v7 = vshll.u32 %v3090_v47, 16  ;;  %v3140_v59 = vld [vmem:[%s3005_s27 + $0x14] sm:$0x1] }
  0x2a   : > { %v458_v10 = vshll.u32 %v3104_v57, 16  ;;  %v462_v11 = vshrl.u32 %v3104_v57, 16  ;;  %v360_v17 = vrot.slane %v359_v1, 4  ;;  %v468_v18 = vshll.u32 %v3110_v63, 16  ;;  %v3146_v1 = vld [vmem:[%s3005_s27 + $0x48] sm:$0xf] }
  0x2b   : > { %v652_v16 = vpack.c.b16 %v621_v0, %v620_v60  ;;  %v370_v19 = vrot.slane %v369_v6, 4  ;;  %v454_v20 = vrot.slane %v452_v7, 5  ;;  %v545_v29 = vshrl.u32 %v211_v12, 16 }
  0x2c   : > { %v460_v21 = vrot.slane %v458_v10, 5  ;;  %v464_v22 = vrot.slane %v462_v11, 4  ;;  %v365_v24 = vsel %vm3037_vm4, %v360_v17, %v364_v61  ;;  %v470_v25 = vrot.slane %v468_v18, 5  ;;  %v2916_v10 = vld [vmem:[%s4174_s1 + $0x24] sm:$0xff] }
  0x2d   : > { %2605 = vmatmul.msk.bf16.vlgmr.msra.gmra.mxu0 %vm677_vm3, %v652_v16  ;;  %v548_v30 = vshll.u32 %v211_v12, 16  ;;  %v375_v31 = vsel %vm3037_vm4, %v370_v19, %v374_v2  ;;  %v630_v32 = vunpack.c.l.b16 %v365_v24  ;;  %v455_v33 = vor.u32 %v454_v20, %v451_v3  ;;  %v2913_v11 = vld [vmem:[%s4174_s1] sm:$0xff]  ;;  %v2917_v12 = vld [vmem:[%s4174_s1 + $0x30] sm:$0xff]  ;;  %v3166_v20 = vld [vmem:[%s3005_s27 + $0x4c] sm:$0xf]  ;;  %1443 = vmatpush.bf16.msrb.mxu3 %v2916_v10 }
  0x2e   : > { %v465_v34 = vor.u32 %v464_v22, %v460_v21  ;;  %v631_v36 = vunpack.c.l.b16 %v375_v31  ;;  %v547_v37 = vrot.slane %v545_v29, 4  ;;  %v554_v41 = vshll.u32 %v212_v23, 16  ;;  %966 = vmatpush.bf16.msrb.mxu1 %v2913_v11  ;;  %v3171_v29 = vld [vmem:[%s3005_s27 + $0x50] sm:$0x1]  ;;  %1610 = vmatpush.bf16.msrb.mxu0 %v2917_v12 }
  0x2f   : > { %v550_v38 = vrot.slane %v548_v30, 5  ;;  %v456_v44 = vrot.slane %v455_v33, 4  ;;  %v558_v49 = vshrl.u32 %v212_v23, 16  ;;  %v564_v50 = vshll.u32 %v213_v28, 16 }
  0x30   : > { %v466_v45 = vrot.slane %v465_v34, 4  ;;  %v3130_v52 = vpack.c.b16 %v631_v36, %v630_v32  ;;  %v556_v46 = vrot.slane %v554_v41, 5  ;;  %v257_v0 = vshrl.u32 %v3125_v43, 16 }
  0x31   : > { %v551_v26 = vor.u32 %v550_v38, %v547_v37  ;;  %v461_v54 = vsel %vm3037_vm4, %v456_v44, %v460_v21  ;;  %v560_v56 = vrot.slane %v558_v49, 4  ;;  %v566_v58 = vrot.slane %v564_v50, 5  ;;  %v3180_v37 = vld [vmem:[%s3005_s27 + $0x78] sm:$0xf] }
  0x32   : > { %v471_v55 = vsel %vm3037_vm4, %v466_v45, %v470_v25  ;;  %2610 = vmatmul.msk.bf16.gmra.mxu1 %vm677_vm3, %v3130_v52  ;;  %v638_v60 = vunpack.c.l.b16 %v461_v54  ;;  %v260_v3 = vshll.u32 %v3125_v43, 16  ;;  %v266_v6 = vshll.u32 %v3133_v53, 16 }
  0x33   : > { %v639_v61 = vunpack.c.l.b16 %v471_v55  ;;  %v552_v62 = vrot.slane %v551_v26, 4  ;;  %v561_v2 = vor.u32 %v560_v56, %v556_v46  ;;  %v270_v7 = vshrl.u32 %v3133_v53, 16  ;;  %v3186_v56 = vld [vmem:[%s3005_s27 + $0x7c] sm:$0xf] }
  0x34   : > { %v259_v18 = vrot.slane %v257_v0, 4  ;;  %v276_v19 = vshll.u32 %v3140_v59, 16  ;;  %v262_v23 = vrot.slane %v260_v3, 5  ;;  %v268_v24 = vrot.slane %v266_v6, 5  ;;  %v3192_v0 = vld [vmem:[%s3005_s27 + $0x80] sm:$0x1] }
  0x35   : > { %v3160_v16 = vpack.c.b16 %v639_v61, %v638_v60  ;;  %v557_v17 = vsel %vm3037_vm4, %v552_v62, %v556_v46  ;;  %v562_v21 = vrot.slane %v561_v2, 4  ;;  %v272_v25 = vrot.slane %v270_v7, 4 }
  0x36   : > { %v646_v22 = vunpack.c.l.b16 %v557_v17  ;;  %v278_v28 = vrot.slane %v276_v19, 5  ;;  %v377_v30 = vshrl.u32 %v3146_v1, 16  ;;  %v380_v31 = vshll.u32 %v3146_v1, 16 }
  0x37   : > { %2614 = vmatmul.msk.bf16.gmra.mxu2 %vm677_vm3, %v3160_v16  ;;  %v567_v32 = vsel %vm3037_vm4, %v562_v21, %v566_v58  ;;  %v263_v33 = vor.u32 %v262_v23, %v259_v18  ;;  %v386_v34 = vshll.u32 %v3166_v20, 16  ;;  %v390_v36 = vshrl.u32 %v3166_v20, 16  ;;  %v3205_v23 = vld [vmem:[%s3005_s27 + $0xa8] sm:$0xf] }
  0x38   : > { %v647_v38 = vunpack.c.l.b16 %v567_v32  ;;  %v273_v41 = vor.u32 %v272_v25, %v268_v24  ;;  %v379_v44 = vrot.slane %v377_v30, 4  ;;  %v382_v45 = vrot.slane %v380_v31, 5  ;;  %4223 = vst [vmem:[#allocation5_spill] sm:$0xff] %v3205_v23  ;;  %v3215_v32 = vld [vmem:[%s3005_s27 + $0xb0] sm:$0x1] }
  0x39   : > { %v264_v49 = vrot.slane %v263_v33, 4  ;;  %v388_v50 = vrot.slane %v386_v34, 5  ;;  %v392_v51 = vrot.slane %v390_v36, 4  ;;  %v396_v26 = vshll.u32 %v3171_v29, 16  ;;  %4225 = vst [vmem:[#allocation7_spill] sm:$0xff] %v3215_v32 }
  0x3a   : > { %v3183_v46 = vpack.c.b16 %v647_v38, %v646_v22  ;;  %v274_v54 = vrot.slane %v273_v41, 4  ;;  %v383_v55 = vor.u32 %v382_v45, %v379_v44  ;;  %v473_v58 = vshrl.u32 %v3180_v37, 16 }
  0x3b   : > { %v269_v60 = vsel %vm3037_vm4, %v264_v49, %v268_v24  ;;  %v393_v61 = vor.u32 %v392_v51, %v388_v50  ;;  %v398_v62 = vrot.slane %v396_v26, 5  ;;  %v476_v2 = vshll.u32 %v3180_v37, 16  ;;  %v3208_v24 = vld [vmem:[%s3005_s27 + $0xac] sm:$0xf] }
  0x3c   : > { %4222 = vst [vmem:[#allocation4_spill] sm:$0xff] %v3183_v46  ;;  %2618 = vmatmul.msk.bf16.gmra.mxu3 %vm677_vm3, %v3183_v46  ;;  %v279_v3 = vsel %vm3037_vm4, %v274_v54, %v278_v28  ;;  %v622_v6 = vunpack.c.l.b16 %v269_v60  ;;  %v384_v7 = vrot.slane %v383_v55, 4  ;;  %v475_v10 = vrot.slane %v473_v58, 4  ;;  %v3227_v55 = vld [vmem:[%s3005_s27 + $0x18] sm:$0xf] }
  0x3d   : > { %v623_v11 = vunpack.c.l.b16 %v279_v3  ;;  %v394_v12 = vrot.slane %v393_v61, 4  ;;  %v478_v17 = vrot.slane %v476_v2, 5  ;;  %v482_v18 = vshll.u32 %v3186_v56, 16  ;;  %4224 = vst [vmem:[#allocation6_spill] sm:$0xff] %v3208_v24  ;;  %v3232_v2 = vld [vmem:[%s3005_s27 + $0x1c] sm:$0xf] }
  0x3e   : > { %v389_v19 = vsel %vm3037_vm4, %v384_v7, %v388_v50  ;;  %v486_v21 = vshrl.u32 %v3186_v56, 16  ;;  %v492_v22 = vshll.u32 %v3192_v0, 16  ;;  %v569_v44 = vshrl.u32 %v3205_v23, 16 }
  0x3f   : > { %v3210_v25 = vpack.c.b16 %v623_v11, %v622_v6  ;;  %v399_v28 = vsel %vm3037_vm4, %v394_v12, %v398_v62  ;;  %v632_v30 = vunpack.c.l.b16 %v389_v19  ;;  %v479_v31 = vor.u32 %v478_v17, %v475_v10  ;;  %v3237_v12 = vld [vmem:[%s3005_s27 + $0x20] sm:$0x1] }
  0x40   : > { %v633_v33 = vunpack.c.l.b16 %v399_v28  ;;  %v484_v34 = vrot.slane %v482_v18, 5  ;;  %v488_v36 = vrot.slane %v486_v21, 4  ;;  %v494_v38 = vrot.slane %v492_v22, 5 }
  0x41   : > { %2606 = vmatmul.msk.bf16.gmra.mxu0 %vm677_vm3, %v3210_v25  ;;  %v480_v41 = vrot.slane %v479_v31, 4  ;;  %v572_v45 = vshll.u32 %v3205_v23, 16  ;;  %v578_v49 = vshll.u32 %v3208_v24, 16  ;;  %v582_v26 = vshrl.u32 %v3208_v24, 16  ;;  %v3303_v23 = vld [vmem:[%s3005_s27 + $0xbc] sm:$0x1] }
  0x42   : > { %v3222_v50 = vpack.c.b16 %v633_v33, %v632_v30  ;;  %v489_v51 = vor.u32 %v488_v36, %v484_v34  ;;  %v588_v54 = vshll.u32 %v3215_v32, 16  ;;  %v571_v60 = vrot.slane %v569_v44, 4  ;;  %v3246_v30 = vld [vmem:[%s3005_s27 + $0x54] sm:$0xf]  ;;  %4233 = vst [vmem:[#allocation15_spill] sm:$0xff] %v3303_v23 }
  0x43   : > { %v485_v58 = vsel %vm3037_vm4, %v480_v41, %v484_v34  ;;  %v574_v61 = vrot.slane %v572_v45, 5  ;;  %v580_v62 = vrot.slane %v578_v49, 5  ;;  %v584_v7 = vrot.slane %v582_v26, 4 }
  0x44   : > { %4226 = vst [vmem:[#allocation8_spill] sm:$0xff] %v3222_v50  ;;  %2611 = vmatmul.msk.bf16.gmra.mxu1 %vm677_vm3, %v3222_v50  ;;  %v490_v3 = vrot.slane %v489_v51, 4  ;;  %v640_v6 = vunpack.c.l.b16 %v485_v58  ;;  %v590_v11 = vrot.slane %v588_v54, 5  ;;  %v281_v17 = vshrl.u32 %v3227_v55, 16  ;;  %v3254_v54 = vld [vmem:[%s3005_s27 + $0x58] sm:$0xf] }
  0x45   : > { %v575_v10 = vor.u32 %v574_v61, %v571_v60  ;;  %v284_v18 = vshll.u32 %v3227_v55, 16  ;;  %v585_v21 = vor.u32 %v584_v7, %v580_v62  ;;  %v290_v22 = vshll.u32 %v3232_v2, 16  ;;  %v3257_v58 = vld [vmem:[%s3005_s27 + $0x5c] sm:$0x1] }
  0x46   : > { %v495_v19 = vsel %vm3037_vm4, %v490_v3, %v494_v38  ;;  %v294_v28 = vshrl.u32 %v3232_v2, 16  ;;  %v283_v34 = vrot.slane %v281_v17, 4  ;;  %v300_v49 = vshll.u32 %v3237_v12, 16  ;;  %v3263_v17 = vld [vmem:[%s3005_s27 + $0x84] sm:$0xf] }
  0x47   : > { %v641_v31 = vunpack.c.l.b16 %v495_v19  ;;  %v576_v33 = vrot.slane %v575_v10, 4  ;;  %v286_v36 = vrot.slane %v284_v18, 5  ;;  %v586_v41 = vrot.slane %v585_v21, 4  ;;  %4227 = vst [vmem:[#allocation9_spill] sm:$0xff] %v3263_v17 }
  0x48   : > { %v292_v44 = vrot.slane %v290_v22, 5  ;;  %v296_v45 = vrot.slane %v294_v28, 4  ;;  %v401_v60 = vshrl.u32 %v3246_v30, 16  ;;  %v302_v10 = vrot.slane %v300_v49, 5 }
  0x49   : > { %v3249_v38 = vpack.c.b16 %v641_v31, %v640_v6  ;;  %v581_v51 = vsel %vm3037_vm4, %v576_v33, %v580_v62  ;;  %v287_v26 = vor.u32 %v286_v36, %v283_v34  ;;  %v591_v61 = vsel %vm3037_vm4, %v586_v41, %v590_v11  ;;  %v3276_v36 = vld [vmem:[%s3005_s27 + $0x88] sm:$0xf] }
  0x4a   : > { %v648_v3 = vunpack.c.l.b16 %v581_v51  ;;  %v297_v7 = vor.u32 %v296_v45, %v292_v44  ;;  %v649_v62 = vunpack.c.l.b16 %v591_v61  ;;  %v403_v18 = vrot.slane %v401_v60, 4  ;;  %4229 = vst [vmem:[#allocation11_spill] sm:$0xff] %v3276_v36  ;;  %v3282_v60 = vld [vmem:[%s3005_s27 + $0x8c] sm:$0x1] }
  0x4b   : > { %2615 = vmatmul.msk.bf16.gmra.mxu2 %vm677_vm3, %v3249_v38  ;;  %v288_v6 = vrot.slane %v287_v26, 4  ;;  %v404_v19 = vshll.u32 %v3246_v30, 16  ;;  %v410_v22 = vshll.u32 %v3254_v54, 16  ;;  %v414_v11 = vshrl.u32 %v3254_v54, 16  ;;  %4230 = vst [vmem:[#allocation12_spill] sm:$0xff] %v3282_v60 }
  0x4c   : > { %v298_v21 = vrot.slane %v297_v7, 4  ;;  %v420_v28 = vshll.u32 %v3257_v58, 16  ;;  %v3271_v31 = vpack.c.b16 %v649_v62, %v648_v3  ;;  %v497_v41 = vshrl.u32 %v3263_v17, 16 }
  0x4d   : > { %v293_v33 = vsel %vm3037_vm4, %v288_v6, %v292_v44  ;;  %v406_v34 = vrot.slane %v404_v19, 5  ;;  %v412_v51 = vrot.slane %v410_v22, 5  ;;  %v416_v26 = vrot.slane %v414_v11, 4 }
  0x4e   : > { %4228 = vst [vmem:[#allocation10_spill] sm:$0xff] %v3271_v31  ;;  %v303_v45 = vsel %vm3037_vm4, %v298_v21, %v302_v10  ;;  %v624_v49 = vunpack.c.l.b16 %v293_v33  ;;  %2619 = vmatmul.msk.bf16.gmra.mxu3 %vm677_vm3, %v3271_v31  ;;  %v422_v3 = vrot.slane %v420_v28, 5  ;;  %v499_v7 = vrot.slane %v497_v41, 4  ;;  %v3290_v21 = vld [vmem:[%s3005_s27 + $0xb4] sm:$0xf] }
  0x4f   : > { %v625_v61 = vunpack.c.l.b16 %v303_v45  ;;  %v407_v44 = vor.u32 %v406_v34, %v403_v18  ;;  %v417_v62 = vor.u32 %v416_v26, %v412_v51  ;;  %v500_v6 = vshll.u32 %v3263_v17, 16  ;;  %4231 = vst [vmem:[#allocation13_spill] sm:$0xff] %v3290_v21  ;;  %v3296_v34 = vld [vmem:[%s3005_s27 + $0xb8] sm:$0xf] }
  0x50   : > { %v506_v19 = vshll.u32 %v3276_v36, 16  ;;  %v510_v10 = vshrl.u32 %v3276_v36, 16  ;;  %v516_v33 = vshll.u32 %v3282_v60, 16  ;;  %4232 = vst [vmem:[#allocation14_spill] sm:$0xff] %v3296_v34  ;;  %v606_v46 = vshrl.u32 %v3296_v34, 16 }
  0x51   : > { %v3292_v22 = vpack.c.b16 %v625_v61, %v624_v49  ;;  %v408_v11 = vrot.slane %v407_v44, 4  ;;  %v418_v45 = vrot.slane %v417_v62, 4  ;;  %v502_v31 = vrot.slane %v500_v6, 5 }
  0x52   : > { %v508_v18 = vrot.slane %v506_v19, 5  ;;  %v512_v28 = vrot.slane %v510_v10, 4  ;;  %v518_v26 = vrot.slane %v516_v33, 5  ;;  %v593_v49 = vshrl.u32 %v3290_v21, 16 }
  0x53   : > { %2607 = vmatmul.msk.bf16.gmra.mxu0 %vm677_vm3, %v3292_v22  ;;  %v413_v41 = vsel %vm3037_vm4, %v408_v11, %v412_v51  ;;  %v596_v61 = vshll.u32 %v3290_v21, 16  ;;  %v423_v44 = vsel %vm3037_vm4, %v418_v45, %v422_v3  ;;  %v503_v6 = vor.u32 %v502_v31, %v499_v7  ;;  %v3313_v21 = vld [vmem:[%s3005_s27 + $0x24] sm:$0xf] }
  0x54   : > { %v634_v62 = vunpack.c.l.b16 %v413_v41  ;;  %v513_v19 = vor.u32 %v512_v28, %v508_v18  ;;  %v635_v10 = vunpack.c.l.b16 %v423_v44  ;;  %v595_v32 = vrot.slane %v593_v49, 4  ;;  %v3319_v28 = vld [vmem:[%s3005_s27 + $0x28] sm:$0xf] }
  0x55   : > { %v598_v24 = vrot.slane %v596_v61, 5  ;;  %v602_v51 = vshll.u32 %v3296_v34, 16  ;;  %v504_v11 = vrot.slane %v503_v6, 4  ;;  %v612_v48 = vshll.u32 %v3303_v23, 16  ;;  %v3326_v6 = vld [vmem:[%s3005_s27 + $0x2c] sm:$0x1] }
  0x56   : > { %v514_v33 = vrot.slane %v513_v19, 4  ;;  %v1072_v3 = vrot.slane %v3057_v9, 5  ;;  %v3316_v45 = vpack.c.b16 %v635_v10, %v634_v62  ;;  %v608_v61 = vrot.slane %v606_v46, 4  ;;  %v2847_v23 = vld [vmem:[%s4174_s1 + $0x5c] sm:$0x1] }
  0x57   : > { %v599_v31 = vor.u32 %v598_v24, %v595_v32  ;;  %v604_v7 = vrot.slane %v602_v51, 5  ;;  %v509_v41 = vsel %vm3037_vm4, %v504_v11, %v508_v18  ;;  %v614_v44 = vrot.slane %v612_v48, 5 }
  0x58   : > { %4234 = vst [vmem:[#allocation16_spill] sm:$0xff] %v3316_v45  ;;  %v519_v49 = vsel %vm3037_vm4, %v514_v33, %v518_v26  ;;  %2612 = vmatmul.msk.bf16.gmra.mxu1 %vm677_vm3, %v3316_v45  ;;  %v642_v9 = vunpack.c.l.b16 %v509_v41  ;;  %v305_v24 = vshrl.u32 %v3313_v21, 16  ;;  %v308_v10 = vshll.u32 %v3313_v21, 16  ;;  %v2820_v33 = vld [vmem:[%s4174_s1 + $0x50] sm:$0x1] }
  0x59   : > { %v643_v62 = vunpack.c.l.b16 %v519_v49  ;;  %v600_v19 = vrot.slane %v599_v31, 4  ;;  %v609_v32 = vor.u32 %v608_v61, %v604_v7  ;;  %v314_v18 = vshll.u32 %v3319_v28, 16 }
  0x5a   : > { %v318_v51 = vshrl.u32 %v3319_v28, 16  ;;  %v307_v46 = vrot.slane %v305_v24, 4  ;;  %v324_v11 = vshll.u32 %v3326_v6, 16  ;;  %v310_v49 = vrot.slane %v308_v10, 5 }
  0x5b   : > { %v3334_v26 = vpack.c.b16 %v643_v62, %v642_v9  ;;  %v605_v48 = vsel %vm3037_vm4, %v600_v19, %v604_v7  ;;  %v610_v31 = vrot.slane %v609_v32, 4  ;;  %v316_v61 = vrot.slane %v314_v18, 5  ;;  %v2797_v62 = vld [vmem:[%s4174_s1 + $0x44] sm:$0x1] }
  0x5c   : > { %v650_v41 = vunpack.c.l.b16 %v605_v48  ;;  %v320_v9 = vrot.slane %v318_v51, 4  ;;  %v326_v7 = vrot.slane %v324_v11, 5  ;;  %v311_v24 = vor.u32 %v310_v49, %v307_v46 }
  0x5d   : > { %4235 = vst [vmem:[#allocation17_spill] sm:$0xff] %v3334_v26  ;;  %2616 = vmatmul.msk.bf16.gmra.mxu2 %vm677_vm3, %v3334_v26  ;;  %v615_v19 = vsel %vm3037_vm4, %v610_v31, %v614_v44  ;;  %v2705_v10 = vrot.slane %v3047_v4, 9  ;;  %v1069_v18 = vrot.slane %v3054_v8, 5  ;;  %v1889_v11 = vunpack.c.l.b16 %v2820_v33  ;;  %v2871_v4 = vld [vmem:[%s4174_s1 + $0x68] sm:$0x1] }
  0x5e   : > { %v651_v51 = vunpack.c.l.b16 %v615_v19  ;;  %v321_v48 = vor.u32 %v320_v9, %v316_v61  ;;  %v2056_v34 = vunpack.c.l.b16 %v2847_v23  ;;  %v312_v26 = vrot.slane %v311_v24, 4 }
  0x5f   : > { %v1070_v17 = vsel %vm3352_vm7, %v2705_v10, %v1069_v18  ;;  %v1071_v60 = vrot.slane %v1069_v18, 4  ;;  %v1744_v36 = vunpack.c.l.b16 %v2797_v62  ;;  %v1891_v49 = vpack.c.b16 %v1889_v11, %v1889_v11 }
  0x60   : > { %v3360_v44 = vpack.c.b16 %v651_v51, %v650_v41  ;;  %v322_v46 = vrot.slane %v321_v48, 4  ;;  %v1183_v31 = vunpack.c.l.b16 %v1070_v17  ;;  %v317_v8 = vsel %vm3037_vm4, %v312_v26, %v316_v61 }
  0x61   : > { %v1073_v23 = vsel %vm3352_vm7, %v1071_v60, %v1072_v3  ;;  %v2058_v33 = vpack.c.b16 %v2056_v34, %v2056_v34  ;;  %v1746_v9 = vpack.c.b16 %v1744_v36, %v1744_v36  ;;  %v626_v41 = vunpack.c.l.b16 %v317_v8  ;;  %v2895_v60 = vld [vmem:[%s3005_s27] sm:$0xff] }
  0x62   : > { %2620 = vmatmul.msk.bf16.gmra.mxu3 %vm677_vm3, %v3360_v44  ;;  %v327_v17 = vsel %vm3037_vm4, %v322_v46, %v326_v7  ;;  %v1184_v62 = vunpack.c.l.b16 %v1073_v23  ;;  %v1897_v19 = vsel %vm726_vm0, %v1891_v49, 0  ;;  %v2207_v61 = vunpack.c.l.b16 %v2871_v4  ;;  %v2896_v49 = vld [vmem:[%s3005_s27 + $0xc] sm:$0xff] }
  0x63   : > { %v627_v24 = vunpack.c.l.b16 %v327_v17  ;;  %1905 = vmatpush.bf16.msra.mxu2 %v1897_v19  ;;  %v2064_v10 = vsel %vm726_vm0, %v2058_v33, 0  ;;  %v1752_v26 = vsel %vm726_vm0, %v1746_v9, 0  ;;  %v2706_v36 = vrot.slane %v3125_v43, 9  ;;  %v3404_v9 = vld [vmem:[%s3005_s27 + $0x18] sm:$0xff] }
  0x64   : > { %v1215_v34 = vpack.c.b16 %v1184_v62, %v1183_v31  ;;  %2072 = vmatpush.bf16.msra.mxu3 %v2064_v10  ;;  %1760 = vmatpush.bf16.msra.mxu1 %v1752_v26  ;;  %v1076_v3 = vrot.slane %v3133_v53, 5  ;;  %v1079_v7 = vrot.slane %v3140_v59, 5  ;;  %v2209_v51 = vpack.c.b16 %v2207_v61, %v2207_v61  ;;  %v3424_v10 = vld [vmem:[%s3005_s27 + $0x24] sm:$0xff] }
  0x65   : > { %v3380_v18 = vpack.c.b16 %v627_v24, %v626_v41  ;;  %v1083_v4 = vrot.slane %v3232_v2, 5  ;;  %v2707_v8 = vrot.slane %v3227_v55, 9  ;;  %v1086_v33 = vrot.slane %v3237_v12, 5 }
  0x66   : > { %v1077_v48 = vsel %vm3352_vm7, %v2706_v36, %v1076_v3  ;;  %v1078_v11 = vrot.slane %v1076_v3, 4  ;;  %v2215_v46 = vsel %vm726_vm0, %v2209_v51, 0  ;;  %v1090_v12 = vrot.slane %v3319_v28, 5  ;;  %v3446_v51 = vld [vmem:[%s3005_s27 + $0x30] sm:$0xff] }
  0x67   : > { %2608 = vmatmul.msk.bf16.gmra.mxu0 %vm677_vm3, %v3380_v18  ;;  %v1185_v31 = vunpack.c.l.b16 %v1077_v48  ;;  %v1085_v23 = vrot.slane %v1083_v4, 4  ;;  %v1084_v17 = vsel %vm3352_vm7, %v2707_v8, %v1083_v4  ;;  %v2708_v62 = vrot.slane %v3313_v21, 9 }
  0x68   : > { %2689 = vmatmul.msk.bf16.vlgmr.msrb.gmra.mxu1 %vm677_vm3, %v2895_v60  ;;  %2223 = vmatpush.bf16.msra.mxu0 %v2215_v46  ;;  %v1080_v43 = vsel %vm3352_vm7, %v1078_v11, %v1079_v7  ;;  %v1187_v2 = vunpack.c.l.b16 %v1084_v17  ;;  %v1092_v19 = vrot.slane %v1090_v12, 4  ;;  %v1093_v24 = vrot.slane %v3326_v6, 5 }
  0x69   : > { %v1186_v53 = vunpack.c.l.b16 %v1080_v43  ;;  %v1091_v26 = vsel %vm3352_vm7, %v2708_v62, %v1090_v12  ;;  %v1097_v6 = vrot.slane %v3017_v14, 5  ;;  %v2709_v36 = vrot.slane %v3014_v13, 9 }
  0x6a   : > { %v1094_v61 = vsel %vm3352_vm7, %v1092_v19, %v1093_v24  ;;  %v1189_v28 = vunpack.c.l.b16 %v1091_v26  ;;  %v1100_v7 = vrot.slane %v3020_v15, 5  ;;  %v2710_v4 = vrot.slane %v3075_v35, 9 }
  0x6b   : > { %v3390_v59 = vpack.c.b16 %v1186_v53, %v1185_v31  ;;  %v1190_v60 = vunpack.c.l.b16 %v1094_v61  ;;  %v1099_v3 = vrot.slane %v1097_v6, 4  ;;  %v1098_v48 = vsel %vm3352_vm7, %v2709_v36, %v1097_v6  ;;  %v3508_v36 = vld [vmem:[%s3005_s27 + $0x48] sm:$0xff] }
  0x6c   : > { %v1191_v14 = vunpack.c.l.b16 %v1098_v48  ;;  %v1104_v53 = vrot.slane %v3080_v39, 5  ;;  %v1111_v26 = vrot.slane %v3166_v20, 5  ;;  %v1114_v6 = vrot.slane %v3171_v29, 5 }
  0x6d   : > { %2728 = vmatmul.msk.bf16.vlgmr.msrb.gmra.mxu2 %vm677_vm3, %v1215_v34  ;;  %v3436_v21 = vpack.c.b16 %v1190_v60, %v1189_v28  ;;  %v1101_v11 = vsel %vm3352_vm7, %v1099_v3, %v1100_v7  ;;  %v2711_v28 = vrot.slane %v3146_v1, 9 }
  0x6e   : > { %v1192_v46 = vunpack.c.l.b16 %v1101_v11  ;;  %v1106_v8 = vrot.slane %v1104_v53, 4  ;;  %v1113_v60 = vrot.slane %v1111_v26, 4 }
  0x6f   : > { %v1112_v48 = vsel %vm3352_vm7, %v2711_v28, %v1111_v26 }
  0x70   : > { %v3462_v15 = vpack.c.b16 %v1192_v46, %v1191_v14  ;;  %v1115_v20 = vsel %vm3352_vm7, %v1113_v60, %v1114_v6  ;;  %v1195_v11 = vunpack.c.l.b16 %v1112_v48 }
  0x71   : > { %v1196_v29 = vunpack.c.l.b16 %v1115_v20 }
  0x72   : > { %2755 = vmatmul.msk.bf16.vlgmr.msrb.gmra.mxu3 %vm677_vm3, %v2896_v49 }
  0x77   : > { %2778 = vmatmul.msk.bf16.vlgmr.msrb.gmra.mxu0 %vm677_vm3, %v3210_v25  ;;  %v1087_v25 = vsel %vm3352_vm7, %v1085_v23, %v1086_v33  ;;  %v1107_v23 = vrot.slane %v3083_v40, 5  ;;  %v3474_v33 = vld [vmem:[%s3005_s27 + $0x3c] sm:$0xff] }
  0x78   : > { %2690 = vmatmul.msk.bf16.gmra.mxu1 %vm677_vm3, %v2896_v49  ;;  %v1188_v41 = vunpack.c.l.b16 %v1087_v25 }
  0x79   : > { %v1108_v39 = vsel %vm3352_vm7, %v1106_v8, %v1107_v23 }
  0x7a   : > { %v3416_v55 = vpack.c.b16 %v1188_v41, %v1187_v2  ;;  %v1105_v2 = vsel %vm3352_vm7, %v2710_v4, %v1104_v53  ;;  %v1194_v12 = vunpack.c.l.b16 %v1108_v39  ;;  %v3530_v53 = vpack.c.b16 %v1196_v29, %v1195_v11  ;;  %v2920_v11 = vld [vmem:[%s4174_s1 + $0x54] sm:$0xff]  ;;  %v2918_v29 = vld [vmem:[%s4174_s1 + $0x3c] sm:$0xff] }
  0x7b   : > { %v1193_v40 = vunpack.c.l.b16 %v1105_v2  ;;  %v1118_v4 = vrot.slane %v3254_v54, 5  ;;  %v2712_v2 = vrot.slane %v3246_v30, 9  ;;  %2073 = vmatpush.bf16.msra.mxu3 %v2920_v11  ;;  %1761 = vmatpush.bf16.msra.mxu1 %v2918_v29  ;;  %v3588_v11 = vld [vmem:[%s3005_s27 + $0x60] sm:$0xff] }
  0x7c   : > { %4242 = vst [vmem:[#allocation22_spill] sm:$0xff] %v3530_v53 }
  0x7d   : > { %2729 = vmatmul.msk.bf16.gmra.mxu2 %vm677_vm3, %v3390_v59  ;;  %v3496_v19 = vpack.c.b16 %v1194_v12, %v1193_v40  ;;  %v1120_v39 = vrot.slane %v1118_v4, 4  ;;  %v1121_v40 = vrot.slane %v3257_v58, 5  ;;  %v3542_v12 = vld [vmem:[%s3005_s27 + $0x54] sm:$0xff]  ;;  %v1119_v54 = vsel %vm3352_vm7, %v2712_v2, %v1118_v4  ;;  %v2919_v58 = vld [vmem:[%s4174_s1 + $0x48] sm:$0xff]  ;;  %v2938_v2 = vld [vmem:[%s3005_s27 + $0x64] sm:$0xf] }
  0x7e   : > { %4243 = vst [vmem:[#allocation23_spill] sm:$0xff] %v3542_v12  ;;  %v1197_v30 = vunpack.c.l.b16 %v1119_v54  ;;  %1906 = vmatpush.bf16.msra.mxu2 %v2919_v58  ;;  %v2939_v58 = vld [vmem:[%s3005_s27 + $0x68] sm:$0x1] }
  0x7f   : > { %v1122_v60 = vsel %vm3352_vm7, %v1120_v39, %v1121_v40  ;;  %v1125_v39 = vrot.slane %v2938_v2, 5  ;;  %4247 = vst [vmem:[#allocation27_spill] sm:$0xff] %v3588_v11 }
  0x80   : > { %v1198_v6 = vunpack.c.l.b16 %v1122_v60  ;;  %v2921_v60 = vld [vmem:[%s4174_s1 + $0x60] sm:$0xff] }
  0x81   : > { %v1127_v2 = vrot.slane %v1125_v39, 4  ;;  %2224 = vmatpush.bf16.msra.mxu0 %v2921_v60 }
  0x82   : > { %2756 = vmatmul.msk.bf16.gmra.mxu3 %vm677_vm3, %v3404_v9  ;;  %v3571_v4 = vpack.c.b16 %v1198_v6, %v1197_v30  ;;  %v2940_v30 = vld [vmem:[%s3005_s27 + $0x60] sm:$0xf] }
  0x83   : > { %v2713_v6 = vrot.slane %v2940_v30, 9 }
  0x84   : > { %4245 = vst [vmem:[#allocation25_spill] sm:$0xff] %v3571_v4 }
  0x87   : > { %2779 = vmatmul.msk.bf16.gmra.mxu0 %vm677_vm3, %v3292_v22 }
  0x88   : > { %2691 = vmatmul.msk.bf16.gmra.mxu1 %vm677_vm3, %v3404_v9 }
  0x8d   : > { %2730 = vmatmul.msk.bf16.gmra.mxu2 %vm677_vm3, %v3416_v55 }
  0x92   : > { %2757 = vmatmul.msk.bf16.gmra.mxu3 %vm677_vm3, %v3424_v10 }
  0x97   : > { %2780 = vmatmul.msk.bf16.gmra.mxu0 %vm677_vm3, %v3380_v18 }
  0x98   : > { %2692 = vmatmul.msk.bf16.gmra.mxu1 %vm677_vm3, %v3424_v10 }
  0x9c   : > { %v3439_v34 = vpop.f32.mrf.mxu1 }
  0x9d   : > { %2731 = vmatmul.msk.bf16.gmra.mxu2 %vm677_vm3, %v3436_v21 }
  0xa2   : > { %2758 = vmatmul.msk.bf16.gmra.mxu3 %vm677_vm3, %v3446_v51 }
  0xa4   : > { %v3454_v31 = vpop.f32.mrf.mxu1 }
  0xa6   : > { %v3456_v13 = vpop.f32.mrf.mxu2 }
  0xa7   : > { %2781 = vmatmul.msk.bf16.gmra.mxu0 %vm677_vm3, %v3049_v5 }
  0xa8   : > { %2693 = vmatmul.msk.bf16.gmra.mxu1 %vm677_vm3, %v3446_v51 }
  0xaa   : > { %v3464_v43 = vpop.f32.mrf.mxu0  ;;  %v3467_v49 = vpop.f32.mrf.mxu3 }
  0xab   : > { %4238 = vst [vmem:[#allocation18_spill] sm:$0xff] %v3467_v49 }
  0xad   : > { %2732 = vmatmul.msk.bf16.gmra.mxu2 %vm677_vm3, %v3462_v15 }
  0xae   : > { %v3478_v25 = vpop.f32.mrf.mxu2 }
  0xaf   : > { %v3476_v17 = vpop.f32.mrf.mxu1 }
  0xb2   : > { %2759 = vmatmul.msk.bf16.gmra.mxu3 %vm677_vm3, %v3474_v33  ;;  %v3486_v35 = vpop.f32.mrf.mxu0  ;;  %v3488_v41 = vpop.f32.mrf.mxu3 }
  0xb3   : > { %4239 = vst [vmem:[#allocation19_spill] sm:$0xff] %v3488_v41 }
  0xb7   : > { %2782 = vmatmul.msk.bf16.gmra.mxu0 %vm677_vm3, %v3130_v52  ;;  %v3492_v62 = vpop.f32.mrf.mxu1 }
  0xb8   : > { %2694 = vmatmul.msk.bf16.gmra.mxu1 %vm677_vm3, %v3474_v33 }
  0xba   : > { %v3498_v24 = vpop.f32.mrf.mxu2 }
  0xbd   : > { %2733 = vmatmul.msk.bf16.gmra.mxu2 %vm677_vm3, %v3496_v19 }
  0xbe   : > { %v3503_v61 = vpop.f32.mrf.mxu0 }
  0xbf   : > { %v3510_v3 = vpop.f32.mrf.mxu3 }
  0xc0   : > { %4240 = vst [vmem:[#allocation20_spill] sm:$0xff] %v3510_v3 }
  0xc1   : > { %v3512_v7 = vpop.f32.mrf.mxu1 }
  0xc2   : > { %2760 = vmatmul.msk.bf16.gmra.mxu3 %vm677_vm3, %v3508_v36  ;;  %v3520_v1 = vpop.f32.mrf.mxu2 }
  0xc6   : > { %v3522_v14 = vpop.f32.mrf.mxu0 }
  0xc7   : > { %2783 = vmatmul.msk.bf16.gmra.mxu0 %vm677_vm3, %v3222_v50  ;;  %v3526_v46 = vpop.f32.mrf.mxu3 }
  0xc8   : > { %4241 = vst [vmem:[#allocation21_spill] sm:$0xff] %v3526_v46  ;;  %2695 = vmatmul.msk.bf16.gmra.mxu1 %vm677_vm3, %v3508_v36 }
  0xc9   : > { %v3533_v8 = vpop.f32.mrf.mxu1 }
  0xcd   : > { %2734 = vmatmul.msk.bf16.gmra.mxu2 %vm677_vm3, %v3530_v53 }
  0xce   : > { %v3537_v23 = vpop.f32.mrf.mxu2 }
  0xd0   : > { %v3544_v26 = vpop.f32.mrf.mxu0 }
  0xd1   : > { %v3546_v28 = vpop.f32.mrf.mxu3 }
  0xd2   : > { %4244 = vst [vmem:[#allocation24_spill] sm:$0xff] %v3546_v28  ;;  %2761 = vmatmul.msk.bf16.gmra.mxu3 %vm677_vm3, %v3542_v12  ;;  %v1128_v28 = vrot.slane %v2939_v58, 5 }
  0xd5   : > { %v3559_v20 = vpop.f32.mrf.mxu1 }
  0xd6   : > { %v3557_v48 = vpop.f32.mrf.mxu2 }
  0xd7   : > { %2784 = vmatmul.msk.bf16.gmra.mxu0 %vm677_vm3, %v3316_v45 }
  0xd8   : > { %2696 = vmatmul.msk.bf16.gmra.mxu1 %vm677_vm3, %v3542_v12  ;;  %v3574_v40 = vpop.f32.mrf.mxu0 }
  0xd9   : > { %v3576_v54 = vpop.f32.mrf.mxu3 }
  0xda   : > { %4246 = vst [vmem:[#allocation26_spill] sm:$0xff] %v3576_v54  ;;  %v1126_v54 = vsel %vm3352_vm7, %v2713_v6, %v1125_v39  ;;  %v1132_v6 = vrot.slane %v3104_v57, 5 }
  0xdb   : > { %v1199_v45 = vunpack.c.l.b16 %v1126_v54 }
  0xdd   : > { %2735 = vmatmul.msk.bf16.gmra.mxu2 %vm677_vm3, %v3571_v4  ;;  %v3584_v46 = vpop.f32.mrf.mxu1  ;;  %v1129_v4 = vsel %vm3352_vm7, %v1127_v2, %v1128_v28  ;;  %v2714_v2 = vrot.slane %v3090_v47, 9 }
  0xde   : > { %v1200_v3 = vunpack.c.l.b16 %v1129_v4  ;;  %v1135_v4 = vrot.slane %v3110_v63, 5 }
  0xdf   : > { %v1133_v57 = vsel %vm3352_vm7, %v2714_v2, %v1132_v6 }
  0xe0   : > { %v3590_v29 = vpop.f32.mrf.mxu2  ;;  %v3609_v28 = vpack.c.b16 %v1200_v3, %v1199_v45 }
  0xe2   : > { %2762 = vmatmul.msk.bf16.gmra.mxu3 %vm677_vm3, %v3588_v11  ;;  %4249 = vst [vmem:[#allocation29_spill] sm:$0xff] %v3609_v28 }
  0xe4   : > { %v3598_v58 = vpop.f32.mrf.mxu0 }
  0xe5   : > { %v3600_v30 = vpop.f32.mrf.mxu3  ;;  %v968_v12 = vpop.f32.mrf.mxu1 }
  0xe6   : > { %4248 = vst [vmem:[#allocation28_spill] sm:$0xff] %v3600_v30  ;;  %v969_v60 = vadd.f32 %v968_v12, %v3464_v43  ;;  %v1134_v30 = vrot.slane %v1132_v6, 4 }
  0xe7   : > { %2785 = vmatmul.msk.bf16.gmra.mxu0 %vm677_vm3, %v3068_v27  ;;  %v3621_v27 = vld [vmem:[%s3005_s27 + $0x6c] sm:$0xff] }
  0xe8   : > { %v3605_v39 = vpop.f32.mrf.mxu2  ;;  %2697 = vmatmul.msk.bf16.gmra.mxu1 %vm677_vm3, %v3588_v11 }
  0xec   : > { %v3612_v54 = vpop.f32.mrf.mxu0 }
  0xed   : > { %2736 = vmatmul.msk.bf16.gmra.mxu2 %vm677_vm3, %v3609_v28  ;;  %v3617_v43 = vpop.f32.mrf.mxu3  ;;  %v970_v12 = vpop.f32.mrf.mxu1  ;;  %v1136_v28 = vsel %vm3352_vm7, %v1134_v30, %v1135_v4 }
  0xee   : > { %4250 = vst [vmem:[#allocation30_spill] sm:$0xff] %v3617_v43  ;;  %v971_v45 = vadd.f32 %v970_v12, %v3486_v35  ;;  %v1201_v43 = vunpack.c.l.b16 %v1133_v57  ;;  %v1202_v53 = vunpack.c.l.b16 %v1136_v28  ;;  %v1139_v28 = vrot.slane %v3186_v56, 5 }
  0xef   : > { %v2715_v12 = vrot.slane %v3180_v37, 9 }
  0xf0   : > { %v1300_v3 = vpop.f32.mrf.mxu2  ;;  %v3635_v30 = vpack.c.b16 %v1202_v53, %v1201_v43  ;;  %v1141_v2 = vrot.slane %v1139_v28, 4 }
  0xf1   : > { %v1380_v11 = vadd.f32 %v1300_v3, %v969_v60  ;;  %v3645_v3 = vld [vmem:[%s3005_s27 + $0x78] sm:$0xff]  ;;  %v1140_v56 = vsel %vm3352_vm7, %v2715_v12, %v1139_v28 }
  0xf2   : > { %2763 = vmatmul.msk.bf16.gmra.mxu3 %vm677_vm3, %v3621_v27 }
  0xf4   : > { %v1612_v63 = vpop.f32.mrf.mxu0 }
  0xf5   : > { %v1445_v47 = vpop.f32.mrf.mxu3  ;;  %v973_v41 = vpop.f32.mrf.mxu1 }
  0xf6   : > { %v1525_v50 = vadd.f32 %v1445_v47, %v1380_v11  ;;  %v974_v49 = vadd.f32 %v973_v41, %v3503_v61  ;;  %v1142_v41 = vrot.slane %v3192_v0, 5 }
  0xf7   : > { %2786 = vmatmul.msk.bf16.gmra.mxu0 %vm677_vm3, %v3160_v16 }
  0xf8   : > { %v1302_v35 = vpop.f32.mrf.mxu2  ;;  %2698 = vmatmul.msk.bf16.gmra.mxu1 %vm677_vm3, %v3621_v27  ;;  %v3637_v6 = vadd.f32 %v1612_v63, %v1525_v50  ;;  %v1143_v0 = vsel %vm3352_vm7, %v1141_v2, %v1142_v41  ;;  %v1203_v63 = vunpack.c.l.b16 %v1140_v56  ;;  %v4254_v56 = vld [vmem:[#allocation9_spill] sm:$0xff] }
  0xf9   : > { %v1381_v60 = vadd.f32 %v1302_v35, %v971_v45  ;;  %v1204_v47 = vunpack.c.l.b16 %v1143_v0  ;;  %v2716_v0 = vrot.slane %v4254_v56, 9 }
  0xfc   : > { %v1614_v4 = vpop.f32.mrf.mxu0 }
  0xfd   : > { %2737 = vmatmul.msk.bf16.gmra.mxu2 %vm677_vm3, %v3635_v30  ;;  %v1447_v61 = vpop.f32.mrf.mxu3  ;;  %v975_v11 = vpop.f32.mrf.mxu1 }
  0xfe   : > { %v1526_v45 = vadd.f32 %v1447_v61, %v1381_v60  ;;  %v976_v53 = vadd.f32 %v975_v11, %v3522_v14  ;;  %v4252_v11 = vld [vmem:[#allocation11_spill] sm:$0xff] }
  0xff   : > { %v1146_v12 = vrot.slane %v4252_v11, 5 }
 0x100   : > { %v1305_v50 = vpop.f32.mrf.mxu2  ;;  %v3648_v57 = vadd.f32 %v1614_v4, %v1526_v45  ;;  %v3661_v4 = vpack.c.b16 %v1204_v47, %v1203_v63 }
 0x101   : > { %v1382_v43 = vadd.f32 %v1305_v50, %v974_v49 }
 0x102   : > { %2764 = vmatmul.msk.bf16.gmra.mxu3 %vm677_vm3, %v3645_v3 }
 0x104   : > { %v1617_v37 = vpop.f32.mrf.mxu0 }
 0x105   : > { %v1450_v35 = vpop.f32.mrf.mxu3  ;;  %v978_v60 = vpop.f32.mrf.mxu1 }
 0x106   : > { %v1527_v61 = vadd.f32 %v1450_v35, %v1382_v43  ;;  %v979_v14 = vadd.f32 %v978_v60, %v3544_v26  ;;  %v4253_v26 = vld [vmem:[#allocation12_spill] sm:$0xff]  ;;  %v3671_v60 = vld [vmem:[%s3005_s27 + $0x84] sm:$0xff] }
 0x107   : > { %2787 = vmatmul.msk.bf16.gmra.mxu0 %vm677_vm3, %v3249_v38  ;;  %v1149_v45 = vrot.slane %v4253_v26, 5 }
 0x108   : > { %v1307_v49 = vpop.f32.mrf.mxu2  ;;  %2699 = vmatmul.msk.bf16.gmra.mxu1 %vm677_vm3, %v3645_v3  ;;  %v3663_v41 = vadd.f32 %v1617_v37, %v1527_v61 }
 0x109   : > { %v1383_v28 = vadd.f32 %v1307_v49, %v976_v53  ;;  %v1148_v53 = vrot.slane %v1146_v12, 4  ;;  %v1147_v49 = vsel %vm3352_vm7, %v2716_v0, %v1146_v12 }
 0x10a   : > { %4251 = vst [vmem:[#allocation31_spill] sm:$0xff] %v3663_v41  ;;  %v3794_v41 = vld [vmem:[%s3005_s27 + $0xc8] sm:$0x1] }
 0x10b   : > { %v1150_v11 = vsel %vm3352_vm7, %v1148_v53, %v1149_v45 }
 0x10c   : > { %v1619_v2 = vpop.f32.mrf.mxu0 }
 0x10d   : > { %2738 = vmatmul.msk.bf16.gmra.mxu2 %vm677_vm3, %v3661_v4  ;;  %v1452_v50 = vpop.f32.mrf.mxu3  ;;  %v980_v43 = vpop.f32.mrf.mxu1 }
 0x10e   : > { %v1528_v35 = vadd.f32 %v1452_v50, %v1383_v28  ;;  %v981_v63 = vadd.f32 %v980_v43, %v3574_v40  ;;  %v1205_v28 = vunpack.c.l.b16 %v1147_v49  ;;  %v1206_v50 = vunpack.c.l.b16 %v1150_v11 }
 0x110   : > { %v1310_v37 = vpop.f32.mrf.mxu2  ;;  %v3674_v61 = vadd.f32 %v1619_v2, %v1528_v35  ;;  %v4256_v2 = vld [vmem:[#allocation17_spill] sm:$0xff]  ;;  %v3687_v45 = vpack.c.b16 %v1206_v50, %v1205_v28  ;;  %v2941_v35 = vld [vmem:[%s3005_s27 + $0x94] sm:$0xf] }
 0x111   : > { %v1384_v47 = vadd.f32 %v1310_v37, %v979_v14  ;;  %v1153_v37 = vrot.slane %v2941_v35, 5 }
 0x112   : > { %4255 = vst [vmem:[#allocation11_spill] sm:$0xff] %v3674_v61  ;;  %2765 = vmatmul.msk.bf16.gmra.mxu3 %vm677_vm3, %v3671_v60 }
 0x113   : > { %4257 = vst [vmem:[#allocation12_spill] sm:$0xff] %v3687_v45 }
 0x114   : > { %v1622_v26 = vpop.f32.mrf.mxu0 }
 0x115   : > { %v1455_v56 = vpop.f32.mrf.mxu3  ;;  %v983_v40 = vpop.f32.mrf.mxu1 }
 0x116   : > { %v1529_v43 = vadd.f32 %v1455_v56, %v1384_v47  ;;  %v984_v14 = vadd.f32 %v983_v40, %v3598_v58  ;;  %v2942_v58 = vld [vmem:[%s3005_s27 + $0x98] sm:$0x1]  ;;  %v2943_v40 = vld [vmem:[%s3005_s27 + $0x90] sm:$0xf] }
 0x117   : > { %2788 = vmatmul.msk.bf16.gmra.mxu0 %vm677_vm3, %v4256_v2  ;;  %v1156_v47 = vrot.slane %v2942_v58, 5  ;;  %v3697_v2 = vld [vmem:[%s3005_s27 + $0x90] sm:$0xff] }
 0x118   : > { %v1312_v12 = vpop.f32.mrf.mxu2  ;;  %2700 = vmatmul.msk.bf16.gmra.mxu1 %vm677_vm3, %v3671_v60  ;;  %v3689_v53 = vadd.f32 %v1622_v26, %v1529_v43  ;;  %4259 = vst [vmem:[#allocation32_spill] sm:$0xff] %v3697_v2 }
 0x119   : > { %v1385_v0 = vadd.f32 %v1312_v12, %v981_v63  ;;  %v2717_v63 = vrot.slane %v2943_v40, 9  ;;  %v1155_v12 = vrot.slane %v1153_v37, 4 }
 0x11a   : > { %4258 = vst [vmem:[#allocation9_spill] sm:$0xff] %v3689_v53 }
 0x11b   : > { %v1154_v35 = vsel %vm3352_vm7, %v2717_v63, %v1153_v37  ;;  %v1157_v58 = vsel %vm3352_vm7, %v1155_v12, %v1156_v47  ;;  %v2944_v63 = vld [vmem:[%s3005_s27 + $0xa0] sm:$0xf] }
 0x11c   : > { %v1624_v49 = vpop.f32.mrf.mxu0  ;;  %v1160_v12 = vrot.slane %v2944_v63, 5 }
 0x11d   : > { %2739 = vmatmul.msk.bf16.gmra.mxu2 %vm677_vm3, %v3687_v45  ;;  %v1457_v11 = vpop.f32.mrf.mxu3  ;;  %v985_v56 = vpop.f32.mrf.mxu1 }
 0x11e   : > { %v1530_v61 = vadd.f32 %v1457_v11, %v1385_v0  ;;  %v986_v28 = vadd.f32 %v985_v56, %v3612_v54  ;;  %v1207_v0 = vunpack.c.l.b16 %v1154_v35  ;;  %v1208_v11 = vunpack.c.l.b16 %v1157_v58 }
 0x120   : > { %v1315_v26 = vpop.f32.mrf.mxu2  ;;  %v3700_v43 = vadd.f32 %v1624_v49, %v1530_v61  ;;  %v4261_v61 = vld [vmem:[#allocation3_spill] sm:$0xff]  ;;  %v3712_v37 = vpack.c.b16 %v1208_v11, %v1207_v0  ;;  %v3723_v0 = vld [vmem:[%s3005_s27 + $0x9c] sm:$0xff] }
 0x121   : > { %v1386_v50 = vadd.f32 %v1315_v26, %v984_v14  ;;  %4264 = vst [vmem:[#allocation36_spill] sm:$0xff] %v3723_v0 }
 0x122   : > { %4260 = vst [vmem:[#allocation33_spill] sm:$0xff] %v3700_v43  ;;  %2766 = vmatmul.msk.bf16.gmra.mxu3 %vm677_vm3, %v3697_v2  ;;  %v2946_v43 = vld [vmem:[%s3005_s27 + $0x9c] sm:$0xf] }
 0x123   : > { %4262 = vst [vmem:[#allocation34_spill] sm:$0xff] %v3712_v37 }
 0x124   : > { %v1627_v40 = vpop.f32.mrf.mxu0 }
 0x125   : > { %v1460_v53 = vpop.f32.mrf.mxu3  ;;  %v988_v54 = vpop.f32.mrf.mxu1 }
 0x126   : > { %v1531_v14 = vadd.f32 %v1460_v53, %v1386_v50  ;;  %v2945_v53 = vld [vmem:[%s3005_s27 + $0xa4] sm:$0x1] }
 0x127   : > { %2789 = vmatmul.msk.bf16.gmra.mxu0 %vm677_vm3, %v4261_v61  ;;  %v1163_v50 = vrot.slane %v2945_v53, 5 }
 0x128   : > { %v1317_v49 = vpop.f32.mrf.mxu2  ;;  %2701 = vmatmul.msk.bf16.gmra.mxu1 %vm677_vm3, %v3697_v2  ;;  %v3714_v47 = vadd.f32 %v1627_v40, %v1531_v14  ;;  %v989_v2 = vadd.f32 %v988_v54, %v3439_v34 }
 0x129   : > { %v1387_v56 = vadd.f32 %v1317_v49, %v986_v28  ;;  %v2718_v28 = vrot.slane %v2946_v43, 9  ;;  %v1162_v49 = vrot.slane %v1160_v12, 4 }
 0x12a   : > { %4263 = vst [vmem:[#allocation35_spill] sm:$0xff] %v3714_v47 }
 0x12b   : > { %v1161_v63 = vsel %vm3352_vm7, %v2718_v28, %v1160_v12  ;;  %v1164_v53 = vsel %vm3352_vm7, %v1162_v49, %v1163_v50  ;;  %v4269_v28 = vld [vmem:[#allocation6_spill] sm:$0xff] }
 0x12c   : > { %v1629_v26 = vpop.f32.mrf.mxu0  ;;  %v1209_v47 = vunpack.c.l.b16 %v1161_v63  ;;  %v1167_v49 = vrot.slane %v4269_v28, 5 }
 0x12d   : > { %2740 = vmatmul.msk.bf16.gmra.mxu2 %vm677_vm3, %v3712_v37  ;;  %v1462_v35 = vpop.f32.mrf.mxu3  ;;  %v990_v58 = vpop.f32.mrf.mxu1 }
 0x12e   : > { %v1532_v61 = vadd.f32 %v1462_v35, %v1387_v56  ;;  %v1210_v56 = vunpack.c.l.b16 %v1164_v53  ;;  %v991_v37 = vadd.f32 %v990_v58, %v3454_v31  ;;  %v4270_v31 = vld [vmem:[#allocation7_spill] sm:$0xff]  ;;  %v4271_v53 = vld [vmem:[#allocation5_spill] sm:$0xff] }
 0x12f   : > { %v1170_v58 = vrot.slane %v4270_v31, 5 }
 0x130   : > { %v1320_v40 = vpop.f32.mrf.mxu2  ;;  %v3725_v14 = vadd.f32 %v1629_v26, %v1532_v61  ;;  %v3738_v26 = vpack.c.b16 %v1210_v56, %v1209_v47  ;;  %v3749_v47 = vld [vmem:[%s3005_s27 + $0xa8] sm:$0xff] }
 0x131   : > { %v1388_v11 = vadd.f32 %v1320_v40, %v989_v2  ;;  %v4266_v2 = vld [vmem:[#allocation4_spill] sm:$0xff]  ;;  %4272 = vst [vmem:[#allocation6_spill] sm:$0xff] %v3749_v47 }
 0x132   : > { %4265 = vst [vmem:[#allocation37_spill] sm:$0xff] %v3725_v14  ;;  %2767 = vmatmul.msk.bf16.gmra.mxu3 %vm677_vm3, %v3723_v0 }
 0x133   : > { %4267 = vst [vmem:[#allocation38_spill] sm:$0xff] %v3738_v26 }
 0x134   : > { %v1632_v43 = vpop.f32.mrf.mxu0 }
 0x135   : > { %v1465_v35 = vpop.f32.mrf.mxu3  ;;  %v993_v34 = vpop.f32.mrf.mxu1 }
 0x136   : > { %v1533_v54 = vadd.f32 %v1465_v35, %v1388_v11  ;;  %v2719_v35 = vrot.slane %v4271_v53, 9  ;;  %v994_v14 = vadd.f32 %v993_v34, %v3476_v17 }
 0x137   : > { %2790 = vmatmul.msk.bf16.gmra.mxu0 %vm677_vm3, %v4266_v2 }
 0x138   : > { %v1322_v61 = vpop.f32.mrf.mxu2  ;;  %2702 = vmatmul.msk.bf16.gmra.mxu1 %vm677_vm3, %v3723_v0  ;;  %v3740_v50 = vadd.f32 %v1632_v43, %v1533_v54  ;;  %v1168_v28 = vsel %vm3352_vm7, %v2719_v35, %v1167_v49  ;;  %v3767_v35 = vld [vmem:[%s3005_s27 + $0xc0] sm:$0xf] }
 0x139   : > { %v1389_v12 = vadd.f32 %v1322_v61, %v991_v37  ;;  %v1169_v37 = vrot.slane %v1167_v49, 4  ;;  %4276 = vst [vmem:[#allocation40_spill] sm:$0xff] %v3767_v35 }
 0x13a   : > { %4268 = vst [vmem:[#allocation39_spill] sm:$0xff] %v3740_v50 }
 0x13b   : > { %v1171_v31 = vsel %vm3352_vm7, %v1169_v37, %v1170_v58  ;;  %v3770_v37 = vld [vmem:[%s3005_s27 + $0xc4] sm:$0xf] }
 0x13c   : > { %v1634_v40 = vpop.f32.mrf.mxu0  ;;  %v1212_v17 = vunpack.c.l.b16 %v1171_v31  ;;  %4277 = vst [vmem:[#allocation41_spill] sm:$0xff] %v3770_v37  ;;  %v1567_v31 = vshll.u32 %v3770_v37, 16 }
 0x13d   : > { %2741 = vmatmul.msk.bf16.gmra.mxu2 %vm677_vm3, %v3738_v26  ;;  %v1467_v11 = vpop.f32.mrf.mxu3  ;;  %v995_v63 = vpop.f32.mrf.mxu1 }
 0x13e   : > { %v1534_v61 = vadd.f32 %v1467_v11, %v1389_v12  ;;  %v1211_v11 = vunpack.c.l.b16 %v1168_v28  ;;  %v1569_v2 = vrot.slane %v1567_v31, 5 }
 0x140   : > { %v1325_v43 = vpop.f32.mrf.mxu2  ;;  %v3751_v54 = vadd.f32 %v1634_v40, %v1534_v61  ;;  %v4274_v40 = vld [vmem:[#allocation10_spill] sm:$0xff]  ;;  %v3764_v58 = vpack.c.b16 %v1212_v17, %v1211_v11  ;;  %v4280_v11 = vld [vmem:[#allocation15_spill] sm:$0xff] }
 0x141   : > { %v1390_v56 = vadd.f32 %v1325_v43, %v994_v14  ;;  %v996_v14 = vadd.f32 %v995_v63, %v3492_v62  ;;  %v1558_v62 = vshrl.u32 %v3767_v35, 16  ;;  %v1561_v63 = vshll.u32 %v3767_v35, 16  ;;  %v3785_v35 = vld [vmem:[%s3005_s27 + $0xb4] sm:$0xff] }
 0x142   : > { %4273 = vst [vmem:[#allocation7_spill] sm:$0xff] %v3751_v54  ;;  %2768 = vmatmul.msk.bf16.gmra.mxu3 %vm677_vm3, %v3749_v47  ;;  %v1177_v17 = vrot.slane %v4280_v11, 5 }
 0x143   : > { %4275 = vst [vmem:[#allocation5_spill] sm:$0xff] %v3764_v58  ;;  %v1560_v26 = vrot.slane %v1558_v62, 4 }
 0x144   : > { %v1637_v12 = vpop.f32.mrf.mxu0 }
 0x145   : > { %v1470_v34 = vpop.f32.mrf.mxu3  ;;  %v998_v53 = vpop.f32.mrf.mxu1 }
 0x146   : > { %v1535_v50 = vadd.f32 %v1470_v34, %v1390_v56  ;;  %v4279_v56 = vld [vmem:[#allocation14_spill] sm:$0xff]  ;;  %v1571_v34 = vshrl.u32 %v3770_v37, 16  ;;  %v1563_v37 = vrot.slane %v1561_v63, 5 }
 0x147   : > { %2791 = vmatmul.msk.bf16.gmra.mxu0 %vm677_vm3, %v4274_v40  ;;  %v1174_v28 = vrot.slane %v4279_v56, 5  ;;  %v999_v40 = vadd.f32 %v998_v53, %v3512_v7 }
 0x148   : > { %v1327_v61 = vpop.f32.mrf.mxu2  ;;  %2703 = vmatmul.msk.bf16.gmra.mxu1 %vm677_vm3, %v3749_v47  ;;  %v3772_v43 = vadd.f32 %v1637_v12, %v1535_v50  ;;  %v4281_v12 = vld [vmem:[#allocation13_spill] sm:$0xff]  ;;  %v1573_v0 = vrot.slane %v1571_v34, 4  ;;  %v1564_v7 = vor.u32 %v1563_v37, %v1560_v26 }
 0x149   : > { %v1391_v49 = vadd.f32 %v1327_v61, %v996_v14  ;;  %v1176_v56 = vrot.slane %v1174_v28, 4 }
 0x14a   : > { %4278 = vst [vmem:[#allocation42_spill] sm:$0xff] %v3772_v43  ;;  %v2720_v43 = vrot.slane %v4281_v12, 9  ;;  %v1574_v53 = vor.u32 %v1573_v0, %v1569_v2  ;;  %v1565_v34 = vrot.slane %v1564_v7, 4  ;;  %v3816_v7 = vld [vmem:[%s3005_s27 + $0xc0] sm:$0xff] }
 0x14b   : > { %v1178_v12 = vsel %vm3352_vm7, %v1176_v56, %v1177_v17 }
 0x14c   : > { %v1639_v14 = vpop.f32.mrf.mxu0  ;;  %v1175_v11 = vsel %vm3352_vm7, %v2720_v43, %v1174_v28  ;;  %v1214_v63 = vunpack.c.l.b16 %v1178_v12 }
 0x14d   : > { %2742 = vmatmul.msk.bf16.gmra.mxu2 %vm677_vm3, %v3764_v58  ;;  %v1472_v61 = vpop.f32.mrf.mxu3  ;;  %v1000_v50 = vpop.f32.mrf.mxu1  ;;  %v1213_v62 = vunpack.c.l.b16 %v1175_v11 }
 0x14e   : > { %v1536_v54 = vadd.f32 %v1472_v61, %v1391_v49  ;;  %v1001_v43 = vadd.f32 %v1000_v50, %v3533_v8  ;;  %v1570_v8 = vsel %vm3037_vm4, %v1565_v34, %v1569_v2 }
 0x14f   : > { %v3804_v0 = vpack.c.b16 %v1214_v63, %v1213_v62 }
 0x150   : > { %v1330_v47 = vpop.f32.mrf.mxu2  ;;  %v3787_v58 = vadd.f32 %v1639_v14, %v1536_v54  ;;  %v1575_v14 = vrot.slane %v1574_v53, 4  ;;  %v1585_v53 = vunpack.c.l.b16 %v1570_v8 }
 0x151   : > { %v1392_v45 = vadd.f32 %v1330_v47, %v999_v40  ;;  %v1577_v47 = vshll.u32 %v3794_v41, 16 }
 0x152   : > { %2769 = vmatmul.msk.bf16.gmra.mxu3 %vm677_vm3, %v3785_v35 }
 0x153   : > { %v1579_v26 = vrot.slane %v1577_v47, 5 }
 0x154   : > { %v1642_v49 = vpop.f32.mrf.mxu0 }
 0x155   : > { %v1475_v54 = vpop.f32.mrf.mxu3  ;;  %v1003_v40 = vpop.f32.mrf.mxu1 }
 0x156   : > { %v1537_v31 = vadd.f32 %v1475_v54, %v1392_v45  ;;  %v1580_v45 = vsel %vm3037_vm4, %v1575_v14, %v1579_v26  ;;  %v1004_v12 = vadd.f32 %v1003_v40, %v3559_v20 }
 0x157   : > { %2792 = vmatmul.msk.bf16.gmra.mxu0 %vm677_vm3, %v3360_v44 }
 0x158   : > { %v1332_v28 = vpop.f32.mrf.mxu2  ;;  %2704 = vmatmul.msk.bf16.gmra.mxu1 %vm677_vm3, %v3785_v35  ;;  %v3806_v37 = vadd.f32 %v1642_v49, %v1537_v31  ;;  %v1586_v49 = vunpack.c.l.b16 %v1580_v45 }
 0x159   : > { %v1393_v17 = vadd.f32 %v1332_v28, %v1001_v43 }
 0x15a   : > { %v3822_v2 = vpack.c.b16 %v1586_v49, %v1585_v53 }
 0x15c   : > { %v1644_v61 = vpop.f32.mrf.mxu0 }
 0x15d   : > { %2743 = vmatmul.msk.bf16.gmra.mxu2 %vm677_vm3, %v3804_v0  ;;  %v1477_v50 = vpop.f32.mrf.mxu3  ;;  %v1005_v56 = vpop.f32.mrf.mxu1 }
 0x15e   : > { %v1538_v11 = vadd.f32 %v1477_v50, %v1393_v17  ;;  %v1006_v34 = vadd.f32 %v1005_v56, %v3584_v46 }
 0x160   : > { %v1335_v62 = vpop.f32.mrf.mxu2  ;;  %v3818_v47 = vadd.f32 %v1644_v61, %v1538_v11 }
 0x161   : > { %v1394_v63 = vadd.f32 %v1335_v62, %v1004_v12 }
 0x162   : > { %2770 = vmatmul.msk.bf16.gmra.mxu3 %vm677_vm3, %v3816_v7 }
 0x164   : > { %v1647_v54 = vpop.f32.mrf.mxu0 }
 0x165   : > { %v1480_v31 = vpop.f32.mrf.mxu3  ;;  %v1008_v43 = vpop.f32.mrf.mxu1 }
 0x166   : > { %v1539_v28 = vadd.f32 %v1480_v31, %v1394_v63  ;;  %v1009_v45 = vadd.f32 %v1008_v43, %v3456_v13 }
 0x167   : > { %2793 = vmatmul.msk.bf16.gmra.mxu0 %vm677_vm3, %v3822_v2 }
 0x168   : > { %v1337_v20 = vpop.f32.mrf.mxu2  ;;  %2802 = vmatmul.msk.bf16.vlgmr.msra.gmra.mxu1 %vm677_vm3, %v3390_v59  ;;  %v3829_v14 = vadd.f32 %v1647_v54, %v1539_v28 }
 0x169   : > { %v1395_v40 = vadd.f32 %v1337_v20, %v1006_v34 }
 0x16c   : > { %v1649_v17 = vpop.f32.mrf.mxu0 }
 0x16d   : > { %2829 = vmatmul.msk.bf16.vlgmr.msra.gmra.mxu2 %vm677_vm3, %v3404_v9  ;;  %v1482_v26 = vpop.f32.mrf.mxu3  ;;  %v1010_v61 = vpop.f32.mrf.mxu1 }
 0x16e   : > { %v1540_v8 = vadd.f32 %v1482_v26, %v1395_v40  ;;  %v1011_v49 = vadd.f32 %v1010_v61, %v3478_v25 }
 0x170   : > { %v1340_v46 = vpop.f32.mrf.mxu2  ;;  %v3834_v56 = vadd.f32 %v1649_v17, %v1540_v8 }
 0x171   : > { %v1396_v50 = vadd.f32 %v1340_v46, %v1009_v45 }
 0x172   : > { %2852 = vmatmul.msk.bf16.vlgmr.msra.gmra.mxu3 %vm677_vm3, %v3292_v22 }
 0x174   : > { %v1652_v11 = vpop.f32.mrf.mxu0 }
 0x175   : > { %v1485_v59 = vpop.f32.mrf.mxu3  ;;  %v1013_v12 = vpop.f32.mrf.mxu1 }
 0x176   : > { %v1541_v53 = vadd.f32 %v1485_v59, %v1396_v50  ;;  %v1014_v43 = vadd.f32 %v1013_v12, %v3498_v24 }
 0x177   : > { %2876 = vmatmul.msk.bf16.vlgmr.msra.gmra.mxu0 %vm677_vm3, %v3416_v55 }
 0x178   : > { %v1342_v9 = vpop.f32.mrf.mxu2  ;;  %2803 = vmatmul.msk.bf16.gmra.mxu1 %vm677_vm3, %v3416_v55  ;;  %v3843_v13 = vadd.f32 %v1652_v11, %v1541_v53 }
 0x179   : > { %v1397_v62 = vadd.f32 %v1342_v9, %v1011_v49 }
 0x17c   : > { %v1654_v63 = vpop.f32.mrf.mxu0 }
 0x17d   : > { %2830 = vmatmul.msk.bf16.gmra.mxu2 %vm677_vm3, %v3424_v10  ;;  %v1487_v22 = vpop.f32.mrf.mxu3  ;;  %v1015_v54 = vpop.f32.mrf.mxu1 }
 0x17e   : > { %v1542_v31 = vadd.f32 %v1487_v22, %v1397_v62  ;;  %v1016_v26 = vadd.f32 %v1015_v54, %v3520_v1 }
 0x180   : > { %v1345_v25 = vpop.f32.mrf.mxu2  ;;  %v3848_v34 = vadd.f32 %v1654_v63, %v1542_v31 }
 0x181   : > { %v1398_v28 = vadd.f32 %v1345_v25, %v1014_v43 }
 0x182   : > { %2853 = vmatmul.msk.bf16.gmra.mxu3 %vm677_vm3, %v3380_v18 }
 0x184   : > { %v1657_v20 = vpop.f32.mrf.mxu0 }
 0x185   : > { %v1490_v55 = vpop.f32.mrf.mxu3  ;;  %v1018_v40 = vpop.f32.mrf.mxu1 }
 0x186   : > { %v1543_v17 = vadd.f32 %v1490_v55, %v1398_v28  ;;  %v1019_v50 = vadd.f32 %v1018_v40, %v3537_v23 }
 0x187   : > { %2877 = vmatmul.msk.bf16.gmra.mxu0 %vm677_vm3, %v3436_v21 }
 0x188   : > { %v1347_v10 = vpop.f32.mrf.mxu2  ;;  %2804 = vmatmul.msk.bf16.gmra.mxu1 %vm677_vm3, %v3436_v21  ;;  %v3857_v24 = vadd.f32 %v1657_v20, %v1543_v17 }
 0x189   : > { %v1399_v61 = vadd.f32 %v1347_v10, %v1016_v26 }
 0x18c   : > { %v1659_v8 = vpop.f32.mrf.mxu0 }
 0x18d   : > { %2831 = vmatmul.msk.bf16.gmra.mxu2 %vm677_vm3, %v3446_v51  ;;  %v1492_v18 = vpop.f32.mrf.mxu3  ;;  %v1020_v45 = vpop.f32.mrf.mxu1 }
 0x18e   : > { %v1544_v46 = vadd.f32 %v1492_v18, %v1399_v61  ;;  %v1021_v9 = vadd.f32 %v1020_v45, %v3557_v48 }
 0x190   : > { %v1350_v1 = vpop.f32.mrf.mxu2  ;;  %v3862_v59 = vadd.f32 %v1659_v8, %v1544_v46  ;;  %v4282_v8 = vld [vmem:[#allocation18_spill] sm:$0xff] }
 0x191   : > { %v1400_v11 = vadd.f32 %v1350_v1, %v1019_v50  ;;  %v4283_v50 = vld [vmem:[#allocation8_spill] sm:$0xff] }
 0x192   : > { %2854 = vmatmul.msk.bf16.gmra.mxu3 %vm677_vm3, %v3049_v5 }
 0x194   : > { %v1662_v12 = vpop.f32.mrf.mxu0 }
 0x195   : > { %v1495_v21 = vpop.f32.mrf.mxu3  ;;  %v1023_v53 = vpop.f32.mrf.mxu1 }
 0x196   : > { %v1545_v49 = vadd.f32 %v1495_v21, %v1400_v11  ;;  %v1024_v31 = vadd.f32 %v1023_v53, %v3590_v29  ;;  %v4284_v21 = vld [vmem:[#allocation19_spill] sm:$0xff] }
 0x197   : > { %2878 = vmatmul.msk.bf16.gmra.mxu0 %vm677_vm3, %v3462_v15 }
 0x198   : > { %v1352_v51 = vpop.f32.mrf.mxu2  ;;  %2805 = vmatmul.msk.bf16.gmra.mxu1 %vm677_vm3, %v3462_v15  ;;  %v3871_v23 = vadd.f32 %v1662_v12, %v1545_v49  ;;  %v4285_v49 = vld [vmem:[#allocation22_spill] sm:$0xff] }
 0x199   : > { %v1401_v62 = vadd.f32 %v1352_v51, %v1021_v9 }
 0x19c   : > { %v1664_v63 = vpop.f32.mrf.mxu0 }
 0x19d   : > { %2832 = vmatmul.msk.bf16.gmra.mxu2 %vm677_vm3, %v3474_v33  ;;  %v1497_v5 = vpop.f32.mrf.mxu3  ;;  %v1025_v22 = vpop.f32.mrf.mxu1 }
 0x19e   : > { %v1546_v54 = vadd.f32 %v1497_v5, %v1401_v62  ;;  %v1026_v40 = vadd.f32 %v1025_v22, %v3605_v39 }
 0x1a0   : > { %v1355_v48 = vpop.f32.mrf.mxu2  ;;  %v3876_v25 = vadd.f32 %v1664_v63, %v1546_v54  ;;  %v4286_v63 = vld [vmem:[#allocation23_spill] sm:$0xff] }
 0x1a1   : > { %v1402_v43 = vadd.f32 %v1355_v48, %v1024_v31  ;;  %v4287_v31 = vld [vmem:[#allocation20_spill] sm:$0xff] }
 0x1a2   : > { %2855 = vmatmul.msk.bf16.gmra.mxu3 %vm677_vm3, %v3130_v52 }
 0x1a4   : > { %v1667_v28 = vpop.f32.mrf.mxu0 }
 0x1a5   : > { %v1500_v15 = vpop.f32.mrf.mxu3  ;;  %v1028_v20 = vpop.f32.mrf.mxu1 }
 0x1a6   : > { %v1547_v55 = vadd.f32 %v1500_v15, %v1402_v43  ;;  %v1029_v18 = vadd.f32 %v1028_v20, %v4282_v8  ;;  %v4288_v20 = vld [vmem:[#allocation16_spill] sm:$0xff] }
 0x1a7   : > { %2879 = vmatmul.msk.bf16.gmra.mxu0 %vm677_vm3, %v3496_v19 }
 0x1a8   : > { %v1357_v33 = vpop.f32.mrf.mxu2  ;;  %2806 = vmatmul.msk.bf16.gmra.mxu1 %vm677_vm3, %v3496_v19  ;;  %v3885_v29 = vadd.f32 %v1667_v28, %v1547_v55 }
 0x1a9   : > { %v1403_v17 = vadd.f32 %v1357_v33, %v1026_v40 }
 0x1ac   : > { %v1669_v26 = vpop.f32.mrf.mxu0 }
 0x1ad   : > { %2833 = vmatmul.msk.bf16.gmra.mxu2 %vm677_vm3, %v3508_v36  ;;  %v1502_v52 = vpop.f32.mrf.mxu3  ;;  %v1030_v10 = vpop.f32.mrf.mxu1 }
 0x1ae   : > { %v1548_v61 = vadd.f32 %v1502_v52, %v1403_v17  ;;  %v1031_v53 = vadd.f32 %v1030_v10, %v4284_v21  ;;  %v4290_v10 = vld [vmem:[#allocation25_spill] sm:$0xff] }
 0x1b0   : > { %v1360_v39 = vpop.f32.mrf.mxu2  ;;  %v3890_v46 = vadd.f32 %v1669_v26, %v1548_v61  ;;  %v4289_v26 = vld [vmem:[#allocation21_spill] sm:$0xff] }
 0x1b1   : > { %v1404_v45 = vadd.f32 %v1360_v39, %v1029_v18 }
 0x1b2   : > { %2856 = vmatmul.msk.bf16.gmra.mxu3 %vm677_vm3, %v4283_v50 }
 0x1b4   : > { %v1672_v1 = vpop.f32.mrf.mxu0 }
 0x1b5   : > { %v1505_v19 = vpop.f32.mrf.mxu3  ;;  %v1033_v11 = vpop.f32.mrf.mxu1 }
 0x1b6   : > { %v1549_v12 = vadd.f32 %v1505_v19, %v1404_v45  ;;  %v1034_v48 = vadd.f32 %v1033_v11, %v4287_v31  ;;  %v4291_v45 = vld [vmem:[#allocation27_spill] sm:$0xff]  ;;  %v4292_v11 = vld [vmem:[#allocation24_spill] sm:$0xff]  ;;  %v4295_v31 = vld [vmem:[#allocation29_spill] sm:$0xff] }
 0x1b7   : > { %2880 = vmatmul.msk.bf16.gmra.mxu0 %vm677_vm3, %v4285_v49 }
 0x1b8   : > { %v1362_v36 = vpop.f32.mrf.mxu2  ;;  %2807 = vmatmul.msk.bf16.gmra.mxu1 %vm677_vm3, %v4285_v49  ;;  %v3899_v51 = vadd.f32 %v1672_v1, %v1549_v12 }
 0x1b9   : > { %v1405_v9 = vadd.f32 %v1362_v36, %v1031_v53  ;;  %v4293_v36 = vld [vmem:[#allocation2_spill] sm:$0xff] }
 0x1bc   : > { %v1674_v62 = vpop.f32.mrf.mxu0 }
 0x1bd   : > { %2834 = vmatmul.msk.bf16.gmra.mxu2 %vm677_vm3, %v4286_v63  ;;  %v1507_v5 = vpop.f32.mrf.mxu3  ;;  %v1035_v22 = vpop.f32.mrf.mxu1 }
 0x1be   : > { %v1550_v54 = vadd.f32 %v1507_v5, %v1405_v9  ;;  %v1036_v52 = vadd.f32 %v1035_v22, %v4289_v26  ;;  %v4294_v22 = vld [vmem:[#allocation26_spill] sm:$0xff] }
 0x1c0   : > { %v1365_v43 = vpop.f32.mrf.mxu2  ;;  %v3904_v15 = vadd.f32 %v1674_v62, %v1550_v54 }
 0x1c1   : > { %v1406_v28 = vadd.f32 %v1365_v43, %v1034_v48 }
 0x1c2   : > { %2857 = vmatmul.msk.bf16.gmra.mxu3 %vm677_vm3, %v4288_v20 }
 0x1c4   : > { %v1677_v55 = vpop.f32.mrf.mxu0 }
 0x1c5   : > { %v1510_v40 = vpop.f32.mrf.mxu3  ;;  %v1038_v33 = vpop.f32.mrf.mxu1 }
 0x1c6   : > { %v1551_v17 = vadd.f32 %v1510_v40, %v1406_v28  ;;  %v1039_v12 = vadd.f32 %v1038_v33, %v4292_v11 }
 0x1c7   : > { %2881 = vmatmul.msk.bf16.gmra.mxu0 %vm677_vm3, %v4290_v10 }
 0x1c8   : > { %v1367_v61 = vpop.f32.mrf.mxu2  ;;  %2808 = vmatmul.msk.bf16.gmra.mxu1 %vm677_vm3, %v4290_v10  ;;  %v3913_v18 = vadd.f32 %v1677_v55, %v1551_v17  ;;  %v4296_v17 = vld [vmem:[#allocation28_spill] sm:$0xff] }
 0x1c9   : > { %v1407_v8 = vadd.f32 %v1367_v61, %v1036_v52 }
 0x1cc   : > { %v1679_v39 = vpop.f32.mrf.mxu0 }
 0x1cd   : > { %2835 = vmatmul.msk.bf16.gmra.mxu2 %vm677_vm3, %v4291_v45  ;;  %v1512_v50 = vpop.f32.mrf.mxu3  ;;  %v1040_v1 = vpop.f32.mrf.mxu1 }
 0x1ce   : > { %v1552_v19 = vadd.f32 %v1512_v50, %v1407_v8  ;;  %v1041_v54 = vadd.f32 %v1040_v1, %v4294_v22  ;;  %v4297_v1 = vld [vmem:[#allocation30_spill] sm:$0xff] }
 0x1d0   : > { %v1370_v21 = vpop.f32.mrf.mxu2  ;;  %v3918_v49 = vadd.f32 %v1679_v39, %v1552_v19 }
 0x1d1   : > { %v1408_v53 = vadd.f32 %v1370_v21, %v1039_v12 }
 0x1d2   : > { %2858 = vmatmul.msk.bf16.gmra.mxu3 %vm677_vm3, %v4293_v36 }
 0x1d4   : > { %v1682_v9 = vpop.f32.mrf.mxu0 }
 0x1d5   : > { %v1515_v62 = vpop.f32.mrf.mxu3  ;;  %v1043_v63 = vpop.f32.mrf.mxu1 }
 0x1d6   : > { %v1553_v5 = vadd.f32 %v1515_v62, %v1408_v53  ;;  %v1044_v26 = vadd.f32 %v1043_v63, %v4296_v17 }
 0x1d7   : > { %2882 = vmatmul.msk.bf16.gmra.mxu0 %vm677_vm3, %v4295_v31 }
 0x1d8   : > { %v1372_v48 = vpop.f32.mrf.mxu2  ;;  %2809 = vmatmul.msk.bf16.gmra.mxu1 %vm677_vm3, %v4295_v31  ;;  %v3927_v28 = vadd.f32 %v1682_v9, %v1553_v5 }
 0x1d9   : > { %v1409_v43 = vadd.f32 %v1372_v48, %v1041_v54 }
 0x1dc   : > { %v1684_v20 = vpop.f32.mrf.mxu0 }
 0x1dd   : > { %2836 = vmatmul.msk.bf16.gmra.mxu2 %vm677_vm3, %v3621_v27  ;;  %v1517_v55 = vpop.f32.mrf.mxu3  ;;  %v1045_v40 = vpop.f32.mrf.mxu1 }
 0x1de   : > { %v1554_v33 = vadd.f32 %v1517_v55, %v1409_v43  ;;  %v1046_v19 = vadd.f32 %v1045_v40, %v4297_v1 }
 0x1e0   : > { %v1375_v52 = vpop.f32.mrf.mxu2  ;;  %v3932_v61 = vadd.f32 %v1684_v20, %v1554_v33 }
 0x1e1   : > { %v1410_v10 = vadd.f32 %v1375_v52, %v1044_v26 }
 0x1e2   : > { %2859 = vmatmul.msk.bf16.gmra.mxu3 %vm677_vm3, %v3160_v16 }
 0x1e4   : > { %v1687_v8 = vpop.f32.mrf.mxu0 }
 0x1e5   : > { %v1520_v39 = vpop.f32.mrf.mxu3  ;;  %v1763_v45 = vpop.f32.mrf.mxu1 }
 0x1e6   : > { %v1555_v50 = vadd.f32 %v1520_v39, %v1410_v10  ;;  %v1843_v62 = vadd.f32 %v1763_v45, %v3637_v6  ;;  %v4299_v45 = vld [vmem:[#allocation17_spill] sm:$0xff] }
 0x1e7   : > { %2883 = vmatmul.msk.bf16.gmra.mxu0 %vm677_vm3, %v3635_v30 }
 0x1e8   : > { %v1377_v27 = vpop.f32.mrf.mxu2  ;;  %2810 = vmatmul.msk.bf16.gmra.mxu1 %vm677_vm3, %v3635_v30  ;;  %v3941_v12 = vadd.f32 %v1687_v8, %v1555_v50  ;;  %v4298_v8 = vld [vmem:[#allocation31_spill] sm:$0xff] }
 0x1e9   : > { %v1411_v11 = vadd.f32 %v1377_v27, %v1046_v19 }
 0x1ec   : > { %v1689_v21 = vpop.f32.mrf.mxu0 }
 0x1ed   : > { %2837 = vmatmul.msk.bf16.gmra.mxu2 %vm677_vm3, %v3645_v3  ;;  %v1522_v16 = vpop.f32.mrf.mxu3  ;;  %v1765_v53 = vpop.f32.mrf.mxu1  ;;  %v3953_v3 = vld [vmem:[%s4175_s2] ss:$0 sm:$0xff] }
 0x1ee   : > { %v1556_v36 = vadd.f32 %v1522_v16, %v1411_v11  ;;  %v1844_v43 = vadd.f32 %v1765_v53, %v3648_v57 }
 0x1f0   : > { %v1908_v9 = vpop.f32.mrf.mxu2  ;;  %v3946_v63 = vadd.f32 %v1689_v21, %v1556_v36  ;;  %v4300_v36 = vld [vmem:[#allocation12_spill] sm:$0xff] }
 0x1f1   : > { %v1988_v5 = vadd.f32 %v1908_v9, %v1843_v62 }
 0x1f2   : > { %2860 = vmatmul.msk.bf16.gmra.mxu3 %vm677_vm3, %v3249_v38 }
 0x1f4   : > { %v2226_v30 = vpop.f32.mrf.mxu0 }
 0x1f5   : > { %v2075_v22 = vpop.f32.mrf.mxu3  ;;  %v1768_v54 = vpop.f32.mrf.mxu1 }
 0x1f6   : > { %v2155_v31 = vadd.f32 %v2075_v22, %v1988_v5  ;;  %v1845_v39 = vadd.f32 %v1768_v54, %v4298_v8  ;;  %v4301_v5 = vld [vmem:[#allocation11_spill] sm:$0xff] }
 0x1f7   : > { %2884 = vmatmul.msk.bf16.gmra.mxu0 %vm677_vm3, %v3661_v4 }
 0x1f8   : > { %v1910_v6 = vpop.f32.mrf.mxu2  ;;  %v2306_v48 = vadd.f32 %v2226_v30, %v2155_v31  ;;  %2811 = vmatmul.msk.bf16.gmra.mxu1 %vm677_vm3, %v3661_v4 }
 0x1f9   : > { %v1989_v20 = vadd.f32 %v1910_v6, %v1844_v43 }
 0x1fa   : > { %v2342_v38 = vadd.f32 %v3953_v3, %v2306_v48  ;;  %v4302_v48 = vld [vmem:[#allocation32_spill] sm:$0xff] }
 0x1fc   : > { %vm2374_vm8 = vcmp.ge.f32.partialorder %v2342_v38, 0.0  ;;  %v2406_v55 = vmul.f32 0.2, %v2342_v38  ;;  %v2228_v40 = vpop.f32.mrf.mxu0 }
 0x1fd   : > { %2838 = vmatmul.msk.bf16.gmra.mxu2 %vm677_vm3, %v3671_v60  ;;  %v2077_v33 = vpop.f32.mrf.mxu3  ;;  %v1770_v17 = vpop.f32.mrf.mxu1 }
 0x1fe   : > { %v2438_v57 = vsel %vm2374_vm8, %v2342_v38, %v2406_v55  ;;  %v2156_v4 = vadd.f32 %v2077_v33, %v1989_v20  ;;  %v1846_v30 = vadd.f32 %v1770_v17, %v4301_v5 }
 0x1ff   : > { %v2470_v26 = vpack.c.bf16 %v2438_v57, %v2438_v57  ;;  %v4303_v57 = vld [vmem:[#allocation9_spill] sm:$0xff] }
 0x200   : > { %v1913_v52 = vpop.f32.mrf.mxu2  ;;  %v2307_v10 = vadd.f32 %v2228_v40, %v2156_v4 }
 0x201   : > { %2503 = vst.msk [vmem:[%s3967_s8] sm:$0xf] %vm2502_vm9, %v2470_v26  ;;  %v1990_v50 = vadd.f32 %v1913_v52, %v1845_v39  ;;  %v4304_v52 = vld [vmem:[#allocation3_spill] sm:$0xff] }
 0x202   : > { %v2343_v60 = vadd.f32 %v3953_v3, %v2307_v10  ;;  %2861 = vmatmul.msk.bf16.gmra.mxu3 %vm677_vm3, %v4299_v45 }
 0x204   : > { %vm2375_vm10 = vcmp.ge.f32.partialorder %v2343_v60, 0.0  ;;  %v2407_v1 = vmul.f32 0.2, %v2343_v60  ;;  %v2231_v19 = vpop.f32.mrf.mxu0 }
 0x205   : > { %v2080_v27 = vpop.f32.mrf.mxu3  ;;  %v1773_v11 = vpop.f32.mrf.mxu1 }
 0x206   : > { %v2439_v21 = vsel %vm2375_vm10, %v2343_v60, %v2407_v1  ;;  %v2157_v16 = vadd.f32 %v2080_v27, %v1990_v50  ;;  %v1847_v4 = vadd.f32 %v1773_v11, %v4303_v57  ;;  %v4305_v27 = vld [vmem:[#allocation34_spill] sm:$0xff] }
 0x207   : > { %v2471_v53 = vpack.c.bf16 %v2439_v21, %v2439_v21  ;;  %2885 = vmatmul.msk.bf16.gmra.mxu0 %vm677_vm3, %v4300_v36 }
 0x208   : > { %v1915_v9 = vpop.f32.mrf.mxu2  ;;  %v2308_v62 = vadd.f32 %v2231_v19, %v2157_v16  ;;  %2812 = vmatmul.msk.bf16.gmra.mxu1 %vm677_vm3, %v4300_v36  ;;  %v4306_v16 = vld [vmem:[#allocation33_spill] sm:$0xff] }
 0x209   : > { %2504 = vst.msk [vmem:[%s3967_s8 + $0x4] sm:$0xf] %vm2502_vm9, %v2471_v53  ;;  %v1991_v54 = vadd.f32 %v1915_v9, %v1846_v30  ;;  %v4307_v30 = vld [vmem:[#allocation36_spill] sm:$0xff] }
 0x20a   : > { %v2344_v22 = vadd.f32 %v3953_v3, %v2308_v62 }
 0x20c   : > { %vm2376_vm11 = vcmp.ge.f32.partialorder %v2344_v22, 0.0  ;;  %v2408_v31 = vmul.f32 0.2, %v2344_v22  ;;  %v2233_v6 = vpop.f32.mrf.mxu0 }
 0x20d   : > { %2839 = vmatmul.msk.bf16.gmra.mxu2 %vm677_vm3, %v4302_v48  ;;  %v2082_v43 = vpop.f32.mrf.mxu3  ;;  %v1775_v38 = vpop.f32.mrf.mxu1 }
 0x20e   : > { %v2440_v20 = vsel %vm2376_vm11, %v2344_v22, %v2408_v31  ;;  %v2158_v55 = vadd.f32 %v2082_v43, %v1991_v54  ;;  %v1848_v53 = vadd.f32 %v1775_v38, %v4306_v16 }
 0x20f   : > { %v2472_v40 = vpack.c.bf16 %v2440_v20, %v2440_v20  ;;  %v4308_v20 = vld [vmem:[#allocation35_spill] sm:$0xff] }
 0x210   : > { %v1918_v33 = vpop.f32.mrf.mxu2  ;;  %v2309_v17 = vadd.f32 %v2233_v6, %v2158_v55 }
 0x211   : > { %2505 = vst.msk [vmem:[%s3967_s8 + $0x8] sm:$0xf] %vm2502_vm9, %v2472_v40  ;;  %v1992_v10 = vadd.f32 %v1918_v33, %v1847_v4  ;;  %v4309_v33 = vld [vmem:[#allocation4_spill] sm:$0xff] }
 0x212   : > { %v2345_v26 = vadd.f32 %v3953_v3, %v2309_v17  ;;  %2862 = vmatmul.msk.bf16.gmra.mxu3 %vm677_vm3, %v4304_v52 }
 0x214   : > { %vm2377_vm12 = vcmp.ge.f32.partialorder %v2345_v26, 0.0  ;;  %v2409_v8 = vmul.f32 0.2, %v2345_v26  ;;  %v2236_v39 = vpop.f32.mrf.mxu0 }
 0x215   : > { %v2085_v60 = vpop.f32.mrf.mxu3  ;;  %v1778_v45 = vpop.f32.mrf.mxu1 }
 0x216   : > { %v2441_v50 = vsel %vm2377_vm12, %v2345_v26, %v2409_v8  ;;  %v2159_v1 = vadd.f32 %v2085_v60, %v1992_v10  ;;  %v1849_v55 = vadd.f32 %v1778_v45, %v4308_v20  ;;  %v4310_v60 = vld [vmem:[#allocation38_spill] sm:$0xff] }
 0x217   : > { %v2473_v19 = vpack.c.bf16 %v2441_v50, %v2441_v50  ;;  %2886 = vmatmul.msk.bf16.gmra.mxu0 %vm677_vm3, %v4305_v27 }
 0x218   : > { %v1920_v11 = vpop.f32.mrf.mxu2  ;;  %v2310_v21 = vadd.f32 %v2236_v39, %v2159_v1  ;;  %2813 = vmatmul.msk.bf16.gmra.mxu1 %vm677_vm3, %v4305_v27  ;;  %v4311_v1 = vld [vmem:[#allocation37_spill] sm:$0xff] }
 0x219   : > { %2506 = vst.msk [vmem:[%s3967_s8 + $0xc] sm:$0xf] %vm2502_vm9, %v2473_v19  ;;  %v1993_v9 = vadd.f32 %v1920_v11, %v1848_v53  ;;  %v4312_v53 = vld [vmem:[#allocation6_spill] sm:$0xff] }
 0x21a   : > { %v2346_v36 = vadd.f32 %v3953_v3, %v2310_v21 }
 0x21c   : > { %vm2378_vm13 = vcmp.ge.f32.partialorder %v2346_v36, 0.0  ;;  %v2410_v62 = vmul.f32 0.2, %v2346_v36  ;;  %v2238_v5 = vpop.f32.mrf.mxu0 }
 0x21d   : > { %2840 = vmatmul.msk.bf16.gmra.mxu2 %vm677_vm3, %v4307_v30  ;;  %v2087_v22 = vpop.f32.mrf.mxu3  ;;  %v1780_v54 = vpop.f32.mrf.mxu1 }
 0x21e   : > { %v2442_v31 = vsel %vm2378_vm13, %v2346_v36, %v2410_v62  ;;  %v2160_v6 = vadd.f32 %v2087_v22, %v1993_v9  ;;  %v1850_v19 = vadd.f32 %v1780_v54, %v4311_v1 }
 0x21f   : > { %v2474_v48 = vpack.c.bf16 %v2442_v31, %v2442_v31  ;;  %v4313_v31 = vld [vmem:[#allocation39_spill] sm:$0xff] }
 0x220   : > { %v1923_v43 = vpop.f32.mrf.mxu2  ;;  %v2311_v38 = vadd.f32 %v2238_v5, %v2160_v6 }
 0x221   : > { %2507 = vst.msk [vmem:[%s3967_s8 + $0x10] sm:$0xf] %vm2502_vm9, %v2474_v48  ;;  %v1994_v17 = vadd.f32 %v1923_v43, %v1849_v55  ;;  %v4314_v43 = vld [vmem:[#allocation10_spill] sm:$0xff] }
 0x222   : > { %v2347_v40 = vadd.f32 %v3953_v3, %v2311_v38  ;;  %2863 = vmatmul.msk.bf16.gmra.mxu3 %vm677_vm3, %v4309_v33 }
 0x224   : > { %vm2379_vm14 = vcmp.ge.f32.partialorder %v2347_v40, 0.0  ;;  %v2411_v57 = vmul.f32 0.2, %v2347_v40  ;;  %v2241_v4 = vpop.f32.mrf.mxu0 }
 0x225   : > { %v2090_v26 = vpop.f32.mrf.mxu3  ;;  %v1783_v52 = vpop.f32.mrf.mxu1 }
 0x226   : > { %v2443_v10 = vsel %vm2379_vm14, %v2347_v40, %v2411_v57  ;;  %v2161_v8 = vadd.f32 %v2090_v26, %v1994_v17  ;;  %v1851_v6 = vadd.f32 %v1783_v52, %v4313_v31  ;;  %v4315_v26 = vld [vmem:[#allocation5_spill] sm:$0xff] }
 0x227   : > { %v2475_v39 = vpack.c.bf16 %v2443_v10, %v2443_v10  ;;  %2887 = vmatmul.msk.bf16.gmra.mxu0 %vm677_vm3, %v4310_v60 }
 0x228   : > { %v1925_v45 = vpop.f32.mrf.mxu2  ;;  %v2312_v50 = vadd.f32 %v2241_v4, %v2161_v8  ;;  %2814 = vmatmul.msk.bf16.gmra.mxu1 %vm677_vm3, %v4310_v60  ;;  %v4316_v8 = vld [vmem:[#allocation7_spill] sm:$0xff] }
 0x229   : > { %2508 = vst.msk [vmem:[%s3967_s8 + $0x14] sm:$0xf] %vm2502_vm9, %v2475_v39  ;;  %v1995_v11 = vadd.f32 %v1925_v45, %v1850_v19 }
 0x22a   : > { %v2348_v27 = vadd.f32 %v3953_v3, %v2312_v50 }
 0x22c   : > { %vm2380_vm15 = vcmp.ge.f32.partialorder %v2348_v27, 0.0  ;;  %v2412_v21 = vmul.f32 0.2, %v2348_v27  ;;  %v2243_v16 = vpop.f32.mrf.mxu0 }
 0x22d   : > { %2841 = vmatmul.msk.bf16.gmra.mxu2 %vm677_vm3, %v4312_v53  ;;  %v2092_v36 = vpop.f32.mrf.mxu3  ;;  %v1785_v9 = vpop.f32.mrf.mxu1 }
 0x22e   : > { %v2444_v62 = vsel %vm2380_vm15, %v2348_v27, %v2412_v21  ;;  %v2162_v5 = vadd.f32 %v2092_v36, %v1995_v11  ;;  %v1852_v39 = vadd.f32 %v1785_v9, %v4316_v8  ;;  %v4317_v9 = vld [vmem:[#allocation42_spill] sm:$0xff] }
 0x22f   : > { %v2476_v30 = vpack.c.bf16 %v2444_v62, %v2444_v62 }
 0x230   : > { %v1928_v22 = vpop.f32.mrf.mxu2  ;;  %v2313_v54 = vadd.f32 %v2243_v16, %v2162_v5  ;;  %v4318_v5 = vld [vmem:[#allocation41_spill] sm:$0xff] }
 0x231   : > { %2509 = vst.msk [vmem:[%s3967_s8 + $0x18] sm:$0xf] %vm2502_vm9, %v2476_v30  ;;  %v1996_v38 = vadd.f32 %v1928_v22, %v1851_v6  ;;  %v1727_v30 = vrot.slane %v4318_v5, 5 }
 0x232   : > { %v2349_v48 = vadd.f32 %v3953_v3, %v2313_v54  ;;  %2864 = vmatmul.msk.bf16.gmra.mxu3 %vm677_vm3, %v4314_v43  ;;  %v4041_v54 = vld [vmem:[%s3005_s27 + $0xcc] sm:$0xf] }
 0x234   : > { %vm2381_vm0 = vcmp.ge.f32.partialorder %v2349_v48, 0.0  ;;  %v2413_v20 = vmul.f32 0.2, %v2349_v48  ;;  %v2246_v55 = vpop.f32.mrf.mxu0 }
 0x235   : > { %v2095_v40 = vpop.f32.mrf.mxu3  ;;  %v1788_v33 = vpop.f32.mrf.mxu1 }
 0x236   : > { %v2445_v17 = vsel %vm2381_vm0, %v2349_v48, %v2413_v20  ;;  %v2163_v57 = vadd.f32 %v2095_v40, %v1996_v38  ;;  %v1853_v62 = vadd.f32 %v1788_v33, %v4317_v9  ;;  %v4044_v48 = vld [vmem:[%s3005_s27 + $0xd0] sm:$0xf]  ;;  %v1729_v40 = vrot.slane %v1727_v30, 4 }
 0x237   : > { %v2477_v4 = vpack.c.bf16 %v2445_v17, %v2445_v17  ;;  %2888 = vmatmul.msk.bf16.gmra.mxu0 %vm677_vm3, %v4315_v26  ;;  %v4319_v20 = vld [vmem:[#allocation40_spill] sm:$0xff]  ;;  %v2034_v8 = vshrl.u32 %v4044_v48, 16 }
 0x238   : > { %v1930_v52 = vpop.f32.mrf.mxu2  ;;  %v2314_v10 = vadd.f32 %v2246_v55, %v2163_v57  ;;  %2815 = vmatmul.msk.bf16.gmra.mxu1 %vm677_vm3, %v4315_v26  ;;  %v2794_v55 = vrot.slane %v4319_v20, 9  ;;  %v1730_v57 = vrot.slane %v3794_v41, 5 }
 0x239   : > { %2510 = vst.msk [vmem:[%s3967_s8 + $0x1c] sm:$0xf] %vm2502_vm9, %v2477_v4  ;;  %v1997_v45 = vadd.f32 %v1930_v52, %v1852_v39  ;;  %v2024_v52 = vshll.u32 %v4041_v54, 16 }
 0x23a   : > { %v2350_v60 = vadd.f32 %v3953_v3, %v2314_v10  ;;  %v2030_v10 = vshll.u32 %v4044_v48, 16 }
 0x23c   : > { %vm2382_vm1 = vcmp.ge.f32.partialorder %v2350_v60, 0.0  ;;  %v2414_v50 = vmul.f32 0.2, %v2350_v60  ;;  %v2248_v1 = vpop.f32.mrf.mxu0 }
 0x23d   : > { %2842 = vmatmul.msk.bf16.gmra.mxu2 %vm677_vm3, %v3785_v35  ;;  %v2097_v19 = vpop.f32.mrf.mxu3  ;;  %v1790_v27 = vpop.f32.mrf.mxu1 }
 0x23e   : > { %v2446_v11 = vsel %vm2382_vm1, %v2350_v60, %v2414_v50  ;;  %v2164_v21 = vadd.f32 %v2097_v19, %v1997_v45  ;;  %v1854_v60 = vadd.f32 %v1790_v27, %v3787_v58  ;;  %v1728_v50 = vsel %vm3352_vm7, %v2794_v55, %v1727_v30 }
 0x23f   : > { %v2478_v16 = vpack.c.bf16 %v2446_v11, %v2446_v11  ;;  %v2026_v11 = vrot.slane %v2024_v52, 5  ;;  %v1736_v5 = vunpack.c.l.b16 %v1728_v50  ;;  %v2190_v52 = vrot.slane %v4044_v48, 5 }
 0x240   : > { %v1933_v53 = vpop.f32.mrf.mxu2  ;;  %v2315_v36 = vadd.f32 %v2248_v1, %v2164_v21  ;;  %v1731_v1 = vsel %vm3352_vm7, %v1729_v40, %v1730_v57  ;;  %v2032_v21 = vrot.slane %v2030_v10, 5 }
 0x241   : > { %2511 = vst.msk [vmem:[%s3967_s8 + $0x20] sm:$0xf] %vm2502_vm9, %v2478_v16  ;;  %v1998_v35 = vadd.f32 %v1933_v53, %v1853_v62  ;;  %v2036_v16 = vrot.slane %v2034_v8, 4  ;;  %v1737_v30 = vunpack.c.l.b16 %v1731_v1  ;;  %v2912_v1 = vld [vmem:[%s3005_s27 + $0xcc] sm:$0xff] }
 0x242   : > { %v2351_v22 = vadd.f32 %v3953_v3, %v2315_v36  ;;  %2865 = vmatmul.msk.bf16.gmra.mxu3 %vm677_vm3, %v3360_v44  ;;  %v2021_v44 = vshrl.u32 %v4041_v54, 16 }
 0x244   : > { %vm2383_vm2 = vcmp.ge.f32.partialorder %v2351_v22, 0.0  ;;  %v2415_v31 = vmul.f32 0.2, %v2351_v22  ;;  %v2251_v6 = vpop.f32.mrf.mxu0  ;;  %v2023_v19 = vrot.slane %v2021_v44, 4 }
 0x245   : > { %v2100_v43 = vpop.f32.mrf.mxu3  ;;  %v1793_v38 = vpop.f32.mrf.mxu1 }
 0x246   : > { %v2447_v33 = vsel %vm2383_vm2, %v2351_v22, %v2415_v31  ;;  %v2165_v17 = vadd.f32 %v2100_v43, %v1998_v35  ;;  %v2027_v31 = vor.u32 %v2026_v11, %v2023_v19  ;;  %v1855_v55 = vadd.f32 %v1793_v38, %v3806_v37 }
 0x247   : > { %v2479_v4 = vpack.c.bf16 %v2447_v33, %v2447_v33  ;;  %2889 = vmatmul.msk.bf16.gmra.mxu0 %vm677_vm3, %v3804_v0  ;;  %v1738_v33 = vpack.c.b16 %v1737_v30, %v1736_v5  ;;  %v2192_v19 = vrot.slane %v2190_v52, 4 }
 0x248   : > { %v1935_v26 = vpop.f32.mrf.mxu2  ;;  %v2316_v39 = vadd.f32 %v2251_v6, %v2165_v17  ;;  %2816 = vmatmul.msk.bf16.gmra.mxu1 %vm677_vm3, %v3804_v0  ;;  %v225_v0 = vld [vmem:[%s3005_s27 + $0xd4] sm:$0x1]  ;;  %v2037_v6 = vor.u32 %v2036_v16, %v2032_v21  ;;  %v2028_v17 = vrot.slane %v2027_v31, 4 }
 0x249   : > { %2512 = vst.msk [vmem:[%s3967_s8 + $0x24] sm:$0xf] %vm2502_vm9, %v2479_v4  ;;  %v1999_v45 = vadd.f32 %v1935_v26, %v1854_v60  ;;  %v2040_v43 = vshll.u32 %v225_v0, 16  ;;  %v2193_v11 = vrot.slane %v225_v0, 5 }
 0x24a   : > { %v2352_v41 = vadd.f32 %v3953_v3, %v2316_v39  ;;  %v2038_v57 = vrot.slane %v2037_v6, 4  ;;  %v2033_v60 = vsel %vm3037_vm4, %v2028_v17, %v2032_v21 }
 0x24b   : > { %v2042_v44 = vrot.slane %v2040_v43, 5 }
 0x24c   : > { %vm2384_vm5 = vcmp.ge.f32.partialorder %v2352_v41, 0.0  ;;  %v2416_v58 = vmul.f32 0.2, %v2352_v41  ;;  %v2253_v27 = vpop.f32.mrf.mxu0 }
 0x24d   : > { %2843 = vmatmul.msk.bf16.gmra.mxu2 %vm677_vm3, %v3816_v7  ;;  %v2102_v53 = vpop.f32.mrf.mxu3  ;;  %v1795_v36 = vpop.f32.mrf.mxu1 }
 0x24e   : > { %v2448_v9 = vsel %vm2384_vm5, %v2352_v41, %v2416_v58  ;;  %v2166_v62 = vadd.f32 %v2102_v53, %v1999_v45  ;;  %v2043_v41 = vsel %vm3037_vm4, %v2038_v57, %v2042_v44  ;;  %v2868_v45 = vrot.slane %v4041_v54, 9 }
 0x24f   : > { %v2480_v22 = vpack.c.bf16 %v2448_v9, %v2448_v9  ;;  %v1856_v48 = vadd.f32 %v1795_v36, %v3818_v47  ;;  %v2049_v21 = vunpack.c.l.b16 %v2043_v41  ;;  %v2194_v54 = vsel %vm3352_vm7, %v2192_v19, %v2193_v11 }
 0x250   : > { %v1938_v35 = vpop.f32.mrf.mxu2  ;;  %v2317_v20 = vadd.f32 %v2253_v27, %v2166_v62  ;;  %v2048_v27 = vunpack.c.l.b16 %v2033_v60  ;;  %v2191_v47 = vsel %vm3352_vm7, %v2868_v45, %v2190_v52 }
 0x251   : > { %2513 = vst.msk [vmem:[%s3967_s8 + $0x28] sm:$0xf] %vm2502_vm9, %v2480_v22  ;;  %v2000_v7 = vadd.f32 %v1938_v35, %v1855_v55  ;;  %v2199_v22 = vunpack.c.l.b16 %v2191_v47  ;;  %v2200_v35 = vunpack.c.l.b16 %v2194_v54 }
 0x252   : > { %v2353_v40 = vadd.f32 %v3953_v3, %v2317_v20  ;;  %2866 = vmatmul.msk.bf16.gmra.mxu3 %vm677_vm3, %v3822_v2  ;;  %v2050_v5 = vpack.c.b16 %v2049_v21, %v2048_v27 }
 0x253   : > { %v2201_v55 = vpack.c.b16 %v2200_v35, %v2199_v22 }
 0x254   : > { %vm2385_vm6 = vcmp.ge.f32.partialorder %v2353_v40, 0.0  ;;  %v2417_v4 = vmul.f32 0.2, %v2353_v40  ;;  %v2256_v26 = vpop.f32.mrf.mxu0 }
 0x255   : > { %v2105_v10 = vpop.f32.mrf.mxu3  ;;  %v1798_v37 = vpop.f32.mrf.mxu1 }
 0x256   : > { %v2449_v38 = vsel %vm2385_vm6, %v2353_v40, %v2417_v4  ;;  %v2167_v8 = vadd.f32 %v2105_v10, %v2000_v7  ;;  %v1857_v43 = vadd.f32 %v1798_v37, %v3829_v14 }
 0x257   : > { %v2481_v39 = vpack.c.bf16 %v2449_v38, %v2449_v38  ;;  %2890 = vmatmul.msk.bf16.gmra.mxu0 %vm677_vm3, %v1738_v33 }
 0x258   : > { %v1940_v2 = vpop.f32.mrf.mxu2  ;;  %v2318_v50 = vadd.f32 %v2256_v26, %v2167_v8  ;;  %2817 = vmatmul.msk.bf16.gmra.mxu1 %vm677_vm3, %v1738_v33 }
 0x259   : > { %2514 = vst.msk [vmem:[%s3967_s8 + $0x2c] sm:$0xf] %vm2502_vm9, %v2481_v39  ;;  %v2001_v58 = vadd.f32 %v1940_v2, %v1856_v48 }
 0x25a   : > { %v2354_v16 = vadd.f32 %v3953_v3, %v2318_v50 }
 0x25c   : > { %vm2386_vm8 = vcmp.ge.f32.partialorder %v2354_v16, 0.0  ;;  %v2418_v42 = vmul.f32 0.2, %v2354_v16  ;;  %v2258_v53 = vpop.f32.mrf.mxu0 }
 0x25d   : > { %2844 = vmatmul.msk.bf16.gmra.mxu2 %vm677_vm3, %v2912_v1  ;;  %v2107_v0 = vpop.f32.mrf.mxu3  ;;  %v1800_v36 = vpop.f32.mrf.mxu1 }
 0x25e   : > { %v2450_v9 = vsel %vm2386_vm8, %v2354_v16, %v2418_v42  ;;  %v2168_v62 = vadd.f32 %v2107_v0, %v2001_v58  ;;  %v1858_v52 = vadd.f32 %v1800_v36, %v3834_v56 }
 0x25f   : > { %v2482_v30 = vpack.c.bf16 %v2450_v9, %v2450_v9 }
 0x260   : > { %v1943_v31 = vpop.f32.mrf.mxu2  ;;  %v2319_v6 = vadd.f32 %v2258_v53, %v2168_v62 }
 0x261   : > { %2515 = vst.msk [vmem:[%s3967_s8 + $0x30] sm:$0xf] %vm2502_vm9, %v2482_v30  ;;  %v2002_v32 = vadd.f32 %v1943_v31, %v1857_v43 }
 0x262   : > { %v2355_v20 = vadd.f32 %v3953_v3, %v2319_v6  ;;  %2867 = vmatmul.msk.bf16.gmra.mxu3 %vm677_vm3, %v2050_v5 }
 0x264   : > { %vm2387_vm4 = vcmp.ge.f32.partialorder %v2355_v20, 0.0  ;;  %v2419_v40 = vmul.f32 0.2, %v2355_v20  ;;  %v2261_v7 = vpop.f32.mrf.mxu0 }
 0x265   : > { %v2110_v33 = vpop.f32.mrf.mxu3  ;;  %v1803_v17 = vpop.f32.mrf.mxu1 }
 0x266   : > { %v2451_v57 = vsel %vm2387_vm4, %v2355_v20, %v2419_v40  ;;  %v2169_v44 = vadd.f32 %v2110_v33, %v2002_v32  ;;  %v1859_v1 = vadd.f32 %v1803_v17, %v3843_v13 }
 0x267   : > { %v2483_v4 = vpack.c.bf16 %v2451_v57, %v2451_v57  ;;  %2891 = vmatmul.msk.bf16.gmra.mxu0 %vm677_vm3, %v2201_v55 }
 0x268   : > { %v1945_v14 = vpop.f32.mrf.mxu2  ;;  %v2320_v26 = vadd.f32 %v2261_v7, %v2169_v44 }
 0x269   : > { %2516 = vst.msk [vmem:[%s3967_s8 + $0x34] sm:$0xf] %vm2502_vm9, %v2483_v4  ;;  %v2003_v37 = vadd.f32 %v1945_v14, %v1858_v52 }
 0x26a   : > { %v2356_v10 = vadd.f32 %v3953_v3, %v2320_v26 }
 0x26c   : > { %vm2388_vm7 = vcmp.ge.f32.partialorder %v2356_v10, 0.0  ;;  %v2420_v38 = vmul.f32 0.2, %v2356_v10  ;;  %v2263_v8 = vpop.f32.mrf.mxu0 }
 0x26d   : > { %v2112_v39 = vpop.f32.mrf.mxu3  ;;  %v1805_v2 = vpop.f32.mrf.mxu1 }
 0x26e   : > { %v2452_v60 = vsel %vm2388_vm7, %v2356_v10, %v2420_v38  ;;  %v2170_v41 = vadd.f32 %v2112_v39, %v2003_v37  ;;  %v1860_v0 = vadd.f32 %v1805_v2, %v3848_v34 }
 0x26f   : > { %v2484_v45 = vpack.c.bf16 %v2452_v60, %v2452_v60 }
 0x270   : > { %v1948_v50 = vpop.f32.mrf.mxu2  ;;  %v2321_v48 = vadd.f32 %v2263_v8, %v2170_v41 }
 0x271   : > { %2517 = vst.msk [vmem:[%s3967_s8 + $0x38] sm:$0xf] %vm2502_vm9, %v2484_v45  ;;  %v2004_v19 = vadd.f32 %v1948_v50, %v1859_v1 }
 0x272   : > { %v2357_v56 = vadd.f32 %v3953_v3, %v2321_v48 }
 0x274   : > { %vm2389_vm3 = vcmp.ge.f32.partialorder %v2357_v56, 0.0  ;;  %v2421_v11 = vmul.f32 0.2, %v2357_v56  ;;  %v2266_v16 = vpop.f32.mrf.mxu0 }
 0x275   : > { %v2115_v58 = vpop.f32.mrf.mxu3  ;;  %v1808_v27 = vpop.f32.mrf.mxu1 }
 0x276   : > { %v2453_v21 = vsel %vm2389_vm3, %v2357_v56, %v2421_v11  ;;  %v2171_v42 = vadd.f32 %v2115_v58, %v2004_v19  ;;  %v1861_v20 = vadd.f32 %v1808_v27, %v3857_v24 }
 0x277   : > { %v2485_v53 = vpack.c.bf16 %v2453_v21, %v2453_v21 }
 0x278   : > { %v1950_v47 = vpop.f32.mrf.mxu2  ;;  %v2322_v54 = vadd.f32 %v2266_v16, %v2171_v42 }
 0x279   : > { %2518 = vst.msk [vmem:[%s3967_s8 + $0x3c] sm:$0xf] %vm2502_vm9, %v2485_v53  ;;  %v2005_v36 = vadd.f32 %v1950_v47, %v1860_v0 }
 0x27a   : > { %v2358_v13 = vadd.f32 %v3953_v3, %v2322_v54 }
 0x27c   : > { %vm2390_vm10 = vcmp.ge.f32.partialorder %v2358_v13, 0.0  ;;  %v2422_v9 = vmul.f32 0.2, %v2358_v13  ;;  %v2268_v62 = vpop.f32.mrf.mxu0 }
 0x27d   : > { %v2117_v5 = vpop.f32.mrf.mxu3  ;;  %v1810_v30 = vpop.f32.mrf.mxu1 }
 0x27e   : > { %v2454_v22 = vsel %vm2390_vm10, %v2358_v13, %v2422_v9  ;;  %v2172_v35 = vadd.f32 %v2117_v5, %v2005_v36  ;;  %v1862_v26 = vadd.f32 %v1810_v30, %v3862_v59 }
 0x27f   : > { %v2486_v31 = vpack.c.bf16 %v2454_v22, %v2454_v22 }
 0x280   : > { %v1953_v6 = vpop.f32.mrf.mxu2  ;;  %v2323_v43 = vadd.f32 %v2268_v62, %v2172_v35 }
 0x281   : > { %2519 = vst.msk [vmem:[%s3967_s8 + $0x40] sm:$0xf] %vm2502_vm9, %v2486_v31  ;;  %v2006_v32 = vadd.f32 %v1953_v6, %v1861_v20 }
 0x282   : > { %v2359_v34 = vadd.f32 %v3953_v3, %v2323_v43 }
 0x284   : > { %vm2391_vm11 = vcmp.ge.f32.partialorder %v2359_v34, 0.0  ;;  %v2423_v55 = vmul.f32 0.2, %v2359_v34  ;;  %v2271_v40 = vpop.f32.mrf.mxu0 }
 0x285   : > { %v2120_v7 = vpop.f32.mrf.mxu3  ;;  %v1813_v33 = vpop.f32.mrf.mxu1 }
 0x286   : > { %v2455_v17 = vsel %vm2391_vm11, %v2359_v34, %v2423_v55  ;;  %v2173_v57 = vadd.f32 %v2120_v7, %v2006_v32  ;;  %v1863_v50 = vadd.f32 %v1813_v33, %v3871_v23 }
 0x287   : > { %v2487_v44 = vpack.c.bf16 %v2455_v17, %v2455_v17 }
 0x288   : > { %v1955_v4 = vpop.f32.mrf.mxu2  ;;  %v2324_v14 = vadd.f32 %v2271_v40, %v2173_v57 }
 0x289   : > { %2520 = vst.msk [vmem:[%s3967_s8 + $0x44] sm:$0xf] %vm2502_vm9, %v2487_v44  ;;  %v2007_v52 = vadd.f32 %v1955_v4, %v1862_v26 }
 0x28a   : > { %v2360_v24 = vadd.f32 %v3953_v3, %v2324_v14 }
 0x28c   : > { %vm2392_vm12 = vcmp.ge.f32.partialorder %v2360_v24, 0.0  ;;  %v2424_v10 = vmul.f32 0.2, %v2360_v24  ;;  %v2273_v37 = vpop.f32.mrf.mxu0 }
 0x28d   : > { %v2122_v38 = vpop.f32.mrf.mxu3  ;;  %v1815_v8 = vpop.f32.mrf.mxu1 }
 0x28e   : > { %v2456_v39 = vsel %vm2392_vm12, %v2360_v24, %v2424_v10  ;;  %v2174_v2 = vadd.f32 %v2122_v38, %v2007_v52  ;;  %v1864_v53 = vadd.f32 %v1815_v8, %v3876_v25 }
 0x28f   : > { %v2488_v60 = vpack.c.bf16 %v2456_v39, %v2456_v39 }
 0x290   : > { %v1958_v41 = vpop.f32.mrf.mxu2  ;;  %v2325_v45 = vadd.f32 %v2273_v37, %v2174_v2 }
 0x291   : > { %2521 = vst.msk [vmem:[%s3967_s8 + $0x48] sm:$0xf] %vm2502_vm9, %v2488_v60  ;;  %v2008_v48 = vadd.f32 %v1958_v41, %v1863_v50 }
 0x292   : > { %v2361_v59 = vadd.f32 %v3953_v3, %v2325_v45 }
 0x294   : > { %vm2393_vm13 = vcmp.ge.f32.partialorder %v2361_v59, 0.0  ;;  %v2425_v1 = vmul.f32 0.2, %v2361_v59  ;;  %v2276_v56 = vpop.f32.mrf.mxu0 }
 0x295   : > { %v2125_v19 = vpop.f32.mrf.mxu3  ;;  %v1818_v11 = vpop.f32.mrf.mxu1 }
 0x296   : > { %v2457_v16 = vsel %vm2393_vm13, %v2361_v59, %v2425_v1  ;;  %v2175_v58 = vadd.f32 %v2125_v19, %v2008_v48  ;;  %v1865_v35 = vadd.f32 %v1818_v11, %v3885_v29 }
 0x297   : > { %v2489_v27 = vpack.c.bf16 %v2457_v16, %v2457_v16 }
 0x298   : > { %v1960_v21 = vpop.f32.mrf.mxu2  ;;  %v2326_v42 = vadd.f32 %v2276_v56, %v2175_v58 }
 0x299   : > { %2522 = vst.msk [vmem:[%s3967_s8 + $0x4c] sm:$0xf] %vm2502_vm9, %v2489_v27  ;;  %v2009_v47 = vadd.f32 %v1960_v21, %v1864_v53 }
 0x29a   : > { %v2362_v23 = vadd.f32 %v3953_v3, %v2326_v42 }
 0x29c   : > { %vm2394_vm14 = vcmp.ge.f32.partialorder %v2362_v23, 0.0  ;;  %v2426_v54 = vmul.f32 0.2, %v2362_v23  ;;  %v2278_v0 = vpop.f32.mrf.mxu0 }
 0x29d   : > { %v2127_v13 = vpop.f32.mrf.mxu3  ;;  %v1820_v36 = vpop.f32.mrf.mxu1 }
 0x29e   : > { %v2458_v9 = vsel %vm2394_vm14, %v2362_v23, %v2426_v54  ;;  %v2176_v62 = vadd.f32 %v2127_v13, %v2009_v47  ;;  %v1866_v17 = vadd.f32 %v1820_v36, %v3890_v46 }
 0x29f   : > { %v2490_v5 = vpack.c.bf16 %v2458_v9, %v2458_v9 }
 0x2a0   : > { %v1963_v30 = vpop.f32.mrf.mxu2  ;;  %v2327_v22 = vadd.f32 %v2278_v0, %v2176_v62 }
 0x2a1   : > { %2523 = vst.msk [vmem:[%s3967_s8 + $0x50] sm:$0xf] %vm2502_vm9, %v2490_v5  ;;  %v2010_v31 = vadd.f32 %v1963_v30, %v1865_v35 }
 0x2a2   : > { %v2363_v25 = vadd.f32 %v3953_v3, %v2327_v22 }
 0x2a4   : > { %vm2395_vm15 = vcmp.ge.f32.partialorder %v2363_v25, 0.0  ;;  %v2427_v6 = vmul.f32 0.2, %v2363_v25  ;;  %v2281_v43 = vpop.f32.mrf.mxu0 }
 0x2a5   : > { %v2130_v20 = vpop.f32.mrf.mxu3  ;;  %v1823_v34 = vpop.f32.mrf.mxu1 }
 0x2a6   : > { %v2459_v32 = vsel %vm2395_vm15, %v2363_v25, %v2427_v6  ;;  %v2177_v55 = vadd.f32 %v2130_v20, %v2010_v31  ;;  %v1867_v8 = vadd.f32 %v1823_v34, %v3899_v51 }
 0x2a7   : > { %v2491_v40 = vpack.c.bf16 %v2459_v32, %v2459_v32 }
 0x2a8   : > { %v1965_v7 = vpop.f32.mrf.mxu2  ;;  %v2328_v33 = vadd.f32 %v2281_v43, %v2177_v55 }
 0x2a9   : > { %2524 = vst.msk [vmem:[%s3967_s8 + $0x54] sm:$0xf] %vm2502_vm9, %v2491_v40  ;;  %v2011_v57 = vadd.f32 %v1965_v7, %v1866_v17 }
 0x2aa   : > { %v2364_v29 = vadd.f32 %v3953_v3, %v2328_v33 }
 0x2ac   : > { %vm2396_vm0 = vcmp.ge.f32.partialorder %v2364_v29, 0.0  ;;  %v2428_v44 = vmul.f32 0.2, %v2364_v29  ;;  %v2283_v4 = vpop.f32.mrf.mxu0 }
 0x2ad   : > { %v2132_v14 = vpop.f32.mrf.mxu3  ;;  %v1825_v26 = vpop.f32.mrf.mxu1 }
 0x2ae   : > { %v2460_v24 = vsel %vm2396_vm0, %v2364_v29, %v2428_v44  ;;  %v2178_v52 = vadd.f32 %v2132_v14, %v2011_v57  ;;  %v1868_v19 = vadd.f32 %v1825_v26, %v3904_v15 }
 0x2af   : > { %v2492_v10 = vpack.c.bf16 %v2460_v24, %v2460_v24 }
 0x2b0   : > { %v1968_v37 = vpop.f32.mrf.mxu2  ;;  %v2329_v38 = vadd.f32 %v2283_v4, %v2178_v52 }
 0x2b1   : > { %2525 = vst.msk [vmem:[%s3967_s8 + $0x58] sm:$0xf] %vm2502_vm9, %v2492_v10  ;;  %v2012_v39 = vadd.f32 %v1968_v37, %v1867_v8 }
 0x2b2   : > { %v2365_v46 = vadd.f32 %v3953_v3, %v2329_v38 }
 0x2b4   : > { %vm2397_vm1 = vcmp.ge.f32.partialorder %v2365_v46, 0.0  ;;  %v2429_v2 = vmul.f32 0.2, %v2365_v46  ;;  %v2286_v60 = vpop.f32.mrf.mxu0 }
 0x2b5   : > { %v2135_v41 = vpop.f32.mrf.mxu3  ;;  %v1828_v45 = vpop.f32.mrf.mxu1 }
 0x2b6   : > { %v2461_v50 = vsel %vm2397_vm1, %v2365_v46, %v2429_v2  ;;  %v2179_v59 = vadd.f32 %v2135_v41, %v2012_v39  ;;  %v1869_v0 = vadd.f32 %v1828_v45, %v3913_v18 }
 0x2b7   : > { %v2493_v48 = vpack.c.bf16 %v2461_v50, %v2461_v50 }
 0x2b8   : > { %v1970_v1 = vpop.f32.mrf.mxu2  ;;  %v2330_v56 = vadd.f32 %v2286_v60, %v2179_v59 }
 0x2b9   : > { %2526 = vst.msk [vmem:[%s3967_s8 + $0x5c] sm:$0xf] %vm2502_vm9, %v2493_v48  ;;  %v2013_v11 = vadd.f32 %v1970_v1, %v1868_v19 }
 0x2ba   : > { %v2366_v51 = vadd.f32 %v3953_v3, %v2330_v56 }
 0x2bc   : > { %vm2398_vm2 = vcmp.ge.f32.partialorder %v2366_v51, 0.0  ;;  %v2430_v16 = vmul.f32 0.2, %v2366_v51  ;;  %v2288_v58 = vpop.f32.mrf.mxu0 }
 0x2bd   : > { %v2137_v27 = vpop.f32.mrf.mxu3  ;;  %v1830_v21 = vpop.f32.mrf.mxu1 }
 0x2be   : > { %v2462_v42 = vsel %vm2398_vm2, %v2366_v51, %v2430_v16  ;;  %v2180_v53 = vadd.f32 %v2137_v27, %v2013_v11  ;;  %v1870_v6 = vadd.f32 %v1830_v21, %v3918_v49 }
 0x2bf   : > { %v2494_v23 = vpack.c.bf16 %v2462_v42, %v2462_v42 }
 0x2c0   : > { %v1973_v47 = vpop.f32.mrf.mxu2  ;;  %v2331_v54 = vadd.f32 %v2288_v58, %v2180_v53 }
 0x2c1   : > { %2527 = vst.msk [vmem:[%s3967_s8 + $0x60] sm:$0xf] %vm2502_vm9, %v2494_v23  ;;  %v2014_v13 = vadd.f32 %v1973_v47, %v1869_v0 }
 0x2c2   : > { %v2367_v15 = vadd.f32 %v3953_v3, %v2331_v54 }
 0x2c4   : > { %vm2399_vm5 = vcmp.ge.f32.partialorder %v2367_v15, 0.0  ;;  %v2431_v36 = vmul.f32 0.2, %v2367_v15  ;;  %v2291_v9 = vpop.f32.mrf.mxu0 }
 0x2c5   : > { %v2140_v62 = vpop.f32.mrf.mxu3  ;;  %v1833_v22 = vpop.f32.mrf.mxu1 }
 0x2c6   : > { %v2463_v5 = vsel %vm2399_vm5, %v2367_v15, %v2431_v36  ;;  %v2181_v30 = vadd.f32 %v2140_v62, %v2014_v13  ;;  %v1871_v29 = vadd.f32 %v1833_v22, %v3927_v28 }
 0x2c7   : > { %v2495_v35 = vpack.c.bf16 %v2463_v5, %v2463_v5 }
 0x2c8   : > { %v1975_v25 = vpop.f32.mrf.mxu2  ;;  %v2332_v31 = vadd.f32 %v2291_v9, %v2181_v30 }
 0x2c9   : > { %2528 = vst.msk [vmem:[%s3967_s8 + $0x64] sm:$0xf] %vm2502_vm9, %v2495_v35  ;;  %v2015_v43 = vadd.f32 %v1975_v25, %v1870_v6 }
 0x2ca   : > { %v2368_v18 = vadd.f32 %v3953_v3, %v2332_v31 }
 0x2cc   : > { %vm2400_vm6 = vcmp.ge.f32.partialorder %v2368_v18, 0.0  ;;  %v2432_v20 = vmul.f32 0.2, %v2368_v18  ;;  %v2293_v34 = vpop.f32.mrf.mxu0 }
 0x2cd   : > { %v2142_v32 = vpop.f32.mrf.mxu3  ;;  %v1835_v57 = vpop.f32.mrf.mxu1 }
 0x2ce   : > { %v2464_v55 = vsel %vm2400_vm6, %v2368_v18, %v2432_v20  ;;  %v2182_v40 = vadd.f32 %v2142_v32, %v2015_v43  ;;  %v1872_v8 = vadd.f32 %v1835_v57, %v3932_v61 }
 0x2cf   : > { %v2496_v7 = vpack.c.bf16 %v2464_v55, %v2464_v55 }
 0x2d0   : > { %v1978_v33 = vpop.f32.mrf.mxu2  ;;  %v2333_v17 = vadd.f32 %v2293_v34, %v2182_v40 }
 0x2d1   : > { %2529 = vst.msk [vmem:[%s3967_s8 + $0x68] sm:$0xf] %vm2502_vm9, %v2496_v7  ;;  %v2016_v44 = vadd.f32 %v1978_v33, %v1871_v29 }
 0x2d2   : > { %v2369_v49 = vadd.f32 %v3953_v3, %v2333_v17 }
 0x2d4   : > { %vm2401_vm8 = vcmp.ge.f32.partialorder %v2369_v49, 0.0  ;;  %v2433_v4 = vmul.f32 0.2, %v2369_v49  ;;  %v2296_v14 = vpop.f32.mrf.mxu0 }
 0x2d5   : > { %v2145_v26 = vpop.f32.mrf.mxu3  ;;  %v1838_v39 = vpop.f32.mrf.mxu1 }
 0x2d6   : > { %v2465_v24 = vsel %vm2401_vm8, %v2369_v49, %v2433_v4  ;;  %v2183_v52 = vadd.f32 %v2145_v26, %v2016_v44  ;;  %v1873_v56 = vadd.f32 %v1838_v39, %v3941_v12 }
 0x2d7   : > { %v2497_v10 = vpack.c.bf16 %v2465_v24, %v2465_v24 }
 0x2d8   : > { %v1980_v37 = vpop.f32.mrf.mxu2  ;;  %v2334_v38 = vadd.f32 %v2296_v14, %v2183_v52 }
 0x2d9   : > { %2530 = vst.msk [vmem:[%s3967_s8 + $0x6c] sm:$0xf] %vm2502_vm9, %v2497_v10  ;;  %v2017_v46 = vadd.f32 %v1980_v37, %v1872_v8 }
 0x2da   : > { %v2370_v28 = vadd.f32 %v3953_v3, %v2334_v38 }
 0x2dc   : > { %vm2402_vm4 = vcmp.ge.f32.partialorder %v2370_v28, 0.0  ;;  %v2434_v2 = vmul.f32 0.2, %v2370_v28  ;;  %v2298_v60 = vpop.f32.mrf.mxu0 }
 0x2dd   : > { %v2147_v41 = vpop.f32.mrf.mxu3  ;;  %v1840_v11 = vpop.f32.mrf.mxu1 }
 0x2de   : > { %v2466_v45 = vsel %vm2402_vm4, %v2370_v28, %v2434_v2  ;;  %v2184_v50 = vadd.f32 %v2147_v41, %v2017_v46  ;;  %v1874_v47 = vadd.f32 %v1840_v11, %v3946_v63 }
 0x2df   : > { %v2498_v59 = vpack.c.bf16 %v2466_v45, %v2466_v45 }
 0x2e0   : > { %v1983_v48 = vpop.f32.mrf.mxu2  ;;  %v2335_v1 = vadd.f32 %v2298_v60, %v2184_v50 }
 0x2e1   : > { %2531 = vst.msk [vmem:[%s3967_s8 + $0x70] sm:$0xf] %vm2502_vm9, %v2498_v59  ;;  %v2018_v19 = vadd.f32 %v1983_v48, %v1873_v56 }
 0x2e2   : > { %v2371_v61 = vadd.f32 %v3953_v3, %v2335_v1 }
 0x2e4   : > { %vm2403_vm7 = vcmp.ge.f32.partialorder %v2371_v61, 0.0  ;;  %v2435_v51 = vmul.f32 0.2, %v2371_v61  ;;  %v2301_v16 = vpop.f32.mrf.mxu0 }
 0x2e5   : > { %v2150_v58 = vpop.f32.mrf.mxu3 }
 0x2e6   : > { %v2467_v27 = vsel %vm2403_vm7, %v2371_v61, %v2435_v51  ;;  %v2185_v21 = vadd.f32 %v2150_v58, %v2018_v19 }
 0x2e7   : > { %v2499_v42 = vpack.c.bf16 %v2467_v27, %v2467_v27 }
 0x2e8   : > { %v1985_v53 = vpop.f32.mrf.mxu2  ;;  %v2336_v23 = vadd.f32 %v2301_v16, %v2185_v21 }
 0x2e9   : > { %2532 = vst.msk [vmem:[%s3967_s8 + $0x74] sm:$0xf] %vm2502_vm9, %v2499_v42  ;;  %v2019_v54 = vadd.f32 %v1985_v53, %v1874_v47 }
 0x2ea   : > { %v2372_v12 = vadd.f32 %v3953_v3, %v2336_v23 }
 0x2ec   : > { %vm2404_vm3 = vcmp.ge.f32.partialorder %v2372_v12, 0.0  ;;  %v2436_v0 = vmul.f32 0.2, %v2372_v12  ;;  %v2303_v62 = vpop.f32.mrf.mxu0 }
 0x2ed   : > { %v2152_v15 = vpop.f32.mrf.mxu3 }
 0x2ee   : > { %v2468_v13 = vsel %vm2404_vm3, %v2372_v12, %v2436_v0  ;;  %v2186_v36 = vadd.f32 %v2152_v15, %v2019_v54 }
 0x2ef   : > { %v2500_v9 = vpack.c.bf16 %v2468_v13, %v2468_v13 }
 0x2f0   : > { %v2337_v5 = vadd.f32 %v2303_v62, %v2186_v36 }
 0x2f1   : > { %2533 = vst.msk [vmem:[%s3967_s8 + $0x78] sm:$0xf] %vm2502_vm9, %v2500_v9 }
 0x2f2   : > { %v2373_v30 = vadd.f32 %v3953_v3, %v2337_v5 }
 0x2f4   : > { %vm2405_vm10 = vcmp.ge.f32.partialorder %v2373_v30, 0.0  ;;  %v2437_v63 = vmul.f32 0.2, %v2373_v30 }
 0x2f6   : > { %v2469_v22 = vsel %vm2405_vm10, %v2373_v30, %v2437_v63 }
 0x2f7   : > { %v2501_v35 = vpack.c.bf16 %v2469_v22, %v2469_v22 }
 0x2f9   : > { %2534 = vst.msk [vmem:[%s3967_s8 + $0x7c] sm:$0xf] %vm2502_vm9, %v2501_v35 }
 0x2fa PF: > { %s13_s12 = sadd.s32 1, %s2953_s12  }
 0x2fb   : > { %p10_p4 = scmp.ge.s32.totalorder %s13_s12, 6  }
 0x2fd   :  { %12 = sbr.rel (!%p10_p4) target bundleno = 1 (0x1), region = 70 }

// kernel: dptn_generator.4
= control target key start
LH: loop header
LB: loop body
LE: loop exit
PB: predicated region body
PF: predicated region fallthrough
CT: control target
= control target key end

     0   :  { %s3465_s15 = smov 0   ;;  %s3467_s16 = smov 0   ;;  %s4835_s0 = inlined_call_operand.vmem [shape: bf16[2,256,32], index: 0, kind: input, shape index: {}]   ;;  %s4836_s1 = inlined_call_operand.vmem [shape: bf16[2,256,32], index: 1, kind: input, shape index: {}]   ;;  %s4837_s2 = inlined_call_operand.vmem [shape: bf16[32,32], index: 2, kind: input, shape index: {}]   ;;  %s4838_s3 = inlined_call_operand.vmem [shape: bf16[32,64], index: 3, kind: input, shape index: {}]   ;;  %s4839_s4 = inlined_call_operand.vmem [shape: bf16[2,256,32], index: 4, kind: output, shape index: {}]  }
   0x1   :  { %s3469_s17 = smov 0   ;;  %s3471_s18 = smov 0  }
   0x2   :  { %s3473_s19 = smov 0  }
   0x3 LB: > { %s23_s20 = sadd.s32 1, %s3425_s17  ;;  %s26_s21 = sadd.s32 1, %s3429_s18  ;;  %s3433_s19 = sphi %s3473_s19, %s14_s19   ;;  %s3429_s18 = sphi %s3471_s18, %s5010_s18   ;;  %s3425_s17 = sphi %s3469_s17, %s5009_s17   ;;  %s3421_s16 = sphi %s3467_s16, %s5008_s16   ;;  %s3417_s15 = sphi %s3465_s15, %s5007_s15  }
   0x4   : > { %p24_p0 = scmp.ge.s32.totalorder %s23_s20, 2  ;;  %p2777_p1 = scmp.ge.s32.totalorder %s3433_s19, 1 }
   0x5   : > { %p191_p2 = scmp.lt.s32.totalorder %s3433_s19, 5 }
   0x6   : > { %s5012_s20 = smov (%p24_p0, %s23_s20), 0  ;;  %s5014_s21 = smov (!%p24_p0, %s26_s21), %s3429_s18 }
   0x7   : > { %p192_p3 = pnand %p2777_p1, %p191_p2  ;;  %p28_p4 = scmp.ge.s32.totalorder %s5014_s21, 2 }
   0x9   : > { %s5016_s21 = smov (%p28_p4, %s5014_s21), 0  ;;  %195 = sbr.rel (%p192_p3) target bundleno = 1607 (0x647), region = 36 }
   0xe   : > { %p226_p5 = scmp.lt.s32.totalorder %s3421_s16, 1  ;;  %s2780_s22 = sshll.u32 %s3417_s15, 4 }
   0xf   : > { %p234_p6 = scmp.lt.s32.totalorder %s2780_s22, 31  ;;  %p2785_p7 = scmp.ne.s32.totalorder %s3417_s15, 0 }
  0x10   : > { %s5018_s16 = smov (!%p226_p5, %s3421_s16), 1 }
  0x11   : > { %s5020_s22 = smov (!%p234_p6, %s2780_s22), 31  ;;  %s3005_s23 = sshll.u32 %s5018_s16, 7 }
  0x12   : > { %s2781_s24 = sshll.u32 %s5018_s16, 5  ;;  %s3501_s27 = scalar_lea.vmem %s4835_s0, %s3005_s23 }
  0x13   : > { %s237_s28 = sadd.s32 %s2781_s24, %s5020_s22  ;;  %s3506_s6 = scalar_lea.vmem %s4839_s4, %s3005_s23 }
  0x14   : > { %s2782_s29 = sshll.u32 %s237_s28, 2  ;;  %250 = sbr.rel (%p2785_p7) target bundleno = 226 (0xe2), region = 40 }
  0x15   : > { %s3511_s9 = scalar_lea.vmem %s4836_s1, %s2782_s29 }
  0x19   : > { %v3024_v0 = vld [vmem:[%s4837_s2 + $0x8] sm:$0xff]  ;;  %vm379_vm0 = vcmask 261120   ;;  %v3435_v1 = vmov 0.0   ;;  %v3023_v2 = vld [vmem:[%s4837_s2] sm:$0xff]  ;;  %v3009_v11 = vld [vmem:[%s3501_s27 + $0x10] sm:$0xff]  ;;  %vm549_vm1 = vcmask 257024  }
  0x1a   : > { %647 = vst.msk [vmem:[#allocation5] sm:$0xff] %vm379_vm0, %v3435_v1  ;;  %434 = vmatpush.bf16.msra.mxu0 %v3024_v0  ;;  %3130 = vmatpush.bf16.msra.mxu1 %v3024_v0  ;;  %v3007_v3 = vld [vmem:[%s3501_s27] sm:$0xff]  ;;  %v3008_v7 = vld [vmem:[%s3501_s27 + $0x8] sm:$0xff]  ;;  %v3013_v12 = vld [vmem:[%s3501_s27 + $0x30] sm:$0xff]  ;;  %vm582_vm2 = vcmask 7168   ;;  %v3436_v55 = vmov -inf  }
  0x1b   : > { %648 = vst.msk [vmem:[#allocation5 + $0x8] sm:$0xff] %vm379_vm0, %v3435_v1  ;;  %3131 = vmatpush.bf16.msra.mxu2 %v3024_v0  ;;  %3132 = vmatpush.bf16.msra.mxu3 %v3024_v0  ;;  %v3011_v4 = vld [vmem:[%s3501_s27 + $0x20] sm:$0xff]  ;;  %v3012_v8 = vld [vmem:[%s3501_s27 + $0x28] sm:$0xff]  ;;  %v3017_v13 = vld [vmem:[%s3501_s27 + $0x50] sm:$0xff] }
  0x1c   : > { %649 = vst.msk [vmem:[#allocation5 + $0x10] sm:$0xff] %vm379_vm0, %v3435_v1  ;;  %v3015_v5 = vld [vmem:[%s3501_s27 + $0x40] sm:$0xff]  ;;  %v3016_v9 = vld [vmem:[%s3501_s27 + $0x48] sm:$0xff]  ;;  %v3021_v14 = vld [vmem:[%s3501_s27 + $0x70] sm:$0xff] }
  0x1d   : > { %650 = vst.msk [vmem:[#allocation5 + $0x18] sm:$0xff] %vm379_vm0, %v3435_v1  ;;  %v3019_v6 = vld [vmem:[%s3501_s27 + $0x60] sm:$0xff]  ;;  %v3020_v10 = vld [vmem:[%s3501_s27 + $0x68] sm:$0xff]  ;;  %v3010_v15 = vld [vmem:[%s3501_s27 + $0x18] sm:$0xff] }
  0x1e   : > { %651 = vst.msk [vmem:[#allocation5 + $0x20] sm:$0xff] %vm379_vm0, %v3435_v1  ;;  %435 = vmatpush.bf16.msra.mxu0 %v3023_v2  ;;  %3133 = vmatpush.bf16.msra.mxu1 %v3023_v2  ;;  %v3014_v16 = vld [vmem:[%s3501_s27 + $0x38] sm:$0xff] }
  0x1f   : > { %652 = vst.msk [vmem:[#allocation5 + $0x28] sm:$0xff] %vm379_vm0, %v3435_v1  ;;  %3134 = vmatpush.bf16.msra.mxu2 %v3023_v2  ;;  %3135 = vmatpush.bf16.msra.mxu3 %v3023_v2  ;;  %v3018_v17 = vld [vmem:[%s3501_s27 + $0x58] sm:$0xff] }
  0x20   : > { %653 = vst.msk [vmem:[#allocation5 + $0x30] sm:$0xff] %vm379_vm0, %v3435_v1  ;;  %v3022_v18 = vld [vmem:[%s3501_s27 + $0x78] sm:$0xff] }
  0x21   : > { %654 = vst.msk [vmem:[#allocation5 + $0x38] sm:$0xff] %vm379_vm0, %v3435_v1  ;;  %2858 = vmatmul.msk.bf16.vlgmr.msra.gmra.mxu0 %vm379_vm0, %v3007_v3  ;;  %2862 = vmatmul.msk.bf16.vlgmr.msra.gmra.mxu1 %vm379_vm0, %v3011_v4 }
  0x22   : > { %655 = vst.msk [vmem:[#allocation5 + $0x40] sm:$0xff] %vm379_vm0, %v3435_v1  ;;  %2866 = vmatmul.msk.bf16.vlgmr.msra.gmra.mxu2 %vm379_vm0, %v3015_v5  ;;  %2870 = vmatmul.msk.bf16.vlgmr.msra.gmra.mxu3 %vm379_vm0, %v3019_v6 }
  0x23   : > { %656 = vst.msk [vmem:[#allocation5 + $0x48] sm:$0xff] %vm379_vm0, %v3435_v1 }
  0x24   : > { %657 = vst.msk [vmem:[#allocation5 + $0x50] sm:$0xff] %vm379_vm0, %v3435_v1 }
  0x25   : > { %658 = vst.msk [vmem:[#allocation5 + $0x58] sm:$0xff] %vm379_vm0, %v3435_v1 }
  0x26   : > { %659 = vst.msk [vmem:[#allocation5 + $0x60] sm:$0xff] %vm379_vm0, %v3435_v1 }
  0x27   : > { %660 = vst.msk [vmem:[#allocation5 + $0x68] sm:$0xff] %vm379_vm0, %v3435_v1 }
  0x28   : > { %661 = vst.msk [vmem:[#allocation5 + $0x70] sm:$0xff] %vm379_vm0, %v3435_v1 }
  0x29   : > { %662 = vst.msk [vmem:[#allocation5 + $0x78] sm:$0xff] %vm379_vm0, %v3435_v1 }
  0x2a   : > { %663 = vst.msk [vmem:[#allocation5 + $0x80] sm:$0xff] %vm379_vm0, %v3435_v1 }
  0x2b   : > { %664 = vst.msk [vmem:[#allocation5 + $0x88] sm:$0xff] %vm379_vm0, %v3435_v1 }
  0x2c   : > { %665 = vst.msk [vmem:[#allocation5 + $0x90] sm:$0xff] %vm379_vm0, %v3435_v1 }
  0x2d   : > { %666 = vst.msk [vmem:[#allocation5 + $0x98] sm:$0xff] %vm379_vm0, %v3435_v1 }
  0x2e   : > { %667 = vst.msk [vmem:[#allocation5 + $0xa0] sm:$0xff] %vm379_vm0, %v3435_v1 }
  0x2f   : > { %668 = vst.msk [vmem:[#allocation5 + $0xa8] sm:$0xff] %vm379_vm0, %v3435_v1 }
  0x30   : > { %669 = vst.msk [vmem:[#allocation5 + $0xb0] sm:$0xff] %vm379_vm0, %v3435_v1 }
  0x31   : > { %670 = vst.msk [vmem:[#allocation5 + $0xb8] sm:$0xff] %vm379_vm0, %v3435_v1  ;;  %2859 = vmatmul.msk.bf16.gmra.mxu0 %vm379_vm0, %v3008_v7  ;;  %2863 = vmatmul.msk.bf16.gmra.mxu1 %vm379_vm0, %v3012_v8 }
  0x32   : > { %671 = vst.msk [vmem:[#allocation5 + $0xc0] sm:$0xff] %vm379_vm0, %v3435_v1  ;;  %2867 = vmatmul.msk.bf16.gmra.mxu2 %vm379_vm0, %v3016_v9  ;;  %2871 = vmatmul.msk.bf16.gmra.mxu3 %vm379_vm0, %v3020_v10 }
  0x33   : > { %672 = vst.msk [vmem:[#allocation5 + $0xc8] sm:$0xff] %vm379_vm0, %v3435_v1 }
  0x34   : > { %673 = vst.msk [vmem:[#allocation5 + $0xd0] sm:$0xff] %vm379_vm0, %v3435_v1 }
  0x35   : > { %674 = vst.msk [vmem:[#allocation5 + $0xd8] sm:$0xff] %vm379_vm0, %v3435_v1 }
  0x36   : > { %675 = vst.msk [vmem:[#allocation5 + $0xe0] sm:$0xff] %vm379_vm0, %v3435_v1 }
  0x37   : > { %676 = vst.msk [vmem:[#allocation5 + $0xe8] sm:$0xff] %vm379_vm0, %v3435_v1 }
  0x38   : > { %677 = vst.msk [vmem:[#allocation5 + $0xf0] sm:$0xff] %vm379_vm0, %v3435_v1 }
  0x39   : > { %678 = vst.msk [vmem:[#allocation5 + $0xf8] sm:$0xff] %vm379_vm0, %v3435_v1 }
  0x3a   : > { %583 = vst.msk [vmem:[#allocation3] sm:$0xff] %vm582_vm2, %v3436_v55 }
  0x3b   : > { %584 = vst.msk [vmem:[#allocation3 + $0x8] sm:$0xff] %vm582_vm2, %v3436_v55 }
  0x3c   : > { %585 = vst.msk [vmem:[#allocation3 + $0x10] sm:$0xff] %vm582_vm2, %v3436_v55 }
  0x3d   : > { %586 = vst.msk [vmem:[#allocation3 + $0x18] sm:$0xff] %vm582_vm2, %v3436_v55 }
  0x3e   : > { %587 = vst.msk [vmem:[#allocation3 + $0x20] sm:$0xff] %vm582_vm2, %v3436_v55 }
  0x3f   : > { %588 = vst.msk [vmem:[#allocation3 + $0x28] sm:$0xff] %vm582_vm2, %v3436_v55 }
  0x40   : > { %589 = vst.msk [vmem:[#allocation3 + $0x30] sm:$0xff] %vm582_vm2, %v3436_v55 }
  0x41   : > { %2860 = vmatmul.msk.bf16.gmra.mxu0 %vm379_vm0, %v3009_v11  ;;  %2864 = vmatmul.msk.bf16.gmra.mxu1 %vm379_vm0, %v3013_v12  ;;  %590 = vst.msk [vmem:[#allocation3 + $0x38] sm:$0xff] %vm582_vm2, %v3436_v55 }
  0x42   : > { %2868 = vmatmul.msk.bf16.gmra.mxu2 %vm379_vm0, %v3017_v13  ;;  %2872 = vmatmul.msk.bf16.gmra.mxu3 %vm379_vm0, %v3021_v14  ;;  %591 = vst.msk [vmem:[#allocation3 + $0x40] sm:$0xff] %vm582_vm2, %v3436_v55 }
  0x43   : > { %592 = vst.msk [vmem:[#allocation3 + $0x48] sm:$0xff] %vm582_vm2, %v3436_v55 }
  0x44   : > { %593 = vst.msk [vmem:[#allocation3 + $0x50] sm:$0xff] %vm582_vm2, %v3436_v55 }
  0x45   : > { %594 = vst.msk [vmem:[#allocation3 + $0x58] sm:$0xff] %vm582_vm2, %v3436_v55 }
  0x46   : > { %595 = vst.msk [vmem:[#allocation3 + $0x60] sm:$0xff] %vm582_vm2, %v3436_v55 }
  0x47   : > { %596 = vst.msk [vmem:[#allocation3 + $0x68] sm:$0xff] %vm582_vm2, %v3436_v55 }
  0x48   : > { %597 = vst.msk [vmem:[#allocation3 + $0x70] sm:$0xff] %vm582_vm2, %v3436_v55 }
  0x49   : > { %598 = vst.msk [vmem:[#allocation3 + $0x78] sm:$0xff] %vm582_vm2, %v3436_v55 }
  0x4a   : > { %599 = vst.msk [vmem:[#allocation3 + $0x80] sm:$0xff] %vm582_vm2, %v3436_v55 }
  0x4b   : > { %600 = vst.msk [vmem:[#allocation3 + $0x88] sm:$0xff] %vm582_vm2, %v3436_v55 }
  0x4c   : > { %601 = vst.msk [vmem:[#allocation3 + $0x90] sm:$0xff] %vm582_vm2, %v3436_v55 }
  0x4d   : > { %602 = vst.msk [vmem:[#allocation3 + $0x98] sm:$0xff] %vm582_vm2, %v3436_v55 }
  0x4e   : > { %603 = vst.msk [vmem:[#allocation3 + $0xa0] sm:$0xff] %vm582_vm2, %v3436_v55 }
  0x4f   : > { %604 = vst.msk [vmem:[#allocation3 + $0xa8] sm:$0xff] %vm582_vm2, %v3436_v55 }
  0x50   : > { %605 = vst.msk [vmem:[#allocation3 + $0xb0] sm:$0xff] %vm582_vm2, %v3436_v55 }
  0x51   : > { %2861 = vmatmul.msk.bf16.gmra.mxu0 %vm379_vm0, %v3010_v15  ;;  %2865 = vmatmul.msk.bf16.gmra.mxu1 %vm379_vm0, %v3014_v16  ;;  %606 = vst.msk [vmem:[#allocation3 + $0xb8] sm:$0xff] %vm582_vm2, %v3436_v55 }
  0x52   : > { %2869 = vmatmul.msk.bf16.gmra.mxu2 %vm379_vm0, %v3018_v17  ;;  %2873 = vmatmul.msk.bf16.gmra.mxu3 %vm379_vm0, %v3022_v18  ;;  %607 = vst.msk [vmem:[#allocation3 + $0xc0] sm:$0xff] %vm582_vm2, %v3436_v55 }
  0x53   : > { %608 = vst.msk [vmem:[#allocation3 + $0xc8] sm:$0xff] %vm582_vm2, %v3436_v55 }
  0x54   : > { %609 = vst.msk [vmem:[#allocation3 + $0xd0] sm:$0xff] %vm582_vm2, %v3436_v55 }
  0x55   : > { %610 = vst.msk [vmem:[#allocation3 + $0xd8] sm:$0xff] %vm582_vm2, %v3436_v55 }
  0x56   : > { %611 = vst.msk [vmem:[#allocation3 + $0xe0] sm:$0xff] %vm582_vm2, %v3436_v55 }
  0x57   : > { %612 = vst.msk [vmem:[#allocation3 + $0xe8] sm:$0xff] %vm582_vm2, %v3436_v55 }
  0x58   : > { %613 = vst.msk [vmem:[#allocation3 + $0xf0] sm:$0xff] %vm582_vm2, %v3436_v55 }
  0x59   : > { %614 = vst.msk [vmem:[#allocation3 + $0xf8] sm:$0xff] %vm582_vm2, %v3436_v55 }
  0x5a   : > { %615 = vst.msk [vmem:[#allocation4] sm:$0xff] %vm582_vm2, %v3435_v1 }
  0x5b   : > { %616 = vst.msk [vmem:[#allocation4 + $0x8] sm:$0xff] %vm582_vm2, %v3435_v1 }
  0x5c   : > { %617 = vst.msk [vmem:[#allocation4 + $0x10] sm:$0xff] %vm582_vm2, %v3435_v1 }
  0x5d   : > { %618 = vst.msk [vmem:[#allocation4 + $0x18] sm:$0xff] %vm582_vm2, %v3435_v1 }
  0x5e   : > { %619 = vst.msk [vmem:[#allocation4 + $0x20] sm:$0xff] %vm582_vm2, %v3435_v1 }
  0x5f   : > { %620 = vst.msk [vmem:[#allocation4 + $0x28] sm:$0xff] %vm582_vm2, %v3435_v1 }
  0x60   : > { %621 = vst.msk [vmem:[#allocation4 + $0x30] sm:$0xff] %vm582_vm2, %v3435_v1 }
  0x61   : > { %622 = vst.msk [vmem:[#allocation4 + $0x38] sm:$0xff] %vm582_vm2, %v3435_v1 }
  0x62   : > { %623 = vst.msk [vmem:[#allocation4 + $0x40] sm:$0xff] %vm582_vm2, %v3435_v1 }
  0x63   : > { %624 = vst.msk [vmem:[#allocation4 + $0x48] sm:$0xff] %vm582_vm2, %v3435_v1 }
  0x64   : > { %625 = vst.msk [vmem:[#allocation4 + $0x50] sm:$0xff] %vm582_vm2, %v3435_v1 }
  0x65   : > { %626 = vst.msk [vmem:[#allocation4 + $0x58] sm:$0xff] %vm582_vm2, %v3435_v1 }
  0x66   : > { %627 = vst.msk [vmem:[#allocation4 + $0x60] sm:$0xff] %vm582_vm2, %v3435_v1 }
  0x67   : > { %628 = vst.msk [vmem:[#allocation4 + $0x68] sm:$0xff] %vm582_vm2, %v3435_v1 }
  0x68   : > { %629 = vst.msk [vmem:[#allocation4 + $0x70] sm:$0xff] %vm582_vm2, %v3435_v1 }
  0x69   : > { %630 = vst.msk [vmem:[#allocation4 + $0x78] sm:$0xff] %vm582_vm2, %v3435_v1 }
  0x6a   : > { %631 = vst.msk [vmem:[#allocation4 + $0x80] sm:$0xff] %vm582_vm2, %v3435_v1 }
  0x6b   : > { %632 = vst.msk [vmem:[#allocation4 + $0x88] sm:$0xff] %vm582_vm2, %v3435_v1 }
  0x6c   : > { %633 = vst.msk [vmem:[#allocation4 + $0x90] sm:$0xff] %vm582_vm2, %v3435_v1 }
  0x6d   : > { %634 = vst.msk [vmem:[#allocation4 + $0x98] sm:$0xff] %vm582_vm2, %v3435_v1 }
  0x6e   : > { %635 = vst.msk [vmem:[#allocation4 + $0xa0] sm:$0xff] %vm582_vm2, %v3435_v1 }
  0x6f   : > { %636 = vst.msk [vmem:[#allocation4 + $0xa8] sm:$0xff] %vm582_vm2, %v3435_v1 }
  0x70   : > { %637 = vst.msk [vmem:[#allocation4 + $0xb0] sm:$0xff] %vm582_vm2, %v3435_v1 }
  0x71   : > { %638 = vst.msk [vmem:[#allocation4 + $0xb8] sm:$0xff] %vm582_vm2, %v3435_v1 }
  0x72   : > { %639 = vst.msk [vmem:[#allocation4 + $0xc0] sm:$0xff] %vm582_vm2, %v3435_v1 }
  0x73   : > { %640 = vst.msk [vmem:[#allocation4 + $0xc8] sm:$0xff] %vm582_vm2, %v3435_v1 }
  0x74   : > { %641 = vst.msk [vmem:[#allocation4 + $0xd0] sm:$0xff] %vm582_vm2, %v3435_v1 }
  0x75   : > { %642 = vst.msk [vmem:[#allocation4 + $0xd8] sm:$0xff] %vm582_vm2, %v3435_v1 }
  0x76   : > { %643 = vst.msk [vmem:[#allocation4 + $0xe0] sm:$0xff] %vm582_vm2, %v3435_v1 }
  0x77   : > { %644 = vst.msk [vmem:[#allocation4 + $0xe8] sm:$0xff] %vm582_vm2, %v3435_v1 }
  0x78   : > { %645 = vst.msk [vmem:[#allocation4 + $0xf0] sm:$0xff] %vm582_vm2, %v3435_v1 }
  0x79   : > { %646 = vst.msk [vmem:[#allocation4 + $0xf8] sm:$0xff] %vm582_vm2, %v3435_v1 }
  0x9e   : > { %v437_v19 = vpop.f32.mrf.mxu0  ;;  %v457_v20 = vpop.f32.mrf.mxu1 }
  0x9f   : > { %v517_v21 = vpack.c.bf16 %v437_v19, %v437_v19  ;;  %v525_v22 = vpack.c.bf16 %v457_v20, %v457_v20 }
  0xa1   : > { %550 = vst.msk [vmem:[#allocation2] sm:$0xf] %vm549_vm1, %v517_v21 }
  0xa2   : > { %558 = vst.msk [vmem:[#allocation2 + $0x20] sm:$0xf] %vm549_vm1, %v525_v22 }
  0xa5   : > { %v477_v23 = vpop.f32.mrf.mxu2  ;;  %v497_v24 = vpop.f32.mrf.mxu3 }
  0xa6   : > { %v533_v25 = vpack.c.bf16 %v477_v23, %v477_v23  ;;  %v541_v26 = vpack.c.bf16 %v497_v24, %v497_v24  ;;  %v439_v27 = vpop.f32.mrf.mxu0  ;;  %v459_v28 = vpop.f32.mrf.mxu1 }
  0xa7   : > { %v518_v29 = vpack.c.bf16 %v439_v27, %v439_v27  ;;  %v526_v30 = vpack.c.bf16 %v459_v28, %v459_v28 }
  0xa8   : > { %566 = vst.msk [vmem:[#allocation2 + $0x40] sm:$0xf] %vm549_vm1, %v533_v25 }
  0xa9   : > { %574 = vst.msk [vmem:[#allocation2 + $0x60] sm:$0xf] %vm549_vm1, %v541_v26 }
  0xaa   : > { %551 = vst.msk [vmem:[#allocation2 + $0x4] sm:$0xf] %vm549_vm1, %v518_v29 }
  0xab   : > { %559 = vst.msk [vmem:[#allocation2 + $0x24] sm:$0xf] %vm549_vm1, %v526_v30 }
  0xad   : > { %v479_v31 = vpop.f32.mrf.mxu2  ;;  %v499_v32 = vpop.f32.mrf.mxu3 }
  0xae   : > { %v534_v33 = vpack.c.bf16 %v479_v31, %v479_v31  ;;  %v542_v34 = vpack.c.bf16 %v499_v32, %v499_v32  ;;  %v442_v35 = vpop.f32.mrf.mxu0  ;;  %v462_v36 = vpop.f32.mrf.mxu1 }
  0xaf   : > { %v519_v37 = vpack.c.bf16 %v442_v35, %v442_v35  ;;  %v527_v38 = vpack.c.bf16 %v462_v36, %v462_v36 }
  0xb0   : > { %567 = vst.msk [vmem:[#allocation2 + $0x44] sm:$0xf] %vm549_vm1, %v534_v33 }
  0xb1   : > { %575 = vst.msk [vmem:[#allocation2 + $0x64] sm:$0xf] %vm549_vm1, %v542_v34 }
  0xb2   : > { %552 = vst.msk [vmem:[#allocation2 + $0x8] sm:$0xf] %vm549_vm1, %v519_v37 }
  0xb3   : > { %560 = vst.msk [vmem:[#allocation2 + $0x28] sm:$0xf] %vm549_vm1, %v527_v38 }
  0xb5   : > { %v482_v39 = vpop.f32.mrf.mxu2  ;;  %v502_v40 = vpop.f32.mrf.mxu3 }
  0xb6   : > { %v535_v41 = vpack.c.bf16 %v482_v39, %v482_v39  ;;  %v543_v42 = vpack.c.bf16 %v502_v40, %v502_v40  ;;  %v444_v43 = vpop.f32.mrf.mxu0  ;;  %v464_v44 = vpop.f32.mrf.mxu1 }
  0xb7   : > { %v520_v45 = vpack.c.bf16 %v444_v43, %v444_v43  ;;  %v528_v46 = vpack.c.bf16 %v464_v44, %v464_v44 }
  0xb8   : > { %568 = vst.msk [vmem:[#allocation2 + $0x48] sm:$0xf] %vm549_vm1, %v535_v41 }
  0xb9   : > { %576 = vst.msk [vmem:[#allocation2 + $0x68] sm:$0xf] %vm549_vm1, %v543_v42 }
  0xba   : > { %553 = vst.msk [vmem:[#allocation2 + $0xc] sm:$0xf] %vm549_vm1, %v520_v45 }
  0xbb   : > { %561 = vst.msk [vmem:[#allocation2 + $0x2c] sm:$0xf] %vm549_vm1, %v528_v46 }
  0xbd   : > { %v484_v47 = vpop.f32.mrf.mxu2  ;;  %v504_v48 = vpop.f32.mrf.mxu3 }
  0xbe   : > { %v536_v49 = vpack.c.bf16 %v484_v47, %v484_v47  ;;  %v544_v50 = vpack.c.bf16 %v504_v48, %v504_v48  ;;  %v447_v51 = vpop.f32.mrf.mxu0  ;;  %v467_v52 = vpop.f32.mrf.mxu1 }
  0xbf   : > { %v521_v53 = vpack.c.bf16 %v447_v51, %v447_v51  ;;  %v529_v54 = vpack.c.bf16 %v467_v52, %v467_v52 }
  0xc0   : > { %569 = vst.msk [vmem:[#allocation2 + $0x4c] sm:$0xf] %vm549_vm1, %v536_v49 }
  0xc1   : > { %577 = vst.msk [vmem:[#allocation2 + $0x6c] sm:$0xf] %vm549_vm1, %v544_v50 }
  0xc2   : > { %554 = vst.msk [vmem:[#allocation2 + $0x10] sm:$0xf] %vm549_vm1, %v521_v53 }
  0xc3   : > { %562 = vst.msk [vmem:[#allocation2 + $0x30] sm:$0xf] %vm549_vm1, %v529_v54 }
  0xc5   : > { %v487_v56 = vpop.f32.mrf.mxu2  ;;  %v507_v57 = vpop.f32.mrf.mxu3 }
  0xc6   : > { %v537_v58 = vpack.c.bf16 %v487_v56, %v487_v56  ;;  %v545_v59 = vpack.c.bf16 %v507_v57, %v507_v57  ;;  %v449_v60 = vpop.f32.mrf.mxu0  ;;  %v469_v61 = vpop.f32.mrf.mxu1 }
  0xc7   : > { %v522_v62 = vpack.c.bf16 %v449_v60, %v449_v60  ;;  %v530_v63 = vpack.c.bf16 %v469_v61, %v469_v61 }
  0xc8   : > { %570 = vst.msk [vmem:[#allocation2 + $0x50] sm:$0xf] %vm549_vm1, %v537_v58 }
  0xc9   : > { %578 = vst.msk [vmem:[#allocation2 + $0x70] sm:$0xf] %vm549_vm1, %v545_v59 }
  0xca   : > { %555 = vst.msk [vmem:[#allocation2 + $0x14] sm:$0xf] %vm549_vm1, %v522_v62 }
  0xcb   : > { %563 = vst.msk [vmem:[#allocation2 + $0x34] sm:$0xf] %vm549_vm1, %v530_v63 }
  0xcd   : > { %v489_v0 = vpop.f32.mrf.mxu2  ;;  %v509_v2 = vpop.f32.mrf.mxu3 }
  0xce   : > { %v538_v3 = vpack.c.bf16 %v489_v0, %v489_v0  ;;  %v546_v4 = vpack.c.bf16 %v509_v2, %v509_v2  ;;  %v452_v5 = vpop.f32.mrf.mxu0  ;;  %v472_v6 = vpop.f32.mrf.mxu1 }
  0xcf   : > { %v523_v7 = vpack.c.bf16 %v452_v5, %v452_v5  ;;  %v531_v8 = vpack.c.bf16 %v472_v6, %v472_v6 }
  0xd0   : > { %571 = vst.msk [vmem:[#allocation2 + $0x54] sm:$0xf] %vm549_vm1, %v538_v3 }
  0xd1   : > { %579 = vst.msk [vmem:[#allocation2 + $0x74] sm:$0xf] %vm549_vm1, %v546_v4 }
  0xd2   : > { %556 = vst.msk [vmem:[#allocation2 + $0x18] sm:$0xf] %vm549_vm1, %v523_v7 }
  0xd3   : > { %564 = vst.msk [vmem:[#allocation2 + $0x38] sm:$0xf] %vm549_vm1, %v531_v8 }
  0xd5   : > { %v492_v9 = vpop.f32.mrf.mxu2  ;;  %v512_v10 = vpop.f32.mrf.mxu3 }
  0xd6   : > { %v539_v11 = vpack.c.bf16 %v492_v9, %v492_v9  ;;  %v547_v12 = vpack.c.bf16 %v512_v10, %v512_v10  ;;  %v454_v13 = vpop.f32.mrf.mxu0  ;;  %v474_v14 = vpop.f32.mrf.mxu1 }
  0xd7   : > { %v524_v15 = vpack.c.bf16 %v454_v13, %v454_v13  ;;  %v532_v16 = vpack.c.bf16 %v474_v14, %v474_v14 }
  0xd8   : > { %572 = vst.msk [vmem:[#allocation2 + $0x58] sm:$0xf] %vm549_vm1, %v539_v11 }
  0xd9   : > { %580 = vst.msk [vmem:[#allocation2 + $0x78] sm:$0xf] %vm549_vm1, %v547_v12 }
  0xda   : > { %557 = vst.msk [vmem:[#allocation2 + $0x1c] sm:$0xf] %vm549_vm1, %v524_v15 }
  0xdb   : > { %565 = vst.msk [vmem:[#allocation2 + $0x3c] sm:$0xf] %vm549_vm1, %v532_v16 }
  0xdd   : > { %v494_v17 = vpop.f32.mrf.mxu2  ;;  %v514_v18 = vpop.f32.mrf.mxu3 }
  0xde   : > { %v540_v19 = vpack.c.bf16 %v494_v17, %v494_v17  ;;  %v548_v20 = vpack.c.bf16 %v514_v18, %v514_v18 }
  0xe0   : > { %573 = vst.msk [vmem:[#allocation2 + $0x5c] sm:$0xf] %vm549_vm1, %v540_v19 }
  0xe1   : > { %581 = vst.msk [vmem:[#allocation2 + $0x7c] sm:$0xf] %vm549_vm1, %v548_v20 }
  0xe2 PF: > { %v3034_v21 = vld [vmem:[%s4838_s3 + $0x8] sm:$0xff]  ;;  %v3033_v22 = vld [vmem:[%s4838_s3] sm:$0xff]  ;;  %vm751_vm3 = vcmask 261120   ;;  %v3027_v24 = vld [vmem:[%s3511_s9 + $0x10] sm:$0xff]  ;;  %s3437_s24 = smov 96   ;;  %vm1746_vm4 = vcmask 7168  }
  0xe3   : > { %782 = vmatpush.bf16.msra.mxu0 %v3034_v21  ;;  %v3025_v23 = vld [vmem:[%s3511_s9] sm:$0xff]  ;;  %v3026_v1 = vld [vmem:[%s3511_s9 + $0x8] sm:$0xff]  ;;  %v3028_v25 = vld [vmem:[%s3511_s9 + $0x18] sm:$0xff]  ;;  %p3002_p8 = scmp.ne.s32.totalorder %s3417_s15, 1 }
  0xe4   : > { %v3029_v26 = vld [vmem:[%s3511_s9 + $0x20] sm:$0xff]  ;;  %v3030_v27 = vld [vmem:[%s3511_s9 + $0x28] sm:$0xff]  ;;  %v3031_v28 = vld [vmem:[%s3511_s9 + $0x30] sm:$0xff] }
  0xe5   : > { %v3032_v29 = vld [vmem:[%s3511_s9 + $0x38] sm:$0xff]  ;;  %v3035_v62 = vld [vmem:[#allocation2] sm:$0xff]  ;;  %v3044_v63 = vld [vmem:[#allocation2 + $0x48] sm:$0xff] }
  0xe6   : > { %v3036_v0 = vld [vmem:[#allocation2 + $0x8] sm:$0xff]  ;;  %v3045_v2 = vld [vmem:[#allocation2 + $0x50] sm:$0xff]  ;;  %v3038_v6 = vld [vmem:[#allocation2 + $0x18] sm:$0xff] }
  0xe7   : > { %783 = vmatpush.bf16.msra.mxu0 %v3033_v22  ;;  %v3037_v3 = vld [vmem:[#allocation2 + $0x10] sm:$0xff]  ;;  %v3046_v4 = vld [vmem:[#allocation2 + $0x58] sm:$0xff]  ;;  %v3047_v7 = vld [vmem:[#allocation2 + $0x60] sm:$0xff] }
  0xe8   : > { %v3039_v13 = vld [vmem:[#allocation2 + $0x20] sm:$0xff]  ;;  %v3048_v14 = vld [vmem:[#allocation2 + $0x68] sm:$0xff]  ;;  %v3049_v16 = vld [vmem:[#allocation2 + $0x70] sm:$0xff] }
  0xe9   : > { %v3040_v15 = vld [vmem:[#allocation2 + $0x28] sm:$0xff]  ;;  %v3041_v17 = vld [vmem:[#allocation2 + $0x30] sm:$0xff]  ;;  %v3050_v18 = vld [vmem:[#allocation2 + $0x78] sm:$0xff] }
  0xea   : > { %2914 = vmatmul.msk.bf16.vlgmr.msra.gmra.mxu0 %vm751_vm3, %v3025_v23  ;;  %v3042_v19 = vld [vmem:[#allocation2 + $0x38] sm:$0xff]  ;;  %v3043_v20 = vld [vmem:[#allocation2 + $0x40] sm:$0xff] }
  0xfa   : > { %2915 = vmatmul.msk.bf16.gmra.mxu0 %vm751_vm3, %v3026_v1 }
 0x10a   : > { %2916 = vmatmul.msk.bf16.gmra.mxu0 %vm751_vm3, %v3027_v24 }
 0x11a   : > { %2917 = vmatmul.msk.bf16.gmra.mxu0 %vm751_vm3, %v3028_v25 }
 0x12a   : > { %2918 = vmatmul.msk.bf16.gmra.mxu0 %vm751_vm3, %v3029_v26 }
 0x13a   : > { %2919 = vmatmul.msk.bf16.gmra.mxu0 %vm751_vm3, %v3030_v27 }
 0x14a   : > { %2920 = vmatmul.msk.bf16.gmra.mxu0 %vm751_vm3, %v3031_v28 }
 0x15a   : > { %2921 = vmatmul.msk.bf16.gmra.mxu0 %vm751_vm3, %v3032_v29 }
 0x167   : > { %v785_v30 = vpop.f32.mrf.mxu0 }
 0x16f   : > { %v787_v31 = vpop.f32.mrf.mxu0 }
 0x170   : > { %v3814_v60 = vpack.c.bf16 %v787_v31, %v785_v30 }
 0x172   : > { %v994_v61 = vsel %vm751_vm3, %v3814_v60, 0 }
 0x177   : > { %v790_v32 = vpop.f32.mrf.mxu0 }
 0x17f   : > { %v792_v33 = vpop.f32.mrf.mxu0 }
 0x180   : > { %v3798_v34 = vpack.c.bf16 %v792_v33, %v790_v32 }
 0x182   : > { %v997_v59 = vsel %vm751_vm3, %v3798_v34, 0 }
 0x187   : > { %v795_v35 = vpop.f32.mrf.mxu0 }
 0x18f   : > { %v797_v36 = vpop.f32.mrf.mxu0 }
 0x190   : > { %v827_v37 = vpack.c.bf16 %v797_v36, %v795_v35 }
 0x192   : > { %2031 = vrot.lane.b32.xlu1 %v827_v37, %s3437_s24  ;;  %v1000_v58 = vsel %vm751_vm3, %v827_v37, 0 }
 0x197   : > { %v800_v38 = vpop.f32.mrf.mxu0 }
 0x19f   : > { %v802_v39 = vpop.f32.mrf.mxu0 }
 0x1a0   : > { %v828_v40 = vpack.c.bf16 %v802_v39, %v800_v38 }
 0x1a2   : > { %2033 = vrot.lane.b32.xlu2 %v828_v40, %s3437_s24  ;;  %v1003_v57 = vsel %vm751_vm3, %v828_v40, 0 }
 0x1a7   : > { %v805_v41 = vpop.f32.mrf.mxu0 }
 0x1af   : > { %v807_v42 = vpop.f32.mrf.mxu0 }
 0x1b0   : > { %v829_v43 = vpack.c.bf16 %v807_v42, %v805_v41 }
 0x1b2   : > { %2035 = vrot.lane.b32.xlu0 %v829_v43, %s3437_s24  ;;  %v1006_v56 = vsel %vm751_vm3, %v829_v43, 0 }
 0x1b7   : > { %v810_v44 = vpop.f32.mrf.mxu0 }
 0x1bf   : > { %v812_v45 = vpop.f32.mrf.mxu0 }
 0x1c0   : > { %v830_v46 = vpack.c.bf16 %v812_v45, %v810_v44 }
 0x1c2   : > { %2037 = vrot.lane.b32.xlu1 %v830_v46, %s3437_s24  ;;  %v1009_v55 = vsel %vm751_vm3, %v830_v46, 0 }
 0x1c7   : > { %v815_v47 = vpop.f32.mrf.mxu0 }
 0x1cf   : > { %v817_v48 = vpop.f32.mrf.mxu0 }
 0x1d0   : > { %v831_v49 = vpack.c.bf16 %v817_v48, %v815_v47  ;;  %v3438_v48 = vmov 0  }
 0x1d1   : > { %3197 = vset.pattern.permute.xlu2 %v3438_v48  ;;  %3198 = vset.pattern.permute.xlu0 %v3438_v48 }
 0x1d2   : > { %2039 = vrot.lane.b32.xlu2 %v831_v49, %s3437_s24  ;;  %v1012_v54 = vsel %vm751_vm3, %v831_v49, 0  ;;  %3199 = vset.pattern.permute.xlu1 %v3438_v48 }
 0x1d7   : > { %v820_v50 = vpop.f32.mrf.mxu0 }
 0x1df   : > { %v822_v51 = vpop.f32.mrf.mxu0 }
 0x1e0   : > { %v832_v52 = vpack.c.bf16 %v822_v51, %v820_v50  ;;  %v3921_v51 = vld [vmem:[#allocation3] sm:$0xff] }
 0x1e2   : > { %2041 = vrot.lane.b32.xlu0 %v832_v52, %s3437_s24  ;;  %v1015_v53 = vsel %vm751_vm3, %v832_v52, 0 }
 0x1e3   : > { %1017 = vmatpush.bf16.xpose.msra.mxu1 %v1015_v53  ;;  %3136 = vmatpush.bf16.xpose.msra.mxu3 %v1015_v53 }
 0x1eb   : > { %1018 = vmatpush.bf16.xpose.msra.mxu1 %v1012_v54  ;;  %3137 = vmatpush.bf16.xpose.msra.mxu3 %v1012_v54 }
 0x1f3   : > { %1019 = vmatpush.bf16.xpose.msra.mxu1 %v1009_v55  ;;  %3138 = vmatpush.bf16.xpose.msra.mxu3 %v1009_v55 }
 0x1fb   : > { %1020 = vmatpush.bf16.xpose.msra.mxu1 %v1006_v56  ;;  %3139 = vmatpush.bf16.xpose.msra.mxu3 %v1006_v56  ;;  %v3933_v56 = vld [vmem:[#allocation3 + $0x90] sm:$0xff] }
 0x1fc   : > { %v2034_v8 = vpop.permute.xlu2 %2033 }
 0x203   : > { %1021 = vmatpush.bf16.xpose.msra.mxu1 %v1003_v57  ;;  %3140 = vmatpush.bf16.xpose.msra.mxu3 %v1003_v57 }
 0x204   : > { %v2032_v9 = vpop.permute.xlu1 %2031 }
 0x20b   : > { %1022 = vmatpush.bf16.xpose.msra.mxu1 %v1000_v58  ;;  %3141 = vmatpush.bf16.xpose.msra.mxu3 %v1000_v58 }
 0x213   : > { %1023 = vmatpush.bf16.xpose.msra.mxu1 %v997_v59  ;;  %3142 = vmatpush.bf16.xpose.msra.mxu3 %v997_v59  ;;  %v4040_v59 = vld [vmem:[#allocation3 + $0xc0] sm:$0xff] }
 0x21b   : > { %1024 = vmatpush.bf16.xpose.msra.mxu1 %v994_v61  ;;  %3143 = vmatpush.bf16.xpose.msra.mxu3 %v994_v61 }
 0x222   : > { %2986 = vmatmul.msk.bf16.vlgmr.msra.gmra.mxu1 %vm751_vm3, %v3035_v62  ;;  %2995 = vmatmul.msk.bf16.vlgmr.msra.gmra.mxu3 %vm751_vm3, %v3044_v63  ;;  %v3944_v62 = vld [vmem:[#allocation3 + $0x98] sm:$0xff] }
 0x223   : > { %4906 = vst [vmem:[#allocation23_spill] sm:$0xff] %v3944_v62 }
 0x224   : > { %v2036_v5 = vpop.permute.xlu0 %2035 }
 0x22c   : > { %v2040_v11 = vpop.permute.xlu2 %2039 }
 0x232   : > { %2987 = vmatmul.msk.bf16.gmra.mxu1 %vm751_vm3, %v3036_v0  ;;  %2996 = vmatmul.msk.bf16.gmra.mxu3 %vm751_vm3, %v3045_v2  ;;  %v3947_v0 = vld [vmem:[#allocation3 + $0x8] sm:$0xff] }
 0x234   : > { %v2038_v12 = vpop.permute.xlu1 %2037 }
 0x242   : > { %2988 = vmatmul.msk.bf16.gmra.mxu1 %vm751_vm3, %v3037_v3  ;;  %2997 = vmatmul.msk.bf16.gmra.mxu3 %vm751_vm3, %v3046_v4  ;;  %v4023_v4 = vld [vmem:[#allocation3 + $0xb8] sm:$0xff] }
 0x243   : > { %4912 = vst [vmem:[#allocation29_spill] sm:$0xff] %v4023_v4 }
 0x252   : > { %2989 = vmatmul.msk.bf16.gmra.mxu1 %vm751_vm3, %v3038_v6  ;;  %2998 = vmatmul.msk.bf16.gmra.mxu3 %vm751_vm3, %v3047_v7  ;;  %v3963_v7 = vld [vmem:[#allocation3 + $0x10] sm:$0xff] }
 0x254   : > { %v2042_v10 = vpop.permute.xlu0 %2041 }
 0x255   : > { %2051 = vmatpush.bf16.msrb.mxu0 %v2042_v10  ;;  %3144 = vmatpush.bf16.msra.mxu2 %v2042_v10 }
 0x259   : > { %2052 = vmatpush.bf16.msrb.mxu0 %v2040_v11  ;;  %3145 = vmatpush.bf16.msra.mxu2 %v2040_v11 }
 0x25d   : > { %2053 = vmatpush.bf16.msrb.mxu0 %v2038_v12  ;;  %3146 = vmatpush.bf16.msra.mxu2 %v2038_v12 }
 0x261   : > { %2054 = vmatpush.bf16.msrb.mxu0 %v2036_v5  ;;  %3147 = vmatpush.bf16.msra.mxu2 %v2036_v5 }
 0x262   : > { %2990 = vmatmul.msk.bf16.gmra.mxu1 %vm751_vm3, %v3039_v13  ;;  %2999 = vmatmul.msk.bf16.gmra.mxu3 %vm751_vm3, %v3048_v14  ;;  %v3981_v14 = vld [vmem:[#allocation3 + $0x18] sm:$0xff] }
 0x265   : > { %2055 = vmatpush.bf16.msrb.mxu0 %v2034_v8  ;;  %3148 = vmatpush.bf16.msra.mxu2 %v2034_v8  ;;  %v3965_v8 = vld [vmem:[#allocation3 + $0xa0] sm:$0xff] }
 0x266   : > { %4908 = vst [vmem:[#allocation25_spill] sm:$0xff] %v3965_v8 }
 0x269   : > { %2056 = vmatpush.bf16.msrb.mxu0 %v2032_v9  ;;  %3149 = vmatpush.bf16.msra.mxu2 %v2032_v9 }
 0x272   : > { %2991 = vmatmul.msk.bf16.gmra.mxu1 %vm751_vm3, %v3040_v15  ;;  %3000 = vmatmul.msk.bf16.gmra.mxu3 %vm751_vm3, %v3049_v16  ;;  %v3983_v15 = vld [vmem:[#allocation3 + $0xa8] sm:$0xff] }
 0x282   : > { %2992 = vmatmul.msk.bf16.gmra.mxu1 %vm751_vm3, %v3041_v17  ;;  %3001 = vmatmul.msk.bf16.gmra.mxu3 %vm751_vm3, %v3050_v18  ;;  %v3986_v18 = vld [vmem:[#allocation3 + $0x20] sm:$0xff] }
 0x292   : > { %2993 = vmatmul.msk.bf16.gmra.mxu1 %vm751_vm3, %v3042_v19 }
 0x29f   : > { %v3833_v21 = vpop.f32.mrf.mxu1 }
 0x2a0   : > { %1138 = vmax.xlane.f32.xlu0 %v3833_v21 }
 0x2a2   : > { %2994 = vmatmul.msk.bf16.gmra.mxu1 %vm751_vm3, %v3043_v20 }
 0x2a5   : > { %v3837_v22 = vpop.f32.mrf.mxu3 }
 0x2a7   : > { %v3839_v23 = vpop.f32.mrf.mxu1 }
 0x2a8   : > { %1174 = vmax.xlane.f32.xlu0 %v3837_v22 }
 0x2ad   : > { %v3842_v1 = vpop.f32.mrf.mxu3 }
 0x2ae   : > { %1176 = vmax.xlane.f32.xlu1 %v3842_v1 }
 0x2af   : > { %v3845_v24 = vpop.f32.mrf.mxu1 }
 0x2b0   : > { %1140 = vmax.xlane.f32.xlu0 %v3839_v23 }
 0x2b5   : > { %v3848_v25 = vpop.f32.mrf.mxu3 }
 0x2b6   : > { %4889 = vst [vmem:[#allocation6_spill] sm:$0xff] %v3848_v25  ;;  %1142 = vmax.xlane.f32.xlu1 %v3845_v24  ;;  %1178 = vmax.xlane.f32.xlu2 %v3848_v25 }
 0x2b7   : > { %v3852_v26 = vpop.f32.mrf.mxu1 }
 0x2bd   : > { %v3854_v27 = vpop.f32.mrf.mxu3 }
 0x2be   : > { %4890 = vst [vmem:[#allocation7_spill] sm:$0xff] %v3854_v27  ;;  %1144 = vmax.xlane.f32.xlu1 %v3852_v26  ;;  %1180 = vmax.xlane.f32.xlu0 %v3854_v27  ;;  %v4091_v27 = vld [vmem:[#allocation3 + $0xd8] sm:$0xff] }
 0x2bf   : > { %v3858_v28 = vpop.f32.mrf.mxu1 }
 0x2c0   : > { %1146 = vmax.xlane.f32.xlu2 %v3858_v28 }
 0x2c5   : > { %v3861_v29 = vpop.f32.mrf.mxu3 }
 0x2c6   : > { %4891 = vst [vmem:[#allocation8_spill] sm:$0xff] %v3861_v29  ;;  %1182 = vmax.xlane.f32.xlu1 %v3861_v29 }
 0x2c7   : > { %v3864_v30 = vpop.f32.mrf.mxu1 }
 0x2c8   : > { %1148 = vmax.xlane.f32.xlu2 %v3864_v30 }
 0x2cd   : > { %v3867_v31 = vpop.f32.mrf.mxu3 }
 0x2ce   : > { %4892 = vst [vmem:[#allocation9_spill] sm:$0xff] %v3867_v31 }
 0x2cf   : > { %v3869_v32 = vpop.f32.mrf.mxu1 }
 0x2d0   : > { %4893 = vst [vmem:[#allocation10_spill] sm:$0xff] %v3869_v32  ;;  %1184 = vmax.xlane.f32.xlu2 %v3867_v31  ;;  %1150 = vmax.xlane.f32.xlu0 %v3869_v32 }
 0x2d5   : > { %v3873_v33 = vpop.f32.mrf.mxu3 }
 0x2d6   : > { %4894 = vst [vmem:[#allocation11_spill] sm:$0xff] %v3873_v33 }
 0x2d7   : > { %v3875_v35 = vpop.f32.mrf.mxu1 }
 0x2d8   : > { %4895 = vst [vmem:[#allocation12_spill] sm:$0xff] %v3875_v35  ;;  %1152 = vmax.xlane.f32.xlu1 %v3875_v35  ;;  %1186 = vmax.xlane.f32.xlu0 %v3873_v33 }
 0x2dd   : > { %v3879_v36 = vpop.f32.mrf.mxu3 }
 0x2de   : > { %4896 = vst [vmem:[#allocation13_spill] sm:$0xff] %v3879_v36 }
 0x2df   : > { %v3881_v37 = vpop.f32.mrf.mxu1 }
 0x2e0   : > { %4897 = vst [vmem:[#allocation14_spill] sm:$0xff] %v3881_v37  ;;  %1188 = vmax.xlane.f32.xlu1 %v3879_v36  ;;  %1154 = vmax.xlane.f32.xlu2 %v3881_v37  ;;  %v4077_v36 = vld [vmem:[#allocation3 + $0xd0] sm:$0xff]  ;;  %v4110_v37 = vld [vmem:[#allocation3 + $0xe0] sm:$0xff] }
 0x2e1   : > { %4917 = vst [vmem:[#allocation34_spill] sm:$0xff] %v4077_v36 }
 0x2e2   : > { %4919 = vst [vmem:[#allocation36_spill] sm:$0xff] %v4110_v37 }
 0x2e5   : > { %v3885_v38 = vpop.f32.mrf.mxu3 }
 0x2e6   : > { %4898 = vst [vmem:[#allocation15_spill] sm:$0xff] %v3885_v38 }
 0x2e7   : > { %v3887_v39 = vpop.f32.mrf.mxu1 }
 0x2e8   : > { %4899 = vst [vmem:[#allocation16_spill] sm:$0xff] %v3887_v39  ;;  %1156 = vmax.xlane.f32.xlu0 %v3887_v39  ;;  %1190 = vmax.xlane.f32.xlu2 %v3885_v38  ;;  %v4055_v38 = vld [vmem:[#allocation3 + $0xc8] sm:$0xff] }
 0x2e9   : > { %4913 = vst [vmem:[#allocation30_spill] sm:$0xff] %v4055_v38 }
 0x2ed   : > { %v3891_v40 = vpop.f32.mrf.mxu3 }
 0x2ee   : > { %4900 = vst [vmem:[#allocation17_spill] sm:$0xff] %v3891_v40 }
 0x2ef   : > { %v3893_v41 = vpop.f32.mrf.mxu1 }
 0x2f0   : > { %1192 = vmax.xlane.f32.xlu0 %v3891_v40  ;;  %1158 = vmax.xlane.f32.xlu1 %v3893_v41 }
 0x2f5   : > { %v3897_v42 = vpop.f32.mrf.mxu3 }
 0x2f6   : > { %4901 = vst [vmem:[#allocation18_spill] sm:$0xff] %v3897_v42 }
 0x2f7   : > { %v3899_v43 = vpop.f32.mrf.mxu1 }
 0x2f8   : > { %1160 = vmax.xlane.f32.xlu2 %v3899_v43  ;;  %1194 = vmax.xlane.f32.xlu1 %v3897_v42 }
 0x2fd   : > { %v3903_v44 = vpop.f32.mrf.mxu3 }
 0x2fe   : > { %4902 = vst [vmem:[#allocation19_spill] sm:$0xff] %v3903_v44 }
 0x2ff   : > { %v3905_v45 = vpop.f32.mrf.mxu1 }
 0x300   : > { %1196 = vmax.xlane.f32.xlu2 %v3903_v44  ;;  %1162 = vmax.xlane.f32.xlu0 %v3905_v45 }
 0x305   : > { %v3909_v46 = vpop.f32.mrf.mxu3 }
 0x306   : > { %4903 = vst [vmem:[#allocation20_spill] sm:$0xff] %v3909_v46 }
 0x307   : > { %v3911_v47 = vpop.f32.mrf.mxu1 }
 0x308   : > { %1164 = vmax.xlane.f32.xlu1 %v3911_v47  ;;  %1198 = vmax.xlane.f32.xlu0 %v3909_v46 }
 0x30d   : > { %v3915_v49 = vpop.f32.mrf.mxu3 }
 0x30e   : > { %4904 = vst [vmem:[#allocation21_spill] sm:$0xff] %v3915_v49 }
 0x30f   : > { %v3917_v50 = vpop.f32.mrf.mxu1 }
 0x310   : > { %1166 = vmax.xlane.f32.xlu2 %v3917_v50  ;;  %1200 = vmax.xlane.f32.xlu1 %v3915_v49  ;;  %v4057_v49 = vld [vmem:[#allocation3 + $0x40] sm:$0xff] }
 0x311   : > { %4914 = vst [vmem:[#allocation31_spill] sm:$0xff] %v4057_v49 }
 0x313   : > { %v1139_v52 = vpop.xlane.xlu0 %1138 }
 0x314   : > { %v3924_v53 = vmax.f32 %v3921_v51, %v1139_v52  ;;  %v4025_v52 = vld [vmem:[#allocation3 + $0x30] sm:$0xff] }
 0x316   : > { %2204 = vst.msk [vmem:[#allocation3] sm:$0xff] %vm1746_vm4, %v3924_v53 }
 0x317   : > { %v3930_v55 = vpop.f32.mrf.mxu1 }
 0x318   : > { %1168 = vmax.xlane.f32.xlu0 %v3930_v55 }
 0x31b   : > { %v1175_v57 = vpop.xlane.xlu0 %1174 }
 0x31c   : > { %v3936_v58 = vmax.f32 %v3933_v56, %v1175_v57 }
 0x31e   : > { %2222 = vst.msk [vmem:[#allocation3 + $0x90] sm:$0xff] %vm1746_vm4, %v3936_v58 }
 0x31f   : > { %v3942_v61 = vpop.f32.mrf.mxu1 }
 0x320   : > { %4905 = vst [vmem:[#allocation22_spill] sm:$0xff] %v3942_v61  ;;  %1170 = vmax.xlane.f32.xlu1 %v3942_v61 }
 0x321   : > { %v1177_v63 = vpop.xlane.xlu1 %1176 }
 0x322   : > { %v3950_v2 = vmax.f32 %v3944_v62, %v1177_v63  ;;  %v4005_v63 = vld [vmem:[#allocation3 + $0xb0] sm:$0xff] }
 0x323   : > { %v1141_v3 = vpop.xlane.xlu0 %1140  ;;  %4909 = vst [vmem:[#allocation26_spill] sm:$0xff] %v4005_v63  ;;  %v4161_v62 = vld [vmem:[#allocation3 + $0x70] sm:$0xff] }
 0x324   : > { %4907 = vst [vmem:[#allocation24_spill] sm:$0xff] %v3950_v2  ;;  %v3957_v5 = vmax.f32 %v3947_v0, %v1141_v3  ;;  %v4008_v3 = vld [vmem:[#allocation3 + $0x28] sm:$0xff] }
 0x325   : > { %2223 = vst.msk [vmem:[#allocation3 + $0x98] sm:$0xff] %vm1746_vm4, %v3950_v2 }
 0x326   : > { %2205 = vst.msk [vmem:[#allocation3 + $0x8] sm:$0xff] %vm1746_vm4, %v3957_v5 }
 0x327   : > { %4910 = vst [vmem:[#allocation27_spill] sm:$0xff] %v4008_v3  ;;  %v4072_v42 = vpop.f32.mrf.mxu1 }
 0x328   : > { %1332 = vperm.xlu2 %3197, %v3924_v53   ;;  %4916 = vst [vmem:[#allocation33_spill] sm:$0xff] %v4072_v42 }
 0x329   : > { %v1143_v9 = vpop.xlane.xlu1 %1142  ;;  %v1179_v10 = vpop.xlane.xlu2 %1178  ;;  %4923 = vst [vmem:[#allocation40_spill] sm:$0xff] %v4161_v62 }
 0x32a   : > { %v3969_v11 = vmax.f32 %v3963_v7, %v1143_v9  ;;  %v3972_v12 = vmax.f32 %v3965_v8, %v1179_v10 }
 0x32c   : > { %2206 = vst.msk [vmem:[#allocation3 + $0x10] sm:$0xff] %vm1746_vm4, %v3969_v11  ;;  %1337 = vperm.xlu0 %3198, %v3957_v5  }
 0x32d   : > { %2224 = vst.msk [vmem:[#allocation3 + $0xa0] sm:$0xff] %vm1746_vm4, %v3972_v12 }
 0x330   : > { %1422 = vperm.xlu2 %3197, %v3936_v58  }
 0x331   : > { %v1145_v16 = vpop.xlane.xlu1 %1144  ;;  %v1181_v17 = vpop.xlane.xlu0 %1180 }
 0x332   : > { %v3989_v19 = vmax.f32 %v3981_v14, %v1145_v16  ;;  %v3992_v20 = vmax.f32 %v3983_v15, %v1181_v17 }
 0x333   : > { %v1147_v48 = vpop.xlane.xlu2 %1146 }
 0x334   : > { %2207 = vst.msk [vmem:[#allocation3 + $0x18] sm:$0xff] %vm1746_vm4, %v3989_v19  ;;  %v3999_v57 = vmax.f32 %v3986_v18, %v1147_v48  ;;  %v4038_v48 = vld [vmem:[#allocation3 + $0x38] sm:$0xff] }
 0x335   : > { %2225 = vst.msk [vmem:[#allocation3 + $0xa8] sm:$0xff] %vm1746_vm4, %v3992_v20 }
 0x336   : > { %2208 = vst.msk [vmem:[#allocation3 + $0x20] sm:$0xff] %vm1746_vm4, %v3999_v57 }
 0x339   : > { %1427 = vperm.xlu1 %3199, %v3950_v2   ;;  %v1183_v9 = vpop.xlane.xlu1 %1182 }
 0x33a   : > { %v4011_v10 = vmax.f32 %v4005_v63, %v1183_v9 }
 0x33b   : > { %v1149_v16 = vpop.xlane.xlu2 %1148 }
 0x33c   : > { %v4014_v17 = vmax.f32 %v4008_v3, %v1149_v16  ;;  %2226 = vst.msk [vmem:[#allocation3 + $0xb0] sm:$0xff] %vm1746_vm4, %v4011_v10 }
 0x33e   : > { %4911 = vst [vmem:[#allocation28_spill] sm:$0xff] %v4014_v17 }
 0x33f   : > { %2209 = vst.msk [vmem:[#allocation3 + $0x28] sm:$0xff] %vm1746_vm4, %v4014_v17 }
 0x341   : > { %1342 = vperm.xlu1 %3199, %v3969_v11  }
 0x343   : > { %v1185_v9 = vpop.xlane.xlu2 %1184  ;;  %v1151_v6 = vpop.xlane.xlu0 %1150 }
 0x344   : > { %v4028_v16 = vmax.f32 %v4023_v4, %v1185_v9  ;;  %v4031_v54 = vmax.f32 %v4025_v52, %v1151_v6  ;;  %v4093_v4 = vld [vmem:[#allocation3 + $0x50] sm:$0xff] }
 0x346   : > { %2227 = vst.msk [vmem:[#allocation3 + $0xb8] sm:$0xff] %vm1746_vm4, %v4028_v16 }
 0x347   : > { %2210 = vst.msk [vmem:[#allocation3 + $0x30] sm:$0xff] %vm1746_vm4, %v4031_v54 }
 0x349   : > { %1357 = vperm.xlu1 %3199, %v4014_v17  }
 0x34b   : > { %v1153_v13 = vpop.xlane.xlu1 %1152  ;;  %v1187_v46 = vpop.xlane.xlu0 %1186 }
 0x34c   : > { %v4043_v9 = vmax.f32 %v4038_v48, %v1153_v13  ;;  %v4046_v6 = vmax.f32 %v4040_v59, %v1187_v46 }
 0x34e   : > { %2211 = vst.msk [vmem:[#allocation3 + $0x38] sm:$0xff] %vm1746_vm4, %v4043_v9 }
 0x34f   : > { %2228 = vst.msk [vmem:[#allocation3 + $0xc0] sm:$0xff] %vm1746_vm4, %v4046_v6 }
 0x351   : > { %1367 = vperm.xlu1 %3199, %v4043_v9  }
 0x353   : > { %v1189_v13 = vpop.xlane.xlu1 %1188  ;;  %v1155_v40 = vpop.xlane.xlu2 %1154 }
 0x354   : > { %v4060_v46 = vmax.f32 %v4055_v38, %v1189_v13  ;;  %v4063_v33 = vmax.f32 %v4057_v49, %v1155_v40  ;;  %v4075_v13 = vld [vmem:[#allocation3 + $0x48] sm:$0xff]  ;;  %v4145_v49 = vld [vmem:[#allocation3 + $0xf0] sm:$0xff] }
 0x355   : > { %4922 = vst [vmem:[#allocation39_spill] sm:$0xff] %v4145_v49 }
 0x356   : > { %4915 = vst [vmem:[#allocation32_spill] sm:$0xff] %v4063_v33  ;;  %1372 = vperm.xlu0 %3198, %v4063_v33  }
 0x357   : > { %2229 = vst.msk [vmem:[#allocation3 + $0xc8] sm:$0xff] %vm1746_vm4, %v4060_v46 }
 0x358   : > { %2212 = vst.msk [vmem:[#allocation3 + $0x40] sm:$0xff] %vm1746_vm4, %v4063_v33 }
 0x359   : > { %1172 = vmax.xlane.f32.xlu2 %v4072_v42  ;;  %v4126_v42 = vld [vmem:[#allocation3 + $0xe8] sm:$0xff] }
 0x35a   : > { %4921 = vst [vmem:[#allocation38_spill] sm:$0xff] %v4126_v42 }
 0x35b   : > { %v1157_v40 = vpop.xlane.xlu0 %1156  ;;  %v1191_v31 = vpop.xlane.xlu2 %1190 }
 0x35c   : > { %v4080_v25 = vmax.f32 %v4075_v13, %v1157_v40  ;;  %v4083_v44 = vmax.f32 %v4077_v36, %v1191_v31  ;;  %v4108_v36 = vld [vmem:[#allocation3 + $0x58] sm:$0xff] }
 0x35d   : > { %4918 = vst [vmem:[#allocation35_spill] sm:$0xff] %v4108_v36 }
 0x35e   : > { %2213 = vst.msk [vmem:[#allocation3 + $0x48] sm:$0xff] %vm1746_vm4, %v4080_v25 }
 0x35f   : > { %2230 = vst.msk [vmem:[#allocation3 + $0xd0] sm:$0xff] %vm1746_vm4, %v4083_v44 }
 0x363   : > { %v1193_v8 = vpop.xlane.xlu0 %1192  ;;  %v1159_v38 = vpop.xlane.xlu1 %1158 }
 0x364   : > { %v4096_v40 = vmax.f32 %v4091_v27, %v1193_v8  ;;  %v4099_v31 = vmax.f32 %v4093_v4, %v1159_v38 }
 0x366   : > { %2231 = vst.msk [vmem:[#allocation3 + $0xd8] sm:$0xff] %vm1746_vm4, %v4096_v40  ;;  %1382 = vperm.xlu1 %3199, %v4099_v31  }
 0x367   : > { %2214 = vst.msk [vmem:[#allocation3 + $0x50] sm:$0xff] %vm1746_vm4, %v4099_v31 }
 0x36b   : > { %v1161_v8 = vpop.xlane.xlu2 %1160  ;;  %v1195_v39 = vpop.xlane.xlu1 %1194 }
 0x36c   : > { %v4113_v38 = vmax.f32 %v4108_v36, %v1161_v8  ;;  %v4116_v63 = vmax.f32 %v4110_v37, %v1195_v39  ;;  %v4128_v8 = vld [vmem:[#allocation3 + $0x60] sm:$0xff]  ;;  %v4143_v36 = vld [vmem:[#allocation3 + $0x68] sm:$0xff] }
 0x36e   : > { %4920 = vst [vmem:[#allocation37_spill] sm:$0xff] %v4113_v38  ;;  %1387 = vperm.xlu0 %3198, %v4113_v38  }
 0x36f   : > { %2215 = vst.msk [vmem:[#allocation3 + $0x58] sm:$0xff] %vm1746_vm4, %v4113_v38 }
 0x370   : > { %2232 = vst.msk [vmem:[#allocation3 + $0xe0] sm:$0xff] %vm1746_vm4, %v4116_v63 }
 0x371   : > { %1347 = vperm.xlu2 %3197, %v3989_v19  }
 0x373   : > { %v1197_v33 = vpop.xlane.xlu2 %1196  ;;  %v1163_v39 = vpop.xlane.xlu0 %1162 }
 0x374   : > { %v4131_v37 = vmax.f32 %v4126_v42, %v1197_v33  ;;  %v4134_v29 = vmax.f32 %v4128_v8, %v1163_v39 }
 0x376   : > { %2233 = vst.msk [vmem:[#allocation3 + $0xe8] sm:$0xff] %vm1746_vm4, %v4131_v37 }
 0x377   : > { %2216 = vst.msk [vmem:[#allocation3 + $0x60] sm:$0xff] %vm1746_vm4, %v4134_v29 }
 0x379   : > { %1437 = vperm.xlu2 %3197, %v3992_v20  }
 0x37b   : > { %v1165_v33 = vpop.xlane.xlu1 %1164  ;;  %v1199_v42 = vpop.xlane.xlu0 %1198 }
 0x37c   : > { %v4148_v39 = vmax.f32 %v4143_v36, %v1165_v33  ;;  %v4151_v2 = vmax.f32 %v4145_v49, %v1199_v42  ;;  %v4163_v33 = vld [vmem:[#allocation3 + $0xf8] sm:$0xff] }
 0x37d   : > { %4924 = vst [vmem:[#allocation41_spill] sm:$0xff] %v4163_v33 }
 0x37e   : > { %2217 = vst.msk [vmem:[#allocation3 + $0x68] sm:$0xff] %vm1746_vm4, %v4148_v39  ;;  %1397 = vperm.xlu1 %3199, %v4148_v39  }
 0x37f   : > { %2234 = vst.msk [vmem:[#allocation3 + $0xf0] sm:$0xff] %vm1746_vm4, %v4151_v2 }
 0x381   : > { %1352 = vperm.xlu2 %3197, %v3999_v57  }
 0x383   : > { %v1167_v61 = vpop.xlane.xlu2 %1166  ;;  %v1201_v42 = vpop.xlane.xlu1 %1200 }
 0x384   : > { %v4166_v49 = vmax.f32 %v4161_v62, %v1167_v61  ;;  %v4169_v38 = vmax.f32 %v4163_v33, %v1201_v42  ;;  %v1121_v61 = vld [vmem:[#allocation3 + $0x78] sm:$0xff] }
 0x386   : > { %4925 = vst [vmem:[#allocation42_spill] sm:$0xff] %v4166_v49  ;;  %1402 = vperm.xlu0 %3198, %v4166_v49   ;;  %2027 = vrot.lane.b32.xlu1 %v3814_v60, %s3437_s24 }
 0x387   : > { %4926 = vst [vmem:[#allocation43_spill] sm:$0xff] %v4169_v38 }
 0x388   : > { %2218 = vst.msk [vmem:[#allocation3 + $0x70] sm:$0xff] %vm1746_vm4, %v4166_v49  ;;  %v4185_v49 = vld [vmem:[#allocation3 + $0x80] sm:$0xff] }
 0x389   : > { %2235 = vst.msk [vmem:[#allocation3 + $0xf8] sm:$0xff] %vm1746_vm4, %v4169_v38  ;;  %1362 = vperm.xlu2 %3197, %v4031_v54  }
 0x38b   : > { %v1169_v42 = vpop.xlane.xlu0 %1168 }
 0x38c   : > { %v1217_v3 = vmax.f32 %v1121_v61, %v1169_v42  ;;  %v1333_v42 = vpop.permute.xlu2 %1332 }
 0x38e   : > { %v1249_v35 = vsub.f32 %v1121_v61, %v1217_v3  ;;  %2219 = vst.msk [vmem:[#allocation3 + $0x78] sm:$0xff] %vm1746_vm4, %v1217_v3  ;;  %v1490_v61 = vsub.f32 %v3833_v21, %v1333_v42  ;;  %v1240_v21 = vsub.f32 %v4025_v52, %v4031_v54 }
 0x390   : > { %v1522_v33 = vmul.f32 1.442695, %v1490_v61 }
 0x391   : > { %1452 = vperm.xlu2 %3197, %v4046_v6  }
 0x392   : > { %3200 = vpow2.f32 %v1522_v33  ;;  %v1278_v33 = vmul.f32 1.442695, %v1240_v21  ;;  %v4931_v21 = vsub.f32 %v4128_v8, %v4134_v29 }
 0x393   : > { %v1171_v62 = vpop.xlane.xlu1 %1170 }
 0x394   : > { %v4188_v60 = vmax.f32 %v4185_v49, %v1171_v62  ;;  %v4927_v62 = vsub.f32 %v3963_v7, %v3969_v11  ;;  %v4929_v11 = vsub.f32 %v4075_v13, %v4080_v25 }
 0x396   : > { %2220 = vst.msk [vmem:[#allocation3 + $0x80] sm:$0xff] %vm1746_vm4, %v4188_v60  ;;  %v1270_v17 = vmul.f32 1.442695, %v4927_v62 }
 0x398   : > { %v4197_v32 = vpop.eup %3200  ;;  %3202 = vpow2.f32 %v1270_v17  ;;  %v1284_v17 = vmul.f32 1.442695, %v4929_v11 }
 0x399   : > { %1377 = vperm.xlu2 %3197, %v4080_v25   ;;  %3204 = vpow2.f32 %v1278_v33  ;;  %v1290_v25 = vmul.f32 1.442695, %v4931_v21 }
 0x39a   : > { %3206 = vpow2.f32 %v1284_v17 }
 0x39b   : > { %3208 = vpow2.f32 %v1290_v25 }
 0x39e   : > { %v4209_v42 = vpop.eup %3202  ;;  %v1338_v21 = vpop.permute.xlu0 %1337 }
 0x39f   : > { %4928 = vst [vmem:[#allocation44_spill] sm:$0xff] %v4209_v42  ;;  %v4226_v52 = vpop.eup %3204 }
 0x3a0   : > { %4930 = vst [vmem:[#allocation45_spill] sm:$0xff] %v4226_v52  ;;  %v4234_v13 = vpop.eup %3206 }
 0x3a1   : > { %1392 = vperm.xlu2 %3197, %v4134_v29   ;;  %4932 = vst [vmem:[#allocation46_spill] sm:$0xff] %v4234_v13  ;;  %v4239_v11 = vpop.eup %3208  ;;  %v4934_v29 = vsub.f32 %v3933_v56, %v3936_v58 }
 0x3a2   : > { %4933 = vst [vmem:[#allocation47_spill] sm:$0xff] %v4239_v11 }
 0x3a3   : > { %v1302_v8 = vmul.f32 1.442695, %v4934_v29 }
 0x3a9   : > { %1407 = vperm.xlu2 %3197, %v1217_v3   ;;  %v1423_v3 = vpop.permute.xlu2 %1422 }
 0x3aa   : > { %v1508_v17 = vsub.f32 %v3837_v22, %v1423_v3 }
 0x3ab   : > { %v4241_v54 = vpop.permute.xlu1 %1427 }
 0x3b0   : > { %1650 = vadd.xlane.f32.xlu1 %v4197_v32 }
 0x3b1   : > { %2029 = vrot.lane.b32.xlu2 %v3798_v34, %s3437_s24  ;;  %v4213_v34 = vld [vmem:[#allocation3 + $0x88] sm:$0xff] }
 0x3b9   : > { %1472 = vperm.xlu2 %3197, %v4116_v63  }
 0x3c1   : > { %1487 = vperm.xlu2 %3197, %v4169_v38  }
 0x3c9   : > { %1412 = vperm.xlu1 %3199, %v4188_v60   ;;  %1823 = vperm.xlu2 %3197, %v4209_v42  }
 0x3cc   : > { %v1173_v61 = vpop.xlane.xlu2 %1172 }
 0x3cd   : > { %v4216_v7 = vmax.f32 %v4213_v34, %v1173_v61  ;;  %v1296_v61 = vmul.f32 1.442695, %v1249_v35  ;;  %v1255_v35 = vsub.f32 %v3983_v15, %v3992_v20  ;;  %v1258_v15 = vsub.f32 %v4040_v59, %v4046_v6 }
 0x3cf   : > { %2221 = vst.msk [vmem:[#allocation3 + $0x88] sm:$0xff] %vm1746_vm4, %v4216_v7  ;;  %1417 = vperm.xlu0 %3198, %v4216_v7   ;;  %3210 = vpow2.f32 %v1296_v61  ;;  %v1491_v61 = vsub.f32 %v3839_v23, %v1338_v21  ;;  %v1308_v3 = vmul.f32 1.442695, %v1255_v35  ;;  %v1261_v21 = vsub.f32 %v4091_v27, %v4096_v40 }
 0x3d0   : > { %3212 = vpow2.f32 %v1302_v8 }
 0x3d1   : > { %1843 = vperm.xlu2 %3197, %v4226_v52   ;;  %v1524_v56 = vmul.f32 1.442695, %v1491_v61  ;;  %v1320_v59 = vmul.f32 1.442695, %v1261_v21  ;;  %v4281_v61 = vpop.permute.xlu0 %1372 }
 0x3d4   : > { %v4229_v62 = vpop.permute.xlu2 %1347 }
 0x3d5   : > { %v4250_v25 = vpop.eup %3210 }
 0x3d6   : > { %4935 = vst [vmem:[#allocation48_spill] sm:$0xff] %v4250_v25  ;;  %v4260_v58 = vpop.eup %3212 }
 0x3d9   : > { %1858 = vperm.xlu2 %3197, %v4234_v13   ;;  %v1558_v13 = vmul.f32 1.442695, %v1508_v17 }
 0x3db   : > { %3214 = vpow2.f32 %v1558_v13  ;;  %v1314_v13 = vmul.f32 1.442695, %v1258_v15 }
 0x3dc   : > { %v4237_v33 = vpop.permute.xlu2 %1437  ;;  %3216 = vpow2.f32 %v1308_v3 }
 0x3dd   : > { %3218 = vpow2.f32 %v1524_v56 }
 0x3de   : > { %3220 = vpow2.f32 %v1314_v13 }
 0x3df   : > { %3222 = vpow2.f32 %v1320_v59 }
 0x3e1   : > { %1873 = vperm.xlu2 %3197, %v4239_v11   ;;  %v4256_v11 = vpop.permute.xlu1 %1342  ;;  %v4263_v17 = vpop.eup %3214 }
 0x3e2   : > { %v4272_v29 = vpop.eup %3216 }
 0x3e3   : > { %4936 = vst [vmem:[#allocation49_spill] sm:$0xff] %v4272_v29  ;;  %v3219_v8 = vpop.eup %3218 }
 0x3e4   : > { %v4245_v52 = vpop.permute.xlu2 %1352  ;;  %v4283_v3 = vpop.eup %3220 }
 0x3e5   : > { %4937 = vst [vmem:[#allocation50_spill] sm:$0xff] %v4283_v3 }
 0x3e9   : > { %1888 = vperm.xlu2 %3197, %v4250_v25   ;;  %v4268_v23 = vpop.permute.xlu1 %1357  ;;  %v1388_v25 = vpop.permute.xlu0 %1387 }
 0x3ea   : > { %v1501_v27 = vsub.f32 %v3899_v43, %v1388_v25 }
 0x3ec   : > { %v4258_v22 = vpop.permute.xlu2 %1362  ;;  %v1544_v38 = vmul.f32 1.442695, %v1501_v27  ;;  %v1493_v27 = vsub.f32 %v3852_v26, %v4229_v62  ;;  %v1238_v26 = vsub.f32 %v3986_v18, %v3999_v57 }
 0x3ee   : > { %3224 = vpow2.f32 %v1544_v38 }
 0x3f1   : > { %1903 = vperm.xlu2 %3197, %v4260_v58   ;;  %v4279_v6 = vpop.permute.xlu1 %1367 }
 0x3f3   : > { %1686 = vadd.xlane.f32.xlu1 %v4263_v17 }
 0x3f4   : > { %v4270_v20 = vpop.permute.xlu2 %1452 }
 0x3f9   : > { %1918 = vperm.xlu2 %3197, %v4272_v29   ;;  %1652 = vadd.xlane.f32.xlu0 %v3219_v8  ;;  %v1383_v15 = vpop.permute.xlu1 %1382  ;;  %v4286_v29 = vpop.eup %3222 }
 0x3fa   : > { %4938 = vst [vmem:[#allocation51_spill] sm:$0xff] %v4286_v29  ;;  %v1500_v13 = vsub.f32 %v3893_v41, %v1383_v15  ;;  %v4300_v41 = vpop.eup %3224  ;;  %v4940_v15 = vsub.f32 %v3947_v0, %v3957_v5  ;;  %v1528_v5 = vmul.f32 1.442695, %v1493_v27  ;;  %v1403_v27 = vpop.permute.xlu0 %1402 }
 0x3fc   : > { %v4277_v35 = vpop.permute.xlu2 %1377  ;;  %v1542_v59 = vmul.f32 1.442695, %v1500_v13  ;;  %v1268_v38 = vmul.f32 1.442695, %v4940_v15 }
 0x3fe   : > { %3226 = vpow2.f32 %v1542_v59 }
 0x401   : > { %1933 = vperm.xlu2 %3197, %v4283_v3   ;;  %v1398_v3 = vpop.permute.xlu1 %1397 }
 0x402   : > { %v1503_v0 = vsub.f32 %v3911_v47, %v1398_v3 }
 0x404   : > { %v1393_v56 = vpop.permute.xlu2 %1392  ;;  %v4307_v13 = vpop.eup %3226 }
 0x409   : > { %1948 = vperm.xlu2 %3197, %v4286_v29   ;;  %v4939_v29 = vsub.f32 %v3921_v51, %v3924_v53  ;;  %v2028_v25 = vpop.permute.xlu1 %2027  ;;  %v1502_v51 = vsub.f32 %v3905_v45, %v1393_v56  ;;  %v2003_v53 = vpack.c.bf16 %v3219_v8, %v4197_v32  ;;  %v1274_v8 = vmul.f32 1.442695, %v1238_v26 }
 0x40a   : > { %v1509_v56 = vsub.f32 %v3842_v1, %v4241_v54  ;;  %v4941_v1 = vsub.f32 %v4038_v48, %v4043_v9  ;;  %v1504_v9 = vsub.f32 %v3917_v50, %v1403_v27  ;;  %v4943_v50 = vsub.f32 %v3981_v14, %v3989_v19  ;;  %v4950_v27 = vld [vmem:[#allocation22_spill] sm:$0xff] }
 0x40b   : > { %v1266_v43 = vmul.f32 1.442695, %v4939_v29  ;;  %v2008_v29 = vpack.c.bf16 %v4300_v41, %v4307_v13  ;;  %v1546_v32 = vmul.f32 1.442695, %v1502_v51  ;;  %v4944_v14 = vsub.f32 %v4143_v36, %v4148_v39 }
 0x40c   : > { %1442 = vperm.xlu1 %3199, %v4011_v10   ;;  %v4292_v21 = vpop.permute.xlu2 %1407  ;;  %v1280_v54 = vmul.f32 1.442695, %v4941_v1  ;;  %v1272_v26 = vmul.f32 1.442695, %v4943_v50  ;;  %v4949_v1 = vld [vmem:[#allocation12_spill] sm:$0xff] }
 0x40d   : > { %1432 = vperm.xlu0 %3198, %v3972_v12   ;;  %3228 = vpow2.f32 %v1266_v43  ;;  %v1560_v43 = vmul.f32 1.442695, %v1509_v56  ;;  %v1292_v19 = vmul.f32 1.442695, %v4944_v14  ;;  %v4947_v56 = vld [vmem:[#allocation28_spill] sm:$0xff]  ;;  %v1497_v36 = vsub.f32 %v4949_v1, %v4279_v6 }
 0x40e   : > { %3230 = vpow2.f32 %v1268_v38  ;;  %v1494_v38 = vsub.f32 %v3858_v28, %v4245_v52 }
 0x40f   : > { %3232 = vpow2.f32 %v1528_v5 }
 0x410   : > { %3234 = vpow2.f32 %v1546_v32  ;;  %v1530_v28 = vmul.f32 1.442695, %v1494_v38 }
 0x413   : > { %v3229_v45 = vpop.eup %3228 }
 0x414   : > { %1457 = vperm.xlu1 %3199, %v4060_v46   ;;  %v2030_v42 = vpop.permute.xlu2 %2029  ;;  %v4320_v3 = vpop.eup %3230 }
 0x415   : > { %1447 = vperm.xlu0 %3198, %v4028_v16   ;;  %2057 = vmatpush.bf16.msrb.mxu0 %v2030_v42  ;;  %v4327_v59 = vpop.eup %3232 }
 0x416   : > { %3150 = vmatpush.bf16.msra.mxu2 %v2030_v42  ;;  %v1492_v42 = vsub.f32 %v3845_v24, %v4256_v11  ;;  %v1586_v24 = vld [vmem:[#allocation4] sm:$0xff]  ;;  %v1548_v11 = vmul.f32 1.442695, %v1503_v0 }
 0x417   : > { %v1618_v47 = vmul.f32 %v3229_v45, %v1586_v24 }
 0x418   : > { %v1526_v62 = vmul.f32 1.442695, %v1492_v42 }
 0x419   : > { %2058 = vmatpush.bf16.msrb.mxu0 %v2028_v25 }
 0x41a   : > { %3151 = vmatpush.bf16.msra.mxu2 %v2028_v25  ;;  %3236 = vpow2.f32 %v1526_v62  ;;  %v4329_v25 = vpop.eup %3234  ;;  %v4945_v62 = vld [vmem:[#allocation10_spill] sm:$0xff] }
 0x41b   : > { %3238 = vpow2.f32 %v1548_v11  ;;  %v1496_v24 = vsub.f32 %v4945_v62, %v4258_v22 }
 0x41c   : > { %1477 = vperm.xlu1 %3199, %v4131_v37   ;;  %2059 = vmatmul.bf16.vlgmr.msrb.gmra.mxu0 %v2003_v53  ;;  %3240 = vpow2.f32 %v1274_v8  ;;  %v4371_v11 = vpop.permute.xlu2 %1472 }
 0x41d   : > { %2084 = vmatmul.bf16.vlgmr.msra.gmra.mxu2 %v2008_v29  ;;  %1462 = vperm.xlu0 %3198, %v4083_v44   ;;  %3242 = vpow2.f32 %v1560_v43  ;;  %v1495_v29 = vsub.f32 %v3864_v30, %v4268_v23  ;;  %v4942_v30 = vsub.f32 %v4093_v4, %v4099_v31  ;;  %v1534_v38 = vmul.f32 1.442695, %v1496_v24  ;;  %v4958_v24 = vld [vmem:[#allocation26_spill] sm:$0xff] }
 0x41e   : > { %3244 = vpow2.f32 %v1280_v54 }
 0x41f   : > { %v1532_v52 = vmul.f32 1.442695, %v1495_v29  ;;  %v1286_v23 = vmul.f32 1.442695, %v4942_v30  ;;  %3246 = vpow2.f32 %v1530_v28  ;;  %v4955_v28 = vld [vmem:[#allocation32_spill] sm:$0xff] }
 0x420   : > { %v3237_v15 = vpop.eup %3236 }
 0x421   : > { %v4336_v51 = vpop.eup %3238  ;;  %v2004_v53 = vpack.c.bf16 %v4327_v59, %v3237_v15 }
 0x422   : > { %v4341_v42 = vpop.eup %3240  ;;  %v2009_v48 = vpack.c.bf16 %v4336_v51, %v4329_v25 }
 0x423   : > { %v1651_v18 = vpop.xlane.xlu1 %1650  ;;  %v4350_v0 = vpop.eup %3242 }
 0x424   : > { %v1714_v57 = vadd.f32 %v1651_v18, %v1618_v47  ;;  %1818 = vperm.xlu1 %3199, %v4320_v3   ;;  %v4359_v5 = vpop.eup %3244  ;;  %v4946_v47 = vld [vmem:[#allocation27_spill] sm:$0xff]  ;;  %v4399_v14 = vpop.permute.xlu2 %1487 }
 0x425   : > { %1467 = vperm.xlu0 %3198, %v4096_v40   ;;  %v1505_v40 = vsub.f32 %v3930_v55, %v4292_v21  ;;  %v1550_v21 = vmul.f32 1.442695, %v1504_v9  ;;  %v3247_v32 = vpop.eup %3246  ;;  %v4954_v9 = vld [vmem:[#allocation31_spill] sm:$0xff] }
 0x426   : > { %1747 = vst.msk [vmem:[#allocation4] sm:$0xff] %vm1746_vm4, %v1714_v57 }
 0x427   : > { %v1552_v55 = vmul.f32 1.442695, %v1505_v40  ;;  %v4951_v40 = vld [vmem:[#allocation23_spill] sm:$0xff] }
 0x429   : > { %3248 = vpow2.f32 %v1552_v55  ;;  %v4956_v55 = vsub.f32 %v4954_v9, %v4955_v28 }
 0x42a   : > { %3250 = vpow2.f32 %v1532_v52 }
 0x42b   : > { %3252 = vpow2.f32 %v1550_v21  ;;  %v1282_v52 = vmul.f32 1.442695, %v4956_v55 }
 0x42c   : > { %1833 = vperm.xlu1 %3199, %v4341_v42   ;;  %2064 = vmatmul.bf16.gmra.mxu0 %v2004_v53  ;;  %3254 = vpow2.f32 %v1286_v23  ;;  %v4952_v53 = vld [vmem:[#allocation24_spill] sm:$0xff]  ;;  %v4957_v23 = vld [vmem:[#allocation33_spill] sm:$0xff]  ;;  %v4431_v9 = vpop.permute.xlu2 %1823 }
 0x42d   : > { %2089 = vmatmul.bf16.gmra.mxu2 %v2009_v48  ;;  %1482 = vperm.xlu0 %3198, %v4151_v2   ;;  %3256 = vpow2.f32 %v1272_v26  ;;  %v4953_v29 = vsub.f32 %v4951_v40, %v4952_v53  ;;  %v1536_v48 = vmul.f32 1.442695, %v1497_v36  ;;  %v4963_v40 = vld [vmem:[#allocation14_spill] sm:$0xff] }
 0x42e   : > { %3258 = vpow2.f32 %v1292_v19  ;;  %v1498_v53 = vsub.f32 %v4963_v40, %v4281_v61  ;;  %v4972_v40 = vld [vmem:[#allocation29_spill] sm:$0xff] }
 0x42f   : > { %v4362_v4 = vpop.eup %3248  ;;  %v1304_v6 = vmul.f32 1.442695, %v4953_v29 }
 0x430   : > { %v4364_v31 = vpop.eup %3250  ;;  %v1538_v55 = vmul.f32 1.442695, %v1498_v53  ;;  %v1257_v53 = vsub.f32 %v4972_v40, %v4028_v16 }
 0x431   : > { %v4373_v8 = vpop.eup %3252  ;;  %v2005_v57 = vpack.c.bf16 %v4364_v31, %v3247_v32 }
 0x432   : > { %1688 = vadd.xlane.f32.xlu2 %v4350_v0  ;;  %v4379_v43 = vpop.eup %3254  ;;  %v2010_v22 = vpack.c.bf16 %v4362_v4, %v4373_v8 }
 0x433   : > { %v4385_v54 = vpop.eup %3256 }
 0x434   : > { %1848 = vperm.xlu1 %3199, %v4359_v5   ;;  %v4397_v26 = vpop.eup %3258 }
 0x435   : > { %1813 = vperm.xlu0 %3198, %v3229_v45   ;;  %v4948_v45 = vsub.f32 %v4946_v47, %v4947_v56  ;;  %v1256_v47 = vsub.f32 %v4958_v24, %v4011_v10 }
 0x437   : > { %v1276_v18 = vmul.f32 1.442695, %v4948_v45 }
 0x439   : > { %3260 = vpow2.f32 %v1276_v18  ;;  %v1310_v18 = vmul.f32 1.442695, %v1256_v47  ;;  %v4970_v47 = vld [vmem:[#allocation25_spill] sm:$0xff] }
 0x43a   : > { %1654 = vadd.xlane.f32.xlu2 %v3237_v15  ;;  %3262 = vpow2.f32 %v1534_v38 }
 0x43b   : > { %v1413_v39 = vpop.permute.xlu1 %1412  ;;  %3264 = vpow2.f32 %v1304_v6 }
 0x43c   : > { %1863 = vperm.xlu1 %3199, %v4379_v43   ;;  %2069 = vmatmul.bf16.gmra.mxu0 %v2005_v57  ;;  %v1506_v15 = vsub.f32 %v4950_v27, %v1413_v39  ;;  %3266 = vpow2.f32 %v1536_v48  ;;  %v4959_v57 = vld [vmem:[#allocation16_spill] sm:$0xff]  ;;  %v4960_v39 = vld [vmem:[#allocation35_spill] sm:$0xff] }
 0x43d   : > { %2094 = vmatmul.bf16.gmra.mxu2 %v2010_v22  ;;  %1828 = vperm.xlu0 %3198, %v4385_v54   ;;  %3268 = vpow2.f32 %v1282_v52  ;;  %v1499_v1 = vsub.f32 %v4959_v57, %v4277_v35  ;;  %v4961_v22 = vld [vmem:[#allocation37_spill] sm:$0xff]  ;;  %v4964_v35 = vld [vmem:[#allocation30_spill] sm:$0xff]  ;;  %v4965_v52 = vld [vmem:[#allocation40_spill] sm:$0xff] }
 0x43e   : > { %v1554_v21 = vmul.f32 1.442695, %v1506_v15  ;;  %v4962_v38 = vsub.f32 %v4960_v39, %v4961_v22  ;;  %v1259_v6 = vsub.f32 %v4964_v35, %v4060_v46  ;;  %v4973_v35 = vsub.f32 %v4185_v49, %v4188_v60 }
 0x43f   : > { %v4401_v19 = vpop.eup %3260  ;;  %v1540_v48 = vmul.f32 1.442695, %v1499_v1  ;;  %v4451_v1 = vpop.permute.xlu2 %1843 }
 0x440   : > { %3270 = vpow2.f32 %v1554_v21  ;;  %v4407_v56 = vpop.eup %3262  ;;  %v1288_v10 = vmul.f32 1.442695, %v4962_v38  ;;  %v1316_v61 = vmul.f32 1.442695, %v1259_v6  ;;  %v4966_v21 = vld [vmem:[#allocation42_spill] sm:$0xff] }
 0x441   : > { %v1418_v30 = vpop.permute.xlu0 %1417  ;;  %v1298_v6 = vmul.f32 1.442695, %v4973_v35 }
 0x442   : > { %v1507_v50 = vsub.f32 %v4957_v23, %v1418_v30  ;;  %1658 = vadd.xlane.f32.xlu2 %v3247_v32  ;;  %v4409_v32 = vpop.eup %3264  ;;  %v4967_v30 = vsub.f32 %v4965_v52, %v4966_v21  ;;  %v1587_v21 = vld [vmem:[#allocation4 + $0x8] sm:$0xff] }
 0x443   : > { %v4411_v45 = vpop.eup %3266 }
 0x444   : > { %v1556_v62 = vmul.f32 1.442695, %v1507_v50  ;;  %1878 = vperm.xlu1 %3199, %v4397_v26   ;;  %v4415_v36 = vpop.eup %3268  ;;  %v2006_v27 = vpack.c.bf16 %v4411_v45, %v4407_v56  ;;  %v1294_v23 = vmul.f32 1.442695, %v4967_v30 }
 0x445   : > { %1838 = vperm.xlu0 %3198, %v4401_v19  }
 0x446   : > { %3272 = vpow2.f32 %v1556_v62  ;;  %v4422_v15 = vpop.eup %3270  ;;  %v4969_v62 = vld [vmem:[#allocation36_spill] sm:$0xff] }
 0x447   : > { %3274 = vpow2.f32 %v1310_v18  ;;  %v1262_v24 = vsub.f32 %v4969_v62, %v4116_v63  ;;  %v1254_v18 = vsub.f32 %v4970_v47, %v3972_v12  ;;  %v2012_v12 = vpack.c.bf16 %v4350_v0, %v4263_v17  ;;  %v4974_v17 = vld [vmem:[#allocation34_spill] sm:$0xff] }
 0x448   : > { %3276 = vpow2.f32 %v1288_v10  ;;  %v1260_v49 = vsub.f32 %v4974_v17, %v4083_v44  ;;  %v4975_v44 = vsub.f32 %v4213_v34, %v4216_v7  ;;  %v4978_v34 = vld [vmem:[#allocation8_spill] sm:$0xff] }
 0x449   : > { %3278 = vpow2.f32 %v1540_v48  ;;  %v1322_v22 = vmul.f32 1.442695, %v1262_v24  ;;  %v1306_v38 = vmul.f32 1.442695, %v1254_v18  ;;  %v4470_v48 = vpop.permute.xlu2 %1858  ;;  %v1619_v24 = vmul.f32 %v4320_v3, %v1587_v21  ;;  %v4976_v3 = vld [vmem:[#allocation7_spill] sm:$0xff] }
 0x44a   : > { %3280 = vpow2.f32 %v1538_v55  ;;  %v1604_v55 = vld [vmem:[#allocation4 + $0x90] sm:$0xff]  ;;  %v1318_v30 = vmul.f32 1.442695, %v1260_v49 }
 0x44b   : > { %3282 = vpow2.f32 %v1316_v61  ;;  %v1636_v16 = vmul.f32 %v4260_v58, %v1604_v55  ;;  %v4979_v55 = vld [vmem:[#allocation6_spill] sm:$0xff] }
 0x44c   : > { %v4426_v29 = vpop.eup %3272  ;;  %1908 = vperm.xlu1 %3199, %v4409_v32   ;;  %2074 = vmatmul.bf16.gmra.mxu0 %v2006_v27  ;;  %3284 = vpow2.f32 %v1294_v23 }
 0x44d   : > { %1853 = vperm.xlu0 %3198, %v4415_v36   ;;  %v2011_v28 = vpack.c.bf16 %v4426_v29, %v4422_v15  ;;  %v4439_v50 = vpop.eup %3274  ;;  %3286 = vpow2.f32 %v1322_v22  ;;  %v1300_v22 = vmul.f32 1.442695, %v4975_v44  ;;  %v4981_v44 = vld [vmem:[#allocation13_spill] sm:$0xff] }
 0x44e   : > { %v4441_v46 = vpop.eup %3276  ;;  %3288 = vpow2.f32 %v1306_v38 }
 0x44f   : > { %2099 = vmatmul.bf16.gmra.mxu2 %v2011_v28  ;;  %4968 = vst [vmem:[#allocation10_spill] sm:$0xff] %v4441_v46  ;;  %v4449_v57 = vpop.eup %3278  ;;  %v1312_v28 = vmul.f32 1.442695, %v1257_v53  ;;  %3290 = vpow2.f32 %v1298_v6 }
 0x450   : > { %v4453_v39 = vpop.eup %3280 }
 0x451   : > { %v2007_v10 = vpack.c.bf16 %v4449_v57, %v4453_v39  ;;  %v4457_v27 = vpop.eup %3282  ;;  %3292 = vpow2.f32 %v1312_v28  ;;  %v4484_v62 = vpop.permute.xlu2 %1873 }
 0x452   : > { %v4459_v63 = vpop.eup %3284  ;;  %3294 = vpow2.f32 %v1318_v30 }
 0x453   : > { %4971 = vst [vmem:[#allocation27_spill] sm:$0xff] %v4459_v63  ;;  %v4472_v61 = vpop.eup %3286  ;;  %3296 = vpow2.f32 %v1300_v22 }
 0x454   : > { %1923 = vperm.xlu1 %3199, %v4439_v50   ;;  %v4474_v52 = vpop.eup %3288 }
 0x455   : > { %1868 = vperm.xlu0 %3198, %v4441_v46   ;;  %v4482_v23 = vpop.eup %3290 }
 0x457   : > { %v4487_v47 = vpop.eup %3292 }
 0x458   : > { %v4495_v38 = vpop.eup %3294 }
 0x459   : > { %v4502_v40 = vpop.eup %3296 }
 0x45a   : > { %4977 = vst [vmem:[#allocation28_spill] sm:$0xff] %v4502_v40 }
 0x45c   : > { %1938 = vperm.xlu1 %3199, %v4457_v27   ;;  %2079 = vmatmul.bf16.gmra.mxu0 %v2007_v10  ;;  %v4497_v10 = vpop.permute.xlu2 %1888 }
 0x45d   : > { %1883 = vperm.xlu0 %3198, %v4459_v63  }
 0x45f   : > { %2104 = vmatmul.bf16.gmra.mxu2 %v2012_v12  ;;  %v1511_v12 = vsub.f32 %v4976_v3, %v4237_v33 }
 0x461   : > { %v1564_v53 = vmul.f32 1.442695, %v1511_v12 }
 0x463   : > { %3298 = vpow2.f32 %v1564_v53 }
 0x464   : > { %1953 = vperm.xlu1 %3199, %v4472_v61   ;;  %v4505_v6 = vpop.permute.xlu2 %1903 }
 0x465   : > { %1913 = vperm.xlu0 %3198, %v4474_v52  }
 0x466   : > { %v1687_v60 = vpop.xlane.xlu1 %1686 }
 0x467   : > { %v1732_v0 = vadd.f32 %v1687_v60, %v1636_v16 }
 0x469   : > { %1765 = vst.msk [vmem:[#allocation4 + $0x90] sm:$0xff] %vm1746_vm4, %v1732_v0  ;;  %v3299_v0 = vpop.eup %3298 }
 0x46c   : > { %1893 = vperm.xlu1 %3199, %v4482_v23   ;;  %v1653_v58 = vpop.xlane.xlu0 %1652  ;;  %v4509_v30 = vpop.permute.xlu2 %1918 }
 0x46d   : > { %v1715_v18 = vadd.f32 %v1653_v58, %v1619_v24  ;;  %1928 = vperm.xlu0 %3198, %v4487_v47   ;;  %v4980_v58 = vld [vmem:[#allocation9_spill] sm:$0xff] }
 0x46f   : > { %1748 = vst.msk [vmem:[#allocation4 + $0x8] sm:$0xff] %vm1746_vm4, %v1715_v18 }
 0x475   : > { %1943 = vperm.xlu0 %3198, %v4495_v38  }
 0x47d   : > { %1898 = vperm.xlu0 %3198, %v4502_v40  }
 0x47e   : > { %v1443_v35 = vpop.permute.xlu1 %1442 }
 0x47f   : > { %v1512_v7 = vsub.f32 %v4978_v34, %v1443_v35  ;;  %v1433_v28 = vpop.permute.xlu0 %1432 }
 0x480   : > { %v1510_v16 = vsub.f32 %v4979_v55, %v1433_v28 }
 0x481   : > { %v1566_v17 = vmul.f32 1.442695, %v1512_v7  ;;  %v4518_v7 = vpop.permute.xlu2 %1933 }
 0x482   : > { %v1562_v49 = vmul.f32 1.442695, %v1510_v16 }
 0x483   : > { %3300 = vpow2.f32 %v1566_v17 }
 0x484   : > { %3302 = vpow2.f32 %v1562_v49 }
 0x486   : > { %v1458_v60 = vpop.permute.xlu1 %1457 }
 0x487   : > { %v1448_v33 = vpop.permute.xlu0 %1447  ;;  %v1515_v22 = vsub.f32 %v4981_v44, %v1458_v60  ;;  %v4982_v60 = vld [vmem:[#allocation18_spill] sm:$0xff] }
 0x488   : > { %v1513_v18 = vsub.f32 %v4980_v58, %v1448_v33  ;;  %v1518_v33 = vsub.f32 %v4982_v60, %v4371_v11  ;;  %v1605_v11 = vld [vmem:[#allocation4 + $0x98] sm:$0xff] }
 0x489   : > { %v3301_v21 = vpop.eup %3300  ;;  %v1572_v53 = vmul.f32 1.442695, %v1515_v22  ;;  %v4528_v44 = vpop.permute.xlu2 %1948  ;;  %v1780_v22 = vld [vmem:[#allocation5 + $0x8] sm:$0xff] }
 0x48a   : > { %v3303_v24 = vpop.eup %3302  ;;  %1694 = vadd.xlane.f32.xlu2 %v3301_v21  ;;  %v1568_v12 = vmul.f32 1.442695, %v1513_v18  ;;  %v4983_v18 = vld [vmem:[#allocation11_spill] sm:$0xff]  ;;  %4984 = vst [vmem:[#allocation12_spill] sm:$0xff] %v4528_v44  ;;  %v1789_v44 = vld [vmem:[#allocation5 + $0x50] sm:$0xff] }
 0x48b   : > { %v2013_v3 = vpack.c.bf16 %v3299_v0, %v3303_v24 }
 0x48c   : > { %3304 = vpow2.f32 %v1568_v12 }
 0x48d   : > { %2109 = vmatmul.bf16.gmra.mxu2 %v2013_v3  ;;  %3306 = vpow2.f32 %v1572_v53 }
 0x48e   : > { %v4513_v35 = vpop.permute.xlu1 %1477 }
 0x48f   : > { %v4515_v34 = vpop.permute.xlu0 %1462 }
 0x492   : > { %1664 = vadd.xlane.f32.xlu2 %v4411_v45  ;;  %v4521_v16 = vpop.eup %3304  ;;  %v1514_v45 = vsub.f32 %v4983_v18, %v4270_v20  ;;  %v1637_v20 = vmul.f32 %v4409_v32, %v1605_v11 }
 0x493   : > { %v3307_v17 = vpop.eup %3306  ;;  %v2014_v58 = vpack.c.bf16 %v4521_v16, %v3301_v21  ;;  %v1781_v21 = vld [vmem:[#allocation5 + $0x10] sm:$0xff] }
 0x494   : > { %v1570_v53 = vmul.f32 1.442695, %v1514_v45 }
 0x496   : > { %v1819_v28 = vpop.permute.xlu1 %1818  ;;  %1656 = vadd.xlane.f32.xlu1 %v4327_v59  ;;  %v1578_v59 = vmul.f32 1.442695, %v1518_v33 }
 0x497   : > { %v1468_v55 = vpop.permute.xlu0 %1467  ;;  %v1972_v40 = vmul.f32 %v1819_v28, %v1780_v22  ;;  %v1588_v22 = vld [vmem:[#allocation4 + $0x10] sm:$0xff] }
 0x498   : > { %3308 = vpow2.f32 %v1578_v59 }
 0x499   : > { %v2060_v49 = vpop.f32.mrf.mxu0  ;;  %3310 = vpow2.f32 %v1570_v53  ;;  %v4985_v53 = vld [vmem:[#allocation17_spill] sm:$0xff] }
 0x49a   : > { %1700 = vadd.xlane.f32.xlu2 %v3307_v17  ;;  %v1517_v11 = vsub.f32 %v4985_v53, %v1468_v55 }
 0x49d   : > { %2114 = vmatmul.bf16.gmra.mxu2 %v2014_v58 }
 0x49e   : > { %v4530_v3 = vpop.permute.xlu1 %1833  ;;  %1692 = vadd.xlane.f32.xlu1 %v3299_v0  ;;  %v1779_v0 = vld [vmem:[#allocation5] sm:$0xff]  ;;  %v4544_v45 = vpop.eup %3308 }
 0x49f   : > { %v4532_v12 = vpop.permute.xlu0 %1482  ;;  %v3311_v59 = vpop.eup %3310 }
 0x4a0   : > { %v2085_v63 = vpop.f32.mrf.mxu2 }
 0x4a1   : > { %v2062_v46 = vpop.f32.mrf.mxu0 }
 0x4a2   : > { %v2141_v60 = vadd.f32 %v2062_v46, %v1972_v40  ;;  %1670 = vadd.xlane.f32.xlu2 %v4307_v13  ;;  %v1973_v46 = vmul.f32 %v4431_v9, %v1781_v21  ;;  %v2015_v9 = vpack.c.bf16 %v3307_v17, %v3311_v59  ;;  %v1791_v21 = vld [vmem:[#allocation5 + $0x60] sm:$0xff] }
 0x4a3   : > { %v1983_v17 = vmul.f32 %v4484_v62, %v1791_v21  ;;  %v1792_v62 = vld [vmem:[#allocation5 + $0x68] sm:$0xff] }
 0x4a4   : > { %2173 = vst.msk [vmem:[#allocation5 + $0x8] sm:$0xff] %vm751_vm3, %v2141_v60 }
 0x4a5   : > { %v1689_v58 = vpop.xlane.xlu2 %1688 }
 0x4a6   : > { %v1733_v33 = vadd.f32 %v1689_v58, %v1637_v20  ;;  %v4537_v18 = vpop.permute.xlu1 %1848  ;;  %1662 = vadd.xlane.f32.xlu1 %v4407_v56  ;;  %v4986_v56 = vld [vmem:[#allocation21_spill] sm:$0xff]  ;;  %v4987_v58 = vld [vmem:[#allocation15_spill] sm:$0xff] }
 0x4a7   : > { %v1814_v28 = vpop.permute.xlu0 %1813  ;;  %1690 = vadd.xlane.f32.xlu0 %v3303_v24  ;;  %v1521_v24 = vsub.f32 %v4986_v56, %v4399_v14 }
 0x4a8   : > { %1766 = vst.msk [vmem:[#allocation4 + $0x98] sm:$0xff] %vm1746_vm4, %v1733_v33  ;;  %v1971_v13 = vmul.f32 %v1814_v28, %v1779_v0  ;;  %v4542_v40 = vpop.f32.mrf.mxu2  ;;  %v1516_v0 = vsub.f32 %v4987_v58, %v4515_v34  ;;  %v4988_v33 = vld [vmem:[#allocation44_spill] sm:$0xff] }
 0x4a9   : > { %v2065_v32 = vpop.f32.mrf.mxu0  ;;  %v1620_v28 = vmul.f32 %v4988_v33, %v1588_v22  ;;  %v1584_v14 = vmul.f32 1.442695, %v1521_v24  ;;  %v1590_v33 = vld [vmem:[#allocation4 + $0x20] sm:$0xff] }
 0x4aa   : > { %v2140_v60 = vadd.f32 %v2060_v49, %v1971_v13  ;;  %v2142_v20 = vadd.f32 %v2065_v32, %v1973_v46  ;;  %1706 = vadd.xlane.f32.xlu2 %v4544_v45  ;;  %v1782_v49 = vld [vmem:[#allocation5 + $0x18] sm:$0xff]  ;;  %v1576_v46 = vmul.f32 1.442695, %v1517_v11  ;;  %v1574_v34 = vmul.f32 1.442695, %v1516_v0 }
 0x4ac   : > { %2172 = vst.msk [vmem:[#allocation5] sm:$0xff] %vm751_vm3, %v2140_v60  ;;  %3312 = vpow2.f32 %v1576_v46 }
 0x4ad   : > { %2174 = vst.msk [vmem:[#allocation5 + $0x10] sm:$0xff] %vm751_vm3, %v2142_v20  ;;  %2119 = vmatmul.bf16.gmra.mxu2 %v2015_v9  ;;  %v1655_v55 = vpop.xlane.xlu2 %1654  ;;  %3314 = vpow2.f32 %v1584_v14 }
 0x4ae   : > { %v1716_v13 = vadd.f32 %v1655_v55, %v1620_v28  ;;  %v1864_v32 = vpop.permute.xlu1 %1863  ;;  %1698 = vadd.xlane.f32.xlu1 %v3311_v59  ;;  %3316 = vpow2.f32 %v1574_v34 }
 0x4af   : > { %v1981_v53 = vmul.f32 %v1864_v32, %v1789_v44  ;;  %v1829_v56 = vpop.permute.xlu0 %1828  ;;  %1660 = vadd.xlane.f32.xlu0 %v4364_v31  ;;  %v1622_v31 = vmul.f32 %v4341_v42, %v1590_v33  ;;  %v1783_v44 = vld [vmem:[#allocation5 + $0x20] sm:$0xff]  ;;  %v4989_v32 = vld [vmem:[#allocation19_spill] sm:$0xff]  ;;  %v1794_v33 = vld [vmem:[#allocation5 + $0x78] sm:$0xff] }
 0x4b0   : > { %1749 = vst.msk [vmem:[#allocation4 + $0x10] sm:$0xff] %vm1746_vm4, %v1716_v13  ;;  %v1974_v22 = vmul.f32 %v1829_v56, %v1782_v49  ;;  %v2090_v60 = vpop.f32.mrf.mxu2  ;;  %v1975_v28 = vmul.f32 %v4530_v3, %v1783_v44  ;;  %v1519_v14 = vsub.f32 %v4989_v32, %v4513_v35  ;;  %v4990_v56 = vld [vmem:[#allocation20_spill] sm:$0xff] }
 0x4b1   : > { %v2150_v20 = vadd.f32 %v2085_v63, %v1981_v53  ;;  %v2152_v9 = vadd.f32 %v2090_v60, %v1983_v17  ;;  %v2067_v58 = vpop.f32.mrf.mxu0  ;;  %v1520_v34 = vsub.f32 %v4990_v56, %v4532_v12  ;;  %v1986_v12 = vmul.f32 %v4497_v10, %v1794_v33  ;;  %v1797_v33 = vld [vmem:[#allocation5 + $0x90] sm:$0xff] }
 0x4b2   : > { %v2143_v11 = vadd.f32 %v2067_v58, %v1974_v22  ;;  %1676 = vadd.xlane.f32.xlu2 %v4336_v51  ;;  %v3313_v51 = vpop.eup %3312  ;;  %v1580_v3 = vmul.f32 1.442695, %v1519_v14 }
 0x4b3   : > { %2182 = vst.msk [vmem:[#allocation5 + $0x50] sm:$0xff] %vm751_vm3, %v2150_v20  ;;  %v4567_v42 = vpop.eup %3314  ;;  %v1582_v58 = vmul.f32 1.442695, %v1520_v34 }
 0x4b4   : > { %2184 = vst.msk [vmem:[#allocation5 + $0x60] sm:$0xff] %vm751_vm3, %v2152_v9  ;;  %v3317_v13 = vpop.eup %3316  ;;  %3318 = vpow2.f32 %v1580_v3 }
 0x4b5   : > { %2175 = vst.msk [vmem:[#allocation5 + $0x18] sm:$0xff] %vm751_vm3, %v2143_v11  ;;  %v1659_v63 = vpop.xlane.xlu2 %1658  ;;  %v1785_v11 = vld [vmem:[#allocation5 + $0x30] sm:$0xff]  ;;  %3320 = vpow2.f32 %v1582_v58  ;;  %v1788_v58 = vld [vmem:[#allocation5 + $0x48] sm:$0xff] }
 0x4b6   : > { %v1718_v59 = vadd.f32 %v1659_v63, %v1622_v31  ;;  %v1879_v24 = vpop.permute.xlu1 %1878  ;;  %1668 = vadd.xlane.f32.xlu1 %v4449_v57  ;;  %v2016_v57 = vpack.c.bf16 %v3313_v51, %v3317_v13  ;;  %v1790_v31 = vld [vmem:[#allocation5 + $0x58] sm:$0xff]  ;;  %v1977_v63 = vmul.f32 %v4451_v1, %v1785_v11  ;;  %v1793_v1 = vld [vmem:[#allocation5 + $0x70] sm:$0xff] }
 0x4b7   : > { %v1984_v21 = vmul.f32 %v1879_v24, %v1792_v62  ;;  %v1839_v0 = vpop.permute.xlu0 %1838  ;;  %1696 = vadd.xlane.f32.xlu0 %v4521_v16  ;;  %v1784_v16 = vld [vmem:[#allocation5 + $0x28] sm:$0xff] }
 0x4b8   : > { %1751 = vst.msk [vmem:[#allocation4 + $0x20] sm:$0xff] %vm1746_vm4, %v1718_v59  ;;  %v2092_v55 = vpop.f32.mrf.mxu2  ;;  %v1976_v35 = vmul.f32 %v1839_v0, %v1784_v16  ;;  %v1787_v16 = vld [vmem:[#allocation5 + $0x40] sm:$0xff] }
 0x4b9   : > { %v2153_v49 = vadd.f32 %v2092_v55, %v1984_v21  ;;  %v2070_v46 = vpop.f32.mrf.mxu0 }
 0x4ba   : > { %v2144_v17 = vadd.f32 %v2070_v46, %v1975_v28  ;;  %1712 = vadd.xlane.f32.xlu2 %v4567_v42  ;;  %v3319_v44 = vpop.eup %3318  ;;  %v4991_v28 = vld [vmem:[#allocation39_spill] sm:$0xff] }
 0x4bb   : > { %2185 = vst.msk [vmem:[#allocation5 + $0x68] sm:$0xff] %vm751_vm3, %v2153_v49  ;;  %v1264_v55 = vsub.f32 %v4991_v28, %v4151_v2  ;;  %v3321_v10 = vpop.eup %3320  ;;  %v1786_v49 = vld [vmem:[#allocation5 + $0x38] sm:$0xff] }
 0x4bc   : > { %2176 = vst.msk [vmem:[#allocation5 + $0x20] sm:$0xff] %vm751_vm3, %v2144_v17  ;;  %v1978_v2 = vmul.f32 %v4537_v18, %v1786_v49 }
 0x4bd   : > { %2124 = vmatmul.bf16.gmra.mxu2 %v2016_v57 }
 0x4be   : > { %v4574_v53 = vpop.permute.xlu1 %1908  ;;  %1704 = vadd.xlane.f32.xlu1 %v3313_v51 }
 0x4bf   : > { %v1854_v22 = vpop.permute.xlu0 %1853  ;;  %1666 = vadd.xlane.f32.xlu0 %v4453_v39 }
 0x4c0   : > { %v2095_v60 = vpop.f32.mrf.mxu2 }
 0x4c1   : > { %v2072_v20 = vpop.f32.mrf.mxu0 }
 0x4c2   : > { %v2145_v9 = vadd.f32 %v2072_v20, %v1976_v35  ;;  %1682 = vadd.xlane.f32.xlu2 %v4422_v15  ;;  %v2018_v20 = vpack.c.bf16 %v4567_v42, %v3321_v10 }
 0x4c4   : > { %2177 = vst.msk [vmem:[#allocation5 + $0x28] sm:$0xff] %vm751_vm3, %v2145_v9  ;;  %v1795_v9 = vld [vmem:[#allocation5 + $0x80] sm:$0xff] }
 0x4c6   : > { %v4581_v62 = vpop.permute.xlu1 %1923  ;;  %1674 = vadd.xlane.f32.xlu1 %v4329_v25  ;;  %v2017_v25 = vpack.c.bf16 %v3319_v44, %v4544_v45 }
 0x4c7   : > { %v1869_v39 = vpop.permute.xlu0 %1868  ;;  %1702 = vadd.xlane.f32.xlu0 %v3317_v13 }
 0x4c8   : > { %v1982_v59 = vmul.f32 %v1869_v39, %v1790_v31  ;;  %v2097_v15 = vpop.f32.mrf.mxu2 }
 0x4c9   : > { %v2155_v24 = vadd.f32 %v2097_v15, %v1986_v12  ;;  %v2075_v21 = vpop.f32.mrf.mxu0  ;;  %v1989_v12 = vmul.f32 %v4505_v6, %v1797_v33  ;;  %v4992_v15 = vld [vmem:[#allocation41_spill] sm:$0xff]  ;;  %v1607_v33 = vld [vmem:[#allocation4 + $0xa8] sm:$0xff] }
 0x4ca   : > { %v2151_v0 = vadd.f32 %v4542_v40, %v1982_v59  ;;  %v2146_v51 = vadd.f32 %v2075_v21, %v1977_v63  ;;  %v1326_v40 = vmul.f32 1.442695, %v1264_v55  ;;  %v4995_v55 = vld [vmem:[#allocation38_spill] sm:$0xff] }
 0x4cb   : > { %2187 = vst.msk [vmem:[#allocation5 + $0x78] sm:$0xff] %vm751_vm3, %v2155_v24  ;;  %v4993_v24 = vld [vmem:[#allocation43_spill] sm:$0xff] }
 0x4cc   : > { %2183 = vst.msk [vmem:[#allocation5 + $0x58] sm:$0xff] %vm751_vm3, %v2151_v0  ;;  %3322 = vpow2.f32 %v1326_v40  ;;  %v4994_v21 = vsub.f32 %v4992_v15, %v4993_v24  ;;  %v1592_v15 = vld [vmem:[#allocation4 + $0x30] sm:$0xff] }
 0x4cd   : > { %2178 = vst.msk [vmem:[#allocation5 + $0x30] sm:$0xff] %vm751_vm3, %v2146_v51  ;;  %2129 = vmatmul.bf16.gmra.mxu2 %v2017_v25  ;;  %v1263_v25 = vsub.f32 %v4995_v55, %v4131_v37 }
 0x4ce   : > { %v4593_v46 = vpop.permute.xlu1 %1938  ;;  %1710 = vadd.xlane.f32.xlu1 %v3321_v10  ;;  %v1328_v0 = vmul.f32 1.442695, %v4994_v21  ;;  %v1796_v10 = vld [vmem:[#allocation5 + $0x88] sm:$0xff] }
 0x4cf   : > { %v1884_v13 = vpop.permute.xlu0 %1883  ;;  %1672 = vadd.xlane.f32.xlu0 %v4300_v41  ;;  %v1979_v41 = vmul.f32 %v1854_v22, %v1787_v16  ;;  %v1980_v22 = vmul.f32 %v4470_v48, %v1788_v58  ;;  %v1324_v40 = vmul.f32 1.442695, %v1263_v25  ;;  %v1589_v16 = vld [vmem:[#allocation4 + $0x18] sm:$0xff]  ;;  %v1614_v25 = vld [vmem:[#allocation4 + $0xe0] sm:$0xff] }
 0x4d0   : > { %v1985_v32 = vmul.f32 %v1884_v13, %v1793_v1  ;;  %3324 = vpow2.f32 %v1328_v0 }
 0x4d1   : > { %v2077_v14 = vpop.f32.mrf.mxu0  ;;  %3326 = vpow2.f32 %v1324_v40  ;;  %v1801_v40 = vld [vmem:[#allocation5 + $0xb0] sm:$0xff] }
 0x4d2   : > { %v2154_v45 = vadd.f32 %v2095_v60, %v1985_v32  ;;  %v2147_v17 = vadd.f32 %v2077_v14, %v1978_v2  ;;  %v2100_v57 = vpop.f32.mrf.mxu2  ;;  %v4604_v18 = vpop.eup %3322 }
 0x4d4   : > { %2186 = vst.msk [vmem:[#allocation5 + $0x70] sm:$0xff] %vm751_vm3, %v2154_v45  ;;  %v1593_v45 = vld [vmem:[#allocation4 + $0x38] sm:$0xff] }
 0x4d5   : > { %2179 = vst.msk [vmem:[#allocation5 + $0x38] sm:$0xff] %vm751_vm3, %v2147_v17  ;;  %v1625_v17 = vmul.f32 %v4359_v5, %v1593_v45 }
 0x4d6   : > { %v4599_v3 = vpop.permute.xlu1 %1953  ;;  %1680 = vadd.xlane.f32.xlu1 %v4362_v4  ;;  %v4627_v49 = vpop.eup %3324 }
 0x4d7   : > { %v4602_v56 = vpop.permute.xlu0 %1913  ;;  %1708 = vadd.xlane.f32.xlu0 %v3319_v44 }
 0x4d9   : > { %v2080_v34 = vpop.f32.mrf.mxu0 }
 0x4da   : > { %v2148_v35 = vadd.f32 %v2080_v34, %v1979_v41  ;;  %v2102_v60 = vpop.f32.mrf.mxu2  ;;  %1963 = vperm.xlu2 %3197, %v4604_v18   ;;  %v1621_v34 = vmul.f32 %v4385_v54, %v1589_v16 }
 0x4dc   : > { %2180 = vst.msk [vmem:[#allocation5 + $0x40] sm:$0xff] %vm751_vm3, %v2148_v35 }
 0x4dd   : > { %2134 = vmatmul.bf16.gmra.mxu2 %v2018_v20 }
 0x4de   : > { %v1894_v4 = vpop.permute.xlu1 %1893 }
 0x4df   : > { %v1987_v11 = vmul.f32 %v1894_v4, %v1795_v9  ;;  %v4609_v31 = vpop.permute.xlu0 %1928  ;;  %1678 = vadd.xlane.f32.xlu0 %v4373_v8  ;;  %v1798_v8 = vld [vmem:[#allocation5 + $0x98] sm:$0xff]  ;;  %v1799_v9 = vld [vmem:[#allocation5 + $0xa0] sm:$0xff] }
 0x4e0   : > { %v1990_v48 = vmul.f32 %v4574_v53, %v1798_v8  ;;  %v4631_v53 = vpop.eup %3326  ;;  %v1991_v5 = vmul.f32 %v4602_v56, %v1799_v9  ;;  %v1606_v56 = vld [vmem:[#allocation4 + $0xa0] sm:$0xff]  ;;  %v4997_v8 = vld [vmem:[#allocation45_spill] sm:$0xff]  ;;  %v1595_v9 = vld [vmem:[#allocation4 + $0x48] sm:$0xff] }
 0x4e1   : > { %v2156_v39 = vadd.f32 %v2100_v57, %v1987_v11  ;;  %v2082_v44 = vpop.f32.mrf.mxu0  ;;  %v1638_v55 = vmul.f32 %v4474_v52, %v1606_v56  ;;  %v5000_v56 = vld [vmem:[#allocation51_spill] sm:$0xff] }
 0x4e2   : > { %v2149_v63 = vadd.f32 %v2082_v44, %v1980_v22  ;;  %v2105_v42 = vpop.f32.mrf.mxu2  ;;  %v4996_v22 = vld [vmem:[#allocation49_spill] sm:$0xff]  ;;  %v1596_v44 = vld [vmem:[#allocation4 + $0x50] sm:$0xff] }
 0x4e3   : > { %2188 = vst.msk [vmem:[#allocation5 + $0x80] sm:$0xff] %vm751_vm3, %v2156_v39  ;;  %v2158_v59 = vadd.f32 %v2105_v42, %v1989_v12  ;;  %v1639_v12 = vmul.f32 %v4996_v22, %v1607_v33  ;;  %v1800_v42 = vld [vmem:[#allocation5 + $0xa8] sm:$0xff] }
 0x4e4   : > { %2181 = vst.msk [vmem:[#allocation5 + $0x48] sm:$0xff] %vm751_vm3, %v2149_v63  ;;  %v1992_v21 = vmul.f32 %v4509_v30, %v1800_v42  ;;  %v1646_v30 = vmul.f32 %v4472_v61, %v1614_v25  ;;  %v1804_v25 = vld [vmem:[#allocation5 + $0xc8] sm:$0xff] }
 0x4e5   : > { %2190 = vst.msk [vmem:[#allocation5 + $0x90] sm:$0xff] %vm751_vm3, %v2158_v59 }
 0x4e7   : > { %v4620_v51 = vpop.permute.xlu0 %1943  ;;  %1684 = vadd.xlane.f32.xlu0 %v4426_v29  ;;  %v1608_v29 = vld [vmem:[#allocation4 + $0xb0] sm:$0xff] }
 0x4e8   : > { %v1640_v37 = vmul.f32 %v4439_v50, %v1608_v29 }
 0x4ea   : > { %v2107_v6 = vpop.f32.mrf.mxu2 }
 0x4eb   : > { %v2159_v28 = vadd.f32 %v2107_v6, %v1990_v48  ;;  %v1624_v48 = vmul.f32 %v4997_v8, %v1592_v15  ;;  %v1594_v15 = vld [vmem:[#allocation4 + $0x40] sm:$0xff] }
 0x4ed   : > { %2191 = vst.msk [vmem:[#allocation5 + $0x98] sm:$0xff] %vm751_vm3, %v2159_v28 }
 0x4ef   : > { %v1899_v1 = vpop.permute.xlu0 %1898  ;;  %1968 = vperm.xlu1 %3199, %v4627_v49  }
 0x4f0   : > { %v1988_v13 = vmul.f32 %v1899_v1, %v1796_v10 }
 0x4f2   : > { %v2157_v2 = vadd.f32 %v2102_v60, %v1988_v13  ;;  %v1611_v60 = vld [vmem:[#allocation4 + $0xc8] sm:$0xff] }
 0x4f3   : > { %v1643_v50 = vmul.f32 %v4457_v27, %v1611_v60  ;;  %v1628_v27 = vmul.f32 %v4379_v43, %v1596_v44  ;;  %v1802_v60 = vld [vmem:[#allocation5 + $0xb8] sm:$0xff] }
 0x4f4   : > { %2189 = vst.msk [vmem:[#allocation5 + $0x88] sm:$0xff] %vm751_vm3, %v2157_v2  ;;  %v1610_v2 = vld [vmem:[#allocation4 + $0xc0] sm:$0xff]  ;;  %v1994_v33 = vmul.f32 %v4609_v31, %v1802_v60 }
 0x4fb   : > { %1958 = vperm.xlu0 %3198, %v4631_v53  }
 0x4fd   : > { %v1695_v32 = vpop.xlane.xlu2 %1694 }
 0x4fe   : > { %v1736_v14 = vadd.f32 %v1695_v32, %v1640_v37  ;;  %v1591_v37 = vld [vmem:[#allocation4 + $0x28] sm:$0xff]  ;;  %v1993_v32 = vmul.f32 %v4581_v62, %v1801_v40  ;;  %v1612_v40 = vld [vmem:[#allocation4 + $0xd0] sm:$0xff] }
 0x4ff   : > { %v1623_v16 = vmul.f32 %v4401_v19, %v1591_v37 }
 0x500   : > { %1769 = vst.msk [vmem:[#allocation4 + $0xb0] sm:$0xff] %vm1746_vm4, %v1736_v14  ;;  %v4998_v14 = vld [vmem:[#allocation50_spill] sm:$0xff] }
 0x501   : > { %v1642_v45 = vmul.f32 %v4998_v14, %v1610_v2 }
 0x505   : > { %v1665_v57 = vpop.xlane.xlu2 %1664 }
 0x506   : > { %v1721_v41 = vadd.f32 %v1665_v57, %v1625_v17 }
 0x508   : > { %1754 = vst.msk [vmem:[#allocation4 + $0x38] sm:$0xff] %vm1746_vm4, %v1721_v41  ;;  %v1599_v41 = vld [vmem:[#allocation4 + $0x68] sm:$0xff] }
 0x509   : > { %v1657_v35 = vpop.xlane.xlu1 %1656  ;;  %v1631_v62 = vmul.f32 %v4397_v26, %v1599_v41 }
 0x50a   : > { %v1717_v20 = vadd.f32 %v1657_v35, %v1621_v34 }
 0x50c   : > { %1750 = vst.msk [vmem:[#allocation4 + $0x18] sm:$0xff] %vm1746_vm4, %v1717_v20 }
 0x50d   : > { %v1701_v58 = vpop.xlane.xlu2 %1700 }
 0x50e   : > { %v1739_v4 = vadd.f32 %v1701_v58, %v1643_v50  ;;  %v1609_v58 = vld [vmem:[#allocation4 + $0xb8] sm:$0xff] }
 0x510   : > { %1772 = vst.msk [vmem:[#allocation4 + $0xc8] sm:$0xff] %vm1746_vm4, %v1739_v4  ;;  %v2110_v11 = vpop.f32.mrf.mxu2  ;;  %v4999_v4 = vld [vmem:[#allocation46_spill] sm:$0xff] }
 0x511   : > { %v2160_v39 = vadd.f32 %v2110_v11, %v1991_v5  ;;  %v1693_v54 = vpop.xlane.xlu1 %1692  ;;  %v1627_v5 = vmul.f32 %v4999_v4, %v1595_v9  ;;  %v1806_v9 = vld [vmem:[#allocation5 + $0xd8] sm:$0xff] }
 0x512   : > { %v1735_v63 = vadd.f32 %v1693_v54, %v1639_v12  ;;  %v1641_v12 = vmul.f32 %v4487_v47, %v1609_v58  ;;  %v1615_v58 = vld [vmem:[#allocation4 + $0xe8] sm:$0xff] }
 0x513   : > { %2192 = vst.msk [vmem:[#allocation5 + $0xa0] sm:$0xff] %vm751_vm3, %v2160_v39  ;;  %v1617_v39 = vld [vmem:[#allocation4 + $0xf8] sm:$0xff] }
 0x514   : > { %1768 = vst.msk [vmem:[#allocation4 + $0xa8] sm:$0xff] %vm1746_vm4, %v1735_v63  ;;  %v1803_v63 = vld [vmem:[#allocation5 + $0xc0] sm:$0xff]  ;;  %v1649_v31 = vmul.f32 %v4627_v49, %v1617_v39 }
 0x515   : > { %v1671_v59 = vpop.xlane.xlu2 %1670 }
 0x516   : > { %v1724_v24 = vadd.f32 %v1671_v59, %v1628_v27  ;;  %v1613_v27 = vld [vmem:[#allocation4 + $0xd8] sm:$0xff] }
 0x518   : > { %1757 = vst.msk [vmem:[#allocation4 + $0x50] sm:$0xff] %vm1746_vm4, %v1724_v24  ;;  %v2112_v0 = vpop.f32.mrf.mxu2  ;;  %v1995_v24 = vmul.f32 %v4518_v7, %v1803_v63 }
 0x519   : > { %v2161_v6 = vadd.f32 %v2112_v0, %v1992_v21  ;;  %v1663_v28 = vpop.xlane.xlu1 %1662  ;;  %v1645_v21 = vmul.f32 %v5000_v56, %v1613_v27  ;;  %v5005_v27 = vld [vmem:[#allocation27_spill] sm:$0xff]  ;;  %v5006_v56 = vld [vmem:[#allocation28_spill] sm:$0xff] }
 0x51a   : > { %v1720_v10 = vadd.f32 %v1663_v28, %v1624_v48  ;;  %v1691_v1 = vpop.xlane.xlu0 %1690  ;;  %v1626_v48 = vmul.f32 %v4415_v36, %v1594_v15 }
 0x51b   : > { %2193 = vst.msk [vmem:[#allocation5 + $0xa8] sm:$0xff] %vm751_vm3, %v2161_v6  ;;  %v1734_v43 = vadd.f32 %v1691_v1, %v1638_v55  ;;  %v1602_v6 = vld [vmem:[#allocation4 + $0x80] sm:$0xff] }
 0x51c   : > { %1753 = vst.msk [vmem:[#allocation4 + $0x30] sm:$0xff] %vm1746_vm4, %v1720_v10  ;;  %v1634_v7 = vmul.f32 %v4482_v23, %v1602_v6  ;;  %v1598_v1 = vld [vmem:[#allocation4 + $0x60] sm:$0xff] }
 0x51d   : > { %1767 = vst.msk [vmem:[#allocation4 + $0xa0] sm:$0xff] %vm1746_vm4, %v1734_v43  ;;  %v1707_v13 = vpop.xlane.xlu2 %1706 }
 0x51e   : > { %v1742_v29 = vadd.f32 %v1707_v13, %v1646_v30  ;;  %v1996_v30 = vmul.f32 %v4593_v46, %v1804_v25  ;;  %v5001_v13 = vld [vmem:[#allocation47_spill] sm:$0xff]  ;;  %v1616_v46 = vld [vmem:[#allocation4 + $0xf0] sm:$0xff] }
 0x51f   : > { %v1630_v2 = vmul.f32 %v5001_v13, %v1598_v1  ;;  %v1648_v41 = vmul.f32 %v4604_v18, %v1616_v46  ;;  %v5004_v18 = vld [vmem:[#allocation48_spill] sm:$0xff] }
 0x520   : > { %1775 = vst.msk [vmem:[#allocation4 + $0xe0] sm:$0xff] %vm1746_vm4, %v1742_v29  ;;  %v2115_v52 = vpop.f32.mrf.mxu2 }
 0x521   : > { %v2162_v17 = vadd.f32 %v2115_v52, %v1993_v32  ;;  %v1699_v57 = vpop.xlane.xlu1 %1698  ;;  %v1644_v32 = vmul.f32 %v4495_v38, %v1612_v40  ;;  %v5002_v38 = vld [vmem:[#allocation10_spill] sm:$0xff] }
 0x522   : > { %v1738_v34 = vadd.f32 %v1699_v57, %v1642_v45  ;;  %v1661_v61 = vpop.xlane.xlu0 %1660  ;;  %v1805_v45 = vld [vmem:[#allocation5 + $0xd0] sm:$0xff] }
 0x523   : > { %2194 = vst.msk [vmem:[#allocation5 + $0xb0] sm:$0xff] %vm751_vm3, %v2162_v17  ;;  %v1719_v35 = vadd.f32 %v1661_v61, %v1623_v16  ;;  %v1597_v17 = vld [vmem:[#allocation4 + $0x58] sm:$0xff]  ;;  %v1997_v57 = vmul.f32 %v4620_v51, %v1805_v45  ;;  %v5003_v51 = vld [vmem:[#allocation12_spill] sm:$0xff] }
 0x524   : > { %1771 = vst.msk [vmem:[#allocation4 + $0xc0] sm:$0xff] %vm1746_vm4, %v1738_v34 }
 0x525   : > { %1752 = vst.msk [vmem:[#allocation4 + $0x28] sm:$0xff] %vm1746_vm4, %v1719_v35  ;;  %v1677_v20 = vpop.xlane.xlu2 %1676  ;;  %v1629_v35 = vmul.f32 %v5002_v38, %v1597_v17 }
 0x526   : > { %v1727_v50 = vadd.f32 %v1677_v20, %v1631_v62 }
 0x528   : > { %1760 = vst.msk [vmem:[#allocation4 + $0x68] sm:$0xff] %vm1746_vm4, %v1727_v50  ;;  %v2117_v19 = vpop.f32.mrf.mxu2  ;;  %v1601_v50 = vld [vmem:[#allocation4 + $0x78] sm:$0xff] }
 0x529   : > { %v2163_v11 = vadd.f32 %v2117_v19, %v1994_v33  ;;  %v1669_v22 = vpop.xlane.xlu1 %1668  ;;  %v1998_v33 = vmul.f32 %v5003_v51, %v1806_v9  ;;  %v1633_v4 = vmul.f32 %v5004_v18, %v1601_v50 }
 0x52a   : > { %v1723_v54 = vadd.f32 %v1669_v22, %v1627_v5  ;;  %v1697_v26 = vpop.xlane.xlu0 %1696  ;;  %v1647_v22 = vmul.f32 %v4631_v53, %v1615_v58 }
 0x52b   : > { %2195 = vst.msk [vmem:[#allocation5 + $0xb8] sm:$0xff] %vm751_vm3, %v2163_v11  ;;  %v1737_v44 = vadd.f32 %v1697_v26, %v1641_v12  ;;  %v1807_v26 = vld [vmem:[#allocation5 + $0xe0] sm:$0xff] }
 0x52c   : > { %1756 = vst.msk [vmem:[#allocation4 + $0x48] sm:$0xff] %vm1746_vm4, %v1723_v54  ;;  %v1999_v63 = vmul.f32 %v4599_v3, %v1807_v26 }
 0x52d   : > { %1770 = vst.msk [vmem:[#allocation4 + $0xb8] sm:$0xff] %vm1746_vm4, %v1737_v44  ;;  %v1713_v42 = vpop.xlane.xlu2 %1712  ;;  %v1600_v44 = vld [vmem:[#allocation4 + $0x70] sm:$0xff] }
 0x52e   : > { %v1745_v59 = vadd.f32 %v1713_v42, %v1649_v31 }
 0x530   : > { %1778 = vst.msk [vmem:[#allocation4 + $0xf8] sm:$0xff] %vm1746_vm4, %v1745_v59  ;;  %v2120_v47 = vpop.f32.mrf.mxu2  ;;  %v1632_v59 = vmul.f32 %v5005_v27, %v1600_v44 }
 0x531   : > { %v2164_v0 = vadd.f32 %v2120_v47, %v1995_v24  ;;  %v1705_v8 = vpop.xlane.xlu1 %1704  ;;  %v1603_v24 = vld [vmem:[#allocation4 + $0x88] sm:$0xff] }
 0x532   : > { %v1741_v28 = vadd.f32 %v1705_v8, %v1645_v21  ;;  %v1667_v49 = vpop.xlane.xlu0 %1666  ;;  %v1635_v21 = vmul.f32 %v5006_v56, %v1603_v24 }
 0x533   : > { %2196 = vst.msk [vmem:[#allocation5 + $0xc0] sm:$0xff] %vm751_vm3, %v2164_v0  ;;  %v1722_v55 = vadd.f32 %v1667_v49, %v1626_v48  ;;  %v1809_v48 = vld [vmem:[#allocation5 + $0xf0] sm:$0xff] }
 0x534   : > { %1774 = vst.msk [vmem:[#allocation4 + $0xd8] sm:$0xff] %vm1746_vm4, %v1741_v28 }
 0x535   : > { %1755 = vst.msk [vmem:[#allocation4 + $0x40] sm:$0xff] %vm1746_vm4, %v1722_v55  ;;  %v1683_v10 = vpop.xlane.xlu2 %1682  ;;  %v1810_v55 = vld [vmem:[#allocation5 + $0xf8] sm:$0xff] }
 0x536   : > { %v1730_v43 = vadd.f32 %v1683_v10, %v1634_v7 }
 0x538   : > { %1763 = vst.msk [vmem:[#allocation4 + $0x80] sm:$0xff] %vm1746_vm4, %v1730_v43  ;;  %v2122_v36 = vpop.f32.mrf.mxu2  ;;  %v1808_v43 = vld [vmem:[#allocation5 + $0xe8] sm:$0xff] }
 0x539   : > { %v2165_v29 = vadd.f32 %v2122_v36, %v1996_v30  ;;  %v1675_v37 = vpop.xlane.xlu1 %1674 }
 0x53a   : > { %v1726_v52 = vadd.f32 %v1675_v37, %v1630_v2  ;;  %v1703_v14 = vpop.xlane.xlu0 %1702 }
 0x53b   : > { %2197 = vst.msk [vmem:[#allocation5 + $0xc8] sm:$0xff] %vm751_vm3, %v2165_v29  ;;  %v1740_v23 = vadd.f32 %v1703_v14, %v1644_v32 }
 0x53c   : > { %1759 = vst.msk [vmem:[#allocation4 + $0x60] sm:$0xff] %vm1746_vm4, %v1726_v52 }
 0x53d   : > { %1773 = vst.msk [vmem:[#allocation4 + $0xd0] sm:$0xff] %vm1746_vm4, %v1740_v23  ;;  %v1964_v6 = vpop.permute.xlu2 %1963 }
 0x53e   : > { %v2001_v3 = vmul.f32 %v1964_v6, %v1809_v48 }
 0x540   : > { %v2125_v16 = vpop.f32.mrf.mxu2 }
 0x541   : > { %v2166_v34 = vadd.f32 %v2125_v16, %v1997_v57  ;;  %v1711_v61 = vpop.xlane.xlu1 %1710 }
 0x542   : > { %v1744_v60 = vadd.f32 %v1711_v61, %v1648_v41  ;;  %v1673_v62 = vpop.xlane.xlu0 %1672 }
 0x543   : > { %2198 = vst.msk [vmem:[#allocation5 + $0xd0] sm:$0xff] %vm751_vm3, %v2166_v34  ;;  %v1725_v20 = vadd.f32 %v1673_v62, %v1629_v35 }
 0x544   : > { %1777 = vst.msk [vmem:[#allocation4 + $0xf0] sm:$0xff] %vm1746_vm4, %v1744_v60 }
 0x545   : > { %1758 = vst.msk [vmem:[#allocation4 + $0x58] sm:$0xff] %vm1746_vm4, %v1725_v20 }
 0x548   : > { %v2127_v19 = vpop.f32.mrf.mxu2 }
 0x549   : > { %v2167_v5 = vadd.f32 %v2127_v19, %v1998_v33  ;;  %v1681_v11 = vpop.xlane.xlu1 %1680 }
 0x54a   : > { %v1729_v12 = vadd.f32 %v1681_v11, %v1633_v4  ;;  %v1709_v39 = vpop.xlane.xlu0 %1708 }
 0x54b   : > { %2199 = vst.msk [vmem:[#allocation5 + $0xd8] sm:$0xff] %vm751_vm3, %v2167_v5  ;;  %v1743_v54 = vadd.f32 %v1709_v39, %v1647_v22 }
 0x54c   : > { %1762 = vst.msk [vmem:[#allocation4 + $0x78] sm:$0xff] %vm1746_vm4, %v1729_v12 }
 0x54d   : > { %1776 = vst.msk [vmem:[#allocation4 + $0xe8] sm:$0xff] %vm1746_vm4, %v1743_v54 }
 0x550   : > { %v2130_v31 = vpop.f32.mrf.mxu2 }
 0x551   : > { %v2168_v42 = vadd.f32 %v2130_v31, %v1999_v63 }
 0x552   : > { %v1679_v15 = vpop.xlane.xlu0 %1678 }
 0x553   : > { %2200 = vst.msk [vmem:[#allocation5 + $0xe0] sm:$0xff] %vm751_vm3, %v2168_v42  ;;  %v1728_v53 = vadd.f32 %v1679_v15, %v1632_v59 }
 0x555   : > { %1761 = vst.msk [vmem:[#allocation4 + $0x70] sm:$0xff] %vm1746_vm4, %v1728_v53 }
 0x558   : > { %v2132_v47 = vpop.f32.mrf.mxu2 }
 0x55a   : > { %v1685_v0 = vpop.xlane.xlu0 %1684 }
 0x55b   : > { %v1731_v8 = vadd.f32 %v1685_v0, %v1635_v21 }
 0x55d   : > { %1764 = vst.msk [vmem:[#allocation4 + $0x88] sm:$0xff] %vm1746_vm4, %v1731_v8 }
 0x560   : > { %v2135_v28 = vpop.f32.mrf.mxu2 }
 0x561   : > { %v2170_v49 = vadd.f32 %v2135_v28, %v2001_v3  ;;  %v1969_v25 = vpop.permute.xlu1 %1968 }
 0x562   : > { %v2002_v7 = vmul.f32 %v1969_v25, %v1810_v55 }
 0x563   : > { %2202 = vst.msk [vmem:[#allocation5 + $0xf0] sm:$0xff] %vm751_vm3, %v2170_v49 }
 0x568   : > { %v2137_v10 = vpop.f32.mrf.mxu2 }
 0x569   : > { %v2171_v1 = vadd.f32 %v2137_v10, %v2002_v7 }
 0x56b   : > { %2203 = vst.msk [vmem:[#allocation5 + $0xf8] sm:$0xff] %vm751_vm3, %v2171_v1 }
 0x56d   : > { %v1959_v40 = vpop.permute.xlu0 %1958 }
 0x56e   : > { %v2000_v30 = vmul.f32 %v1959_v40, %v1808_v43  ;;  %2239 = sbr.rel (%p3002_p8) target bundleno = 1607 (0x647), region = 44 }
 0x570   : > { %v2169_v36 = vadd.f32 %v2132_v47, %v2000_v30 }
 0x572   : > { %2201 = vst.msk [vmem:[#allocation5 + $0xe8] sm:$0xff] %vm751_vm3, %v2169_v36 }
 0x573   : > { %v2244_v13 = vld [vmem:[#allocation4 + $0x20] sm:$0xff]  ;;  %v2242_v2 = vld [vmem:[#allocation4 + $0x10] sm:$0xff]  ;;  %v3439_v37 = vmov 0   ;;  %v2245_v32 = vld [vmem:[#allocation4 + $0x28] sm:$0xff]  ;;  %vm2656_vm5 = vcmask 257024  }
 0x574   : > { %v2240_v29 = vld [vmem:[#allocation4] sm:$0xff]  ;;  %3330 = vset.pattern.permute.xlu2 %v3439_v37  ;;  %3329 = vset.pattern.permute.xlu1 %v3439_v37  ;;  %3331 = vrcp.f32 %v2244_v13  ;;  %v2243_v52 = vld [vmem:[#allocation4 + $0x18] sm:$0xff]  ;;  %v2241_v14 = vld [vmem:[#allocation4 + $0x8] sm:$0xff] }
 0x575   : > { %3328 = vset.pattern.permute.xlu0 %v3439_v37  ;;  %3333 = vrcp.f32 %v2242_v2  ;;  %v2248_v17 = vld [vmem:[#allocation4 + $0x40] sm:$0xff]  ;;  %v2247_v16 = vld [vmem:[#allocation4 + $0x38] sm:$0xff]  ;;  %v2246_v34 = vld [vmem:[#allocation4 + $0x30] sm:$0xff] }
 0x576   : > { %3335 = vrcp.f32 %v2240_v29  ;;  %v2251_v38 = vld [vmem:[#allocation4 + $0x58] sm:$0xff]  ;;  %v2250_v60 = vld [vmem:[#allocation4 + $0x50] sm:$0xff]  ;;  %v2249_v20 = vld [vmem:[#allocation4 + $0x48] sm:$0xff] }
 0x577   : > { %3337 = vrcp.f32 %v2245_v32  ;;  %v2254_v50 = vld [vmem:[#allocation4 + $0x70] sm:$0xff]  ;;  %v2253_v51 = vld [vmem:[#allocation4 + $0x68] sm:$0xff]  ;;  %v2252_v19 = vld [vmem:[#allocation4 + $0x60] sm:$0xff] }
 0x578   : > { %3339 = vrcp.f32 %v2243_v52  ;;  %v2257_v4 = vld [vmem:[#allocation4 + $0x88] sm:$0xff]  ;;  %v2256_v11 = vld [vmem:[#allocation4 + $0x80] sm:$0xff]  ;;  %v2255_v12 = vld [vmem:[#allocation4 + $0x78] sm:$0xff] }
 0x579   : > { %3341 = vrcp.f32 %v2241_v14  ;;  %v2260_v54 = vld [vmem:[#allocation4 + $0xa0] sm:$0xff]  ;;  %v2259_v44 = vld [vmem:[#allocation4 + $0x98] sm:$0xff]  ;;  %v2258_v31 = vld [vmem:[#allocation4 + $0x90] sm:$0xff] }
 0x57a   : > { %v3332_v23 = vpop.eup %3331  ;;  %3343 = vrcp.f32 %v2248_v17  ;;  %v2263_v27 = vld [vmem:[#allocation4 + $0xb8] sm:$0xff]  ;;  %v2262_v15 = vld [vmem:[#allocation4 + $0xb0] sm:$0xff]  ;;  %v2261_v24 = vld [vmem:[#allocation4 + $0xa8] sm:$0xff] }
 0x57b   : > { %v3334_v45 = vpop.eup %3333  ;;  %2422 = vperm.xlu2 %3330, %v3332_v23   ;;  %3345 = vrcp.f32 %v2247_v16  ;;  %v2266_v56 = vld [vmem:[#allocation4 + $0xd0] sm:$0xff]  ;;  %v2265_v0 = vld [vmem:[#allocation4 + $0xc8] sm:$0xff]  ;;  %v2264_v48 = vld [vmem:[#allocation4 + $0xc0] sm:$0xff] }
 0x57c   : > { %v3336_v46 = vpop.eup %3335  ;;  %2412 = vperm.xlu1 %3329, %v3334_v45   ;;  %3347 = vrcp.f32 %v2246_v34  ;;  %v2269_v3 = vld [vmem:[#allocation4 + $0xe8] sm:$0xff]  ;;  %v2268_v49 = vld [vmem:[#allocation4 + $0xe0] sm:$0xff]  ;;  %v2267_v25 = vld [vmem:[#allocation4 + $0xd8] sm:$0xff] }
 0x57d   : > { %2402 = vperm.xlu0 %3328, %v3336_v46   ;;  %v3338_v57 = vpop.eup %3337  ;;  %3349 = vrcp.f32 %v2251_v38  ;;  %v2271_v1 = vld [vmem:[#allocation4 + $0xf8] sm:$0xff]  ;;  %v2270_v40 = vld [vmem:[#allocation4 + $0xf0] sm:$0xff]  ;;  %v2372_v29 = vld [vmem:[#allocation5 + $0x20] sm:$0xff] }
 0x57e   : > { %v3340_v41 = vpop.eup %3339  ;;  %3351 = vrcp.f32 %v2250_v60  ;;  %v3116_v2 = vld [vmem:[%s3501_s27 + $0x10] sm:$0xff]   ;;  %v2373_v45 = vld [vmem:[#allocation5 + $0x28] sm:$0xff] }
 0x57f   : > { %v3342_v61 = vpop.eup %3341  ;;  %3353 = vrcp.f32 %v2249_v20  ;;  %v3061_v37 = vunpack.c.l.bf16 %v3116_v2  ;;  %v3062_v46 = vunpack.c.h.bf16 %v3116_v2  ;;  %v4718_v20 = vld [vmem:[%s3501_s27 + $0x28] sm:$0xff]   ;;  %v2375_v2 = vld [vmem:[#allocation5 + $0x38] sm:$0xff] }
 0x580   : > { %v3344_v35 = vpop.eup %3343  ;;  %3355 = vrcp.f32 %v2254_v50  ;;  %v3115_v50 = vld [vmem:[%s3501_s27 + $0x8] sm:$0xff]  }
 0x581   : > { %v3346_v62 = vpop.eup %3345  ;;  %3357 = vrcp.f32 %v2253_v51  ;;  %v3052_v51 = vld [vmem:[%s3501_s27] sm:$0xff]  }
 0x582   : > { %v3348_v9 = vpop.eup %3347  ;;  %3359 = vrcp.f32 %v2252_v19  ;;  %v2370_v19 = vld [vmem:[#allocation5 + $0x10] sm:$0xff] }
 0x583   : > { %2427 = vperm.xlu2 %3330, %v3338_v57   ;;  %v3350_v58 = vpop.eup %3349  ;;  %3361 = vrcp.f32 %v2257_v4  ;;  %v3057_v4 = vunpack.c.l.bf16 %v3115_v50 }
 0x584   : > { %2417 = vperm.xlu1 %3329, %v3340_v41   ;;  %v3352_v33 = vpop.eup %3351  ;;  %3363 = vrcp.f32 %v2256_v11  ;;  %v4712_v41 = vld [vmem:[%s3501_s27 + $0x20] sm:$0xff]  }
 0x585   : > { %2407 = vperm.xlu0 %3328, %v3342_v61   ;;  %v3354_v18 = vpop.eup %3353  ;;  %3365 = vrcp.f32 %v2255_v12  ;;  %v2376_v61 = vld [vmem:[#allocation5 + $0x40] sm:$0xff]  ;;  %v3069_v38 = vunpack.c.l.bf16 %v4712_v41  ;;  %v3053_v12 = vunpack.c.l.bf16 %v3052_v51 }
 0x586   : > { %v3356_v5 = vpop.eup %3355  ;;  %3367 = vrcp.f32 %v2260_v54 }
 0x587   : > { %v3358_v22 = vpop.eup %3357  ;;  %3369 = vrcp.f32 %v2259_v44 }
 0x588   : > { %v3360_v39 = vpop.eup %3359  ;;  %3371 = vrcp.f32 %v2258_v31  ;;  %v4726_v31 = vld [vmem:[%s3501_s27 + $0x38] sm:$0xff]  }
 0x589   : > { %v3362_v26 = vpop.eup %3361  ;;  %3373 = vrcp.f32 %v2263_v27 }
 0x58a   : > { %v3364_v63 = vpop.eup %3363  ;;  %3375 = vrcp.f32 %v2262_v15  ;;  %v2382_v15 = vld [vmem:[#allocation5 + $0x70] sm:$0xff] }
 0x58b   : > { %2442 = vperm.xlu2 %3330, %v3344_v35   ;;  %v3366_v42 = vpop.eup %3365  ;;  %3377 = vrcp.f32 %v2261_v24  ;;  %v3081_v24 = vunpack.c.l.bf16 %v4726_v31 }
 0x58c   : > { %2437 = vperm.xlu1 %3329, %v3346_v62   ;;  %v3368_v59 = vpop.eup %3367  ;;  %3379 = vrcp.f32 %v2266_v56 }
 0x58d   : > { %2432 = vperm.xlu0 %3328, %v3348_v9   ;;  %v3370_v53 = vpop.eup %3369  ;;  %3381 = vrcp.f32 %v2265_v0  ;;  %v2369_v0 = vld [vmem:[#allocation5 + $0x8] sm:$0xff] }
 0x58e   : > { %v3372_v47 = vpop.eup %3371  ;;  %3383 = vrcp.f32 %v2264_v48 }
 0x58f   : > { %v3374_v21 = vpop.eup %3373  ;;  %3385 = vrcp.f32 %v2269_v3 }
 0x590   : > { %v3376_v8 = vpop.eup %3375  ;;  %3387 = vrcp.f32 %v2268_v49 }
 0x591   : > { %v3378_v6 = vpop.eup %3377  ;;  %3389 = vrcp.f32 %v2267_v25 }
 0x592   : > { %v3380_v28 = vpop.eup %3379  ;;  %3391 = vrcp.f32 %v2271_v1 }
 0x593   : > { %2457 = vperm.xlu2 %3330, %v3350_v58   ;;  %v3382_v55 = vpop.eup %3381  ;;  %3393 = vrcp.f32 %v2270_v40  ;;  %v2379_v58 = vld [vmem:[#allocation5 + $0x58] sm:$0xff] }
 0x594   : > { %2452 = vperm.xlu1 %3329, %v3352_v33   ;;  %v3384_v7 = vpop.eup %3383  ;;  %v3074_v33 = vunpack.c.h.bf16 %v4718_v20 }
 0x595   : > { %2447 = vperm.xlu0 %3328, %v3354_v18   ;;  %v3386_v10 = vpop.eup %3385 }
 0x596   : > { %v3388_v43 = vpop.eup %3387 }
 0x597   : > { %v3390_v30 = vpop.eup %3389 }
 0x598   : > { %v3392_v36 = vpop.eup %3391 }
 0x599   : > { %v3394_v13 = vpop.eup %3393 }
 0x59b   : > { %2472 = vperm.xlu2 %3330, %v3356_v5   ;;  %v2368_v5 = vld [vmem:[#allocation5] sm:$0xff] }
 0x59c   : > { %2467 = vperm.xlu1 %3329, %v3358_v22  }
 0x59d   : > { %2462 = vperm.xlu0 %3328, %v3360_v39  }
 0x5a3   : > { %2487 = vperm.xlu2 %3330, %v3362_v26  }
 0x5a4   : > { %2482 = vperm.xlu1 %3329, %v3364_v63  }
 0x5a5   : > { %2477 = vperm.xlu0 %3328, %v3366_v42  }
 0x5ab   : > { %2502 = vperm.xlu2 %3330, %v3368_v59  }
 0x5ac   : > { %2497 = vperm.xlu1 %3329, %v3370_v53  }
 0x5ad   : > { %2492 = vperm.xlu0 %3328, %v3372_v47   ;;  %v2371_v47 = vld [vmem:[#allocation5 + $0x18] sm:$0xff] }
 0x5b3   : > { %2517 = vperm.xlu2 %3330, %v3374_v21   ;;  %v3058_v21 = vunpack.c.h.bf16 %v3115_v50  ;;  %v2378_v50 = vld [vmem:[#allocation5 + $0x50] sm:$0xff] }
 0x5b4   : > { %2512 = vperm.xlu1 %3329, %v3376_v8  }
 0x5b5   : > { %2507 = vperm.xlu0 %3328, %v3378_v6   ;;  %v3054_v6 = vunpack.c.h.bf16 %v3052_v51  ;;  %v3073_v51 = vunpack.c.l.bf16 %v4718_v20  ;;  %v3120_v20 = vld [vmem:[%s3501_s27 + $0x30] sm:$0xff]  }
 0x5bb   : > { %2532 = vperm.xlu2 %3330, %v3380_v28  }
 0x5bc   : > { %2527 = vperm.xlu1 %3329, %v3382_v55  }
 0x5bd   : > { %2522 = vperm.xlu0 %3328, %v3384_v7   ;;  %v4736_v7 = vld [vmem:[%s3501_s27 + $0x40] sm:$0xff]  }
 0x5c3   : > { %2547 = vperm.xlu2 %3330, %v3386_v10  }
 0x5c4   : > { %2542 = vperm.xlu1 %3329, %v3388_v43   ;;  %v3117_v43 = vld [vmem:[%s3501_s27 + $0x18] sm:$0xff]  }
 0x5c5   : > { %2537 = vperm.xlu0 %3328, %v3390_v30   ;;  %v2385_v30 = vld [vmem:[#allocation5 + $0x88] sm:$0xff] }
 0x5cc   : > { %2557 = vperm.xlu1 %3329, %v3392_v36  }
 0x5cd   : > { %2552 = vperm.xlu0 %3328, %v3394_v13   ;;  %v3086_v13 = vunpack.c.h.bf16 %v4736_v7 }
 0x5d5   : > { %v2423_v32 = vpop.permute.xlu2 %2422 }
 0x5d6   : > { %v2564_v52 = vmul.f32 %v2423_v32, %v2372_v29  ;;  %v2374_v32 = vld [vmem:[#allocation5 + $0x30] sm:$0xff] }
 0x5d8   : > { %v2596_v14 = vadd.f32 %v3061_v37, %v2564_v52  ;;  %v3066_v37 = vunpack.c.h.bf16 %v3117_v43 }
 0x5da   : > { %v2628_v23 = vpack.c.bf16 %v2596_v14, %v2596_v14 }
 0x5dc   : > { %2661 = vst.msk [vmem:[%s3506_s6 + $0x10] sm:$0xf] %vm2656_vm5, %v2628_v23  ;;  %v3065_v23 = vunpack.c.l.bf16 %v3117_v43 }
 0x5dd   : > { %v2428_v17 = vpop.permute.xlu2 %2427 }
 0x5de   : > { %v2565_v57 = vmul.f32 %v2428_v17, %v2373_v45 }
 0x5e0   : > { %v2597_v16 = vadd.f32 %v3062_v46, %v2565_v57 }
 0x5e2   : > { %v2629_v34 = vpack.c.bf16 %v2597_v16, %v2597_v16 }
 0x5e4   : > { %2662 = vst.msk [vmem:[%s3506_s6 + $0x14] sm:$0xf] %vm2656_vm5, %v2629_v34  ;;  %v4747_v34 = vld [vmem:[%s3501_s27 + $0x50] sm:$0xff]  }
 0x5e5   : > { %v2443_v35 = vpop.permute.xlu2 %2442 }
 0x5e6   : > { %v2568_v60 = vmul.f32 %v2443_v35, %v2376_v61 }
 0x5e8   : > { %v2600_v62 = vadd.f32 %v3069_v38, %v2568_v60  ;;  %v2388_v60 = vld [vmem:[#allocation5 + $0xa0] sm:$0xff] }
 0x5ea   : > { %v2632_v9 = vpack.c.bf16 %v2600_v62, %v2600_v62 }
 0x5ec   : > { %2665 = vst.msk [vmem:[%s3506_s6 + $0x20] sm:$0xf] %vm2656_vm5, %v2632_v9  ;;  %v3093_v9 = vunpack.c.l.bf16 %v4747_v34 }
 0x5ed   : > { %v2458_v18 = vpop.permute.xlu2 %2457 }
 0x5ee   : > { %v2571_v11 = vmul.f32 %v2458_v18, %v2379_v58  ;;  %v2413_v22 = vpop.permute.xlu1 %2412 }
 0x5ef   : > { %v2562_v39 = vmul.f32 %v2413_v22, %v2370_v19  ;;  %v2403_v54 = vpop.permute.xlu0 %2402 }
 0x5f0   : > { %v2603_v26 = vadd.f32 %v3074_v33, %v2571_v11  ;;  %v2560_v44 = vmul.f32 %v2403_v54, %v2368_v5  ;;  %v2377_v33 = vld [vmem:[#allocation5 + $0x48] sm:$0xff]  ;;  %v4759_v54 = vld [vmem:[%s3501_s27 + $0x58] sm:$0xff]  }
 0x5f1   : > { %v2594_v63 = vadd.f32 %v3057_v4, %v2562_v39  ;;  %v3070_v4 = vunpack.c.h.bf16 %v4712_v41  ;;  %v3098_v41 = vunpack.c.h.bf16 %v4759_v54 }
 0x5f2   : > { %v2635_v42 = vpack.c.bf16 %v2603_v26, %v2603_v26  ;;  %v2592_v27 = vadd.f32 %v3053_v12, %v2560_v44 }
 0x5f3   : > { %v2626_v59 = vpack.c.bf16 %v2594_v63, %v2594_v63 }
 0x5f4   : > { %2668 = vst.msk [vmem:[%s3506_s6 + $0x2c] sm:$0xf] %vm2656_vm5, %v2635_v42  ;;  %v2624_v53 = vpack.c.bf16 %v2592_v27, %v2592_v27  ;;  %v2391_v42 = vld [vmem:[#allocation5 + $0xb8] sm:$0xff] }
 0x5f5   : > { %2659 = vst.msk [vmem:[%s3506_s6 + $0x8] sm:$0xf] %vm2656_vm5, %v2626_v59  ;;  %v2473_v56 = vpop.permute.xlu2 %2472  ;;  %v2381_v59 = vld [vmem:[#allocation5 + $0x68] sm:$0xff] }
 0x5f6   : > { %2657 = vst.msk [vmem:[%s3506_s6] sm:$0xf] %vm2656_vm5, %v2624_v53  ;;  %v2574_v8 = vmul.f32 %v2473_v56, %v2382_v15  ;;  %v2418_v48 = vpop.permute.xlu1 %2417  ;;  %v3078_v53 = vunpack.c.h.bf16 %v3120_v20 }
 0x5f7   : > { %v2563_v3 = vmul.f32 %v2418_v48, %v2371_v47  ;;  %v2408_v28 = vpop.permute.xlu0 %2407 }
 0x5f8   : > { %v2606_v49 = vadd.f32 %v3081_v24, %v2574_v8  ;;  %v2561_v55 = vmul.f32 %v2408_v28, %v2369_v0  ;;  %v2380_v24 = vld [vmem:[#allocation5 + $0x60] sm:$0xff]  ;;  %v4770_v28 = vld [vmem:[%s3501_s27 + $0x68] sm:$0xff]  }
 0x5f9   : > { %v2595_v25 = vadd.f32 %v3058_v21, %v2563_v3  ;;  %v3077_v21 = vunpack.c.l.bf16 %v3120_v20  ;;  %v3105_v43 = vunpack.c.l.bf16 %v4770_v28  ;;  %v2389_v20 = vld [vmem:[#allocation5 + $0xa8] sm:$0xff] }
 0x5fa   : > { %v2638_v10 = vpack.c.bf16 %v2606_v49, %v2606_v49  ;;  %v2593_v1 = vadd.f32 %v3054_v6, %v2561_v55 }
 0x5fb   : > { %v2627_v40 = vpack.c.bf16 %v2595_v25, %v2595_v25 }
 0x5fc   : > { %2671 = vst.msk [vmem:[%s3506_s6 + $0x38] sm:$0xf] %vm2656_vm5, %v2638_v10  ;;  %v2625_v36 = vpack.c.bf16 %v2593_v1, %v2593_v1  ;;  %v2394_v10 = vld [vmem:[#allocation5 + $0xd0] sm:$0xff] }
 0x5fd   : > { %2660 = vst.msk [vmem:[%s3506_s6 + $0xc] sm:$0xf] %vm2656_vm5, %v2627_v40  ;;  %v2488_v29 = vpop.permute.xlu2 %2487  ;;  %v2384_v40 = vld [vmem:[#allocation5 + $0x80] sm:$0xff] }
 0x5fe   : > { %2658 = vst.msk [vmem:[%s3506_s6 + $0x4] sm:$0xf] %vm2656_vm5, %v2625_v36  ;;  %v2577_v52 = vmul.f32 %v2488_v29, %v2385_v30  ;;  %v2438_v14 = vpop.permute.xlu1 %2437  ;;  %v3085_v36 = vunpack.c.l.bf16 %v4736_v7  ;;  %v3123_v7 = vld [vmem:[%s3501_s27 + $0x48] sm:$0xff]  }
 0x5ff   : > { %v2567_v45 = vmul.f32 %v2438_v14, %v2375_v2  ;;  %v2433_v46 = vpop.permute.xlu0 %2432 }
 0x600   : > { %v2609_v17 = vadd.f32 %v3086_v13, %v2577_v52  ;;  %v2566_v57 = vmul.f32 %v2433_v46, %v2374_v32  ;;  %v2383_v13 = vld [vmem:[#allocation5 + $0x78] sm:$0xff]  ;;  %v4782_v46 = vld [vmem:[%s3501_s27 + $0x70] sm:$0xff]  }
 0x601   : > { %v2599_v16 = vadd.f32 %v3066_v37, %v2567_v45  ;;  %v3082_v37 = vunpack.c.h.bf16 %v4726_v31  ;;  %v2387_v31 = vld [vmem:[#allocation5 + $0x98] sm:$0xff] }
 0x602   : > { %v2641_v61 = vpack.c.bf16 %v2609_v17, %v2609_v17  ;;  %v2598_v38 = vadd.f32 %v3065_v23, %v2566_v57 }
 0x603   : > { %v2631_v35 = vpack.c.bf16 %v2599_v16, %v2599_v16 }
 0x604   : > { %2674 = vst.msk [vmem:[%s3506_s6 + $0x44] sm:$0xf] %vm2656_vm5, %v2641_v61  ;;  %v2630_v62 = vpack.c.bf16 %v2598_v38, %v2598_v38  ;;  %v2397_v61 = vld [vmem:[#allocation5 + $0xe8] sm:$0xff] }
 0x605   : > { %2664 = vst.msk [vmem:[%s3506_s6 + $0x1c] sm:$0xf] %vm2656_vm5, %v2631_v35  ;;  %v2503_v58 = vpop.permute.xlu2 %2502  ;;  %v3110_v35 = vunpack.c.h.bf16 %v4782_v46 }
 0x606   : > { %2663 = vst.msk [vmem:[%s3506_s6 + $0x18] sm:$0xf] %vm2656_vm5, %v2630_v62  ;;  %v2580_v19 = vmul.f32 %v2503_v58, %v2388_v60  ;;  %v2453_v18 = vpop.permute.xlu1 %2452  ;;  %v3090_v62 = vunpack.c.h.bf16 %v3123_v7 }
 0x607   : > { %v2570_v5 = vmul.f32 %v2453_v18, %v2378_v50  ;;  %v2448_v11 = vpop.permute.xlu0 %2447 }
 0x608   : > { %v2612_v22 = vadd.f32 %v3093_v9, %v2580_v19  ;;  %v2569_v12 = vmul.f32 %v2448_v11, %v2377_v33  ;;  %v2386_v9 = vld [vmem:[#allocation5 + $0x90] sm:$0xff] }
 0x609   : > { %v2602_v39 = vadd.f32 %v3073_v51, %v2570_v5  ;;  %v3089_v51 = vunpack.c.l.bf16 %v3123_v7 }
 0x60a   : > { %v2644_v26 = vpack.c.bf16 %v2612_v22, %v2612_v22  ;;  %v2601_v44 = vadd.f32 %v3070_v4, %v2569_v12 }
 0x60b   : > { %v2634_v63 = vpack.c.bf16 %v2602_v39, %v2602_v39 }
 0x60c   : > { %2677 = vst.msk [vmem:[%s3506_s6 + $0x50] sm:$0xf] %vm2656_vm5, %v2644_v26  ;;  %v2633_v27 = vpack.c.bf16 %v2601_v44, %v2601_v44  ;;  %v2390_v26 = vld [vmem:[#allocation5 + $0xb0] sm:$0xff]  ;;  %v3097_v44 = vunpack.c.l.bf16 %v4759_v54 }
 0x60d   : > { %2667 = vst.msk [vmem:[%s3506_s6 + $0x28] sm:$0xf] %vm2656_vm5, %v2634_v63  ;;  %v2518_v15 = vpop.permute.xlu2 %2517 }
 0x60e   : > { %2666 = vst.msk [vmem:[%s3506_s6 + $0x24] sm:$0xf] %vm2656_vm5, %v2633_v27  ;;  %v2583_v47 = vmul.f32 %v2518_v15, %v2391_v42  ;;  %v2468_v56 = vpop.permute.xlu1 %2467  ;;  %v3094_v42 = vunpack.c.h.bf16 %v4747_v34 }
 0x60f   : > { %v2573_v0 = vmul.f32 %v2468_v56, %v2381_v59  ;;  %v2463_v8 = vpop.permute.xlu0 %2462 }
 0x610   : > { %v2615_v48 = vadd.f32 %v3098_v41, %v2583_v47  ;;  %v2572_v6 = vmul.f32 %v2463_v8, %v2380_v24  ;;  %v3126_v24 = vld [vmem:[%s3501_s27 + $0x60] sm:$0xff]  }
 0x611   : > { %v2605_v3 = vadd.f32 %v3078_v53, %v2573_v0  ;;  %v3102_v54 = vunpack.c.h.bf16 %v3126_v24  ;;  %v2392_v0 = vld [vmem:[#allocation5 + $0xc0] sm:$0xff] }
 0x612   : > { %v2647_v49 = vpack.c.bf16 %v2615_v48, %v2615_v48  ;;  %v2604_v55 = vadd.f32 %v3077_v21, %v2572_v6  ;;  %v2393_v21 = vld [vmem:[#allocation5 + $0xc8] sm:$0xff]  ;;  %v3101_v48 = vunpack.c.l.bf16 %v3126_v24 }
 0x613   : > { %v2637_v25 = vpack.c.bf16 %v2605_v3, %v2605_v3 }
 0x614   : > { %2680 = vst.msk [vmem:[%s3506_s6 + $0x5c] sm:$0xf] %vm2656_vm5, %v2647_v49  ;;  %v2636_v1 = vpack.c.bf16 %v2604_v55, %v2604_v55 }
 0x615   : > { %2670 = vst.msk [vmem:[%s3506_s6 + $0x34] sm:$0xf] %vm2656_vm5, %v2637_v25  ;;  %v2533_v30 = vpop.permute.xlu2 %2532 }
 0x616   : > { %2669 = vst.msk [vmem:[%s3506_s6 + $0x30] sm:$0xf] %vm2656_vm5, %v2636_v1  ;;  %v2586_v2 = vmul.f32 %v2533_v30, %v2394_v10  ;;  %v2483_v29 = vpop.permute.xlu1 %2482  ;;  %v2396_v1 = vld [vmem:[#allocation5 + $0xe0] sm:$0xff] }
 0x617   : > { %v2576_v32 = vmul.f32 %v2483_v29, %v2384_v40  ;;  %v2478_v52 = vpop.permute.xlu0 %2477  ;;  %v2395_v40 = vld [vmem:[#allocation5 + $0xd8] sm:$0xff] }
 0x618   : > { %v2618_v14 = vadd.f32 %v3105_v43, %v2586_v2  ;;  %v2575_v23 = vmul.f32 %v2478_v52, %v2383_v13  ;;  %v3109_v43 = vunpack.c.l.bf16 %v4782_v46  ;;  %v3129_v52 = vld [vmem:[%s3501_s27 + $0x78] sm:$0xff]  }
 0x619   : > { %v2608_v45 = vadd.f32 %v3085_v36, %v2576_v32  ;;  %v3106_v36 = vunpack.c.h.bf16 %v4770_v28  ;;  %v3114_v46 = vunpack.c.h.bf16 %v3129_v52  ;;  %v3113_v7 = vunpack.c.l.bf16 %v3129_v52 }
 0x61a   : > { %v2650_v17 = vpack.c.bf16 %v2618_v14, %v2618_v14  ;;  %v2607_v57 = vadd.f32 %v3082_v37, %v2575_v23 }
 0x61b   : > { %v2640_v16 = vpack.c.bf16 %v2608_v45, %v2608_v45  ;;  %v2399_v45 = vld [vmem:[#allocation5 + $0xf8] sm:$0xff] }
 0x61c   : > { %2683 = vst.msk [vmem:[%s3506_s6 + $0x68] sm:$0xf] %vm2656_vm5, %v2650_v17  ;;  %v2639_v38 = vpack.c.bf16 %v2607_v57, %v2607_v57  ;;  %v2398_v17 = vld [vmem:[#allocation5 + $0xf0] sm:$0xff] }
 0x61d   : > { %2673 = vst.msk [vmem:[%s3506_s6 + $0x40] sm:$0xf] %vm2656_vm5, %v2640_v16  ;;  %v2548_v60 = vpop.permute.xlu2 %2547 }
 0x61e   : > { %2672 = vst.msk [vmem:[%s3506_s6 + $0x3c] sm:$0xf] %vm2656_vm5, %v2639_v38  ;;  %v2589_v50 = vmul.f32 %v2548_v60, %v2397_v61  ;;  %v2498_v58 = vpop.permute.xlu1 %2497 }
 0x61f   : > { %v2579_v33 = vmul.f32 %v2498_v58, %v2387_v31  ;;  %v2493_v19 = vpop.permute.xlu0 %2492 }
 0x620   : > { %v2621_v18 = vadd.f32 %v3110_v35, %v2589_v50  ;;  %v2578_v4 = vmul.f32 %v2493_v19, %v2386_v9 }
 0x621   : > { %v2611_v5 = vadd.f32 %v3090_v62, %v2579_v33 }
 0x622   : > { %v2653_v11 = vpack.c.bf16 %v2621_v18, %v2621_v18  ;;  %v2610_v22 = vadd.f32 %v3089_v51, %v2578_v4 }
 0x623   : > { %v2643_v12 = vpack.c.bf16 %v2611_v5, %v2611_v5 }
 0x624   : > { %2686 = vst.msk [vmem:[%s3506_s6 + $0x74] sm:$0xf] %vm2656_vm5, %v2653_v11  ;;  %v2642_v39 = vpack.c.bf16 %v2610_v22, %v2610_v22 }
 0x625   : > { %2676 = vst.msk [vmem:[%s3506_s6 + $0x4c] sm:$0xf] %vm2656_vm5, %v2643_v12 }
 0x626   : > { %2675 = vst.msk [vmem:[%s3506_s6 + $0x48] sm:$0xf] %vm2656_vm5, %v2642_v39  ;;  %v2513_v63 = vpop.permute.xlu1 %2512 }
 0x627   : > { %v2582_v27 = vmul.f32 %v2513_v63, %v2390_v26  ;;  %v2508_v41 = vpop.permute.xlu0 %2507 }
 0x628   : > { %v2581_v59 = vmul.f32 %v2508_v41, %v2389_v20 }
 0x629   : > { %v2614_v15 = vadd.f32 %v3097_v44, %v2582_v27 }
 0x62a   : > { %v2613_v53 = vadd.f32 %v3094_v42, %v2581_v59 }
 0x62b   : > { %v2646_v47 = vpack.c.bf16 %v2614_v15, %v2614_v15 }
 0x62c   : > { %v2645_v56 = vpack.c.bf16 %v2613_v53, %v2613_v53 }
 0x62d   : > { %2679 = vst.msk [vmem:[%s3506_s6 + $0x58] sm:$0xf] %vm2656_vm5, %v2646_v47 }
 0x62e   : > { %2678 = vst.msk [vmem:[%s3506_s6 + $0x54] sm:$0xf] %vm2656_vm5, %v2645_v56  ;;  %v2528_v8 = vpop.permute.xlu1 %2527 }
 0x62f   : > { %v2585_v34 = vmul.f32 %v2528_v8, %v2393_v21  ;;  %v2523_v6 = vpop.permute.xlu0 %2522 }
 0x630   : > { %v2584_v3 = vmul.f32 %v2523_v6, %v2392_v0 }
 0x631   : > { %v2617_v49 = vadd.f32 %v3102_v54, %v2585_v34 }
 0x632   : > { %v2616_v55 = vadd.f32 %v3101_v48, %v2584_v3 }
 0x633   : > { %v2649_v25 = vpack.c.bf16 %v2617_v49, %v2617_v49 }
 0x634   : > { %v2648_v10 = vpack.c.bf16 %v2616_v55, %v2616_v55 }
 0x635   : > { %2682 = vst.msk [vmem:[%s3506_s6 + $0x64] sm:$0xf] %vm2656_vm5, %v2649_v25 }
 0x636   : > { %2681 = vst.msk [vmem:[%s3506_s6 + $0x60] sm:$0xf] %vm2656_vm5, %v2648_v10  ;;  %v2543_v30 = vpop.permute.xlu1 %2542 }
 0x637   : > { %v2588_v13 = vmul.f32 %v2543_v30, %v2396_v1  ;;  %v2538_v2 = vpop.permute.xlu0 %2537 }
 0x638   : > { %v2587_v29 = vmul.f32 %v2538_v2, %v2395_v40 }
 0x639   : > { %v2620_v37 = vadd.f32 %v3109_v43, %v2588_v13 }
 0x63a   : > { %v2619_v32 = vadd.f32 %v3106_v36, %v2587_v29 }
 0x63b   : > { %v2652_v14 = vpack.c.bf16 %v2620_v37, %v2620_v37 }
 0x63c   : > { %v2651_v23 = vpack.c.bf16 %v2619_v32, %v2619_v32 }
 0x63d   : > { %2685 = vst.msk [vmem:[%s3506_s6 + $0x70] sm:$0xf] %vm2656_vm5, %v2652_v14 }
 0x63e   : > { %2684 = vst.msk [vmem:[%s3506_s6 + $0x6c] sm:$0xf] %vm2656_vm5, %v2651_v23  ;;  %v2558_v57 = vpop.permute.xlu1 %2557 }
 0x63f   : > { %v2591_v28 = vmul.f32 %v2558_v57, %v2399_v45  ;;  %v2553_v16 = vpop.permute.xlu0 %2552 }
 0x640   : > { %v2590_v61 = vmul.f32 %v2553_v16, %v2398_v17 }
 0x641   : > { %v2623_v38 = vadd.f32 %v3114_v46, %v2591_v28 }
 0x642   : > { %v2622_v35 = vadd.f32 %v3113_v7, %v2590_v61 }
 0x643   : > { %v2655_v31 = vpack.c.bf16 %v2623_v38, %v2623_v38 }
 0x644   : > { %v2654_v60 = vpack.c.bf16 %v2622_v35, %v2622_v35 }
 0x645   : > { %2688 = vst.msk [vmem:[%s3506_s6 + $0x7c] sm:$0xf] %vm2656_vm5, %v2655_v31 }
 0x646   : > { %2687 = vst.msk [vmem:[%s3506_s6 + $0x78] sm:$0xf] %vm2656_vm5, %v2654_v60 }
 0x647 PF: > { %s14_s19 = sadd.s32 1, %s3433_s19   ;;  %s5007_s15 = smov %s3425_s17 }
 0x648   : > { %p11_p9 = scmp.ge.s32.totalorder %s14_s19, 6   ;;  %s5008_s16 = smov %s3429_s18 }
 0x649   : > { %s5009_s17 = smov %s5012_s20  ;;  %s5010_s18 = smov %s5016_s21 }
 0x64a   :  { %13 = sbr.rel (!%p11_p9) target bundleno = 3 (0x3), region = 77 }

// kernel: dptn_generator.5
= control target key start
LH: loop header
LB: loop body
LE: loop exit
PB: predicated region body
PF: predicated region fallthrough
CT: control target
= control target key end

     0   :  { %s3042_s12 = smov 0   ;;  %s4159_s0 = inlined_call_operand.vmem [shape: bf16[4,18,18,32], index: 0, kind: input, shape index: {}]   ;;  %s4160_s1 = inlined_call_operand.vmem [shape: bf16[9,32,128], index: 1, kind: input, shape index: {}]   ;;  %s4161_s2 = inlined_call_operand.vmem [shape: f32[1,128], index: 2, kind: input, shape index: {}]   ;;  %s4162_s3 = inlined_call_operand.vmem [shape: f32[4,3,256], index: 3, kind: output, shape index: {}]  }
   0x1 LB: > { %s2540_s13 = sadd.s32 4294967295, %s3020_s12   ;;  %p2544_p0 = scmp.ge.s32.totalorder %s3020_s12, 1  ;;  %s3020_s12 = sphi %s3042_s12, %s13_s12  }
   0x2   : > { %p137_p1 = scmp.lt.s32.totalorder %s3020_s12, 5 }
   0x4   : > { %p138_p2 = pnand %p2544_p0, %p137_p1 }
   0x6   : > { %141 = sbr.rel (%p138_p2) target bundleno = 811 (0x32b), region = 32 }
   0xb   : > { %v2910_v0 = vld [vmem:[%s4160_s1 + $0x18] sm:$0xff]  ;;  %p161_p3 = scmp.lt.s32.totalorder %s2540_s13, 3  ;;  %v2909_v1 = vld [vmem:[%s4160_s1 + $0x10] sm:$0xff]  ;;  %v2912_v2 = vld [vmem:[%s4160_s1 + $0x28] sm:$0xff]  ;;  %vm230_vm0 = vsmask.f32 3328 }
   0xc   : > { %2925 = vmatpush.bf16.msra.mxu1 %v2910_v0  ;;  %2926 = vmatpush.bf16.msra.mxu2 %v2910_v0  ;;  %v2914_v3 = vld [vmem:[%s4160_s1 + $0x38] sm:$0xff]  ;;  %v2908_v4 = vld [vmem:[%s4160_s1 + $0x8] sm:$0xff]  ;;  %vm231_vm1 = vsmask.f32 7440  ;;  %vm682_vm3 = vcmask 261120   ;;  %vm1065_vm4 = vcmask 1042432  }
   0xd   : > { %s4305_s13 = smov (!%p161_p3, %s2540_s13), 3  ;;  %2927 = vmatpush.bf16.msra.mxu3 %v2910_v0  ;;  %737 = vmatpush.bf16.msra.mxu0 %v2910_v0  ;;  %v2916_v5 = vld [vmem:[%s4160_s1 + $0x48] sm:$0xff]  ;;  %vm3097_vm2 = vmor %vm230_vm0, %vm231_vm1  ;;  %vm1066_vm5 = vcmask 1046532   ;;  %vm2481_vm7 = vcmask 1043456  }
   0xe   : > { %s2931_s18 = smul.u32 216, %s4305_s13  ;;  %vm3411_vm6 = vmor %vm1065_vm4, %vm1066_vm5 }
  0x10   : > { %2928 = vmatpush.bf16.msra.mxu1 %v2909_v1  ;;  %2929 = vmatpush.bf16.msra.mxu2 %v2909_v1  ;;  %s3074_s29 = scalar_lea.vmem %s4159_s0, %s2931_s18 }
  0x11   : > { %2930 = vmatpush.bf16.msra.mxu3 %v2909_v1  ;;  %738 = vmatpush.bf16.msra.mxu0 %v2909_v1  ;;  %v3077_v6 = vld [vmem:[%s3074_s29 + $0x30] sm:$0xf]  ;;  %v3080_v7 = vld [vmem:[%s3074_s29 + $0x34] sm:$0xf]  ;;  %v3083_v8 = vld [vmem:[%s3074_s29 + $0x38] sm:$0x1] }
  0x12   : > { %v330_v9 = vshrl.u32 %v3077_v6, 16  ;;  %v333_v10 = vshll.u32 %v3077_v6, 16  ;;  %v339_v11 = vshll.u32 %v3080_v7, 16  ;;  %v343_v12 = vshrl.u32 %v3080_v7, 16  ;;  %v196_v13 = vld [vmem:[%s3074_s29 + $0x60] sm:$0xf] }
  0x13   : > { %v349_v14 = vshll.u32 %v3083_v8, 16  ;;  %v197_v15 = vld [vmem:[%s3074_s29 + $0x64] sm:$0xf]  ;;  %v198_v16 = vld [vmem:[%s3074_s29 + $0x68] sm:$0x1]  ;;  %v426_v17 = vshrl.u32 %v196_v13, 16 }
  0x14   : > { %1299 = vmatpush.bf16.msrb.mxu2 %v2912_v2  ;;  %966 = vmatpush.bf16.msrb.mxu1 %v2908_v4  ;;  %v332_v18 = vrot.slane %v330_v9, 4  ;;  %v335_v19 = vrot.slane %v333_v10, 5  ;;  %v341_v20 = vrot.slane %v339_v11, 5  ;;  %v345_v21 = vrot.slane %v343_v12, 4  ;;  %v208_v22 = vld [vmem:[%s3074_s29 + $0x90] sm:$0xf] }
  0x15   : > { %1445 = vmatpush.bf16.msrb.mxu3 %v2914_v3  ;;  %1613 = vmatpush.bf16.msrb.mxu0 %v2916_v5  ;;  %v351_v23 = vrot.slane %v349_v14, 5  ;;  %v428_v24 = vrot.slane %v426_v17, 4  ;;  %v429_v25 = vshll.u32 %v196_v13, 16  ;;  %v435_v26 = vshll.u32 %v197_v15, 16  ;;  %v209_v31 = vld [vmem:[%s3074_s29 + $0x94] sm:$0xf] }
  0x16   : > { %v336_v27 = vor.u32 %v335_v19, %v332_v18  ;;  %v346_v28 = vor.u32 %v345_v21, %v341_v20  ;;  %v439_v29 = vshrl.u32 %v197_v15, 16  ;;  %v445_v30 = vshll.u32 %v198_v16, 16  ;;  %v210_v41 = vld [vmem:[%s3074_s29 + $0x98] sm:$0x1]  ;;  %v3107_v57 = vld [vmem:[%s3074_s29] sm:$0xf] }
  0x17   : > { %v431_v33 = vrot.slane %v429_v25, 5  ;;  %v437_v34 = vrot.slane %v435_v26, 5  ;;  %v522_v35 = vshrl.u32 %v208_v22, 16  ;;  %v525_v43 = vshll.u32 %v208_v22, 16  ;;  %v3114_v61 = vld [vmem:[%s3074_s29 + $0x4] sm:$0xf] }
  0x18   : > { %v337_v36 = vrot.slane %v336_v27, 4  ;;  %v347_v37 = vrot.slane %v346_v28, 4  ;;  %v441_v38 = vrot.slane %v439_v29, 4  ;;  %v447_v39 = vrot.slane %v445_v30, 5  ;;  %v3117_v62 = vld [vmem:[%s3074_s29 + $0x8] sm:$0x1] }
  0x19   : > { %v432_v40 = vor.u32 %v431_v33, %v428_v24  ;;  %v524_v42 = vrot.slane %v522_v35, 4  ;;  %v531_v44 = vshll.u32 %v209_v31, 16  ;;  %v535_v48 = vshrl.u32 %v209_v31, 16  ;;  %v3133_v18 = vld [vmem:[%s3074_s29 + $0x3c] sm:$0xf] }
  0x1a   : > { %v342_v45 = vsel %vm3097_vm2, %v337_v36, %v341_v20  ;;  %v352_v46 = vsel %vm3097_vm2, %v347_v37, %v351_v23  ;;  %v442_v47 = vor.u32 %v441_v38, %v437_v34  ;;  %v527_v52 = vrot.slane %v525_v43, 5  ;;  %v3136_v19 = vld [vmem:[%s3074_s29 + $0x40] sm:$0xf]  ;;  %v3141_v24 = vld [vmem:[%s3074_s29 + $0x44] sm:$0x1] }
  0x1b   : > { %v630_v49 = vunpack.c.l.b16 %v342_v45  ;;  %v631_v50 = vunpack.c.l.b16 %v352_v46  ;;  %v433_v51 = vrot.slane %v432_v40, 4  ;;  %v533_v54 = vrot.slane %v531_v44, 5  ;;  %v3149_v33 = vld [vmem:[%s3074_s29 + $0x6c] sm:$0xf]  ;;  %v3163_v46 = vld [vmem:[%s3074_s29 + $0x74] sm:$0x1] }
  0x1c   : > { %v443_v53 = vrot.slane %v442_v47, 4  ;;  %v537_v55 = vrot.slane %v535_v48, 4  ;;  %v541_v56 = vshll.u32 %v210_v41, 16  ;;  %v528_v60 = vor.u32 %v527_v52, %v524_v42  ;;  %v3156_v42 = vld [vmem:[%s3074_s29 + $0x70] sm:$0xf] }
  0x1d   : > { %v3109_v58 = vpack.c.b16 %v631_v50, %v630_v49  ;;  %v438_v59 = vsel %vm3097_vm2, %v433_v51, %v437_v34  ;;  %v234_v5 = vshrl.u32 %v3107_v57, 16  ;;  %v237_v9 = vshll.u32 %v3107_v57, 16 }
  0x1e   : > { %v448_v63 = vsel %vm3097_vm2, %v443_v53, %v447_v39  ;;  %v638_v0 = vunpack.c.l.b16 %v438_v59  ;;  %v538_v1 = vor.u32 %v537_v55, %v533_v54  ;;  %v543_v2 = vrot.slane %v541_v56, 5 }
  0x1f   : > { %2564 = vmatmul.msk.bf16.vlgmr.msra.gmra.mxu1 %vm682_vm3, %v3109_v58  ;;  %v639_v3 = vunpack.c.l.b16 %v448_v63  ;;  %v529_v4 = vrot.slane %v528_v60, 4  ;;  %v243_v11 = vshll.u32 %v3114_v61, 16  ;;  %v247_v12 = vshrl.u32 %v3114_v61, 16 }
  0x20   : > { %v539_v10 = vrot.slane %v538_v1, 4  ;;  %v253_v13 = vshll.u32 %v3117_v62, 16  ;;  %v236_v16 = vrot.slane %v234_v5, 4  ;;  %v239_v17 = vrot.slane %v237_v9, 5 }
  0x21   : > { %v3128_v14 = vpack.c.b16 %v639_v3, %v638_v0  ;;  %v534_v15 = vsel %vm3097_vm2, %v529_v4, %v533_v54  ;;  %v245_v22 = vrot.slane %v243_v11, 5  ;;  %v249_v23 = vrot.slane %v247_v12, 4  ;;  %v211_v0 = vld [vmem:[%s3074_s29 + $0x9c] sm:$0xf]  ;;  %v212_v4 = vld [vmem:[%s3074_s29 + $0xa0] sm:$0xf] }
  0x22   : > { %v544_v20 = vsel %vm3097_vm2, %v539_v10, %v543_v2  ;;  %v646_v21 = vunpack.c.l.b16 %v534_v15  ;;  %v240_v26 = vor.u32 %v239_v17, %v236_v16  ;;  %v255_v27 = vrot.slane %v253_v13, 5  ;;  %v213_v12 = vld [vmem:[%s3074_s29 + $0xa4] sm:$0x1] }
  0x23   : > { %4205 = vst [vmem:[#allocation2_spill] sm:$0xff] %v3128_v14  ;;  %2568 = vmatmul.msk.bf16.vlgmr.msra.gmra.mxu2 %vm682_vm3, %v3128_v14  ;;  %v647_v25 = vunpack.c.l.b16 %v544_v20  ;;  %v250_v28 = vor.u32 %v249_v23, %v245_v22  ;;  %v354_v29 = vshrl.u32 %v3133_v18, 16  ;;  %v357_v30 = vshll.u32 %v3133_v18, 16 }
  0x24   : > { %v363_v31 = vshll.u32 %v3136_v19, 16  ;;  %v241_v35 = vrot.slane %v240_v26, 4  ;;  %v367_v36 = vshrl.u32 %v3136_v19, 16  ;;  %v373_v37 = vshll.u32 %v3141_v24, 16 }
  0x25   : > { %v3151_v34 = vpack.c.b16 %v647_v25, %v646_v21  ;;  %v251_v38 = vrot.slane %v250_v28, 4  ;;  %v356_v39 = vrot.slane %v354_v29, 4  ;;  %v359_v40 = vrot.slane %v357_v30, 5  ;;  %v3181_v25 = vld [vmem:[%s3074_s29 + $0xc] sm:$0xf]  ;;  %v2911_v30 = vld [vmem:[%s4160_s1 + $0x20] sm:$0xff] }
  0x26   : > { %v365_v41 = vrot.slane %v363_v31, 5  ;;  %v246_v43 = vsel %vm3097_vm2, %v241_v35, %v245_v22  ;;  %v369_v44 = vrot.slane %v367_v36, 4  ;;  %v375_v45 = vrot.slane %v373_v37, 5  ;;  %1300 = vmatpush.bf16.msrb.mxu2 %v2911_v30 }
  0x27   : > { %4206 = vst [vmem:[#allocation3_spill] sm:$0xff] %v3151_v34  ;;  %2572 = vmatmul.msk.bf16.vlgmr.msra.gmra.mxu3 %vm682_vm3, %v3151_v34  ;;  %v450_v47 = vshrl.u32 %v3149_v33, 16  ;;  %v256_v48 = vsel %vm3097_vm2, %v251_v38, %v255_v27  ;;  %v622_v49 = vunpack.c.l.b16 %v246_v43  ;;  %v360_v50 = vor.u32 %v359_v40, %v356_v39  ;;  %v3191_v38 = vld [vmem:[%s3074_s29 + $0x10] sm:$0xf]  ;;  %v3194_v43 = vld [vmem:[%s3074_s29 + $0x14] sm:$0x1] }
  0x28   : > { %v453_v51 = vshll.u32 %v3149_v33, 16  ;;  %v623_v52 = vunpack.c.l.b16 %v256_v48  ;;  %v370_v53 = vor.u32 %v369_v44, %v365_v41  ;;  %v459_v55 = vshll.u32 %v3156_v42, 16 }
  0x29   : > { %v452_v54 = vrot.slane %v450_v47, 4  ;;  %v361_v56 = vrot.slane %v360_v50, 4  ;;  %v463_v60 = vshrl.u32 %v3156_v42, 16  ;;  %v469_v63 = vshll.u32 %v3163_v46, 16 }
  0x2a   : > { %v455_v59 = vrot.slane %v453_v51, 5  ;;  %v654_v1 = vpack.c.b16 %v623_v52, %v622_v49  ;;  %v371_v2 = vrot.slane %v370_v53, 4  ;;  %v461_v3 = vrot.slane %v459_v55, 5  ;;  %v3204_v53 = vld [vmem:[%s3074_s29 + $0x48] sm:$0xf] }
  0x2b   : > { %v366_v5 = vsel %vm3097_vm2, %v361_v56, %v365_v41  ;;  %v465_v10 = vrot.slane %v463_v60, 4  ;;  %v471_v11 = vrot.slane %v469_v63, 5  ;;  %v546_v16 = vshrl.u32 %v211_v0, 16  ;;  %v2913_v63 = vld [vmem:[%s4160_s1 + $0x30] sm:$0xff] }
  0x2c   : > { %v456_v9 = vor.u32 %v455_v59, %v452_v54  ;;  %2560 = vmatmul.msk.bf16.vlgmr.msra.gmra.mxu0 %vm682_vm3, %v654_v1  ;;  %v376_v13 = vsel %vm3097_vm2, %v371_v2, %v375_v45  ;;  %v632_v15 = vunpack.c.l.b16 %v366_v5  ;;  %v549_v17 = vshll.u32 %v211_v0, 16  ;;  %v3207_v54 = vld [vmem:[%s3074_s29 + $0x4c] sm:$0xf]  ;;  %v2907_v0 = vld [vmem:[%s4160_s1] sm:$0xff]  ;;  %1446 = vmatpush.bf16.msrb.mxu3 %v2913_v63 }
  0x2d   : > { %v633_v20 = vunpack.c.l.b16 %v376_v13  ;;  %v466_v22 = vor.u32 %v465_v10, %v461_v3  ;;  %v555_v23 = vshll.u32 %v212_v4, 16  ;;  %v548_v26 = vrot.slane %v546_v16, 4  ;;  %v2915_v5 = vld [vmem:[%s4160_s1 + $0x40] sm:$0xff]  ;;  %v3225_v13 = vld [vmem:[%s3074_s29 + $0x50] sm:$0x1]  ;;  %967 = vmatpush.bf16.msrb.mxu1 %v2907_v0 }
  0x2e   : > { %v457_v21 = vrot.slane %v456_v9, 4  ;;  %v551_v27 = vrot.slane %v549_v17, 5  ;;  %v559_v28 = vshrl.u32 %v212_v4, 16  ;;  %v565_v29 = vshll.u32 %v213_v12, 16  ;;  %1614 = vmatpush.bf16.msrb.mxu0 %v2915_v5  ;;  %v3259_v5 = vld [vmem:[%s3074_s29 + $0xa8] sm:$0xf] }
  0x2f   : > { %v3186_v31 = vpack.c.b16 %v633_v20, %v632_v15  ;;  %v467_v36 = vrot.slane %v466_v22, 4  ;;  %v557_v37 = vrot.slane %v555_v23, 5  ;;  %v258_v47 = vshrl.u32 %v3181_v25, 16  ;;  %4208 = vst [vmem:[#allocation5_spill] sm:$0xff] %v3259_v5 }
  0x30   : > { %v462_v35 = vsel %vm3097_vm2, %v457_v21, %v461_v3  ;;  %v552_v40 = vor.u32 %v551_v27, %v548_v26  ;;  %v561_v41 = vrot.slane %v559_v28, 4  ;;  %v567_v45 = vrot.slane %v565_v29, 5  ;;  %v3236_v27 = vld [vmem:[%s3074_s29 + $0x78] sm:$0xf] }
  0x31   : > { %v640_v39 = vunpack.c.l.b16 %v462_v35  ;;  %2565 = vmatmul.msk.bf16.gmra.mxu1 %vm682_vm3, %v3186_v31  ;;  %v472_v44 = vsel %vm3097_vm2, %v467_v36, %v471_v11  ;;  %v261_v48 = vshll.u32 %v3181_v25, 16  ;;  %v267_v52 = vshll.u32 %v3191_v38, 16  ;;  %v3240_v36 = vld [vmem:[%s3074_s29 + $0x7c] sm:$0xf] }
  0x32   : > { %v641_v49 = vunpack.c.l.b16 %v472_v44  ;;  %v553_v50 = vrot.slane %v552_v40, 4  ;;  %v562_v51 = vor.u32 %v561_v41, %v557_v37  ;;  %v260_v55 = vrot.slane %v258_v47, 4 }
  0x33   : > { %v263_v56 = vrot.slane %v261_v48, 5  ;;  %v271_v59 = vshrl.u32 %v3191_v38, 16  ;;  %v277_v60 = vshll.u32 %v3194_v43, 16  ;;  %v269_v4 = vrot.slane %v267_v52, 5  ;;  %v3247_v48 = vld [vmem:[%s3074_s29 + $0x80] sm:$0x1] }
  0x34   : > { %v3217_v1 = vpack.c.b16 %v641_v49, %v640_v39  ;;  %v558_v2 = vsel %vm3097_vm2, %v553_v50, %v557_v37  ;;  %v563_v3 = vrot.slane %v562_v51, 4  ;;  %v378_v16 = vshrl.u32 %v3204_v53, 16 }
  0x35   : > { %v648_v9 = vunpack.c.l.b16 %v558_v2  ;;  %v264_v10 = vor.u32 %v263_v56, %v260_v55  ;;  %v273_v11 = vrot.slane %v271_v59, 4  ;;  %v279_v12 = vrot.slane %v277_v60, 5 }
  0x36   : > { %2569 = vmatmul.msk.bf16.gmra.mxu2 %vm682_vm3, %v3217_v1  ;;  %v568_v15 = vsel %vm3097_vm2, %v563_v3, %v567_v45  ;;  %v381_v17 = vshll.u32 %v3204_v53, 16  ;;  %v387_v20 = vshll.u32 %v3207_v54, 16  ;;  %v391_v26 = vshrl.u32 %v3207_v54, 16 }
  0x37   : > { %v649_v21 = vunpack.c.l.b16 %v568_v15  ;;  %v265_v22 = vrot.slane %v264_v10, 4  ;;  %v274_v23 = vor.u32 %v273_v11, %v269_v4  ;;  %v380_v28 = vrot.slane %v378_v16, 4  ;;  %v3269_v15 = vld [vmem:[%s3074_s29 + $0xb0] sm:$0x1] }
  0x38   : > { %v383_v29 = vrot.slane %v381_v17, 5  ;;  %v389_v30 = vrot.slane %v387_v20, 5  ;;  %v397_v35 = vshll.u32 %v3225_v13, 16  ;;  %v393_v41 = vrot.slane %v391_v26, 4  ;;  %4210 = vst [vmem:[#allocation7_spill] sm:$0xff] %v3269_v15 }
  0x39   : > { %v3242_v37 = vpack.c.b16 %v649_v21, %v648_v9  ;;  %v270_v39 = vsel %vm3097_vm2, %v265_v22, %v269_v4  ;;  %v275_v40 = vrot.slane %v274_v23, 4  ;;  %v474_v49 = vshrl.u32 %v3236_v27, 16 }
  0x3a   : > { %v624_v44 = vunpack.c.l.b16 %v270_v39  ;;  %v384_v45 = vor.u32 %v383_v29, %v380_v28  ;;  %v399_v47 = vrot.slane %v397_v35, 5  ;;  %v394_v51 = vor.u32 %v393_v41, %v389_v30 }
  0x3b   : > { %4207 = vst [vmem:[#allocation4_spill] sm:$0xff] %v3242_v37  ;;  %2573 = vmatmul.msk.bf16.gmra.mxu3 %vm682_vm3, %v3242_v37  ;;  %v280_v50 = vsel %vm3097_vm2, %v275_v40, %v279_v12  ;;  %v477_v52 = vshll.u32 %v3236_v27, 16  ;;  %v483_v55 = vshll.u32 %v3240_v36, 16  ;;  %v476_v60 = vrot.slane %v474_v49, 4  ;;  %v3266_v12 = vld [vmem:[%s3074_s29 + $0xac] sm:$0xf] }
  0x3c   : > { %v625_v56 = vunpack.c.l.b16 %v280_v50  ;;  %v385_v59 = vrot.slane %v384_v45, 4  ;;  %v487_v63 = vshrl.u32 %v3240_v36, 16  ;;  %v395_v0 = vrot.slane %v394_v51, 4  ;;  %4209 = vst [vmem:[#allocation6_spill] sm:$0xff] %v3266_v12 }
  0x3d   : > { %v479_v2 = vrot.slane %v477_v52, 5  ;;  %v485_v3 = vrot.slane %v483_v55, 5  ;;  %v493_v4 = vshll.u32 %v3247_v48, 16  ;;  %v570_v26 = vshrl.u32 %v3259_v5, 16  ;;  %v3288_v52 = vld [vmem:[%s3074_s29 + $0x1c] sm:$0xf] }
  0x3e   : > { %v3261_v9 = vpack.c.b16 %v625_v56, %v624_v44  ;;  %v390_v10 = vsel %vm3097_vm2, %v385_v59, %v389_v30  ;;  %v489_v11 = vrot.slane %v487_v63, 4  ;;  %v400_v16 = vsel %vm3097_vm2, %v395_v0, %v399_v47  ;;  %v3283_v47 = vld [vmem:[%s3074_s29 + $0x18] sm:$0xf]  ;;  %v3291_v55 = vld [vmem:[%s3074_s29 + $0x20] sm:$0x1] }
  0x3f   : > { %v634_v17 = vunpack.c.l.b16 %v390_v10  ;;  %v480_v20 = vor.u32 %v479_v2, %v476_v60  ;;  %v495_v21 = vrot.slane %v493_v4, 5  ;;  %v635_v22 = vunpack.c.l.b16 %v400_v16 }
  0x40   : > { %2561 = vmatmul.msk.bf16.gmra.mxu0 %vm682_vm3, %v3261_v9  ;;  %v490_v23 = vor.u32 %v489_v11, %v485_v3  ;;  %v573_v28 = vshll.u32 %v3259_v5, 16  ;;  %v579_v30 = vshll.u32 %v3266_v12, 16  ;;  %v583_v35 = vshrl.u32 %v3266_v12, 16  ;;  %v3347_v5 = vld [vmem:[%s3074_s29 + $0xb4] sm:$0xf] }
  0x41   : > { %v481_v29 = vrot.slane %v480_v20, 4  ;;  %v589_v39 = vshll.u32 %v3269_v15, 16  ;;  %v3280_v40 = vpack.c.b16 %v635_v22, %v634_v17  ;;  %v572_v44 = vrot.slane %v570_v26, 4  ;;  %v3303_v20 = vld [vmem:[%s3074_s29 + $0x54] sm:$0xf]  ;;  %4216 = vst [vmem:[#allocation13_spill] sm:$0xff] %v3347_v5 }
  0x42   : > { %v491_v41 = vrot.slane %v490_v23, 4  ;;  %v575_v45 = vrot.slane %v573_v28, 5  ;;  %v581_v50 = vrot.slane %v579_v30, 5  ;;  %v585_v51 = vrot.slane %v583_v35, 4  ;;  %v3308_v28 = vld [vmem:[%s3074_s29 + $0x58] sm:$0xf] }
  0x43   : > { %4211 = vst [vmem:[#allocation8_spill] sm:$0xff] %v3280_v40  ;;  %v486_v49 = vsel %vm3097_vm2, %v481_v29, %v485_v3  ;;  %2566 = vmatmul.msk.bf16.gmra.mxu1 %vm682_vm3, %v3280_v40  ;;  %v591_v63 = vrot.slane %v589_v39, 5  ;;  %v282_v3 = vshrl.u32 %v3283_v47, 16  ;;  %v285_v4 = vshll.u32 %v3283_v47, 16 }
  0x44   : > { %v496_v56 = vsel %vm3097_vm2, %v491_v41, %v495_v21  ;;  %v642_v59 = vunpack.c.l.b16 %v486_v49  ;;  %v576_v60 = vor.u32 %v575_v45, %v572_v44  ;;  %v586_v2 = vor.u32 %v585_v51, %v581_v50  ;;  %v3313_v41 = vld [vmem:[%s3074_s29 + $0x5c] sm:$0x1] }
  0x45   : > { %v643_v0 = vunpack.c.l.b16 %v496_v56  ;;  %v291_v11 = vshll.u32 %v3288_v52, 16  ;;  %v295_v16 = vshrl.u32 %v3288_v52, 16  ;;  %v301_v17 = vshll.u32 %v3291_v55, 16 }
  0x46   : > { %v577_v10 = vrot.slane %v576_v60, 4  ;;  %v587_v22 = vrot.slane %v586_v2, 4  ;;  %v284_v23 = vrot.slane %v282_v3, 4  ;;  %v287_v26 = vrot.slane %v285_v4, 5 }
  0x47   : > { %v3305_v21 = vpack.c.b16 %v643_v0, %v642_v59  ;;  %v293_v30 = vrot.slane %v291_v11, 5  ;;  %v297_v35 = vrot.slane %v295_v16, 4  ;;  %v303_v39 = vrot.slane %v301_v17, 5  ;;  %v3323_v0 = vld [vmem:[%s3074_s29 + $0x84] sm:$0xf] }
  0x48   : > { %v582_v29 = vsel %vm3097_vm2, %v577_v10, %v581_v50  ;;  %v592_v44 = vsel %vm3097_vm2, %v587_v22, %v591_v63  ;;  %v288_v49 = vor.u32 %v287_v26, %v284_v23  ;;  %v402_v51 = vshrl.u32 %v3303_v20, 16  ;;  %4212 = vst [vmem:[#allocation9_spill] sm:$0xff] %v3323_v0  ;;  %v3330_v22 = vld [vmem:[%s3074_s29 + $0x88] sm:$0xf] }
  0x49   : > { %2570 = vmatmul.msk.bf16.gmra.mxu2 %vm682_vm3, %v3305_v21  ;;  %v650_v45 = vunpack.c.l.b16 %v582_v29  ;;  %v651_v56 = vunpack.c.l.b16 %v592_v44  ;;  %v298_v59 = vor.u32 %v297_v35, %v293_v30  ;;  %v405_v50 = vshll.u32 %v3303_v20, 16  ;;  %4214 = vst [vmem:[#allocation11_spill] sm:$0xff] %v3330_v22  ;;  %v3335_v35 = vld [vmem:[%s3074_s29 + $0x8c] sm:$0x1] }
  0x4a   : > { %v411_v60 = vshll.u32 %v3308_v28, 16  ;;  %v289_v2 = vrot.slane %v288_v49, 4  ;;  %v404_v3 = vrot.slane %v402_v51, 4  ;;  %v415_v4 = vshrl.u32 %v3308_v28, 16  ;;  %4215 = vst [vmem:[#allocation12_spill] sm:$0xff] %v3335_v35 }
  0x4b   : > { %v421_v63 = vshll.u32 %v3313_v41, 16  ;;  %v3327_v10 = vpack.c.b16 %v651_v56, %v650_v45  ;;  %v299_v11 = vrot.slane %v298_v59, 4  ;;  %v407_v16 = vrot.slane %v405_v50, 5 }
  0x4c   : > { %v413_v17 = vrot.slane %v411_v60, 5  ;;  %v294_v23 = vsel %vm3097_vm2, %v289_v2, %v293_v30  ;;  %v417_v26 = vrot.slane %v415_v4, 4  ;;  %v498_v44 = vshrl.u32 %v3323_v0, 16 }
  0x4d   : > { %4213 = vst [vmem:[#allocation10_spill] sm:$0xff] %v3327_v10  ;;  %v423_v29 = vrot.slane %v421_v63, 5  ;;  %2574 = vmatmul.msk.bf16.gmra.mxu3 %vm682_vm3, %v3327_v10  ;;  %v304_v45 = vsel %vm3097_vm2, %v299_v11, %v303_v39  ;;  %v626_v49 = vunpack.c.l.b16 %v294_v23  ;;  %v408_v51 = vor.u32 %v407_v16, %v404_v3  ;;  %v3352_v16 = vld [vmem:[%s3074_s29 + $0xb8] sm:$0xf] }
  0x4e   : > { %v501_v56 = vshll.u32 %v3323_v0, 16  ;;  %v627_v59 = vunpack.c.l.b16 %v304_v45  ;;  %v418_v30 = vor.u32 %v417_v26, %v413_v17  ;;  %v500_v50 = vrot.slane %v498_v44, 4  ;;  %4217 = vst [vmem:[#allocation14_spill] sm:$0xff] %v3352_v16 }
  0x4f   : > { %v507_v60 = vshll.u32 %v3330_v22, 16  ;;  %v409_v2 = vrot.slane %v408_v51, 4  ;;  %v511_v63 = vshrl.u32 %v3330_v22, 16  ;;  %v517_v10 = vshll.u32 %v3335_v35, 16  ;;  %v3357_v51 = vld [vmem:[%s3074_s29 + $0xbc] sm:$0x1] }
  0x50   : > { %v503_v4 = vrot.slane %v501_v56, 5  ;;  %v3349_v39 = vpack.c.b16 %v627_v59, %v626_v49  ;;  %v419_v11 = vrot.slane %v418_v30, 4  ;;  %4218 = vst [vmem:[#allocation15_spill] sm:$0xff] %v3357_v51  ;;  %v2920_v56 = vld [vmem:[%s4160_s1 + $0x68] sm:$0xff]  ;;  %v594_v30 = vshrl.u32 %v3347_v5, 16 }
  0x51   : > { %v509_v3 = vrot.slane %v507_v60, 5  ;;  %v414_v23 = vsel %vm3097_vm2, %v409_v2, %v413_v17  ;;  %v513_v44 = vrot.slane %v511_v63, 4  ;;  %v519_v45 = vrot.slane %v517_v10, 5  ;;  %1911 = vmatpush.bf16.msra.mxu2 %v2920_v56 }
  0x52   : > { %v504_v26 = vor.u32 %v503_v4, %v500_v50  ;;  %2562 = vmatmul.msk.bf16.gmra.mxu0 %vm682_vm3, %v3349_v39  ;;  %v424_v49 = vsel %vm3097_vm2, %v419_v11, %v423_v29  ;;  %v636_v59 = vunpack.c.l.b16 %v414_v23  ;;  %v597_v17 = vshll.u32 %v3347_v5, 16  ;;  %v3372_v29 = vld [vmem:[%s3074_s29 + $0x24] sm:$0xf] }
  0x53   : > { %v637_v10 = vunpack.c.l.b16 %v424_v49  ;;  %v514_v60 = vor.u32 %v513_v44, %v509_v3  ;;  %v603_v2 = vshll.u32 %v3352_v16, 16  ;;  %v596_v4 = vrot.slane %v594_v30, 4  ;;  %v3382_v44 = vld [vmem:[%s3074_s29 + $0x2c] sm:$0x1] }
  0x54   : > { %v505_v50 = vrot.slane %v504_v26, 4  ;;  %v599_v63 = vrot.slane %v597_v17, 5  ;;  %v607_v15 = vshrl.u32 %v3352_v16, 16  ;;  %v613_v12 = vshll.u32 %v3357_v51, 16  ;;  %v3379_v26 = vld [vmem:[%s3074_s29 + $0x28] sm:$0xf] }
  0x55   : > { %v3374_v11 = vpack.c.b16 %v637_v10, %v636_v59  ;;  %v515_v5 = vrot.slane %v514_v60, 4  ;;  %v605_v49 = vrot.slane %v603_v2, 5  ;;  %v2922_v51 = vld [vmem:[%s4160_s1 + $0x78] sm:$0xff]  ;;  %v309_v60 = vshll.u32 %v3372_v29, 16 }
  0x56   : > { %v510_v23 = vsel %vm3097_vm2, %v505_v50, %v509_v3  ;;  %v600_v30 = vor.u32 %v599_v63, %v596_v4  ;;  %v609_v17 = vrot.slane %v607_v15, 4  ;;  %v2918_v59 = vld [vmem:[%s4160_s1 + $0x58] sm:$0xff]  ;;  %v2924_v3 = vld [vmem:[%s4160_s1 + $0x88] sm:$0xff]  ;;  %v615_v50 = vrot.slane %v613_v12, 5  ;;  %2079 = vmatpush.bf16.msra.mxu3 %v2922_v51 }
  0x57   : > { %4219 = vst [vmem:[#allocation16_spill] sm:$0xff] %v3374_v11  ;;  %v644_v56 = vunpack.c.l.b16 %v510_v23  ;;  %2567 = vmatmul.msk.bf16.gmra.mxu1 %vm682_vm3, %v3374_v11  ;;  %v520_v10 = vsel %vm3097_vm2, %v515_v5, %v519_v45  ;;  %v306_v15 = vshrl.u32 %v3372_v29, 16  ;;  %v315_v23 = vshll.u32 %v3379_v26, 16  ;;  %2231 = vmatpush.bf16.msra.mxu0 %v2924_v3 }
  0x58   : > { %v645_v2 = vunpack.c.l.b16 %v520_v10  ;;  %v601_v4 = vrot.slane %v600_v30, 4  ;;  %v610_v63 = vor.u32 %v609_v17, %v605_v49  ;;  %1765 = vmatpush.bf16.msra.mxu1 %v2918_v59  ;;  %v311_v37 = vrot.slane %v309_v60, 5 }
  0x59   : > { %v308_v16 = vrot.slane %v306_v15, 4  ;;  %v319_v34 = vshrl.u32 %v3379_v26, 16  ;;  %v325_v0 = vshll.u32 %v3382_v44, 16  ;;  %v317_v10 = vrot.slane %v315_v23, 5 }
  0x5a   : > { %v3402_v5 = vpack.c.b16 %v645_v2, %v644_v56  ;;  %v606_v12 = vsel %vm3097_vm2, %v601_v4, %v605_v49  ;;  %v611_v45 = vrot.slane %v610_v63, 4  ;;  %v2664_v56 = vrot.slane %v3107_v57, 9 }
  0x5b   : > { %v652_v30 = vunpack.c.l.b16 %v606_v12  ;;  %v312_v17 = vor.u32 %v311_v37, %v308_v16  ;;  %v321_v35 = vrot.slane %v319_v34, 4  ;;  %v327_v22 = vrot.slane %v325_v0, 5 }
  0x5c   : > { %4220 = vst [vmem:[#allocation17_spill] sm:$0xff] %v3402_v5  ;;  %2571 = vmatmul.msk.bf16.gmra.mxu2 %vm682_vm3, %v3402_v5  ;;  %v616_v51 = vsel %vm3097_vm2, %v611_v45, %v615_v50  ;;  %v1070_v34 = vrot.slane %v3114_v61, 5  ;;  %v1073_v37 = vrot.slane %v3117_v62, 5  ;;  %v2665_v0 = vrot.slane %v3181_v25, 9  ;;  %v2889_v45 = vld [vmem:[%s3074_s29] sm:$0xff] }
  0x5d   : > { %v653_v59 = vunpack.c.l.b16 %v616_v51  ;;  %v313_v3 = vrot.slane %v312_v17, 4  ;;  %v322_v15 = vor.u32 %v321_v35, %v317_v10  ;;  %v1077_v16 = vrot.slane %v3191_v38, 5 }
  0x5e   : > { %v1080_v50 = vrot.slane %v3194_v43, 5  ;;  %v1071_v2 = vsel %vm3411_vm6, %v2664_v56, %v1070_v34  ;;  %v1072_v61 = vrot.slane %v1070_v34, 4  ;;  %v2666_v34 = vrot.slane %v3283_v47, 9 }
  0x5f   : > { %v3420_v60 = vpack.c.b16 %v653_v59, %v652_v30  ;;  %v318_v57 = vsel %vm3097_vm2, %v313_v3, %v317_v10  ;;  %v323_v35 = vrot.slane %v322_v15, 4  ;;  %v1078_v62 = vsel %vm3411_vm6, %v2665_v0, %v1077_v16  ;;  %v2890_v59 = vld [vmem:[%s3074_s29 + $0xc] sm:$0xff]  ;;  %v3454_v15 = vld [vmem:[%s3074_s29 + $0x18] sm:$0xff] }
  0x60   : > { %v628_v4 = vunpack.c.l.b16 %v318_v57  ;;  %v1185_v38 = vunpack.c.l.b16 %v1071_v2  ;;  %v1079_v43 = vrot.slane %v1077_v16, 4  ;;  %v1074_v23 = vsel %vm3411_vm6, %v1072_v61, %v1073_v37  ;;  %v3474_v57 = vld [vmem:[%s3074_s29 + $0x24] sm:$0xff] }
  0x61   : > { %2575 = vmatmul.msk.bf16.gmra.mxu3 %vm682_vm3, %v3420_v60  ;;  %v328_v25 = vsel %vm3097_vm2, %v323_v35, %v327_v22  ;;  %v1187_v12 = vunpack.c.l.b16 %v1078_v62  ;;  %v1186_v10 = vunpack.c.l.b16 %v1074_v23  ;;  %v1084_v3 = vrot.slane %v3288_v52, 5 }
  0x62   : > { %v629_v63 = vunpack.c.l.b16 %v328_v25  ;;  %v1081_v30 = vsel %vm3411_vm6, %v1079_v43, %v1080_v50  ;;  %v1087_v0 = vrot.slane %v3291_v55, 5  ;;  %v1091_v55 = vrot.slane %v3379_v26, 5  ;;  %v3496_v43 = vld [vmem:[%s3074_s29 + $0x30] sm:$0xff] }
  0x63   : > { %v1188_v51 = vunpack.c.l.b16 %v1081_v30  ;;  %v1217_v56 = vpack.c.b16 %v1186_v10, %v1185_v38  ;;  %v1086_v37 = vrot.slane %v1084_v3, 4  ;;  %v2667_v35 = vrot.slane %v3372_v29, 9 }
  0x64   : > { %v3437_v17 = vpack.c.b16 %v629_v63, %v628_v4  ;;  %v1093_v2 = vrot.slane %v1091_v55, 4  ;;  %v1094_v4 = vrot.slane %v3382_v44, 5  ;;  %v1098_v44 = vrot.slane %v3080_v7, 5 }
  0x65   : > { %v3441_v22 = vpack.c.b16 %v1188_v51, %v1187_v12  ;;  %v1088_v52 = vsel %vm3411_vm6, %v1086_v37, %v1087_v0  ;;  %v1092_v61 = vsel %vm3411_vm6, %v2667_v35, %v1091_v55  ;;  %v2668_v63 = vrot.slane %v3077_v6, 9 }
  0x66   : > { %2563 = vmatmul.msk.bf16.gmra.mxu0 %vm682_vm3, %v3437_v17  ;;  %v1190_v50 = vunpack.c.l.b16 %v1088_v52  ;;  %v1095_v26 = vsel %vm3411_vm6, %v1093_v2, %v1094_v4  ;;  %v1191_v62 = vunpack.c.l.b16 %v1092_v61  ;;  %v1100_v23 = vrot.slane %v1098_v44, 4 }
  0x67   : > { %2648 = vmatmul.msk.bf16.vlgmr.msrb.gmra.mxu1 %vm682_vm3, %v2889_v45  ;;  %v1192_v25 = vunpack.c.l.b16 %v1095_v26  ;;  %v1101_v12 = vrot.slane %v3083_v8, 5  ;;  %v1099_v45 = vsel %vm3411_vm6, %v2668_v63, %v1098_v44  ;;  %v2669_v0 = vrot.slane %v3133_v18, 9 }
  0x68   : > { %v1193_v30 = vunpack.c.l.b16 %v1099_v45  ;;  %v1108_v52 = vrot.slane %v3141_v24, 5  ;;  %v1112_v26 = vrot.slane %v3207_v54, 5  ;;  %v2670_v63 = vrot.slane %v3204_v53, 9 }
  0x69   : > { %v3488_v29 = vpack.c.b16 %v1192_v25, %v1191_v62  ;;  %v1102_v7 = vsel %vm3411_vm6, %v1100_v23, %v1101_v12  ;;  %v3558_v25 = vld [vmem:[%s3074_s29 + $0x48] sm:$0xff]  ;;  %v1115_v12 = vrot.slane %v3225_v13, 5 }
  0x6a   : > { %v1194_v51 = vunpack.c.l.b16 %v1102_v7  ;;  %v1114_v23 = vrot.slane %v1112_v26, 4  ;;  %v1113_v7 = vsel %vm3411_vm6, %v2670_v63, %v1112_v26  ;;  %v1122_v26 = vrot.slane %v3313_v41, 5 }
  0x6c   : > { %2692 = vmatmul.msk.bf16.vlgmr.msrb.gmra.mxu2 %vm682_vm3, %v1217_v56  ;;  %v3516_v8 = vpack.c.b16 %v1194_v51, %v1193_v30  ;;  %v1116_v30 = vsel %vm3411_vm6, %v1114_v23, %v1115_v12  ;;  %v1197_v51 = vunpack.c.l.b16 %v1113_v7 }
  0x71   : > { %2724 = vmatmul.msk.bf16.vlgmr.msrb.gmra.mxu3 %vm682_vm3, %v2890_v59 }
  0x76   : > { %2752 = vmatmul.msk.bf16.vlgmr.msrb.gmra.mxu0 %vm682_vm3, %v3261_v9  ;;  %v1085_v9 = vsel %vm3411_vm6, %v2666_v34, %v1084_v3  ;;  %v1105_v3 = vrot.slane %v3136_v19, 5  ;;  %v3524_v34 = vld [vmem:[%s3074_s29 + $0x3c] sm:$0xff] }
  0x77   : > { %2649 = vmatmul.msk.bf16.gmra.mxu1 %vm682_vm3, %v2890_v59  ;;  %v1189_v16 = vunpack.c.l.b16 %v1085_v9 }
  0x78   : > { %v1107_v9 = vrot.slane %v1105_v3, 4  ;;  %v1106_v19 = vsel %vm3411_vm6, %v2669_v0, %v1105_v3  ;;  %v1198_v3 = vunpack.c.l.b16 %v1116_v30 }
  0x79   : > { %v3468_v47 = vpack.c.b16 %v1190_v50, %v1189_v16  ;;  %v1195_v18 = vunpack.c.l.b16 %v1106_v19 }
  0x7a   : > { %v1109_v50 = vsel %vm3411_vm6, %v1107_v9, %v1108_v52  ;;  %v3582_v0 = vpack.c.b16 %v1198_v3, %v1197_v51  ;;  %v1119_v9 = vrot.slane %v3308_v28, 5  ;;  %v2921_v3 = vld [vmem:[%s4160_s1 + $0x70] sm:$0xff] }
  0x7b   : > { %v1196_v2 = vunpack.c.l.b16 %v1109_v50  ;;  %v3592_v50 = vld [vmem:[%s3074_s29 + $0x54] sm:$0xff]  ;;  %2080 = vmatpush.bf16.msra.mxu3 %v2921_v3  ;;  %v3007_v3 = vld [vmem:[%s3074_s29 + $0x60] sm:$0xf] }
  0x7c   : > { %2693 = vmatmul.msk.bf16.gmra.mxu2 %vm682_vm3, %v3441_v22  ;;  %4227 = vst [vmem:[#allocation22_spill] sm:$0xff] %v3582_v0 }
  0x7d   : > { %v3548_v4 = vpack.c.b16 %v1196_v2, %v1195_v18  ;;  %4228 = vst [vmem:[#allocation23_spill] sm:$0xff] %v3592_v50  ;;  %v2671_v18 = vrot.slane %v3303_v20, 9  ;;  %v1121_v2 = vrot.slane %v1119_v9, 4  ;;  %v2919_v20 = vld [vmem:[%s4160_s1 + $0x60] sm:$0xff] }
  0x7e   : > { %1912 = vmatpush.bf16.msra.mxu2 %v2919_v20  ;;  %v2923_v20 = vld [vmem:[%s4160_s1 + $0x80] sm:$0xff] }
  0x7f   : > { %v1120_v28 = vsel %vm3411_vm6, %v2671_v18, %v1119_v9  ;;  %v1123_v12 = vsel %vm3411_vm6, %v1121_v2, %v1122_v26  ;;  %v2917_v9 = vld [vmem:[%s4160_s1 + $0x50] sm:$0xff]  ;;  %v3005_v26 = vld [vmem:[%s3074_s29 + $0x64] sm:$0xf]  ;;  %2232 = vmatpush.bf16.msra.mxu0 %v2923_v20 }
  0x80   : > { %v1199_v41 = vunpack.c.l.b16 %v1120_v28  ;;  %v1200_v30 = vunpack.c.l.b16 %v1123_v12  ;;  %1766 = vmatpush.bf16.msra.mxu1 %v2917_v9  ;;  %v1126_v28 = vrot.slane %v3005_v26, 5  ;;  %v2672_v9 = vrot.slane %v3007_v3, 9 }
  0x81   : > { %2725 = vmatmul.msk.bf16.gmra.mxu3 %vm682_vm3, %v3454_v15 }
  0x82   : > { %v3623_v18 = vpack.c.b16 %v1200_v30, %v1199_v41  ;;  %v3639_v30 = vld [vmem:[%s3074_s29 + $0x60] sm:$0xff] }
  0x83   : > { %4232 = vst [vmem:[#allocation27_spill] sm:$0xff] %v3639_v30 }
  0x84   : > { %4230 = vst [vmem:[#allocation25_spill] sm:$0xff] %v3623_v18 }
  0x86   : > { %2753 = vmatmul.msk.bf16.gmra.mxu0 %vm682_vm3, %v3349_v39 }
  0x87   : > { %2650 = vmatmul.msk.bf16.gmra.mxu1 %vm682_vm3, %v3454_v15 }
  0x8c   : > { %2694 = vmatmul.msk.bf16.gmra.mxu2 %vm682_vm3, %v3468_v47 }
  0x91   : > { %2726 = vmatmul.msk.bf16.gmra.mxu3 %vm682_vm3, %v3474_v57 }
  0x96   : > { %2754 = vmatmul.msk.bf16.gmra.mxu0 %vm682_vm3, %v3437_v17 }
  0x97   : > { %2651 = vmatmul.msk.bf16.gmra.mxu1 %vm682_vm3, %v3474_v57 }
  0x9c   : > { %v3491_v38 = vpop.f32.mrf.mxu1  ;;  %2695 = vmatmul.msk.bf16.gmra.mxu2 %vm682_vm3, %v3488_v29 }
  0xa1   : > { %2727 = vmatmul.msk.bf16.gmra.mxu3 %vm682_vm3, %v3496_v43 }
  0xa4   : > { %v3506_v10 = vpop.f32.mrf.mxu1 }
  0xa6   : > { %v3508_v56 = vpop.f32.mrf.mxu2  ;;  %2755 = vmatmul.msk.bf16.gmra.mxu0 %vm682_vm3, %v3109_v58 }
  0xa7   : > { %2652 = vmatmul.msk.bf16.gmra.mxu1 %vm682_vm3, %v3496_v43 }
  0xa9   : > { %v3514_v6 = vpop.f32.mrf.mxu0 }
  0xaa   : > { %v3518_v59 = vpop.f32.mrf.mxu3 }
  0xab   : > { %4223 = vst [vmem:[#allocation18_spill] sm:$0xff] %v3518_v59 }
  0xac   : > { %2696 = vmatmul.msk.bf16.gmra.mxu2 %vm682_vm3, %v3516_v8 }
  0xae   : > { %v3526_v37 = vpop.f32.mrf.mxu1  ;;  %v3530_v16 = vpop.f32.mrf.mxu2 }
  0xb1   : > { %2728 = vmatmul.msk.bf16.gmra.mxu3 %vm682_vm3, %v3524_v34  ;;  %v3538_v55 = vpop.f32.mrf.mxu0 }
  0xb2   : > { %v3540_v35 = vpop.f32.mrf.mxu3 }
  0xb3   : > { %4224 = vst [vmem:[#allocation19_spill] sm:$0xff] %v3540_v35 }
  0xb6   : > { %2756 = vmatmul.msk.bf16.gmra.mxu0 %vm682_vm3, %v3186_v31  ;;  %v3544_v24 = vpop.f32.mrf.mxu1 }
  0xb7   : > { %2653 = vmatmul.msk.bf16.gmra.mxu1 %vm682_vm3, %v3524_v34 }
  0xb9   : > { %v3550_v61 = vpop.f32.mrf.mxu2 }
  0xbc   : > { %2697 = vmatmul.msk.bf16.gmra.mxu2 %vm682_vm3, %v3548_v4 }
  0xbd   : > { %v3553_v62 = vpop.f32.mrf.mxu0 }
  0xbe   : > { %v3560_v44 = vpop.f32.mrf.mxu3 }
  0xbf   : > { %4225 = vst [vmem:[#allocation20_spill] sm:$0xff] %v3560_v44 }
  0xc0   : > { %v3564_v45 = vpop.f32.mrf.mxu1 }
  0xc1   : > { %2729 = vmatmul.msk.bf16.gmra.mxu3 %vm682_vm3, %v3558_v25  ;;  %v3568_v54 = vpop.f32.mrf.mxu2 }
  0xc5   : > { %v3574_v53 = vpop.f32.mrf.mxu0 }
  0xc6   : > { %2757 = vmatmul.msk.bf16.gmra.mxu0 %vm682_vm3, %v3280_v40  ;;  %v3578_v13 = vpop.f32.mrf.mxu3 }
  0xc7   : > { %4226 = vst [vmem:[#allocation21_spill] sm:$0xff] %v3578_v13  ;;  %2654 = vmatmul.msk.bf16.gmra.mxu1 %vm682_vm3, %v3558_v25  ;;  %v3006_v13 = vld [vmem:[%s3074_s29 + $0x68] sm:$0x1] }
  0xc8   : > { %v3585_v52 = vpop.f32.mrf.mxu1  ;;  %v1129_v41 = vrot.slane %v3006_v13, 5 }
  0xcc   : > { %v3587_v19 = vpop.f32.mrf.mxu2  ;;  %2698 = vmatmul.msk.bf16.gmra.mxu2 %vm682_vm3, %v3582_v0 }
  0xcf   : > { %v3596_v63 = vpop.f32.mrf.mxu0 }
  0xd0   : > { %v3598_v23 = vpop.f32.mrf.mxu3 }
  0xd1   : > { %4229 = vst [vmem:[#allocation24_spill] sm:$0xff] %v3598_v23  ;;  %2730 = vmatmul.msk.bf16.gmra.mxu3 %vm682_vm3, %v3592_v50 }
  0xd4   : > { %v3609_v7 = vpop.f32.mrf.mxu1  ;;  %v3611_v51 = vpop.f32.mrf.mxu2 }
  0xd6   : > { %2758 = vmatmul.msk.bf16.gmra.mxu0 %vm682_vm3, %v3374_v11  ;;  %v1128_v11 = vrot.slane %v1126_v28, 4 }
  0xd7   : > { %2655 = vmatmul.msk.bf16.gmra.mxu1 %vm682_vm3, %v3592_v50  ;;  %v3625_v2 = vpop.f32.mrf.mxu0 }
  0xd8   : > { %v3628_v12 = vpop.f32.mrf.mxu3 }
  0xd9   : > { %4231 = vst [vmem:[#allocation26_spill] sm:$0xff] %v3628_v12  ;;  %v1127_v12 = vsel %vm3411_vm6, %v2672_v9, %v1126_v28 }
  0xda   : > { %v1201_v3 = vunpack.c.l.b16 %v1127_v12 }
  0xdc   : > { %2699 = vmatmul.msk.bf16.gmra.mxu2 %vm682_vm3, %v3623_v18  ;;  %v3635_v23 = vpop.f32.mrf.mxu1  ;;  %v1130_v18 = vsel %vm3411_vm6, %v1128_v11, %v1129_v41  ;;  %v1133_v11 = vrot.slane %v3156_v42, 5 }
  0xdd   : > { %v1202_v35 = vunpack.c.l.b16 %v1130_v18  ;;  %v3672_v18 = vld [vmem:[%s3074_s29 + $0x6c] sm:$0xff] }
  0xdf   : > { %v3642_v26 = vpop.f32.mrf.mxu2  ;;  %v3661_v28 = vpack.c.b16 %v1202_v35, %v1201_v3  ;;  %v1135_v35 = vrot.slane %v1133_v11, 4 }
  0xe1   : > { %2731 = vmatmul.msk.bf16.gmra.mxu3 %vm682_vm3, %v3639_v30  ;;  %4234 = vst [vmem:[#allocation29_spill] sm:$0xff] %v3661_v28 }
  0xe3   : > { %v3650_v44 = vpop.f32.mrf.mxu0 }
  0xe4   : > { %v3652_v13 = vpop.f32.mrf.mxu3  ;;  %v969_v50 = vpop.f32.mrf.mxu1 }
  0xe5   : > { %4233 = vst [vmem:[#allocation28_spill] sm:$0xff] %v3652_v13  ;;  %v970_v20 = vadd.f32 %v969_v50, %v3514_v6  ;;  %v1136_v50 = vrot.slane %v3163_v46, 5  ;;  %v2673_v13 = vrot.slane %v3149_v33, 9 }
  0xe6   : > { %2759 = vmatmul.msk.bf16.gmra.mxu0 %vm682_vm3, %v3128_v14 }
  0xe7   : > { %v3657_v0 = vpop.f32.mrf.mxu2  ;;  %2656 = vmatmul.msk.bf16.gmra.mxu1 %vm682_vm3, %v3639_v30  ;;  %v1134_v42 = vsel %vm3411_vm6, %v2673_v13, %v1133_v11 }
  0xe8   : > { %v1203_v40 = vunpack.c.l.b16 %v1134_v42 }
  0xeb   : > { %v3664_v41 = vpop.f32.mrf.mxu0 }
  0xec   : > { %v3666_v9 = vpop.f32.mrf.mxu3  ;;  %2700 = vmatmul.msk.bf16.gmra.mxu2 %vm682_vm3, %v3661_v28  ;;  %v971_v6 = vpop.f32.mrf.mxu1 }
  0xed   : > { %4235 = vst [vmem:[#allocation30_spill] sm:$0xff] %v3666_v9  ;;  %v972_v12 = vadd.f32 %v971_v6, %v3538_v55  ;;  %v1137_v9 = vsel %vm3411_vm6, %v1135_v35, %v1136_v50  ;;  %v1140_v50 = vrot.slane %v3240_v36, 5 }
  0xee   : > { %v1204_v59 = vunpack.c.l.b16 %v1137_v9  ;;  %v1143_v9 = vrot.slane %v3247_v48, 5 }
  0xef   : > { %v1302_v3 = vpop.f32.mrf.mxu2 }
  0xf0   : > { %v1382_v14 = vadd.f32 %v1302_v3, %v970_v20  ;;  %v3689_v6 = vpack.c.b16 %v1204_v59, %v1203_v40  ;;  %v3696_v3 = vld [vmem:[%s3074_s29 + $0x78] sm:$0xff] }
  0xf1   : > { %2732 = vmatmul.msk.bf16.gmra.mxu3 %vm682_vm3, %v3672_v18 }
  0xf3   : > { %v1616_v28 = vpop.f32.mrf.mxu0 }
  0xf4   : > { %v1448_v46 = vpop.f32.mrf.mxu3  ;;  %v974_v30 = vpop.f32.mrf.mxu1 }
  0xf5   : > { %v1528_v55 = vadd.f32 %v1448_v46, %v1382_v14  ;;  %v975_v33 = vadd.f32 %v974_v30, %v3553_v62 }
  0xf6   : > { %2760 = vmatmul.msk.bf16.gmra.mxu0 %vm682_vm3, %v3217_v1 }
  0xf7   : > { %v1304_v20 = vpop.f32.mrf.mxu2  ;;  %2657 = vmatmul.msk.bf16.gmra.mxu1 %vm682_vm3, %v3672_v18  ;;  %v3687_v13 = vadd.f32 %v1616_v28, %v1528_v55  ;;  %v2674_v28 = vrot.slane %v3236_v27, 9 }
  0xf8   : > { %v1383_v11 = vadd.f32 %v1304_v20, %v972_v12  ;;  %v1142_v12 = vrot.slane %v1140_v50, 4 }
  0xf9   : > { %v1141_v48 = vsel %vm3411_vm6, %v2674_v28, %v1140_v50 }
  0xfa   : > { %v1144_v46 = vsel %vm3411_vm6, %v1142_v12, %v1143_v9 }
  0xfb   : > { %v1618_v35 = vpop.f32.mrf.mxu0 }
  0xfc   : > { %v1450_v14 = vpop.f32.mrf.mxu3  ;;  %2701 = vmatmul.msk.bf16.gmra.mxu2 %vm682_vm3, %v3689_v6  ;;  %v976_v62 = vpop.f32.mrf.mxu1 }
  0xfd   : > { %v1529_v30 = vadd.f32 %v1450_v14, %v1383_v11  ;;  %v977_v42 = vadd.f32 %v976_v62, %v3574_v53  ;;  %v1205_v53 = vunpack.c.l.b16 %v1141_v48  ;;  %v1206_v14 = vunpack.c.l.b16 %v1144_v46 }
  0xff   : > { %v1307_v40 = vpop.f32.mrf.mxu2  ;;  %v3700_v59 = vadd.f32 %v1618_v35, %v1529_v30  ;;  %v3715_v9 = vpack.c.b16 %v1206_v14, %v1205_v53  ;;  %v4237_v30 = vld [vmem:[#allocation11_spill] sm:$0xff] }
 0x100   : > { %v1384_v36 = vadd.f32 %v1307_v40, %v975_v33  ;;  %v1147_v28 = vrot.slane %v4237_v30, 5  ;;  %v4238_v40 = vld [vmem:[#allocation12_spill] sm:$0xff] }
 0x101   : > { %2733 = vmatmul.msk.bf16.gmra.mxu3 %vm682_vm3, %v3696_v3  ;;  %v1150_v48 = vrot.slane %v4238_v40, 5 }
 0x103   : > { %v1621_v55 = vpop.f32.mrf.mxu0 }
 0x104   : > { %v1453_v20 = vpop.f32.mrf.mxu3  ;;  %v979_v11 = vpop.f32.mrf.mxu1 }
 0x105   : > { %v1530_v27 = vadd.f32 %v1453_v20, %v1384_v36  ;;  %v980_v35 = vadd.f32 %v979_v11, %v3596_v63  ;;  %v3722_v20 = vld [vmem:[%s3074_s29 + $0x84] sm:$0xff] }
 0x106   : > { %2761 = vmatmul.msk.bf16.gmra.mxu0 %vm682_vm3, %v3305_v21 }
 0x107   : > { %v1309_v33 = vpop.f32.mrf.mxu2  ;;  %2658 = vmatmul.msk.bf16.gmra.mxu1 %vm682_vm3, %v3696_v3  ;;  %v3713_v50 = vadd.f32 %v1621_v55, %v1530_v27  ;;  %v4239_v55 = vld [vmem:[#allocation9_spill] sm:$0xff] }
 0x108   : > { %v1385_v62 = vadd.f32 %v1309_v33, %v977_v42  ;;  %v2675_v27 = vrot.slane %v4239_v55, 9  ;;  %v1149_v42 = vrot.slane %v1147_v28, 4 }
 0x109   : > { %4236 = vst [vmem:[#allocation31_spill] sm:$0xff] %v3713_v50 }
 0x10a   : > { %v1148_v30 = vsel %vm3411_vm6, %v2675_v27, %v1147_v28  ;;  %v3008_v27 = vld [vmem:[%s3074_s29 + $0x94] sm:$0xf] }
 0x10b   : > { %v1623_v12 = vpop.f32.mrf.mxu0 }
 0x10c   : > { %v1455_v36 = vpop.f32.mrf.mxu3  ;;  %2702 = vmatmul.msk.bf16.gmra.mxu2 %vm682_vm3, %v3715_v9  ;;  %v981_v63 = vpop.f32.mrf.mxu1 }
 0x10d   : > { %v1531_v46 = vadd.f32 %v1455_v36, %v1385_v62  ;;  %v982_v11 = vadd.f32 %v981_v63, %v3625_v2  ;;  %v1151_v62 = vsel %vm3411_vm6, %v1149_v42, %v1150_v48  ;;  %v1207_v63 = vunpack.c.l.b16 %v1148_v30 }
 0x10e   : > { %v1208_v55 = vunpack.c.l.b16 %v1151_v62  ;;  %v1154_v42 = vrot.slane %v3008_v27, 5 }
 0x10f   : > { %v1312_v53 = vpop.f32.mrf.mxu2  ;;  %v3726_v14 = vadd.f32 %v1623_v12, %v1531_v46 }
 0x110   : > { %v1386_v33 = vadd.f32 %v1312_v53, %v980_v35  ;;  %v3741_v46 = vpack.c.b16 %v1208_v55, %v1207_v63 }
 0x111   : > { %4240 = vst [vmem:[#allocation11_spill] sm:$0xff] %v3726_v14  ;;  %2734 = vmatmul.msk.bf16.gmra.mxu3 %vm682_vm3, %v3722_v20 }
 0x112   : > { %4242 = vst [vmem:[#allocation9_spill] sm:$0xff] %v3741_v46 }
 0x113   : > { %v1626_v40 = vpop.f32.mrf.mxu0 }
 0x114   : > { %v1458_v2 = vpop.f32.mrf.mxu3  ;;  %v984_v36 = vpop.f32.mrf.mxu1 }
 0x115   : > { %v1532_v50 = vadd.f32 %v1458_v2, %v1386_v33  ;;  %v985_v12 = vadd.f32 %v984_v36, %v3650_v44  ;;  %v3009_v33 = vld [vmem:[%s3074_s29 + $0x98] sm:$0x1]  ;;  %v3748_v36 = vld [vmem:[%s3074_s29 + $0x90] sm:$0xff] }
 0x116   : > { %2762 = vmatmul.msk.bf16.gmra.mxu0 %vm682_vm3, %v3402_v5  ;;  %v1157_v30 = vrot.slane %v3009_v33, 5  ;;  %4243 = vst [vmem:[#allocation32_spill] sm:$0xff] %v3748_v36 }
 0x117   : > { %v1314_v35 = vpop.f32.mrf.mxu2  ;;  %2659 = vmatmul.msk.bf16.gmra.mxu1 %vm682_vm3, %v3722_v20  ;;  %v3739_v28 = vadd.f32 %v1626_v40, %v1532_v50  ;;  %v3010_v50 = vld [vmem:[%s3074_s29 + $0x90] sm:$0xf] }
 0x118   : > { %v1387_v48 = vadd.f32 %v1314_v35, %v982_v11  ;;  %v2676_v40 = vrot.slane %v3010_v50, 9  ;;  %v1156_v11 = vrot.slane %v1154_v42, 4 }
 0x119   : > { %4241 = vst [vmem:[#allocation12_spill] sm:$0xff] %v3739_v28 }
 0x11a   : > { %v1155_v27 = vsel %vm3411_vm6, %v2676_v40, %v1154_v42  ;;  %v3011_v40 = vld [vmem:[%s3074_s29 + $0xa0] sm:$0xf] }
 0x11b   : > { %v1628_v53 = vpop.f32.mrf.mxu0 }
 0x11c   : > { %v1460_v44 = vpop.f32.mrf.mxu3  ;;  %2703 = vmatmul.msk.bf16.gmra.mxu2 %vm682_vm3, %v3741_v46  ;;  %v986_v62 = vpop.f32.mrf.mxu1  ;;  %v3013_v46 = vld [vmem:[%s3074_s29 + $0x9c] sm:$0xf] }
 0x11d   : > { %v1533_v2 = vadd.f32 %v1460_v44, %v1387_v48  ;;  %v987_v14 = vadd.f32 %v986_v62, %v3664_v41  ;;  %v1158_v48 = vsel %vm3411_vm6, %v1156_v11, %v1157_v30  ;;  %v1209_v62 = vunpack.c.l.b16 %v1155_v27 }
 0x11e   : > { %v1210_v50 = vunpack.c.l.b16 %v1158_v48  ;;  %v1161_v11 = vrot.slane %v3011_v40, 5  ;;  %v3012_v48 = vld [vmem:[%s3074_s29 + $0xa4] sm:$0x1] }
 0x11f   : > { %v1317_v63 = vpop.f32.mrf.mxu2  ;;  %v3752_v55 = vadd.f32 %v1628_v53, %v1533_v2  ;;  %v4245_v53 = vld [vmem:[#allocation3_spill] sm:$0xff] }
 0x120   : > { %v1388_v35 = vadd.f32 %v1317_v63, %v985_v12  ;;  %v3766_v30 = vpack.c.b16 %v1210_v50, %v1209_v62 }
 0x121   : > { %4244 = vst [vmem:[#allocation33_spill] sm:$0xff] %v3752_v55  ;;  %2735 = vmatmul.msk.bf16.gmra.mxu3 %vm682_vm3, %v3748_v36 }
 0x122   : > { %4247 = vst [vmem:[#allocation35_spill] sm:$0xff] %v3766_v30 }
 0x123   : > { %v1631_v33 = vpop.f32.mrf.mxu0 }
 0x124   : > { %v1463_v44 = vpop.f32.mrf.mxu3  ;;  %v989_v41 = vpop.f32.mrf.mxu1 }
 0x125   : > { %v1534_v28 = vadd.f32 %v1463_v44, %v1388_v35  ;;  %v1164_v44 = vrot.slane %v3012_v48, 5 }
 0x126   : > { %2763 = vmatmul.msk.bf16.gmra.mxu0 %vm682_vm3, %v4245_v53  ;;  %v3773_v53 = vld [vmem:[%s3074_s29 + $0x9c] sm:$0xff] }
 0x127   : > { %v1319_v12 = vpop.f32.mrf.mxu2  ;;  %2660 = vmatmul.msk.bf16.gmra.mxu1 %vm682_vm3, %v3748_v36  ;;  %v3764_v42 = vadd.f32 %v1631_v33, %v1534_v28  ;;  %4248 = vst [vmem:[#allocation36_spill] sm:$0xff] %v3773_v53  ;;  %v2677_v36 = vrot.slane %v3013_v46, 9  ;;  %v1163_v28 = vrot.slane %v1161_v11, 4 }
 0x128   : > { %v1389_v2 = vadd.f32 %v1319_v12, %v987_v14  ;;  %v990_v14 = vadd.f32 %v989_v41, %v3491_v38  ;;  %v4250_v41 = vld [vmem:[#allocation4_spill] sm:$0xff] }
 0x129   : > { %4246 = vst [vmem:[#allocation34_spill] sm:$0xff] %v3764_v42  ;;  %v1162_v12 = vsel %vm3411_vm6, %v2677_v36, %v1161_v11 }
 0x12a   : > { %v1211_v46 = vunpack.c.l.b16 %v1162_v12 }
 0x12b   : > { %v1633_v63 = vpop.f32.mrf.mxu0 }
 0x12c   : > { %v1465_v27 = vpop.f32.mrf.mxu3  ;;  %2704 = vmatmul.msk.bf16.gmra.mxu2 %vm682_vm3, %v3766_v30  ;;  %v991_v35 = vpop.f32.mrf.mxu1 }
 0x12d   : > { %v1535_v55 = vadd.f32 %v1465_v27, %v1389_v2  ;;  %v1165_v2 = vsel %vm3411_vm6, %v1163_v28, %v1164_v44  ;;  %v4253_v28 = vld [vmem:[#allocation6_spill] sm:$0xff] }
 0x12e   : > { %v1212_v42 = vunpack.c.l.b16 %v1165_v2  ;;  %v4254_v2 = vld [vmem:[#allocation7_spill] sm:$0xff] }
 0x12f   : > { %v1322_v33 = vpop.f32.mrf.mxu2  ;;  %v3777_v62 = vadd.f32 %v1633_v63, %v1535_v55  ;;  %v992_v55 = vadd.f32 %v991_v35, %v3506_v10  ;;  %v3799_v35 = vld [vmem:[%s3074_s29 + $0xa8] sm:$0xff] }
 0x130   : > { %v1390_v50 = vadd.f32 %v1322_v33, %v990_v14  ;;  %v3792_v44 = vpack.c.b16 %v1212_v42, %v1211_v46  ;;  %v1168_v14 = vrot.slane %v4253_v28, 5  ;;  %4255 = vst [vmem:[#allocation6_spill] sm:$0xff] %v3799_v35 }
 0x131   : > { %4249 = vst [vmem:[#allocation37_spill] sm:$0xff] %v3777_v62  ;;  %2736 = vmatmul.msk.bf16.gmra.mxu3 %vm682_vm3, %v3773_v53  ;;  %v4256_v62 = vld [vmem:[#allocation5_spill] sm:$0xff] }
 0x132   : > { %4252 = vst [vmem:[#allocation39_spill] sm:$0xff] %v3792_v44 }
 0x133   : > { %v1636_v40 = vpop.f32.mrf.mxu0 }
 0x134   : > { %v1468_v27 = vpop.f32.mrf.mxu3  ;;  %v994_v48 = vpop.f32.mrf.mxu1 }
 0x135   : > { %v1536_v38 = vadd.f32 %v1468_v27, %v1390_v50  ;;  %v1171_v27 = vrot.slane %v4254_v2, 5 }
 0x136   : > { %2764 = vmatmul.msk.bf16.gmra.mxu0 %vm682_vm3, %v4250_v41  ;;  %v2678_v41 = vrot.slane %v4256_v62, 9 }
 0x137   : > { %v1324_v63 = vpop.f32.mrf.mxu2  ;;  %2661 = vmatmul.msk.bf16.gmra.mxu1 %vm682_vm3, %v3773_v53  ;;  %v3790_v36 = vadd.f32 %v1636_v40, %v1536_v38  ;;  %v1170_v40 = vrot.slane %v1168_v14, 4  ;;  %v995_v38 = vadd.f32 %v994_v48, %v3526_v37 }
 0x138   : > { %v1391_v11 = vadd.f32 %v1324_v63, %v992_v55  ;;  %v1169_v63 = vsel %vm3411_vm6, %v2678_v41, %v1168_v14  ;;  %v3817_v41 = vld [vmem:[%s3074_s29 + $0xc0] sm:$0xf] }
 0x139   : > { %4251 = vst [vmem:[#allocation38_spill] sm:$0xff] %v3790_v36  ;;  %v1213_v2 = vunpack.c.l.b16 %v1169_v63  ;;  %v4258_v36 = vld [vmem:[#allocation10_spill] sm:$0xff]  ;;  %v1561_v63 = vshrl.u32 %v3817_v41, 16 }
 0x13a   : > { %4259 = vst [vmem:[#allocation5_spill] sm:$0xff] %v3817_v41 }
 0x13b   : > { %v1638_v33 = vpop.f32.mrf.mxu0 }
 0x13c   : > { %v1470_v12 = vpop.f32.mrf.mxu3  ;;  %2705 = vmatmul.msk.bf16.gmra.mxu2 %vm682_vm3, %v3792_v44  ;;  %v996_v50 = vpop.f32.mrf.mxu1 }
 0x13d   : > { %v1537_v10 = vadd.f32 %v1470_v12, %v1391_v11  ;;  %v1172_v11 = vsel %vm3411_vm6, %v1170_v40, %v1171_v27 }
 0x13e   : > { %v1214_v37 = vunpack.c.l.b16 %v1172_v11 }
 0x13f   : > { %v1327_v42 = vpop.f32.mrf.mxu2  ;;  %v3803_v46 = vadd.f32 %v1638_v33, %v1537_v10  ;;  %v997_v33 = vadd.f32 %v996_v50, %v3544_v24  ;;  %v1564_v24 = vshll.u32 %v3817_v41, 16 }
 0x140   : > { %v1392_v55 = vadd.f32 %v1327_v42, %v995_v38  ;;  %v3821_v40 = vpack.c.b16 %v1214_v37, %v1213_v2  ;;  %v3824_v38 = vld [vmem:[%s3074_s29 + $0xc4] sm:$0xf]  ;;  %v4264_v2 = vld [vmem:[#allocation15_spill] sm:$0xff] }
 0x141   : > { %4257 = vst [vmem:[#allocation7_spill] sm:$0xff] %v3803_v46  ;;  %2737 = vmatmul.msk.bf16.gmra.mxu3 %vm682_vm3, %v3799_v35  ;;  %v4263_v42 = vld [vmem:[#allocation14_spill] sm:$0xff]  ;;  %v1570_v50 = vshll.u32 %v3824_v38, 16  ;;  %v1178_v37 = vrot.slane %v4264_v2, 5  ;;  %v1566_v44 = vrot.slane %v1564_v24, 5 }
 0x142   : > { %4261 = vst [vmem:[#allocation41_spill] sm:$0xff] %v3821_v40 }
 0x143   : > { %v1641_v28 = vpop.f32.mrf.mxu0  ;;  %4262 = vst [vmem:[#allocation42_spill] sm:$0xff] %v3824_v38 }
 0x144   : > { %v1473_v62 = vpop.f32.mrf.mxu3  ;;  %v999_v12 = vpop.f32.mrf.mxu1 }
 0x145   : > { %v1538_v48 = vadd.f32 %v1473_v62, %v1392_v55  ;;  %v1175_v55 = vrot.slane %v4263_v42, 5  ;;  %v1574_v62 = vshrl.u32 %v3824_v38, 16  ;;  %v1000_v41 = vadd.f32 %v999_v12, %v3564_v45 }
 0x146   : > { %2765 = vmatmul.msk.bf16.gmra.mxu0 %vm682_vm3, %v4258_v36  ;;  %v1563_v36 = vrot.slane %v1561_v63, 4  ;;  %v1572_v38 = vrot.slane %v1570_v50, 5 }
 0x147   : > { %v1329_v10 = vpop.f32.mrf.mxu2  ;;  %2662 = vmatmul.msk.bf16.gmra.mxu1 %vm682_vm3, %v3799_v35  ;;  %v3819_v14 = vadd.f32 %v1641_v28, %v1538_v48  ;;  %v1576_v53 = vrot.slane %v1574_v62, 4 }
 0x148   : > { %v1393_v27 = vadd.f32 %v1329_v10, %v997_v33  ;;  %v3835_v33 = vld [vmem:[%s3074_s29 + $0xb4] sm:$0xff]  ;;  %v1567_v12 = vor.u32 %v1566_v44, %v1563_v36 }
 0x149   : > { %4260 = vst [vmem:[#allocation40_spill] sm:$0xff] %v3819_v14  ;;  %v4265_v10 = vld [vmem:[#allocation13_spill] sm:$0xff]  ;;  %v1177_v14 = vrot.slane %v1175_v55, 4  ;;  %v1577_v63 = vor.u32 %v1576_v53, %v1572_v38 }
 0x14a   : > { %v2679_v42 = vrot.slane %v4265_v10, 9 }
 0x14b   : > { %v1643_v11 = vpop.f32.mrf.mxu0  ;;  %v1578_v36 = vrot.slane %v1577_v63, 4 }
 0x14c   : > { %v1475_v46 = vpop.f32.mrf.mxu3  ;;  %2706 = vmatmul.msk.bf16.gmra.mxu2 %vm682_vm3, %v3821_v40  ;;  %v1001_v28 = vpop.f32.mrf.mxu1  ;;  %v3842_v40 = vld [vmem:[%s3074_s29 + $0xc8] sm:$0x1] }
 0x14d   : > { %v1539_v48 = vadd.f32 %v1475_v46, %v1393_v27  ;;  %v1176_v46 = vsel %vm3411_vm6, %v2679_v42, %v1175_v55  ;;  %v1179_v27 = vsel %vm3411_vm6, %v1177_v14, %v1178_v37  ;;  %v1580_v24 = vshll.u32 %v3842_v40, 16 }
 0x14e   : > { %v1215_v62 = vunpack.c.l.b16 %v1176_v46  ;;  %v1002_v2 = vadd.f32 %v1001_v28, %v3585_v52  ;;  %v1568_v14 = vrot.slane %v1567_v12, 4 }
 0x14f   : > { %v1332_v35 = vpop.f32.mrf.mxu2  ;;  %v3839_v30 = vadd.f32 %v1643_v11, %v1539_v48  ;;  %v1582_v53 = vrot.slane %v1580_v24, 5 }
 0x150   : > { %v1394_v5 = vadd.f32 %v1332_v35, %v1000_v41  ;;  %v1216_v35 = vunpack.c.l.b16 %v1179_v27  ;;  %v3867_v27 = vld [vmem:[%s3074_s29 + $0xc0] sm:$0xff] }
 0x151   : > { %2738 = vmatmul.msk.bf16.gmra.mxu3 %vm682_vm3, %v3835_v33  ;;  %v1583_v52 = vsel %vm3097_vm2, %v1578_v36, %v1582_v53 }
 0x152   : > { %v3858_v48 = vpack.c.b16 %v1216_v35, %v1215_v62  ;;  %v1590_v63 = vunpack.c.l.b16 %v1583_v52 }
 0x153   : > { %v1646_v45 = vpop.f32.mrf.mxu0 }
 0x154   : > { %v1478_v50 = vpop.f32.mrf.mxu3  ;;  %v1004_v11 = vpop.f32.mrf.mxu1 }
 0x155   : > { %v1540_v41 = vadd.f32 %v1478_v50, %v1394_v5  ;;  %v1573_v5 = vsel %vm3097_vm2, %v1568_v14, %v1572_v38 }
 0x156   : > { %2766 = vmatmul.msk.bf16.gmra.mxu0 %vm682_vm3, %v3420_v60  ;;  %v1589_v12 = vunpack.c.l.b16 %v1573_v5 }
 0x157   : > { %v1334_v55 = vpop.f32.mrf.mxu2  ;;  %2663 = vmatmul.msk.bf16.gmra.mxu1 %vm682_vm3, %v3835_v33  ;;  %v3856_v44 = vadd.f32 %v1646_v45, %v1540_v41  ;;  %v1005_v45 = vadd.f32 %v1004_v11, %v3609_v7 }
 0x158   : > { %v1395_v37 = vadd.f32 %v1334_v55, %v1002_v2  ;;  %v3874_v38 = vpack.c.b16 %v1590_v63, %v1589_v12 }
 0x15b   : > { %v1648_v10 = vpop.f32.mrf.mxu0 }
 0x15c   : > { %v1480_v28 = vpop.f32.mrf.mxu3  ;;  %2707 = vmatmul.msk.bf16.gmra.mxu2 %vm682_vm3, %v3858_v48  ;;  %v1006_v42 = vpop.f32.mrf.mxu1 }
 0x15d   : > { %v1541_v46 = vadd.f32 %v1480_v28, %v1395_v37  ;;  %v1007_v7 = vadd.f32 %v1006_v42, %v3635_v23 }
 0x15f   : > { %v1337_v24 = vpop.f32.mrf.mxu2  ;;  %v3870_v50 = vadd.f32 %v1648_v10, %v1541_v46 }
 0x160   : > { %v1396_v62 = vadd.f32 %v1337_v24, %v1005_v45 }
 0x161   : > { %2739 = vmatmul.msk.bf16.gmra.mxu3 %vm682_vm3, %v3867_v27 }
 0x163   : > { %v1651_v35 = vpop.f32.mrf.mxu0 }
 0x164   : > { %v1483_v41 = vpop.f32.mrf.mxu3  ;;  %v1009_v2 = vpop.f32.mrf.mxu1 }
 0x165   : > { %v1542_v55 = vadd.f32 %v1483_v41, %v1396_v62  ;;  %v1010_v52 = vadd.f32 %v1009_v2, %v3508_v56 }
 0x166   : > { %2767 = vmatmul.msk.bf16.gmra.mxu0 %vm682_vm3, %v3874_v38 }
 0x167   : > { %v1339_v11 = vpop.f32.mrf.mxu2  ;;  %2781 = vmatmul.msk.bf16.vlgmr.msra.gmra.mxu1 %vm682_vm3, %v3441_v22  ;;  %v3881_v14 = vadd.f32 %v1651_v35, %v1542_v55 }
 0x168   : > { %v1397_v36 = vadd.f32 %v1339_v11, %v1007_v7 }
 0x16b   : > { %v1653_v53 = vpop.f32.mrf.mxu0 }
 0x16c   : > { %v1485_v37 = vpop.f32.mrf.mxu3  ;;  %2813 = vmatmul.msk.bf16.vlgmr.msra.gmra.mxu2 %vm682_vm3, %v3454_v15  ;;  %v1011_v10 = vpop.f32.mrf.mxu1 }
 0x16d   : > { %v1543_v5 = vadd.f32 %v1485_v37, %v1397_v36  ;;  %v1012_v15 = vadd.f32 %v1011_v10, %v3530_v16 }
 0x16f   : > { %v1342_v28 = vpop.f32.mrf.mxu2  ;;  %v3886_v46 = vadd.f32 %v1653_v53, %v1543_v5 }
 0x170   : > { %v1398_v23 = vadd.f32 %v1342_v28, %v1010_v52 }
 0x171   : > { %2841 = vmatmul.msk.bf16.vlgmr.msra.gmra.mxu3 %vm682_vm3, %v3349_v39 }
 0x173   : > { %v1656_v22 = vpop.f32.mrf.mxu0 }
 0x174   : > { %v1488_v42 = vpop.f32.mrf.mxu3  ;;  %v1014_v45 = vpop.f32.mrf.mxu1 }
 0x175   : > { %v1544_v12 = vadd.f32 %v1488_v42, %v1398_v23  ;;  %v1015_v2 = vadd.f32 %v1014_v45, %v3550_v61 }
 0x176   : > { %2870 = vmatmul.msk.bf16.vlgmr.msra.gmra.mxu0 %vm682_vm3, %v3468_v47 }
 0x177   : > { %v1344_v63 = vpop.f32.mrf.mxu2  ;;  %2782 = vmatmul.msk.bf16.gmra.mxu1 %vm682_vm3, %v3468_v47  ;;  %v3895_v56 = vadd.f32 %v1656_v22, %v1544_v12 }
 0x178   : > { %v1399_v24 = vadd.f32 %v1344_v63, %v1012_v15 }
 0x17b   : > { %v1658_v62 = vpop.f32.mrf.mxu0 }
 0x17c   : > { %v1490_v35 = vpop.f32.mrf.mxu3  ;;  %2814 = vmatmul.msk.bf16.gmra.mxu2 %vm682_vm3, %v3474_v57  ;;  %v1016_v39 = vpop.f32.mrf.mxu1 }
 0x17d   : > { %v1545_v41 = vadd.f32 %v1490_v35, %v1399_v24  ;;  %v1017_v57 = vadd.f32 %v1016_v39, %v3568_v54 }
 0x17f   : > { %v1347_v55 = vpop.f32.mrf.mxu2  ;;  %v3900_v7 = vadd.f32 %v1658_v62, %v1545_v41 }
 0x180   : > { %v1400_v16 = vadd.f32 %v1347_v55, %v1015_v2 }
 0x181   : > { %2842 = vmatmul.msk.bf16.gmra.mxu3 %vm682_vm3, %v3437_v17 }
 0x183   : > { %v1661_v47 = vpop.f32.mrf.mxu0 }
 0x184   : > { %v1493_v11 = vpop.f32.mrf.mxu3  ;;  %v1019_v36 = vpop.f32.mrf.mxu1 }
 0x185   : > { %v1546_v53 = vadd.f32 %v1493_v11, %v1400_v16  ;;  %v1020_v23 = vadd.f32 %v1019_v36, %v3587_v19 }
 0x186   : > { %2871 = vmatmul.msk.bf16.gmra.mxu0 %vm682_vm3, %v3488_v29 }
 0x187   : > { %v1349_v37 = vpop.f32.mrf.mxu2  ;;  %2783 = vmatmul.msk.bf16.gmra.mxu1 %vm682_vm3, %v3488_v29  ;;  %v3909_v61 = vadd.f32 %v1661_v47, %v1546_v53 }
 0x188   : > { %v1401_v10 = vadd.f32 %v1349_v37, %v1017_v57 }
 0x18b   : > { %v1663_v5 = vpop.f32.mrf.mxu0 }
 0x18c   : > { %v1495_v52 = vpop.f32.mrf.mxu3  ;;  %2815 = vmatmul.msk.bf16.gmra.mxu2 %vm682_vm3, %v3496_v43  ;;  %v1021_v17 = vpop.f32.mrf.mxu1 }
 0x18d   : > { %v1547_v28 = vadd.f32 %v1495_v52, %v1401_v10  ;;  %v1022_v43 = vadd.f32 %v1021_v17, %v3611_v51 }
 0x18f   : > { %v1352_v22 = vpop.f32.mrf.mxu2  ;;  %v3914_v42 = vadd.f32 %v1663_v5, %v1547_v28  ;;  %v4266_v5 = vld [vmem:[#allocation18_spill] sm:$0xff] }
 0x190   : > { %v1402_v54 = vadd.f32 %v1352_v22, %v1020_v23  ;;  %v4267_v23 = vld [vmem:[#allocation8_spill] sm:$0xff] }
 0x191   : > { %2843 = vmatmul.msk.bf16.gmra.mxu3 %vm682_vm3, %v3109_v58 }
 0x193   : > { %v1666_v29 = vpop.f32.mrf.mxu0 }
 0x194   : > { %v1498_v45 = vpop.f32.mrf.mxu3  ;;  %v1024_v12 = vpop.f32.mrf.mxu1 }
 0x195   : > { %v1548_v15 = vadd.f32 %v1498_v45, %v1402_v54  ;;  %v1025_v41 = vadd.f32 %v1024_v12, %v3642_v26  ;;  %v4268_v45 = vld [vmem:[#allocation22_spill] sm:$0xff]  ;;  %v4269_v12 = vld [vmem:[#allocation19_spill] sm:$0xff] }
 0x196   : > { %2872 = vmatmul.msk.bf16.gmra.mxu0 %vm682_vm3, %v3516_v8 }
 0x197   : > { %v1354_v63 = vpop.f32.mrf.mxu2  ;;  %2784 = vmatmul.msk.bf16.gmra.mxu1 %vm682_vm3, %v3516_v8  ;;  %v3923_v19 = vadd.f32 %v1666_v29, %v1548_v15 }
 0x198   : > { %v1403_v24 = vadd.f32 %v1354_v63, %v1022_v43 }
 0x19b   : > { %v1668_v62 = vpop.f32.mrf.mxu0 }
 0x19c   : > { %v1500_v35 = vpop.f32.mrf.mxu3  ;;  %2816 = vmatmul.msk.bf16.gmra.mxu2 %vm682_vm3, %v3524_v34  ;;  %v1026_v58 = vpop.f32.mrf.mxu1 }
 0x19d   : > { %v1549_v39 = vadd.f32 %v1500_v35, %v1403_v24  ;;  %v1027_v34 = vadd.f32 %v1026_v58, %v3657_v0  ;;  %v4270_v35 = vld [vmem:[#allocation23_spill] sm:$0xff] }
 0x19f   : > { %v1357_v2 = vpop.f32.mrf.mxu2  ;;  %v3928_v55 = vadd.f32 %v1668_v62, %v1549_v39 }
 0x1a0   : > { %v1404_v51 = vadd.f32 %v1357_v2, %v1025_v41  ;;  %v4271_v41 = vld [vmem:[#allocation20_spill] sm:$0xff] }
 0x1a1   : > { %2844 = vmatmul.msk.bf16.gmra.mxu3 %vm682_vm3, %v3186_v31 }
 0x1a3   : > { %v1671_v8 = vpop.f32.mrf.mxu0 }
 0x1a4   : > { %v1503_v16 = vpop.f32.mrf.mxu3  ;;  %v1029_v47 = vpop.f32.mrf.mxu1 }
 0x1a5   : > { %v1550_v11 = vadd.f32 %v1503_v16, %v1404_v51  ;;  %v1030_v52 = vadd.f32 %v1029_v47, %v4266_v5  ;;  %v4272_v47 = vld [vmem:[#allocation16_spill] sm:$0xff] }
 0x1a6   : > { %2873 = vmatmul.msk.bf16.gmra.mxu0 %vm682_vm3, %v3548_v4 }
 0x1a7   : > { %v1359_v36 = vpop.f32.mrf.mxu2  ;;  %2785 = vmatmul.msk.bf16.gmra.mxu1 %vm682_vm3, %v3548_v4  ;;  %v3937_v26 = vadd.f32 %v1671_v8, %v1550_v11 }
 0x1a8   : > { %v1405_v53 = vadd.f32 %v1359_v36, %v1027_v34 }
 0x1ab   : > { %v1673_v57 = vpop.f32.mrf.mxu0 }
 0x1ac   : > { %v1505_v37 = vpop.f32.mrf.mxu3  ;;  %2817 = vmatmul.msk.bf16.gmra.mxu2 %vm682_vm3, %v3558_v25  ;;  %v1031_v31 = vpop.f32.mrf.mxu1 }
 0x1ad   : > { %v1551_v10 = vadd.f32 %v1505_v37, %v1405_v53  ;;  %v1032_v25 = vadd.f32 %v1031_v31, %v4269_v12  ;;  %v4274_v37 = vld [vmem:[#allocation21_spill] sm:$0xff] }
 0x1af   : > { %v1362_v17 = vpop.f32.mrf.mxu2  ;;  %v3942_v28 = vadd.f32 %v1673_v57, %v1551_v10  ;;  %v4273_v57 = vld [vmem:[#allocation25_spill] sm:$0xff] }
 0x1b0   : > { %v1406_v0 = vadd.f32 %v1362_v17, %v1030_v52 }
 0x1b1   : > { %2845 = vmatmul.msk.bf16.gmra.mxu3 %vm682_vm3, %v4267_v23  ;;  %v4275_v23 = vld [vmem:[#allocation27_spill] sm:$0xff] }
 0x1b3   : > { %v1676_v4 = vpop.f32.mrf.mxu0 }
 0x1b4   : > { %v1508_v22 = vpop.f32.mrf.mxu3  ;;  %v1034_v54 = vpop.f32.mrf.mxu1 }
 0x1b5   : > { %v1552_v29 = vadd.f32 %v1508_v22, %v1406_v0  ;;  %v1035_v2 = vadd.f32 %v1034_v54, %v4271_v41  ;;  %v4276_v54 = vld [vmem:[#allocation24_spill] sm:$0xff] }
 0x1b6   : > { %2874 = vmatmul.msk.bf16.gmra.mxu0 %vm682_vm3, %v4268_v45 }
 0x1b7   : > { %v1364_v15 = vpop.f32.mrf.mxu2  ;;  %2786 = vmatmul.msk.bf16.gmra.mxu1 %vm682_vm3, %v4268_v45  ;;  %v3951_v43 = vadd.f32 %v1676_v4, %v1552_v29 }
 0x1b8   : > { %v1407_v63 = vadd.f32 %v1364_v15, %v1032_v25  ;;  %v4277_v15 = vld [vmem:[#allocation2_spill] sm:$0xff] }
 0x1bb   : > { %v1678_v24 = vpop.f32.mrf.mxu0 }
 0x1bc   : > { %v1510_v62 = vpop.f32.mrf.mxu3  ;;  %2818 = vmatmul.msk.bf16.gmra.mxu2 %vm682_vm3, %v4270_v35  ;;  %v1036_v58 = vpop.f32.mrf.mxu1 }
 0x1bd   : > { %v1553_v39 = vadd.f32 %v1510_v62, %v1407_v63  ;;  %v1037_v31 = vadd.f32 %v1036_v58, %v4274_v37  ;;  %v4278_v58 = vld [vmem:[#allocation29_spill] sm:$0xff] }
 0x1bf   : > { %v1367_v51 = vpop.f32.mrf.mxu2  ;;  %v3956_v8 = vadd.f32 %v1678_v24, %v1553_v39  ;;  %v4279_v39 = vld [vmem:[#allocation26_spill] sm:$0xff] }
 0x1c0   : > { %v1408_v16 = vadd.f32 %v1367_v51, %v1035_v2 }
 0x1c1   : > { %2846 = vmatmul.msk.bf16.gmra.mxu3 %vm682_vm3, %v4272_v47 }
 0x1c3   : > { %v1681_v11 = vpop.f32.mrf.mxu0 }
 0x1c4   : > { %v1513_v34 = vpop.f32.mrf.mxu3  ;;  %v1039_v36 = vpop.f32.mrf.mxu1 }
 0x1c5   : > { %v1554_v53 = vadd.f32 %v1513_v34, %v1408_v16  ;;  %v1040_v29 = vadd.f32 %v1039_v36, %v4276_v54 }
 0x1c6   : > { %2875 = vmatmul.msk.bf16.gmra.mxu0 %vm682_vm3, %v4273_v57 }
 0x1c7   : > { %v1369_v10 = vpop.f32.mrf.mxu2  ;;  %2787 = vmatmul.msk.bf16.gmra.mxu1 %vm682_vm3, %v4273_v57  ;;  %v3965_v5 = vadd.f32 %v1681_v11, %v1554_v53  ;;  %v4280_v53 = vld [vmem:[#allocation28_spill] sm:$0xff] }
 0x1c8   : > { %v1409_v52 = vadd.f32 %v1369_v10, %v1037_v31 }
 0x1cb   : > { %v1683_v17 = vpop.f32.mrf.mxu0 }
 0x1cc   : > { %v1515_v0 = vpop.f32.mrf.mxu3  ;;  %2819 = vmatmul.msk.bf16.gmra.mxu2 %vm682_vm3, %v4275_v23  ;;  %v1041_v4 = vpop.f32.mrf.mxu1 }
 0x1cd   : > { %v1555_v22 = vadd.f32 %v1515_v0, %v1409_v52  ;;  %v1042_v41 = vadd.f32 %v1041_v4, %v4279_v39  ;;  %v4281_v4 = vld [vmem:[#allocation30_spill] sm:$0xff] }
 0x1cf   : > { %v1372_v45 = vpop.f32.mrf.mxu2  ;;  %v3970_v12 = vadd.f32 %v1683_v17, %v1555_v22 }
 0x1d0   : > { %v1410_v25 = vadd.f32 %v1372_v45, %v1040_v29 }
 0x1d1   : > { %2847 = vmatmul.msk.bf16.gmra.mxu3 %vm682_vm3, %v4277_v15 }
 0x1d3   : > { %v1686_v63 = vpop.f32.mrf.mxu0 }
 0x1d4   : > { %v1518_v24 = vpop.f32.mrf.mxu3  ;;  %v1044_v62 = vpop.f32.mrf.mxu1 }
 0x1d5   : > { %v1556_v35 = vadd.f32 %v1518_v24, %v1410_v25  ;;  %v1045_v57 = vadd.f32 %v1044_v62, %v4280_v53 }
 0x1d6   : > { %2876 = vmatmul.msk.bf16.gmra.mxu0 %vm682_vm3, %v4278_v58 }
 0x1d7   : > { %v1374_v2 = vpop.f32.mrf.mxu2  ;;  %2788 = vmatmul.msk.bf16.gmra.mxu1 %vm682_vm3, %v4278_v58  ;;  %v3979_v51 = vadd.f32 %v1686_v63, %v1556_v35 }
 0x1d8   : > { %v1411_v16 = vadd.f32 %v1374_v2, %v1042_v41  ;;  %v4005_v2 = vld [vmem:[%s4161_s2] ss:$0 sm:$0xff] }
 0x1db   : > { %v1688_v47 = vpop.f32.mrf.mxu0 }
 0x1dc   : > { %v1520_v11 = vpop.f32.mrf.mxu3  ;;  %2820 = vmatmul.msk.bf16.gmra.mxu2 %vm682_vm3, %v3672_v18  ;;  %v1046_v34 = vpop.f32.mrf.mxu1 }
 0x1dd   : > { %v1557_v36 = vadd.f32 %v1520_v11, %v1411_v16  ;;  %v1047_v18 = vadd.f32 %v1046_v34, %v4281_v4 }
 0x1df   : > { %v1377_v37 = vpop.f32.mrf.mxu2  ;;  %v3984_v31 = vadd.f32 %v1688_v47, %v1557_v36 }
 0x1e0   : > { %v1412_v10 = vadd.f32 %v1377_v37, %v1045_v57  ;;  %v4282_v37 = vld [vmem:[#allocation31_spill] sm:$0xff] }
 0x1e1   : > { %2848 = vmatmul.msk.bf16.gmra.mxu3 %vm682_vm3, %v3217_v1 }
 0x1e3   : > { %v1691_v52 = vpop.f32.mrf.mxu0 }
 0x1e4   : > { %v1523_v17 = vpop.f32.mrf.mxu3  ;;  %v1768_v0 = vpop.f32.mrf.mxu1 }
 0x1e5   : > { %v1558_v23 = vadd.f32 %v1523_v17, %v1412_v10  ;;  %v1848_v63 = vadd.f32 %v1768_v0, %v3687_v13  ;;  %v4283_v0 = vld [vmem:[#allocation17_spill] sm:$0xff] }
 0x1e6   : > { %2877 = vmatmul.msk.bf16.gmra.mxu0 %vm682_vm3, %v3689_v6 }
 0x1e7   : > { %v1379_v22 = vpop.f32.mrf.mxu2  ;;  %2789 = vmatmul.msk.bf16.gmra.mxu1 %vm682_vm3, %v3689_v6  ;;  %v3993_v54 = vadd.f32 %v1691_v52, %v1558_v23 }
 0x1e8   : > { %v1413_v29 = vadd.f32 %v1379_v22, %v1047_v18 }
 0x1eb   : > { %v1693_v45 = vpop.f32.mrf.mxu0 }
 0x1ec   : > { %v1525_v25 = vpop.f32.mrf.mxu3  ;;  %2821 = vmatmul.msk.bf16.gmra.mxu2 %vm682_vm3, %v3696_v3  ;;  %v1770_v1 = vpop.f32.mrf.mxu1 }
 0x1ed   : > { %v1559_v15 = vadd.f32 %v1525_v25, %v1413_v29  ;;  %v1849_v3 = vadd.f32 %v1770_v1, %v3700_v59 }
 0x1ef   : > { %v1914_v24 = vpop.f32.mrf.mxu2  ;;  %v3998_v62 = vadd.f32 %v1693_v45, %v1559_v15  ;;  %v4285_v45 = vld [vmem:[#allocation11_spill] sm:$0xff] }
 0x1f0   : > { %v1994_v35 = vadd.f32 %v1914_v24, %v1848_v63 }
 0x1f1   : > { %2849 = vmatmul.msk.bf16.gmra.mxu3 %vm682_vm3, %v3305_v21 }
 0x1f3   : > { %v2234_v6 = vpop.f32.mrf.mxu0 }
 0x1f4   : > { %v2082_v58 = vpop.f32.mrf.mxu3  ;;  %v1773_v39 = vpop.f32.mrf.mxu1 }
 0x1f5   : > { %v2162_v41 = vadd.f32 %v2082_v58, %v1994_v35  ;;  %v1850_v10 = vadd.f32 %v1773_v39, %v4282_v37  ;;  %v4286_v58 = vld [vmem:[#allocation32_spill] sm:$0xff] }
 0x1f6   : > { %2878 = vmatmul.msk.bf16.gmra.mxu0 %vm682_vm3, %v3715_v9 }
 0x1f7   : > { %v2314_v13 = vadd.f32 %v2234_v6, %v2162_v41  ;;  %v1916_v16 = vpop.f32.mrf.mxu2  ;;  %2790 = vmatmul.msk.bf16.gmra.mxu1 %vm682_vm3, %v3715_v9 }
 0x1f8   : > { %v1995_v21 = vadd.f32 %v1916_v16, %v1849_v3  ;;  %v4287_v3 = vld [vmem:[#allocation12_spill] sm:$0xff] }
 0x1f9   : > { %v2350_v47 = vadd.f32 %v4005_v2, %v2314_v13 }
 0x1fb   : > { %v2236_v11 = vpop.f32.mrf.mxu0  ;;  %2941 = vtanh.f32 %v2350_v47 }
 0x1fc   : > { %v2084_v34 = vpop.f32.mrf.mxu3  ;;  %2822 = vmatmul.msk.bf16.gmra.mxu2 %vm682_vm3, %v3722_v20  ;;  %v1775_v36 = vpop.f32.mrf.mxu1  ;;  %v4284_v20 = vld [vmem:[#allocation9_spill] sm:$0xff] }
 0x1fd   : > { %v2163_v53 = vadd.f32 %v2084_v34, %v1995_v21  ;;  %v1851_v25 = vadd.f32 %v1775_v36, %v4285_v45  ;;  %v4288_v34 = vld [vmem:[#allocation3_spill] sm:$0xff] }
 0x1ff   : > { %v2315_v57 = vadd.f32 %v2236_v11, %v2163_v53  ;;  %v1919_v52 = vpop.f32.mrf.mxu2 }
 0x200   : > { %v1996_v9 = vadd.f32 %v1919_v52, %v1850_v10  ;;  %v4289_v52 = vld [vmem:[#allocation35_spill] sm:$0xff] }
 0x201   : > { %v2942_v59 = vpop.eup %2941  ;;  %v2351_v17 = vadd.f32 %v4005_v2, %v2315_v57  ;;  %2850 = vmatmul.msk.bf16.gmra.mxu3 %vm682_vm3, %v4283_v0 }
 0x202   : > { %2414 = vxpose.xlu0.b32.start [1/16] (narrow) %v2942_v59, 8 }
 0x203   : > { %2943 = vtanh.f32 %v2351_v17  ;;  %v2239_v23 = vpop.f32.mrf.mxu0  ;;  %v4290_v17 = vld [vmem:[#allocation33_spill] sm:$0xff] }
 0x204   : > { %v2087_v4 = vpop.f32.mrf.mxu3  ;;  %v1778_v18 = vpop.f32.mrf.mxu1 }
 0x205   : > { %v2164_v22 = vadd.f32 %v2087_v4, %v1996_v9  ;;  %v1852_v16 = vadd.f32 %v1778_v18, %v4287_v3 }
 0x206   : > { %2879 = vmatmul.msk.bf16.gmra.mxu0 %vm682_vm3, %v4284_v20 }
 0x207   : > { %v2316_v29 = vadd.f32 %v2239_v23, %v2164_v22  ;;  %v1921_v1 = vpop.f32.mrf.mxu2  ;;  %2791 = vmatmul.msk.bf16.gmra.mxu1 %vm682_vm3, %v4284_v20 }
 0x208   : > { %v1997_v24 = vadd.f32 %v1921_v1, %v1851_v25 }
 0x209   : > { %v2944_v15 = vpop.eup %2943  ;;  %v2352_v63 = vadd.f32 %v4005_v2, %v2316_v29  ;;  %v4291_v29 = vld [vmem:[#allocation36_spill] sm:$0xff] }
 0x20a   : > { %2415 = vxpose.xlu0.b32.cont [2/16] (narrow) %v2944_v15, 8  ;;  %v4292_v15 = vld [vmem:[#allocation34_spill] sm:$0xff] }
 0x20b   : > { %2945 = vtanh.f32 %v2352_v63  ;;  %v2241_v35 = vpop.f32.mrf.mxu0 }
 0x20c   : > { %v2089_v6 = vpop.f32.mrf.mxu3  ;;  %2823 = vmatmul.msk.bf16.gmra.mxu2 %vm682_vm3, %v4286_v58  ;;  %v1780_v39 = vpop.f32.mrf.mxu1  ;;  %v4293_v58 = vld [vmem:[#allocation4_spill] sm:$0xff] }
 0x20d   : > { %v2165_v41 = vadd.f32 %v2089_v6, %v1997_v24  ;;  %v1853_v0 = vadd.f32 %v1780_v39, %v4290_v17 }
 0x20f   : > { %v2317_v13 = vadd.f32 %v2241_v35, %v2165_v41  ;;  %v1924_v21 = vpop.f32.mrf.mxu2 }
 0x210   : > { %v1998_v36 = vadd.f32 %v1924_v21, %v1852_v16  ;;  %v4294_v21 = vld [vmem:[#allocation39_spill] sm:$0xff] }
 0x211   : > { %v2946_v47 = vpop.eup %2945  ;;  %v2353_v11 = vadd.f32 %v4005_v2, %v2317_v13  ;;  %2851 = vmatmul.msk.bf16.gmra.mxu3 %vm682_vm3, %v4288_v34 }
 0x212   : > { %2416 = vxpose.xlu0.b32.cont [3/16] (narrow) %v2946_v47, 8 }
 0x213   : > { %2947 = vtanh.f32 %v2353_v11  ;;  %v2244_v53 = vpop.f32.mrf.mxu0  ;;  %v4295_v11 = vld [vmem:[#allocation37_spill] sm:$0xff] }
 0x214   : > { %v2092_v57 = vpop.f32.mrf.mxu3  ;;  %v1783_v37 = vpop.f32.mrf.mxu1 }
 0x215   : > { %v2166_v10 = vadd.f32 %v2092_v57, %v1998_v36  ;;  %v1854_v63 = vadd.f32 %v1783_v37, %v4292_v15 }
 0x216   : > { %2880 = vmatmul.msk.bf16.gmra.mxu0 %vm682_vm3, %v4289_v52 }
 0x217   : > { %v2318_v59 = vadd.f32 %v2244_v53, %v2166_v10  ;;  %v1926_v9 = vpop.f32.mrf.mxu2  ;;  %2792 = vmatmul.msk.bf16.gmra.mxu1 %vm682_vm3, %v4289_v52 }
 0x218   : > { %v1999_v18 = vadd.f32 %v1926_v9, %v1853_v0 }
 0x219   : > { %v2948_v23 = vpop.eup %2947  ;;  %v2354_v4 = vadd.f32 %v4005_v2, %v2318_v59  ;;  %v4296_v59 = vld [vmem:[#allocation6_spill] sm:$0xff] }
 0x21a   : > { %2417 = vxpose.xlu0.b32.cont [4/16] (narrow) %v2948_v23, 8  ;;  %v4297_v23 = vld [vmem:[#allocation38_spill] sm:$0xff] }
 0x21b   : > { %2949 = vtanh.f32 %v2354_v4  ;;  %v2246_v22 = vpop.f32.mrf.mxu0 }
 0x21c   : > { %v2094_v20 = vpop.f32.mrf.mxu3  ;;  %2824 = vmatmul.msk.bf16.gmra.mxu2 %vm682_vm3, %v4291_v29  ;;  %v1785_v45 = vpop.f32.mrf.mxu1  ;;  %v4298_v29 = vld [vmem:[#allocation10_spill] sm:$0xff] }
 0x21d   : > { %v2167_v25 = vadd.f32 %v2094_v20, %v1999_v18  ;;  %v1855_v34 = vadd.f32 %v1785_v45, %v4295_v11 }
 0x21f   : > { %v2319_v1 = vadd.f32 %v2246_v22, %v2167_v25  ;;  %v1929_v24 = vpop.f32.mrf.mxu2 }
 0x220   : > { %v2000_v39 = vadd.f32 %v1929_v24, %v1854_v63  ;;  %v4299_v24 = vld [vmem:[#allocation41_spill] sm:$0xff] }
 0x221   : > { %v2950_v35 = vpop.eup %2949  ;;  %v2355_v6 = vadd.f32 %v4005_v2, %v2319_v1  ;;  %2852 = vmatmul.msk.bf16.gmra.mxu3 %vm682_vm3, %v4293_v58 }
 0x222   : > { %2418 = vxpose.xlu0.b32.cont [5/16] (narrow) %v2950_v35, 8 }
 0x223   : > { %2951 = vtanh.f32 %v2355_v6  ;;  %v2249_v41 = vpop.f32.mrf.mxu0  ;;  %v4300_v6 = vld [vmem:[#allocation7_spill] sm:$0xff] }
 0x224   : > { %v2097_v13 = vpop.f32.mrf.mxu3  ;;  %v1788_v3 = vpop.f32.mrf.mxu1 }
 0x225   : > { %v2168_v16 = vadd.f32 %v2097_v13, %v2000_v39  ;;  %v1856_v4 = vadd.f32 %v1788_v3, %v4297_v23 }
 0x226   : > { %2881 = vmatmul.msk.bf16.gmra.mxu0 %vm682_vm3, %v4294_v21 }
 0x227   : > { %v2320_v47 = vadd.f32 %v2249_v41, %v2168_v16  ;;  %v1931_v36 = vpop.f32.mrf.mxu2  ;;  %2793 = vmatmul.msk.bf16.gmra.mxu1 %vm682_vm3, %v4294_v21 }
 0x228   : > { %v2001_v37 = vadd.f32 %v1931_v36, %v1855_v34  ;;  %v4301_v36 = vld [vmem:[#allocation40_spill] sm:$0xff] }
 0x229   : > { %v2952_v53 = vpop.eup %2951  ;;  %v2356_v57 = vadd.f32 %v4005_v2, %v2320_v47 }
 0x22a   : > { %2419 = vxpose.xlu0.b32.cont [6/16] (narrow) %v2952_v53, 8 }
 0x22b   : > { %2953 = vtanh.f32 %v2356_v57  ;;  %v2251_v10 = vpop.f32.mrf.mxu0 }
 0x22c   : > { %v2099_v52 = vpop.f32.mrf.mxu3  ;;  %2825 = vmatmul.msk.bf16.gmra.mxu2 %vm682_vm3, %v4296_v59  ;;  %v1790_v17 = vpop.f32.mrf.mxu1 }
 0x22d   : > { %v2169_v0 = vadd.f32 %v2099_v52, %v2001_v37  ;;  %v1857_v58 = vadd.f32 %v1790_v17, %v4300_v6  ;;  %v4302_v17 = vld [vmem:[#allocation42_spill] sm:$0xff] }
 0x22f   : > { %v2321_v9 = vadd.f32 %v2251_v10, %v2169_v0  ;;  %v1934_v18 = vpop.f32.mrf.mxu2  ;;  %v1731_v0 = vrot.slane %v4302_v17, 5 }
 0x230   : > { %v2002_v45 = vadd.f32 %v1934_v18, %v1856_v4 }
 0x231   : > { %v2954_v22 = vpop.eup %2953  ;;  %v2357_v20 = vadd.f32 %v4005_v2, %v2321_v9  ;;  %2853 = vmatmul.msk.bf16.gmra.mxu3 %vm682_vm3, %v4298_v29  ;;  %v4069_v9 = vld [vmem:[%s3074_s29 + $0xcc] sm:$0xf] }
 0x232   : > { %2420 = vxpose.xlu0.b32.cont [7/16] (narrow) %v2954_v22, 8  ;;  %v4303_v22 = vld [vmem:[#allocation5_spill] sm:$0xff]  ;;  %v2030_v29 = vshll.u32 %v4069_v9, 16 }
 0x233   : > { %2955 = vtanh.f32 %v2357_v20  ;;  %v2254_v25 = vpop.f32.mrf.mxu0  ;;  %v2768_v20 = vrot.slane %v4303_v22, 9 }
 0x234   : > { %v2102_v1 = vpop.f32.mrf.mxu3  ;;  %v1793_v15 = vpop.f32.mrf.mxu1 }
 0x235   : > { %v2170_v63 = vadd.f32 %v2102_v1, %v2002_v45  ;;  %v1858_v53 = vadd.f32 %v1793_v15, %v4301_v36 }
 0x236   : > { %2882 = vmatmul.msk.bf16.gmra.mxu0 %vm682_vm3, %v4299_v24 }
 0x237   : > { %v2322_v35 = vadd.f32 %v2254_v25, %v2170_v63  ;;  %v1936_v39 = vpop.f32.mrf.mxu2  ;;  %2794 = vmatmul.msk.bf16.gmra.mxu1 %vm682_vm3, %v4299_v24  ;;  %v1733_v24 = vrot.slane %v1731_v0, 4 }
 0x238   : > { %v2003_v3 = vadd.f32 %v1936_v39, %v1857_v58 }
 0x239   : > { %v2956_v41 = vpop.eup %2955  ;;  %v2358_v13 = vadd.f32 %v4005_v2, %v2322_v35  ;;  %v1734_v35 = vrot.slane %v3842_v40, 5 }
 0x23a   : > { %2421 = vxpose.xlu0.b32.cont [8/16] (narrow) %v2956_v41, 8  ;;  %v1732_v41 = vsel %vm3411_vm6, %v2768_v20, %v1731_v0 }
 0x23b   : > { %2957 = vtanh.f32 %v2358_v13  ;;  %v2256_v16 = vpop.f32.mrf.mxu0  ;;  %v1741_v36 = vunpack.c.l.b16 %v1732_v41 }
 0x23c   : > { %v2104_v21 = vpop.f32.mrf.mxu3  ;;  %2826 = vmatmul.msk.bf16.gmra.mxu2 %vm682_vm3, %v3835_v33  ;;  %v1795_v47 = vpop.f32.mrf.mxu1  ;;  %v4072_v33 = vld [vmem:[%s3074_s29 + $0xd0] sm:$0xf] }
 0x23d   : > { %v2171_v11 = vadd.f32 %v2104_v21, %v2003_v3  ;;  %v2036_v45 = vshll.u32 %v4072_v33, 16  ;;  %v2040_v25 = vshrl.u32 %v4072_v33, 16  ;;  %v1859_v15 = vadd.f32 %v1795_v47, %v3839_v30  ;;  %v225_v47 = vld [vmem:[%s3074_s29 + $0xd4] sm:$0x1] }
 0x23e   : > { %v2032_v3 = vrot.slane %v2030_v29, 5 }
 0x23f   : > { %v2323_v34 = vadd.f32 %v2256_v16, %v2171_v11  ;;  %v1939_v57 = vpop.f32.mrf.mxu2  ;;  %v2038_v16 = vrot.slane %v2036_v45, 5  ;;  %v2042_v30 = vrot.slane %v2040_v25, 4  ;;  %v2197_v45 = vrot.slane %v4072_v33, 5 }
 0x240   : > { %v2004_v52 = vadd.f32 %v1939_v57, %v1858_v53 }
 0x241   : > { %v2958_v37 = vpop.eup %2957  ;;  %v2359_v10 = vadd.f32 %v4005_v2, %v2323_v34  ;;  %2854 = vmatmul.msk.bf16.gmra.mxu3 %vm682_vm3, %v3420_v60  ;;  %v2027_v60 = vshrl.u32 %v4069_v9, 16  ;;  %v2199_v33 = vrot.slane %v2197_v45, 4 }
 0x242   : > { %2422 = vxpose.xlu0.b32.cont [9/16] (narrow) %v2958_v37, 8  ;;  %v2043_v37 = vor.u32 %v2042_v30, %v2038_v16 }
 0x243   : > { %2959 = vtanh.f32 %v2359_v10  ;;  %v2259_v59 = vpop.f32.mrf.mxu0  ;;  %v2029_v13 = vrot.slane %v2027_v60, 4  ;;  %v2046_v10 = vshll.u32 %v225_v47, 16 }
 0x244   : > { %v2107_v23 = vpop.f32.mrf.mxu3  ;;  %v1798_v4 = vpop.f32.mrf.mxu1  ;;  %v2044_v20 = vrot.slane %v2043_v37, 4 }
 0x245   : > { %v2172_v18 = vadd.f32 %v2107_v23, %v2004_v52  ;;  %v2033_v57 = vor.u32 %v2032_v3, %v2029_v13  ;;  %v2048_v60 = vrot.slane %v2046_v10, 5 }
 0x246   : > { %2883 = vmatmul.msk.bf16.gmra.mxu0 %vm682_vm3, %v3858_v48 }
 0x247   : > { %v2324_v1 = vadd.f32 %v2259_v59, %v2172_v18  ;;  %v1941_v63 = vpop.f32.mrf.mxu2  ;;  %2795 = vmatmul.msk.bf16.gmra.mxu1 %vm682_vm3, %v3858_v48  ;;  %v1735_v48 = vsel %vm3411_vm6, %v1733_v24, %v1734_v35  ;;  %v1860_v59 = vadd.f32 %v1798_v4, %v3856_v44 }
 0x248   : > { %v2005_v39 = vadd.f32 %v1941_v63, %v1859_v15  ;;  %v1742_v53 = vunpack.c.l.b16 %v1735_v48  ;;  %v2857_v15 = vrot.slane %v4069_v9, 9 }
 0x249   : > { %v2960_v6 = vpop.eup %2959  ;;  %v2360_v58 = vadd.f32 %v4005_v2, %v2324_v1 }
 0x24a   : > { %2423 = vxpose.xlu0.b32.cont [10/16] (narrow) %v2960_v6, 8  ;;  %v1743_v22 = vpack.c.b16 %v1742_v53, %v1741_v36  ;;  %v2200_v6 = vrot.slane %v225_v47, 5  ;;  %v2198_v9 = vsel %vm3411_vm6, %v2857_v15, %v2197_v45 }
 0x24b   : > { %2961 = vtanh.f32 %v2360_v58  ;;  %v2261_v21 = vpop.f32.mrf.mxu0  ;;  %v2906_v58 = vld [vmem:[%s3074_s29 + $0xcc] sm:$0xff]  ;;  %s2888_s29 = sshll.u32 %s4305_s13, 3 }
 0x24c   : > { %v2109_v11 = vpop.f32.mrf.mxu3  ;;  %2827 = vmatmul.msk.bf16.gmra.mxu2 %vm682_vm3, %v3867_v27  ;;  %v1800_v40 = vpop.f32.mrf.mxu1  ;;  %v2034_v27 = vrot.slane %v2033_v57, 4  ;;  %s170_s7 = scalar_lea.vmem %s4162_s3, %s2888_s29 }
 0x24d   : > { %v2173_v34 = vadd.f32 %v2109_v11, %v2005_v39  ;;  %v1861_v24 = vadd.f32 %v1800_v40, %v3870_v50  ;;  %v2201_v50 = vsel %vm3411_vm6, %v2199_v33, %v2200_v6  ;;  %v2207_v11 = vunpack.c.l.b16 %v2198_v9 }
 0x24e   : > { %v2039_v1 = vsel %vm3097_vm2, %v2034_v27, %v2038_v16  ;;  %v2208_v40 = vunpack.c.l.b16 %v2201_v50 }
 0x24f   : > { %v2325_v52 = vadd.f32 %v2261_v21, %v2173_v34  ;;  %v1944_v17 = vpop.f32.mrf.mxu2  ;;  %v2055_v3 = vunpack.c.l.b16 %v2039_v1 }
 0x250   : > { %v2006_v18 = vadd.f32 %v1944_v17, %v1860_v59  ;;  %v2209_v49 = vpack.c.b16 %v2208_v40, %v2207_v11 }
 0x251   : > { %v2962_v0 = vpop.eup %2961  ;;  %v2361_v23 = vadd.f32 %v4005_v2, %v2325_v52  ;;  %2855 = vmatmul.msk.bf16.gmra.mxu3 %vm682_vm3, %v3874_v38  ;;  %v2049_v38 = vsel %vm3097_vm2, %v2044_v20, %v2048_v60 }
 0x252   : > { %2424 = vxpose.xlu0.b32.cont [11/16] (narrow) %v2962_v0, 8  ;;  %v2056_v16 = vunpack.c.l.b16 %v2049_v38 }
 0x253   : > { %2963 = vtanh.f32 %v2361_v23  ;;  %v2264_v29 = vpop.f32.mrf.mxu0 }
 0x254   : > { %v2112_v25 = vpop.f32.mrf.mxu3  ;;  %v1803_v44 = vpop.f32.mrf.mxu1  ;;  %v2057_v47 = vpack.c.b16 %v2056_v16, %v2055_v3 }
 0x255   : > { %v2174_v4 = vadd.f32 %v2112_v25, %v2006_v18  ;;  %v1862_v36 = vadd.f32 %v1803_v44, %v3881_v14 }
 0x256   : > { %2884 = vmatmul.msk.bf16.gmra.mxu0 %vm682_vm3, %v1743_v22 }
 0x257   : > { %v2326_v63 = vadd.f32 %v2264_v29, %v2174_v4  ;;  %v1946_v35 = vpop.f32.mrf.mxu2  ;;  %2796 = vmatmul.msk.bf16.gmra.mxu1 %vm682_vm3, %v1743_v22 }
 0x258   : > { %v2007_v13 = vadd.f32 %v1946_v35, %v1861_v24 }
 0x259   : > { %v2964_v39 = vpop.eup %2963  ;;  %v2362_v41 = vadd.f32 %v4005_v2, %v2326_v63 }
 0x25a   : > { %2425 = vxpose.xlu0.b32.cont [12/16] (narrow) %v2964_v39, 8 }
 0x25b   : > { %2965 = vtanh.f32 %v2362_v41  ;;  %v2266_v32 = vpop.f32.mrf.mxu0 }
 0x25c   : > { %v2114_v30 = vpop.f32.mrf.mxu3  ;;  %2828 = vmatmul.msk.bf16.gmra.mxu2 %vm682_vm3, %v2906_v58  ;;  %v1805_v21 = vpop.f32.mrf.mxu1 }
 0x25d   : > { %v2175_v48 = vadd.f32 %v2114_v30, %v2007_v13  ;;  %v1863_v18 = vadd.f32 %v1805_v21, %v3886_v46 }
 0x25f   : > { %v2327_v34 = vadd.f32 %v2266_v32, %v2175_v48  ;;  %v1949_v53 = vpop.f32.mrf.mxu2 }
 0x260   : > { %v2008_v10 = vadd.f32 %v1949_v53, %v1862_v36 }
 0x261   : > { %v2966_v57 = vpop.eup %2965  ;;  %v2363_v37 = vadd.f32 %v4005_v2, %v2327_v34  ;;  %2856 = vmatmul.msk.bf16.gmra.mxu3 %vm682_vm3, %v2057_v47 }
 0x262   : > { %2426 = vxpose.xlu0.b32.cont [13/16] (narrow) %v2966_v57, 8 }
 0x263   : > { %2967 = vtanh.f32 %v2363_v37  ;;  %v2269_v52 = vpop.f32.mrf.mxu0 }
 0x264   : > { %v2117_v59 = vpop.f32.mrf.mxu3  ;;  %v1808_v17 = vpop.f32.mrf.mxu1 }
 0x265   : > { %v2176_v0 = vadd.f32 %v2117_v59, %v2008_v10  ;;  %v1864_v4 = vadd.f32 %v1808_v17, %v3895_v56 }
 0x266   : > { %2885 = vmatmul.msk.bf16.gmra.mxu0 %vm682_vm3, %v2209_v49 }
 0x267   : > { %v2328_v23 = vadd.f32 %v2269_v52, %v2176_v0  ;;  %v1951_v14 = vpop.f32.mrf.mxu2 }
 0x268   : > { %v2009_v20 = vadd.f32 %v1951_v14, %v1863_v18 }
 0x269   : > { %v2968_v22 = vpop.eup %2967  ;;  %v2364_v27 = vadd.f32 %v4005_v2, %v2328_v23 }
 0x26a   : > { %2427 = vxpose.xlu0.b32.cont [14/16] (narrow) %v2968_v22, 8 }
 0x26b   : > { %2969 = vtanh.f32 %v2364_v27  ;;  %v2271_v60 = vpop.f32.mrf.mxu0 }
 0x26c   : > { %v2119_v29 = vpop.f32.mrf.mxu3  ;;  %v1810_v45 = vpop.f32.mrf.mxu1 }
 0x26d   : > { %v2177_v25 = vadd.f32 %v2119_v29, %v2009_v20  ;;  %v1865_v58 = vadd.f32 %v1810_v45, %v3900_v7 }
 0x26f   : > { %v2329_v44 = vadd.f32 %v2271_v60, %v2177_v25  ;;  %v1954_v1 = vpop.f32.mrf.mxu2 }
 0x270   : > { %v2010_v63 = vadd.f32 %v1954_v1, %v1864_v4 }
 0x271   : > { %v2970_v38 = vpop.eup %2969  ;;  %v2365_v15 = vadd.f32 %v4005_v2, %v2329_v44 }
 0x272   : > { %2428 = vxpose.xlu0.b32.cont [15/16] (narrow) %v2970_v38, 8 }
 0x273   : > { %2971 = vtanh.f32 %v2365_v15  ;;  %v2274_v46 = vpop.f32.mrf.mxu0 }
 0x274   : > { %v2122_v24 = vpop.f32.mrf.mxu3  ;;  %v1813_v35 = vpop.f32.mrf.mxu1 }
 0x275   : > { %v2178_v33 = vadd.f32 %v2122_v24, %v2010_v63  ;;  %v1866_v30 = vadd.f32 %v1813_v35, %v3909_v61 }
 0x277   : > { %v2330_v6 = vadd.f32 %v2274_v46, %v2178_v33  ;;  %v1956_v39 = vpop.f32.mrf.mxu2 }
 0x278   : > { %v2011_v13 = vadd.f32 %v1956_v39, %v1865_v58 }
 0x279   : > { %v2972_v41 = vpop.eup %2971  ;;  %v2366_v3 = vadd.f32 %v4005_v2, %v2330_v6 }
 0x27a   : > { %2429 = vxpose.xlu0.b32.end [16/16] (narrow) %v2972_v41, 8 }
 0x27b   : > { %v2276_v56 = vpop.f32.mrf.mxu0  ;;  %2973 = vtanh.f32 %v2366_v3 }
 0x27c   : > { %v2124_v16 = vpop.f32.mrf.mxu3  ;;  %v1815_v32 = vpop.f32.mrf.mxu1 }
 0x27d   : > { %v2179_v9 = vadd.f32 %v2124_v16, %v2011_v13  ;;  %v1867_v57 = vadd.f32 %v1815_v32, %v3914_v42 }
 0x27f   : > { %v2331_v50 = vadd.f32 %v2276_v56, %v2179_v9  ;;  %v1959_v21 = vpop.f32.mrf.mxu2 }
 0x280   : > { %v2012_v11 = vadd.f32 %v1959_v21, %v1866_v30 }
 0x281   : > { %v2974_v48 = vpop.eup %2973  ;;  %v2367_v47 = vadd.f32 %v4005_v2, %v2331_v50 }
 0x282   : > { %2446 = vxpose.xlu1.b32.start [1/16] (narrow) %v2974_v48, 8 }
 0x283   : > { %2975 = vtanh.f32 %v2367_v47  ;;  %v2279_v7 = vpop.f32.mrf.mxu0 }
 0x284   : > { %v2127_v40 = vpop.f32.mrf.mxu3  ;;  %v1818_v34 = vpop.f32.mrf.mxu1 }
 0x285   : > { %v2180_v36 = vadd.f32 %v2127_v40, %v2012_v11  ;;  %v1868_v18 = vadd.f32 %v1818_v34, %v3923_v19 }
 0x287   : > { %v2332_v53 = vadd.f32 %v2279_v7, %v2180_v36  ;;  %v1961_v37 = vpop.f32.mrf.mxu2 }
 0x288   : > { %v2013_v52 = vadd.f32 %v1961_v37, %v1867_v57 }
 0x289   : > { %v2976_v10 = vpop.eup %2975  ;;  %v2368_v49 = vadd.f32 %v4005_v2, %v2332_v53 }
 0x28a   : > { %2447 = vxpose.xlu1.b32.cont [2/16] (narrow) %v2976_v10, 8 }
 0x28b   : > { %2977 = vtanh.f32 %v2368_v49  ;;  %v2281_v61 = vpop.f32.mrf.mxu0 }
 0x28c   : > { %v2129_v59 = vpop.f32.mrf.mxu3  ;;  %v1820_v17 = vpop.f32.mrf.mxu1 }
 0x28d   : > { %v2181_v0 = vadd.f32 %v2129_v59, %v2013_v52  ;;  %v1869_v44 = vadd.f32 %v1820_v17, %v3928_v55 }
 0x28f   : > { %v2333_v23 = vadd.f32 %v2281_v61, %v2181_v0  ;;  %v1964_v14 = vpop.f32.mrf.mxu2 }
 0x290   : > { %v2014_v20 = vadd.f32 %v1964_v14, %v1868_v18 }
 0x291   : > { %v2978_v22 = vpop.eup %2977  ;;  %v2369_v27 = vadd.f32 %v4005_v2, %v2333_v23 }
 0x292   : > { %2448 = vxpose.xlu1.b32.cont [3/16] (narrow) %v2978_v22, 8 }
 0x293   : > { %2979 = vtanh.f32 %v2369_v27  ;;  %v2284_v42 = vpop.f32.mrf.mxu0 }
 0x294   : > { %v2132_v60 = vpop.f32.mrf.mxu3  ;;  %v1823_v29 = vpop.f32.mrf.mxu1 }
 0x295   : > { %v2182_v45 = vadd.f32 %v2132_v60, %v2014_v20  ;;  %v1870_v33 = vadd.f32 %v1823_v29, %v3937_v26 }
 0x297   : > { %v2334_v25 = vadd.f32 %v2284_v42, %v2182_v45  ;;  %v1966_v4 = vpop.f32.mrf.mxu2 }
 0x298   : > { %v2015_v15 = vadd.f32 %v1966_v4, %v1869_v44 }
 0x299   : > { %v2980_v1 = vpop.eup %2979  ;;  %v2370_v38 = vadd.f32 %v4005_v2, %v2334_v25 }
 0x29a   : > { %2449 = vxpose.xlu1.b32.cont [4/16] (narrow) %v2980_v1, 8 }
 0x29b   : > { %2981 = vtanh.f32 %v2370_v38  ;;  %v2286_v19 = vpop.f32.mrf.mxu0 }
 0x29c   : > { %v2134_v63 = vpop.f32.mrf.mxu3  ;;  %v1825_v46 = vpop.f32.mrf.mxu1 }
 0x29d   : > { %v2183_v24 = vadd.f32 %v2134_v63, %v2015_v15  ;;  %v1871_v32 = vadd.f32 %v1825_v46, %v3942_v28 }
 0x29f   : > { %v2335_v35 = vadd.f32 %v2286_v19, %v2183_v24  ;;  %v1969_v6 = vpop.f32.mrf.mxu2 }
 0x2a0   : > { %v2016_v41 = vadd.f32 %v1969_v6, %v1870_v33 }
 0x2a1   : > { %v2982_v58 = vpop.eup %2981  ;;  %v2371_v39 = vadd.f32 %v4005_v2, %v2335_v35 }
 0x2a2   : > { %2450 = vxpose.xlu1.b32.cont [5/16] (narrow) %v2982_v58, 8 }
 0x2a3   : > { %2983 = vtanh.f32 %v2371_v39  ;;  %v2289_v55 = vpop.f32.mrf.mxu0 }
 0x2a4   : > { %v2137_v13 = vpop.f32.mrf.mxu3  ;;  %v1828_v3 = vpop.f32.mrf.mxu1 }
 0x2a5   : > { %v2184_v56 = vadd.f32 %v2137_v13, %v2016_v41  ;;  %v1872_v40 = vadd.f32 %v1828_v3, %v3951_v43 }
 0x2a7   : > { %v2336_v16 = vadd.f32 %v2289_v55, %v2184_v56  ;;  %v1971_v9 = vpop.f32.mrf.mxu2 }
 0x2a8   : > { %v2017_v21 = vadd.f32 %v1971_v9, %v1871_v32 }
 0x2a9   : > { %v2984_v50 = vpop.eup %2983  ;;  %v2372_v30 = vadd.f32 %v4005_v2, %v2336_v16 }
 0x2aa   : > { %2451 = vxpose.xlu1.b32.cont [6/16] (narrow) %v2984_v50, 8 }
 0x2ab   : > { %2985 = vtanh.f32 %v2372_v30  ;;  %v2291_v26 = vpop.f32.mrf.mxu0 }
 0x2ac   : > { %v2139_v48 = vpop.f32.mrf.mxu3  ;;  %v1830_v47 = vpop.f32.mrf.mxu1 }
 0x2ad   : > { %v2185_v11 = vadd.f32 %v2139_v48, %v2017_v21  ;;  %v1873_v61 = vadd.f32 %v1830_v47, %v3956_v8 }
 0x2af   : > { %v2337_v7 = vadd.f32 %v2291_v26, %v2185_v11  ;;  %v1974_v34 = vpop.f32.mrf.mxu2 }
 0x2b0   : > { %v2018_v57 = vadd.f32 %v1974_v34, %v1872_v40 }
 0x2b1   : > { %v2986_v36 = vpop.eup %2985  ;;  %v2373_v53 = vadd.f32 %v4005_v2, %v2337_v7 }
 0x2b2   : > { %2452 = vxpose.xlu1.b32.cont [7/16] (narrow) %v2986_v36, 8 }
 0x2b3   : > { %2987 = vtanh.f32 %v2373_v53  ;;  %v2294_v28 = vpop.f32.mrf.mxu0 }
 0x2b4   : > { %v2142_v37 = vpop.f32.mrf.mxu3  ;;  %v1833_v10 = vpop.f32.mrf.mxu1 }
 0x2b5   : > { %v2186_v49 = vadd.f32 %v2142_v37, %v2018_v57  ;;  %v1874_v20 = vadd.f32 %v1833_v10, %v3965_v5 }
 0x2b7   : > { %v2338_v52 = vadd.f32 %v2294_v28, %v2186_v49  ;;  %v1976_v59 = vpop.f32.mrf.mxu2 }
 0x2b8   : > { %v2019_v23 = vadd.f32 %v1976_v59, %v1873_v61 }
 0x2b9   : > { %v2988_v17 = vpop.eup %2987  ;;  %v2374_v0 = vadd.f32 %v4005_v2, %v2338_v52 }
 0x2ba   : > { %2453 = vxpose.xlu1.b32.cont [8/16] (narrow) %v2988_v17, 8 }
 0x2bb   : > { %2989 = vtanh.f32 %v2374_v0  ;;  %v2296_v43 = vpop.f32.mrf.mxu0 }
 0x2bc   : > { %v2144_v18 = vpop.f32.mrf.mxu3  ;;  %v1835_v14 = vpop.f32.mrf.mxu1 }
 0x2bd   : > { %v2187_v22 = vadd.f32 %v2144_v18, %v2019_v23  ;;  %v1875_v38 = vadd.f32 %v1835_v14, %v3970_v12 }
 0x2bf   : > { %v2339_v27 = vadd.f32 %v2296_v43, %v2187_v22  ;;  %v1979_v42 = vpop.f32.mrf.mxu2 }
 0x2c0   : > { %v2020_v45 = vadd.f32 %v1979_v42, %v1874_v20 }
 0x2c1   : > { %v2990_v60 = vpop.eup %2989  ;;  %v2375_v29 = vadd.f32 %v4005_v2, %v2339_v27  ;;  %v2430_v27 = vpop.trf.xlu0 }
 0x2c2   : > { %2454 = vxpose.xlu1.b32.cont [9/16] (narrow) %v2990_v60, 8 }
 0x2c3   : > { %2991 = vtanh.f32 %v2375_v29  ;;  %v2299_v8 = vpop.f32.mrf.mxu0 }
 0x2c4   : > { %v2147_v25 = vpop.f32.mrf.mxu3  ;;  %v1838_v4 = vpop.f32.mrf.mxu1 }
 0x2c5   : > { %v2188_v44 = vadd.f32 %v2147_v25, %v2020_v45  ;;  %v1876_v6 = vadd.f32 %v1838_v4, %v3979_v51 }
 0x2c7   : > { %v2340_v1 = vadd.f32 %v2299_v8, %v2188_v44  ;;  %v1981_v15 = vpop.f32.mrf.mxu2 }
 0x2c8   : > { %v2021_v46 = vadd.f32 %v1981_v15, %v1875_v38 }
 0x2c9   : > { %v2992_v19 = vpop.eup %2991  ;;  %v2376_v63 = vadd.f32 %v4005_v2, %v2340_v1 }
 0x2ca   : > { %2455 = vxpose.xlu1.b32.cont [10/16] (narrow) %v2992_v19, 8 }
 0x2cb   : > { %2993 = vtanh.f32 %v2376_v63  ;;  %v2301_v5 = vpop.f32.mrf.mxu0 }
 0x2cc   : > { %v2149_v24 = vpop.f32.mrf.mxu3  ;;  %v1840_v39 = vpop.f32.mrf.mxu1 }
 0x2cd   : > { %v2189_v35 = vadd.f32 %v2149_v24, %v2021_v46  ;;  %v1877_v32 = vadd.f32 %v1840_v39, %v3984_v31 }
 0x2cf   : > { %v2341_v33 = vadd.f32 %v2301_v5, %v2189_v35  ;;  %v1984_v58 = vpop.f32.mrf.mxu2 }
 0x2d0   : > { %v2022_v13 = vadd.f32 %v1984_v58, %v1876_v6 }
 0x2d1   : > { %v2994_v41 = vpop.eup %2993  ;;  %v2377_v55 = vadd.f32 %v4005_v2, %v2341_v33 }
 0x2d2   : > { %2456 = vxpose.xlu1.b32.cont [11/16] (narrow) %v2994_v41, 8 }
 0x2d3   : > { %2995 = vtanh.f32 %v2377_v55  ;;  %v2304_v12 = vpop.f32.mrf.mxu0 }
 0x2d4   : > { %v2152_v3 = vpop.f32.mrf.mxu3  ;;  %v1843_v51 = vpop.f32.mrf.mxu1 }
 0x2d5   : > { %v2190_v56 = vadd.f32 %v2152_v3, %v2022_v13  ;;  %v1878_v7 = vadd.f32 %v1843_v51, %v3993_v54 }
 0x2d7   : > { %v2342_v16 = vadd.f32 %v2304_v12, %v2190_v56  ;;  %v1986_v9 = vpop.f32.mrf.mxu2 }
 0x2d8   : > { %v2023_v21 = vadd.f32 %v1986_v9, %v1877_v32 }
 0x2d9   : > { %v2996_v50 = vpop.eup %2995  ;;  %v2378_v30 = vadd.f32 %v4005_v2, %v2342_v16 }
 0x2da   : > { %2457 = vxpose.xlu1.b32.cont [12/16] (narrow) %v2996_v50, 8 }
 0x2db   : > { %2997 = vtanh.f32 %v2378_v30  ;;  %v2306_v26 = vpop.f32.mrf.mxu0 }
 0x2dc   : > { %v2154_v48 = vpop.f32.mrf.mxu3  ;;  %v1845_v31 = vpop.f32.mrf.mxu1 }
 0x2dd   : > { %v2191_v47 = vadd.f32 %v2154_v48, %v2023_v21  ;;  %v1879_v49 = vadd.f32 %v1845_v31, %v3998_v62 }
 0x2df   : > { %v2343_v11 = vadd.f32 %v2306_v26, %v2191_v47  ;;  %v1989_v40 = vpop.f32.mrf.mxu2 }
 0x2e0   : > { %v2024_v53 = vadd.f32 %v1989_v40, %v1878_v7 }
 0x2e1   : > { %v2998_v34 = vpop.eup %2997  ;;  %v2379_v36 = vadd.f32 %v4005_v2, %v2343_v11 }
 0x2e2   : > { %2458 = vxpose.xlu1.b32.cont [13/16] (narrow) %v2998_v34, 8 }
 0x2e3   : > { %2999 = vtanh.f32 %v2379_v36  ;;  %v2309_v57 = vpop.f32.mrf.mxu0 }
 0x2e4   : > { %v2157_v28 = vpop.f32.mrf.mxu3 }
 0x2e5   : > { %v2192_v37 = vadd.f32 %v2157_v28, %v2024_v53 }
 0x2e7   : > { %v2344_v10 = vadd.f32 %v2309_v57, %v2192_v37  ;;  %v1991_v52 = vpop.f32.mrf.mxu2 }
 0x2e8   : > { %v2025_v54 = vadd.f32 %v1991_v52, %v1879_v49 }
 0x2e9   : > { %v3000_v61 = vpop.eup %2999  ;;  %v2380_v59 = vadd.f32 %v4005_v2, %v2344_v10 }
 0x2ea   : > { %2459 = vxpose.xlu1.b32.cont [14/16] (narrow) %v3000_v61, 8 }
 0x2eb   : > { %3001 = vtanh.f32 %v2380_v59  ;;  %v2311_v23 = vpop.f32.mrf.mxu0 }
 0x2ec   : > { %v2159_v17 = vpop.f32.mrf.mxu3 }
 0x2ed   : > { %v2193_v0 = vadd.f32 %v2159_v17, %v2025_v54 }
 0x2ef   : > { %v2345_v43 = vadd.f32 %v2311_v23, %v2193_v0 }
 0x2f1   : > { %v3002_v18 = vpop.eup %3001  ;;  %v2381_v14 = vadd.f32 %v4005_v2, %v2345_v43 }
 0x2f2   : > { %2460 = vxpose.xlu1.b32.cont [15/16] (narrow) %v3002_v18, 8 }
 0x2f3   : > { %3003 = vtanh.f32 %v2381_v14 }
 0x2f9   : > { %v3004_v22 = vpop.eup %3003 }
 0x2fa   : > { %2461 = vxpose.xlu1.b32.end [16/16] (narrow) %v3004_v22, 8 }
 0x326   : > { %v2462_v62 = vpop.trf.xlu1 }
 0x327   : > { %v2480_v20 = vrot.slane %v2462_v62, 4 }
 0x329   : > { %v2482_v42 = vsel %vm2481_vm7, %v2430_v27, %v2480_v20 }
 0x32a   : > { %2484 = vst [vmem:[%s170_s7] sm:$0x77] %v2482_v42 }
 0x32b PF: > { %s13_s12 = sadd.s32 1, %s3020_s12  }
 0x32c   : > { %p10_p4 = scmp.ge.s32.totalorder %s13_s12, 6  }
 0x32e   :  { %12 = sbr.rel (!%p10_p4) target bundleno = 1 (0x1), region = 70 }

</bundles_post_ra>
